<compile_context>
chip_gen: v7x
topology: tpu7x:2x2x1
jax: 0.10.0
libtpu: 0.0.40
codegen_flags: <defaults>
</compile_context>

<pallas_src>
import jax
import jax.numpy as jnp
import numpy as np
from jax import lax
from jax.experimental import pallas as pl
from jax.experimental.pallas import tpu as pltpu

LEAKY_SLOPE = 0.01   # nn.LeakyReLU default
BN_EPS = 1e-5        # nn.BatchNorm2d default


# ---------------------------------------------------------------------------
# In-kernel building blocks
# ---------------------------------------------------------------------------
def _leaky(y):
    return jnp.where(y > 0, y, LEAKY_SLOPE * y)


def _conv3x3(scr_ref, a, w_ref, off_ref, col, H, W, relu):
    """3x3 conv (stride 1, pad 1) on a flattened-spatial activation.

    a:       (H*W, Cin) bf16 value (row index = h*W + w)
    scr_ref: (H*W + 2*W + 2, Cin) f32 VMEM shift buffer
    w_ref:   (9, Cin, Cout) bf16 ref, tap index = dh*3 + dw (BN scale folded)
    off_ref: (1, Cout) f32 ref, folded bias/BN offset
    col:     (H*W, 1) int32, w-coordinate of each flattened row
    returns  (H*W, Cout) f32
    """
    HW = H * W
    base = W + 1
    # Zero-padded shift buffer: rows [0, base) and [base+HW, end) stay zero and
    # provide the h-direction zero padding for free.
    scr_ref[...] = jnp.zeros(scr_ref.shape, scr_ref.dtype)
    scr_ref[pl.ds(base, HW), :] = a.astype(scr_ref.dtype)
    acc = None
    for dh in range(3):
        for dw in range(3):
            shift = (dh - 1) * W + (dw - 1)
            at = scr_ref[pl.ds(base + shift, HW), :]
            # w-direction boundary handling (left / right column taps)
            if dw == 0:
                at = jnp.where(col >= 1, at, jnp.zeros_like(at))
            elif dw == 2:
                at = jnp.where(col < W - 1, at, jnp.zeros_like(at))
            t = jnp.dot(at.astype(jnp.bfloat16), w_ref[dh * 3 + dw],
                        preferred_element_type=jnp.float32)
            acc = t if acc is None else acc + t
    y = acc + off_ref[...]
    return _leaky(y) if relu else y


# ---------------------------------------------------------------------------
# Fused group kernel (lead conv + ResBlk(s) + optional maxpool)
# ---------------------------------------------------------------------------
def _const_spec(shape):
    zeros = (0,) * len(shape)
    return pl.BlockSpec(shape, lambda n: zeros)


def _make_pool_select(H, W):
    """(4, Ho*Wo, H*W) 0/1 matrices so that MaxPool2d(2,2) = max_t (S[t] @ x)."""
    Ho, Wo = H // 2, W // 2
    S = np.zeros((4, Ho * Wo, H * W), np.float32)
    for ho in range(Ho):
        for wo in range(Wo):
            o = ho * Wo + wo
            for t, (dh, dw) in enumerate(((0, 0), (0, 1), (1, 0), (1, 1))):
                S[t, o, (2 * ho + dh) * W + (2 * wo + dw)] = 1.0
    return jnp.asarray(S, jnp.bfloat16)


def group_forward(x, H, W, stages, pool):
    """Run one fused Group as a single pallas_call.

    x:      (N, H*W, Cin) bf16 activations (flattened spatial, channels-last)
    stages: list of ("conv", p) / ("resblk", p) parameter dicts
    pool:   apply fused MaxPool2d(2,2) at the end
    Returns (out, H', W') with out of shape (N, H'*W', Cout) bf16.
    """
    N, HW, Cin = x.shape
    assert HW == H * W

    arrays = [x]
    in_specs = [pl.BlockSpec((1, HW, Cin), lambda n: (n, 0, 0))]
    scratch_shapes = []
    plan = []
    c_out = Cin
    for kind, p in stages:
        if kind == "conv":
            arrays += [p["w"], p["off"]]
            in_specs += [_const_spec(p["w"].shape), _const_spec(p["off"].shape)]
            scratch_shapes.append(
                pltpu.VMEM((HW + 2 * W + 2, p["w"].shape[1]), jnp.float32))
            plan.append(("conv", False))
            c_out = p["w"].shape[2]
        else:  # resblk
            has_extra = "extra" in p
            for cp in (p["conv1"], p["conv2"]):
                arrays += [cp["w"], cp["off"]]
                in_specs += [_const_spec(cp["w"].shape),
                             _const_spec(cp["off"].shape)]
                scratch_shapes.append(
                    pltpu.VMEM((HW + 2 * W + 2, cp["w"].shape[1]), jnp.float32))
            if has_extra:
                arrays += [p["extra"]["w"], p["extra"]["off"]]
                in_specs += [_const_spec(p["extra"]["w"].shape),
                             _const_spec(p["extra"]["off"].shape)]
            plan.append(("resblk", has_extra))
            c_out = p["conv2"]["w"].shape[2]

    if pool:
        S = _make_pool_select(H, W)
        arrays.append(S)
        in_specs.append(_const_spec(S.shape))
        HWo = (H // 2) * (W // 2)
    else:
        HWo = HW
    n_scr = len(scratch_shapes)

    def kernel(*refs):
        it = iter(refs)
        x_ref = next(it)
        stage_refs = []
        for kind, has_extra in plan:
            if kind == "conv":
                stage_refs.append([next(it), next(it)])
            else:
                r = [next(it), next(it), next(it), next(it)]
                if has_extra:
                    r += [next(it), next(it)]
                stage_refs.append(r)
        s_ref = next(it) if pool else None
        o_ref = next(it)
        scr = [next(it) for _ in range(n_scr)]

        col = lax.broadcasted_iota(jnp.int32, (HW, 1), 0) % W
        a = x_ref[0]                       # (HW, Cin) bf16
        si = 0
        y = None
        for (kind, has_extra), sr in zip(plan, stage_refs):
            if kind == "conv":
                # Group_1 lead conv: conv + (dropout=id), no BN, no activation.
                y = _conv3x3(scr[si], a, sr[0], sr[1], col, H, W, relu=False)
                si += 1
            else:
                # model1: conv -> (dropout=id) -> BN -> LeakyReLU
                y1 = _conv3x3(scr[si], a, sr[0], sr[1], col, H, W, relu=True)
                si += 1
                # model2: conv -> (dropout=id) -> BN
                y2 = _conv3x3(scr[si], y1.astype(jnp.bfloat16), sr[2], sr[3],
                              col, H, W, relu=False)
                si += 1
                if has_extra:              # fused 1x1 projection + BN
                    res = jnp.dot(a, sr[4][...],
                                  preferred_element_type=jnp.float32) + sr[5][...]
                else:
                    res = a.astype(jnp.float32)
                y = _leaky(y2 + res)
            a = y.astype(jnp.bfloat16)

        if pool:                            # fused MaxPool2d(2, 2)
            out = None
            for t in range(4):
                sel = jnp.dot(s_ref[t], a, preferred_element_type=jnp.float32)
                out = sel if out is None else jnp.maximum(out, sel)
            o_ref[0, :, :] = out.astype(o_ref.dtype)
        else:
            o_ref[0, :, :] = y.astype(o_ref.dtype)

    out = pl.pallas_call(
        kernel,
        grid=(N,),
        in_specs=in_specs,
        out_specs=pl.BlockSpec((1, HWo, c_out), lambda n: (n, 0, 0)),
        out_shape=jax.ShapeDtypeStruct((N, HWo, c_out), jnp.bfloat16),
        scratch_shapes=scratch_shapes,
        compiler_params=pltpu.CompilerParams(dimension_semantics=("parallel",)),
    )(*arrays)
    if pool:
        return out, H // 2, W // 2
    return out, H, W


# ---------------------------------------------------------------------------
# Parameters (deterministic PyTorch-default-style init; BN folded into weights)
# ---------------------------------------------------------------------------
def make_conv_params(key, cin, cout, ksize, with_bn):
    k1, k2 = jax.random.split(key)
    fan_in = cin * ksize * ksize
    bound = 1.0 / np.sqrt(fan_in)
    w = jax.random.uniform(k1, (ksize, ksize, cin, cout), jnp.float32, -bound, bound)
    b = jax.random.uniform(k2, (cout,), jnp.float32, -bound, bound)
    if with_bn:
        gamma = jnp.ones((cout,), jnp.float32)
        beta = jnp.zeros((cout,), jnp.float32)
        r_mean = jnp.zeros((cout,), jnp.float32)
        r_var = jnp.ones((cout,), jnp.float32)
        s = gamma / jnp.sqrt(r_var + BN_EPS)
        offset = (b - r_mean) * s + beta
    else:
        s = jnp.ones((cout,), jnp.float32)
        offset = b
    w_folded = (w * s).astype(jnp.bfloat16)        # fold BN scale into weights
    if ksize == 3:
        w_folded = w_folded.reshape(9, cin, cout)  # tap = dh*3 + dw
    else:
        w_folded = w_folded.reshape(cin, cout)
    return {"w": w_folded, "off": offset.reshape(1, cout).astype(jnp.float32)}


def init_resblk(key, cin, cout):
    k1, k2, k3 = jax.random.split(key, 3)
    p = {"conv1": make_conv_params(k1, cin, cout, 3, True),
         "conv2": make_conv_params(k2, cout, cout, 3, True)}
    if cin != cout:
        p["extra"] = make_conv_params(k3, cin, cout, 1, True)
    return p


def init_network(key, channels):
    ks = jax.random.split(key, 12)
    return {
        "g1": [("conv", make_conv_params(ks[0], channels, 16, 3, False)),
               ("resblk", init_resblk(ks[1], 16, 16))],
        "g2": [("resblk", init_resblk(ks[2], 16, 32))],
        "g3": [("resblk", init_resblk(ks[3], 32, 64)),
               ("resblk", init_resblk(ks[4], 64, 64))],
        "g4": [("resblk", init_resblk(ks[5], 64, 128)),
               ("resblk", init_resblk(ks[6], 128, 128))],
        "g5": [("resblk", init_resblk(ks[7], 128, 256)),
               ("resblk", init_resblk(ks[8], 256, 256))],
        "g6": [("resblk", init_resblk(ks[9], 256, 256)),
               ("resblk", init_resblk(ks[10], 256, 256))],
    }


# ---------------------------------------------------------------------------
# Network forward
# ---------------------------------------------------------------------------
def create_mr_network(mr_nchw, params):
    N, C, H, W = mr_nchw.shape
    # NCHW -> flattened channels-last (N, H*W, C), bf16 for MXU + HBM traffic.
    x = jnp.transpose(mr_nchw, (0, 2, 3, 1)).reshape(N, H * W, C).astype(jnp.bfloat16)
    h, w = H, W
    x, h, w = group_forward(x, h, w, params["g1"], pool=True)
    x, h, w = group_forward(x, h, w, params["g2"], pool=True)
    x, h, w = group_forward(x, h, w, params["g3"], pool=True)
    x, h, w = group_forward(x, h, w, params["g4"], pool=False)
    gx4 = x
    x, h, w = group_forward(x, h, w, params["g5"], pool=False)
    x, h, w = group_forward(x, h, w, params["g6"], pool=False)
    gx6 = x

    def to_nchw(t):
        n, hw, c = t.shape
        return jnp.transpose(t.reshape(n, h, w, c).astype(jnp.float32),
                             (0, 3, 1, 2))

    return to_nchw(gx4), to_nchw(gx6)


if __name__ == "__main__":
    key = jax.random.PRNGKey(0)
    kx, kp = jax.random.split(key)

    channels, N, H, W = 4, 2, 16, 16
    mr = jax.random.normal(kx, (N, channels, H, W), jnp.float32)   # NCHW input
    params = init_network(kp, channels)

    gx4, gx6 = create_mr_network(mr, params)
    jax.block_until_ready((gx4, gx6))

    assert gx4.shape == (N, 128, H // 8, W // 8), gx4.shape
    assert gx6.shape == (N, 256, H // 8, W // 8), gx6.shape
    assert bool(jnp.all(jnp.isfinite(gx4))) and bool(jnp.all(jnp.isfinite(gx6)))
    print("KERNEL_OK")
</pallas_src>

<mosaic_0001>
module attributes {stable_mosaic.version = 11 : i64} {
  func.func @kernel(%arg0: i32, %arg1: memref<1x256x4xbf16, #tpu.memory_space<vmem>>, %arg2: memref<9x4x16xbf16, #tpu.memory_space<vmem>>, %arg3: memref<1x16xf32, #tpu.memory_space<vmem>>, %arg4: memref<9x16x16xbf16, #tpu.memory_space<vmem>>, %arg5: memref<1x16xf32, #tpu.memory_space<vmem>>, %arg6: memref<9x16x16xbf16, #tpu.memory_space<vmem>>, %arg7: memref<1x16xf32, #tpu.memory_space<vmem>>, %arg8: memref<4x64x256xbf16, #tpu.memory_space<vmem>>, %arg9: memref<1x64x16xbf16, #tpu.memory_space<vmem>>, %arg10: memref<290x4xf32, #tpu.memory_space<vmem>>, %arg11: memref<290x16xf32, #tpu.memory_space<vmem>>, %arg12: memref<290x16xf32, #tpu.memory_space<vmem>>) attributes {dimension_semantics = [#tpu.dimension_semantics<parallel>], iteration_bounds = array<i64: 2>, scalar_prefetch = 0 : i64, scratch_operands = 3 : i64, tpu.core_type = #tpu.core_type<tc>, window_params = [{transform_indices = @transform_0, window_bounds = array<i64: 1, 256, 4>}, {pipeline_mode = #tpu.pipeline_mode<synchronous>, transform_indices = @transform_1, window_bounds = array<i64: 9, 4, 16>}, {pipeline_mode = #tpu.pipeline_mode<synchronous>, transform_indices = @transform_2, window_bounds = array<i64: 1, 16>}, {pipeline_mode = #tpu.pipeline_mode<synchronous>, transform_indices = @transform_3, window_bounds = array<i64: 9, 16, 16>}, {pipeline_mode = #tpu.pipeline_mode<synchronous>, transform_indices = @transform_4, window_bounds = array<i64: 1, 16>}, {pipeline_mode = #tpu.pipeline_mode<synchronous>, transform_indices = @transform_5, window_bounds = array<i64: 9, 16, 16>}, {pipeline_mode = #tpu.pipeline_mode<synchronous>, transform_indices = @transform_6, window_bounds = array<i64: 1, 16>}, {pipeline_mode = #tpu.pipeline_mode<synchronous>, transform_indices = @transform_7, window_bounds = array<i64: 4, 64, 256>}, {transform_indices = @transform_8, window_bounds = array<i64: 1, 64, 16>}]} {
    %0 = tpu.iota {dimensions = array<i32: 0>} : vector<256x1xi32>
    %c16_i32 = arith.constant 16 : i32
    %c0_i32 = arith.constant 0 : i32
    %1 = arith.cmpi eq, %c16_i32, %c0_i32 : i32
    %c1_i32 = arith.constant 1 : i32
    %2 = arith.select %1, %c1_i32, %c16_i32 : i32
    %3 = vector.broadcast %2 : i32 to vector<256x1xi32>
    %4 = arith.remsi %0, %3 : vector<256x1xi32>
    %c0_i32_0 = arith.constant 0 : i32
    %5 = vector.broadcast %c0_i32_0 : i32 to vector<256x1xi32>
    %6 = arith.cmpi ne, %4, %5 : vector<256x1xi32>
    %c0_i32_1 = arith.constant 0 : i32
    %7 = vector.broadcast %c0_i32_1 : i32 to vector<256x1xi32>
    %8 = arith.cmpi slt, %4, %7 : vector<256x1xi32>
    %c0_i32_2 = arith.constant 0 : i32
    %9 = arith.cmpi slt, %2, %c0_i32_2 : i32
    %10 = vector.broadcast %9 : i1 to vector<256x1xi1>
    %11 = vector.broadcast %10 : vector<256x1xi1> to vector<256x1xi1>
    %12 = arith.xori %8, %11 : vector<256x1xi1>
    %13 = arith.andi %12, %6 : vector<256x1xi1>
    %14 = vector.broadcast %2 : i32 to vector<256x1xi32>
    %15 = arith.addi %4, %14 : vector<256x1xi32>
    %16 = arith.select %13, %15, %4 : vector<256x1xi1>, vector<256x1xi32>
    %c0 = arith.constant 0 : index
    %c0_3 = arith.constant 0 : index
    %c0_4 = arith.constant 0 : index
    %17 = vector.load %arg1[%c0, %c0_3, %c0_4] : memref<1x256x4xbf16, #tpu.memory_space<vmem>>, vector<1x256x4xbf16>
    %18 = vector.shape_cast %17 : vector<1x256x4xbf16> to vector<256x4xbf16>
    %cst = arith.constant 0.000000e+00 : f32
    %19 = vector.broadcast %cst : f32 to vector<290x4xf32>
    %c0_5 = arith.constant 0 : index
    %c0_6 = arith.constant 0 : index
    %20 = vector.load %arg10[%c0_5, %c0_6] : memref<290x4xf32, #tpu.memory_space<vmem>>, vector<290x4xf32>
    tpu.vector_store %arg10[%c0_5, %c0_6], %19 {strides = array<i32>} : memref<290x4xf32, #tpu.memory_space<vmem>>, vector<290x4xf32>,
    %21 = arith.extf %18 : vector<256x4xbf16> to vector<256x4xf32>
    %c17 = arith.constant 17 : index
    %c0_7 = arith.constant 0 : index
    %22 = vector.load %arg10[%c17, %c0_7] : memref<290x4xf32, #tpu.memory_space<vmem>>, vector<256x4xf32>
    tpu.vector_store %arg10[%c17, %c0_7], %21 {strides = array<i32>} : memref<290x4xf32, #tpu.memory_space<vmem>>, vector<256x4xf32>,
    %c0_8 = arith.constant 0 : index
    %c0_9 = arith.constant 0 : index
    %23 = vector.load %arg10[%c0_8, %c0_9] : memref<290x4xf32, #tpu.memory_space<vmem>>, vector<256x4xf32>
    %c1_i32_10 = arith.constant 1 : i32
    %24 = vector.broadcast %c1_i32_10 : i32 to vector<256x1xi32>
    %25 = arith.cmpi sge, %16, %24 : vector<256x1xi32>
    %cst_11 = arith.constant 0.000000e+00 : f32
    %26 = vector.broadcast %cst_11 : f32 to vector<256x4xf32>
    %27 = vector.shape_cast %25 : vector<256x1xi1> to vector<256x1xi1>
    %28 = vector.broadcast %27 : vector<256x1xi1> to vector<256x4xi1>
    %29 = arith.select %28, %23, %26 : vector<256x4xi1>, vector<256x4xf32>
    %30 = arith.truncf %29 : vector<256x4xf32> to vector<256x4xbf16>
    %c0_12 = arith.constant 0 : index
    %c0_13 = arith.constant 0 : index
    %c0_14 = arith.constant 0 : index
    %31 = vector.load %arg2[%c0_12, %c0_13, %c0_14] : memref<9x4x16xbf16, #tpu.memory_space<vmem>>, vector<1x4x16xbf16>
    %32 = vector.shape_cast %31 : vector<1x4x16xbf16> to vector<4x16xbf16>
    %cst_15 = arith.constant dense<0.000000e+00> : vector<256x16xf32>
    %33 = tpu.matmul %30, %32, %cst_15 {dimension_numbers = #tpu.dot_dimension_numbers<[1], [0], [0], [1], [0, 0, 1, 1], [], []>} : vector<256x4xbf16>, vector<4x16xbf16>, vector<256x16xf32> -> vector<256x16xf32>
    %c1 = arith.constant 1 : index
    %c0_16 = arith.constant 0 : index
    %34 = vector.load %arg10[%c1, %c0_16] : memref<290x4xf32, #tpu.memory_space<vmem>>, vector<256x4xf32>
    %35 = arith.truncf %34 : vector<256x4xf32> to vector<256x4xbf16>
    %c1_17 = arith.constant 1 : index
    %c0_18 = arith.constant 0 : index
    %c0_19 = arith.constant 0 : index
    %36 = vector.load %arg2[%c1_17, %c0_18, %c0_19] : memref<9x4x16xbf16, #tpu.memory_space<vmem>>, vector<1x4x16xbf16>
    %37 = vector.shape_cast %36 : vector<1x4x16xbf16> to vector<4x16xbf16>
    %cst_20 = arith.constant dense<0.000000e+00> : vector<256x16xf32>
    %38 = tpu.matmul %35, %37, %cst_20 {dimension_numbers = #tpu.dot_dimension_numbers<[1], [0], [0], [1], [0, 0, 1, 1], [], []>} : vector<256x4xbf16>, vector<4x16xbf16>, vector<256x16xf32> -> vector<256x16xf32>
    %39 = arith.addf %33, %38 : vector<256x16xf32>
    %c2 = arith.constant 2 : index
    %c0_21 = arith.constant 0 : index
    %40 = vector.load %arg10[%c2, %c0_21] : memref<290x4xf32, #tpu.memory_space<vmem>>, vector<256x4xf32>
    %c15_i32 = arith.constant 15 : i32
    %41 = vector.broadcast %c15_i32 : i32 to vector<256x1xi32>
    %42 = arith.cmpi slt, %16, %41 : vector<256x1xi32>
    %cst_22 = arith.constant 0.000000e+00 : f32
    %43 = vector.broadcast %cst_22 : f32 to vector<256x4xf32>
    %44 = vector.shape_cast %42 : vector<256x1xi1> to vector<256x1xi1>
    %45 = vector.broadcast %44 : vector<256x1xi1> to vector<256x4xi1>
    %46 = arith.select %45, %40, %43 : vector<256x4xi1>, vector<256x4xf32>
    %47 = arith.truncf %46 : vector<256x4xf32> to vector<256x4xbf16>
    %c2_23 = arith.constant 2 : index
    %c0_24 = arith.constant 0 : index
    %c0_25 = arith.constant 0 : index
    %48 = vector.load %arg2[%c2_23, %c0_24, %c0_25] : memref<9x4x16xbf16, #tpu.memory_space<vmem>>, vector<1x4x16xbf16>
    %49 = vector.shape_cast %48 : vector<1x4x16xbf16> to vector<4x16xbf16>
    %cst_26 = arith.constant dense<0.000000e+00> : vector<256x16xf32>
    %50 = tpu.matmul %47, %49, %cst_26 {dimension_numbers = #tpu.dot_dimension_numbers<[1], [0], [0], [1], [0, 0, 1, 1], [], []>} : vector<256x4xbf16>, vector<4x16xbf16>, vector<256x16xf32> -> vector<256x16xf32>
    %51 = arith.addf %39, %50 : vector<256x16xf32>
    %c16 = arith.constant 16 : index
    %c0_27 = arith.constant 0 : index
    %52 = vector.load %arg10[%c16, %c0_27] : memref<290x4xf32, #tpu.memory_space<vmem>>, vector<256x4xf32>
    %c1_i32_28 = arith.constant 1 : i32
    %53 = vector.broadcast %c1_i32_28 : i32 to vector<256x1xi32>
    %54 = arith.cmpi sge, %16, %53 : vector<256x1xi32>
    %cst_29 = arith.constant 0.000000e+00 : f32
    %55 = vector.broadcast %cst_29 : f32 to vector<256x4xf32>
    %56 = vector.shape_cast %54 : vector<256x1xi1> to vector<256x1xi1>
    %57 = vector.broadcast %56 : vector<256x1xi1> to vector<256x4xi1>
    %58 = arith.select %57, %52, %55 : vector<256x4xi1>, vector<256x4xf32>
    %59 = arith.truncf %58 : vector<256x4xf32> to vector<256x4xbf16>
    %c3 = arith.constant 3 : index
    %c0_30 = arith.constant 0 : index
    %c0_31 = arith.constant 0 : index
    %60 = vector.load %arg2[%c3, %c0_30, %c0_31] : memref<9x4x16xbf16, #tpu.memory_space<vmem>>, vector<1x4x16xbf16>
    %61 = vector.shape_cast %60 : vector<1x4x16xbf16> to vector<4x16xbf16>
    %cst_32 = arith.constant dense<0.000000e+00> : vector<256x16xf32>
    %62 = tpu.matmul %59, %61, %cst_32 {dimension_numbers = #tpu.dot_dimension_numbers<[1], [0], [0], [1], [0, 0, 1, 1], [], []>} : vector<256x4xbf16>, vector<4x16xbf16>, vector<256x16xf32> -> vector<256x16xf32>
    %63 = arith.addf %51, %62 : vector<256x16xf32>
    %c17_33 = arith.constant 17 : index
    %c0_34 = arith.constant 0 : index
    %64 = vector.load %arg10[%c17_33, %c0_34] : memref<290x4xf32, #tpu.memory_space<vmem>>, vector<256x4xf32>
    %65 = arith.truncf %64 : vector<256x4xf32> to vector<256x4xbf16>
    %c4 = arith.constant 4 : index
    %c0_35 = arith.constant 0 : index
    %c0_36 = arith.constant 0 : index
    %66 = vector.load %arg2[%c4, %c0_35, %c0_36] : memref<9x4x16xbf16, #tpu.memory_space<vmem>>, vector<1x4x16xbf16>
    %67 = vector.shape_cast %66 : vector<1x4x16xbf16> to vector<4x16xbf16>
    %cst_37 = arith.constant dense<0.000000e+00> : vector<256x16xf32>
    %68 = tpu.matmul %65, %67, %cst_37 {dimension_numbers = #tpu.dot_dimension_numbers<[1], [0], [0], [1], [0, 0, 1, 1], [], []>} : vector<256x4xbf16>, vector<4x16xbf16>, vector<256x16xf32> -> vector<256x16xf32>
    %69 = arith.addf %63, %68 : vector<256x16xf32>
    %c18 = arith.constant 18 : index
    %c0_38 = arith.constant 0 : index
    %70 = vector.load %arg10[%c18, %c0_38] : memref<290x4xf32, #tpu.memory_space<vmem>>, vector<256x4xf32>
    %c15_i32_39 = arith.constant 15 : i32
    %71 = vector.broadcast %c15_i32_39 : i32 to vector<256x1xi32>
    %72 = arith.cmpi slt, %16, %71 : vector<256x1xi32>
    %cst_40 = arith.constant 0.000000e+00 : f32
    %73 = vector.broadcast %cst_40 : f32 to vector<256x4xf32>
    %74 = vector.shape_cast %72 : vector<256x1xi1> to vector<256x1xi1>
    %75 = vector.broadcast %74 : vector<256x1xi1> to vector<256x4xi1>
    %76 = arith.select %75, %70, %73 : vector<256x4xi1>, vector<256x4xf32>
    %77 = arith.truncf %76 : vector<256x4xf32> to vector<256x4xbf16>
    %c5 = arith.constant 5 : index
    %c0_41 = arith.constant 0 : index
    %c0_42 = arith.constant 0 : index
    %78 = vector.load %arg2[%c5, %c0_41, %c0_42] : memref<9x4x16xbf16, #tpu.memory_space<vmem>>, vector<1x4x16xbf16>
    %79 = vector.shape_cast %78 : vector<1x4x16xbf16> to vector<4x16xbf16>
    %cst_43 = arith.constant dense<0.000000e+00> : vector<256x16xf32>
    %80 = tpu.matmul %77, %79, %cst_43 {dimension_numbers = #tpu.dot_dimension_numbers<[1], [0], [0], [1], [0, 0, 1, 1], [], []>} : vector<256x4xbf16>, vector<4x16xbf16>, vector<256x16xf32> -> vector<256x16xf32>
    %81 = arith.addf %69, %80 : vector<256x16xf32>
    %c32 = arith.constant 32 : index
    %c0_44 = arith.constant 0 : index
    %82 = vector.load %arg10[%c32, %c0_44] : memref<290x4xf32, #tpu.memory_space<vmem>>, vector<256x4xf32>
    %c1_i32_45 = arith.constant 1 : i32
    %83 = vector.broadcast %c1_i32_45 : i32 to vector<256x1xi32>
    %84 = arith.cmpi sge, %16, %83 : vector<256x1xi32>
    %cst_46 = arith.constant 0.000000e+00 : f32
    %85 = vector.broadcast %cst_46 : f32 to vector<256x4xf32>
    %86 = vector.shape_cast %84 : vector<256x1xi1> to vector<256x1xi1>
    %87 = vector.broadcast %86 : vector<256x1xi1> to vector<256x4xi1>
    %88 = arith.select %87, %82, %85 : vector<256x4xi1>, vector<256x4xf32>
    %89 = arith.truncf %88 : vector<256x4xf32> to vector<256x4xbf16>
    %c6 = arith.constant 6 : index
    %c0_47 = arith.constant 0 : index
    %c0_48 = arith.constant 0 : index
    %90 = vector.load %arg2[%c6, %c0_47, %c0_48] : memref<9x4x16xbf16, #tpu.memory_space<vmem>>, vector<1x4x16xbf16>
    %91 = vector.shape_cast %90 : vector<1x4x16xbf16> to vector<4x16xbf16>
    %cst_49 = arith.constant dense<0.000000e+00> : vector<256x16xf32>
    %92 = tpu.matmul %89, %91, %cst_49 {dimension_numbers = #tpu.dot_dimension_numbers<[1], [0], [0], [1], [0, 0, 1, 1], [], []>} : vector<256x4xbf16>, vector<4x16xbf16>, vector<256x16xf32> -> vector<256x16xf32>
    %93 = arith.addf %81, %92 : vector<256x16xf32>
    %c33 = arith.constant 33 : index
    %c0_50 = arith.constant 0 : index
    %94 = vector.load %arg10[%c33, %c0_50] : memref<290x4xf32, #tpu.memory_space<vmem>>, vector<256x4xf32>
    %95 = arith.truncf %94 : vector<256x4xf32> to vector<256x4xbf16>
    %c7 = arith.constant 7 : index
    %c0_51 = arith.constant 0 : index
    %c0_52 = arith.constant 0 : index
    %96 = vector.load %arg2[%c7, %c0_51, %c0_52] : memref<9x4x16xbf16, #tpu.memory_space<vmem>>, vector<1x4x16xbf16>
    %97 = vector.shape_cast %96 : vector<1x4x16xbf16> to vector<4x16xbf16>
    %cst_53 = arith.constant dense<0.000000e+00> : vector<256x16xf32>
    %98 = tpu.matmul %95, %97, %cst_53 {dimension_numbers = #tpu.dot_dimension_numbers<[1], [0], [0], [1], [0, 0, 1, 1], [], []>} : vector<256x4xbf16>, vector<4x16xbf16>, vector<256x16xf32> -> vector<256x16xf32>
    %99 = arith.addf %93, %98 : vector<256x16xf32>
    %c34 = arith.constant 34 : index
    %c0_54 = arith.constant 0 : index
    %100 = vector.load %arg10[%c34, %c0_54] : memref<290x4xf32, #tpu.memory_space<vmem>>, vector<256x4xf32>
    %c15_i32_55 = arith.constant 15 : i32
    %101 = vector.broadcast %c15_i32_55 : i32 to vector<256x1xi32>
    %102 = arith.cmpi slt, %16, %101 : vector<256x1xi32>
    %cst_56 = arith.constant 0.000000e+00 : f32
    %103 = vector.broadcast %cst_56 : f32 to vector<256x4xf32>
    %104 = vector.shape_cast %102 : vector<256x1xi1> to vector<256x1xi1>
    %105 = vector.broadcast %104 : vector<256x1xi1> to vector<256x4xi1>
    %106 = arith.select %105, %100, %103 : vector<256x4xi1>, vector<256x4xf32>
    %107 = arith.truncf %106 : vector<256x4xf32> to vector<256x4xbf16>
    %c8 = arith.constant 8 : index
    %c0_57 = arith.constant 0 : index
    %c0_58 = arith.constant 0 : index
    %108 = vector.load %arg2[%c8, %c0_57, %c0_58] : memref<9x4x16xbf16, #tpu.memory_space<vmem>>, vector<1x4x16xbf16>
    %109 = vector.shape_cast %108 : vector<1x4x16xbf16> to vector<4x16xbf16>
    %cst_59 = arith.constant dense<0.000000e+00> : vector<256x16xf32>
    %110 = tpu.matmul %107, %109, %cst_59 {dimension_numbers = #tpu.dot_dimension_numbers<[1], [0], [0], [1], [0, 0, 1, 1], [], []>} : vector<256x4xbf16>, vector<4x16xbf16>, vector<256x16xf32> -> vector<256x16xf32>
    %111 = arith.addf %99, %110 : vector<256x16xf32>
    %c0_60 = arith.constant 0 : index
    %c0_61 = arith.constant 0 : index
    %112 = vector.load %arg3[%c0_60, %c0_61] : memref<1x16xf32, #tpu.memory_space<vmem>>, vector<1x16xf32>
    %113 = vector.broadcast %112 : vector<1x16xf32> to vector<256x16xf32>
    %114 = arith.addf %111, %113 : vector<256x16xf32>
    %115 = arith.truncf %114 : vector<256x16xf32> to vector<256x16xbf16>
    %cst_62 = arith.constant 0.000000e+00 : f32
    %116 = vector.broadcast %cst_62 : f32 to vector<290x16xf32>
    %c0_63 = arith.constant 0 : index
    %c0_64 = arith.constant 0 : index
    %117 = vector.load %arg11[%c0_63, %c0_64] : memref<290x16xf32, #tpu.memory_space<vmem>>, vector<290x16xf32>
    tpu.vector_store %arg11[%c0_63, %c0_64], %116 {strides = array<i32>} : memref<290x16xf32, #tpu.memory_space<vmem>>, vector<290x16xf32>,
    %118 = arith.extf %115 : vector<256x16xbf16> to vector<256x16xf32>
    %c17_65 = arith.constant 17 : index
    %c0_66 = arith.constant 0 : index
    %119 = vector.load %arg11[%c17_65, %c0_66] : memref<290x16xf32, #tpu.memory_space<vmem>>, vector<256x16xf32>
    tpu.vector_store %arg11[%c17_65, %c0_66], %118 {strides = array<i32>} : memref<290x16xf32, #tpu.memory_space<vmem>>, vector<256x16xf32>,
    %c0_67 = arith.constant 0 : index
    %c0_68 = arith.constant 0 : index
    %120 = vector.load %arg11[%c0_67, %c0_68] : memref<290x16xf32, #tpu.memory_space<vmem>>, vector<256x16xf32>
    %c1_i32_69 = arith.constant 1 : i32
    %121 = vector.broadcast %c1_i32_69 : i32 to vector<256x1xi32>
    %122 = arith.cmpi sge, %16, %121 : vector<256x1xi32>
    %cst_70 = arith.constant 0.000000e+00 : f32
    %123 = vector.broadcast %cst_70 : f32 to vector<256x16xf32>
    %124 = vector.shape_cast %122 : vector<256x1xi1> to vector<256x1xi1>
    %125 = vector.broadcast %124 : vector<256x1xi1> to vector<256x16xi1>
    %126 = arith.select %125, %120, %123 : vector<256x16xi1>, vector<256x16xf32>
    %127 = arith.truncf %126 : vector<256x16xf32> to vector<256x16xbf16>
    %c0_71 = arith.constant 0 : index
    %c0_72 = arith.constant 0 : index
    %c0_73 = arith.constant 0 : index
    %128 = vector.load %arg4[%c0_71, %c0_72, %c0_73] : memref<9x16x16xbf16, #tpu.memory_space<vmem>>, vector<1x16x16xbf16>
    %129 = vector.shape_cast %128 : vector<1x16x16xbf16> to vector<16x16xbf16>
    %cst_74 = arith.constant dense<0.000000e+00> : vector<256x16xf32>
    %130 = tpu.matmul %127, %129, %cst_74 {dimension_numbers = #tpu.dot_dimension_numbers<[1], [0], [0], [1], [0, 0, 1, 1], [], []>} : vector<256x16xbf16>, vector<16x16xbf16>, vector<256x16xf32> -> vector<256x16xf32>
    %c1_75 = arith.constant 1 : index
    %c0_76 = arith.constant 0 : index
    %131 = vector.load %arg11[%c1_75, %c0_76] : memref<290x16xf32, #tpu.memory_space<vmem>>, vector<256x16xf32>
    %132 = arith.truncf %131 : vector<256x16xf32> to vector<256x16xbf16>
    %c1_77 = arith.constant 1 : index
    %c0_78 = arith.constant 0 : index
    %c0_79 = arith.constant 0 : index
    %133 = vector.load %arg4[%c1_77, %c0_78, %c0_79] : memref<9x16x16xbf16, #tpu.memory_space<vmem>>, vector<1x16x16xbf16>
    %134 = vector.shape_cast %133 : vector<1x16x16xbf16> to vector<16x16xbf16>
    %cst_80 = arith.constant dense<0.000000e+00> : vector<256x16xf32>
    %135 = tpu.matmul %132, %134, %cst_80 {dimension_numbers = #tpu.dot_dimension_numbers<[1], [0], [0], [1], [0, 0, 1, 1], [], []>} : vector<256x16xbf16>, vector<16x16xbf16>, vector<256x16xf32> -> vector<256x16xf32>
    %136 = arith.addf %130, %135 : vector<256x16xf32>
    %c2_81 = arith.constant 2 : index
    %c0_82 = arith.constant 0 : index
    %137 = vector.load %arg11[%c2_81, %c0_82] : memref<290x16xf32, #tpu.memory_space<vmem>>, vector<256x16xf32>
    %c15_i32_83 = arith.constant 15 : i32
    %138 = vector.broadcast %c15_i32_83 : i32 to vector<256x1xi32>
    %139 = arith.cmpi slt, %16, %138 : vector<256x1xi32>
    %cst_84 = arith.constant 0.000000e+00 : f32
    %140 = vector.broadcast %cst_84 : f32 to vector<256x16xf32>
    %141 = vector.shape_cast %139 : vector<256x1xi1> to vector<256x1xi1>
    %142 = vector.broadcast %141 : vector<256x1xi1> to vector<256x16xi1>
    %143 = arith.select %142, %137, %140 : vector<256x16xi1>, vector<256x16xf32>
    %144 = arith.truncf %143 : vector<256x16xf32> to vector<256x16xbf16>
    %c2_85 = arith.constant 2 : index
    %c0_86 = arith.constant 0 : index
    %c0_87 = arith.constant 0 : index
    %145 = vector.load %arg4[%c2_85, %c0_86, %c0_87] : memref<9x16x16xbf16, #tpu.memory_space<vmem>>, vector<1x16x16xbf16>
    %146 = vector.shape_cast %145 : vector<1x16x16xbf16> to vector<16x16xbf16>
    %cst_88 = arith.constant dense<0.000000e+00> : vector<256x16xf32>
    %147 = tpu.matmul %144, %146, %cst_88 {dimension_numbers = #tpu.dot_dimension_numbers<[1], [0], [0], [1], [0, 0, 1, 1], [], []>} : vector<256x16xbf16>, vector<16x16xbf16>, vector<256x16xf32> -> vector<256x16xf32>
    %148 = arith.addf %136, %147 : vector<256x16xf32>
    %c16_89 = arith.constant 16 : index
    %c0_90 = arith.constant 0 : index
    %149 = vector.load %arg11[%c16_89, %c0_90] : memref<290x16xf32, #tpu.memory_space<vmem>>, vector<256x16xf32>
    %c1_i32_91 = arith.constant 1 : i32
    %150 = vector.broadcast %c1_i32_91 : i32 to vector<256x1xi32>
    %151 = arith.cmpi sge, %16, %150 : vector<256x1xi32>
    %cst_92 = arith.constant 0.000000e+00 : f32
    %152 = vector.broadcast %cst_92 : f32 to vector<256x16xf32>
    %153 = vector.shape_cast %151 : vector<256x1xi1> to vector<256x1xi1>
    %154 = vector.broadcast %153 : vector<256x1xi1> to vector<256x16xi1>
    %155 = arith.select %154, %149, %152 : vector<256x16xi1>, vector<256x16xf32>
    %156 = arith.truncf %155 : vector<256x16xf32> to vector<256x16xbf16>
    %c3_93 = arith.constant 3 : index
    %c0_94 = arith.constant 0 : index
    %c0_95 = arith.constant 0 : index
    %157 = vector.load %arg4[%c3_93, %c0_94, %c0_95] : memref<9x16x16xbf16, #tpu.memory_space<vmem>>, vector<1x16x16xbf16>
    %158 = vector.shape_cast %157 : vector<1x16x16xbf16> to vector<16x16xbf16>
    %cst_96 = arith.constant dense<0.000000e+00> : vector<256x16xf32>
    %159 = tpu.matmul %156, %158, %cst_96 {dimension_numbers = #tpu.dot_dimension_numbers<[1], [0], [0], [1], [0, 0, 1, 1], [], []>} : vector<256x16xbf16>, vector<16x16xbf16>, vector<256x16xf32> -> vector<256x16xf32>
    %160 = arith.addf %148, %159 : vector<256x16xf32>
    %c17_97 = arith.constant 17 : index
    %c0_98 = arith.constant 0 : index
    %161 = vector.load %arg11[%c17_97, %c0_98] : memref<290x16xf32, #tpu.memory_space<vmem>>, vector<256x16xf32>
    %162 = arith.truncf %161 : vector<256x16xf32> to vector<256x16xbf16>
    %c4_99 = arith.constant 4 : index
    %c0_100 = arith.constant 0 : index
    %c0_101 = arith.constant 0 : index
    %163 = vector.load %arg4[%c4_99, %c0_100, %c0_101] : memref<9x16x16xbf16, #tpu.memory_space<vmem>>, vector<1x16x16xbf16>
    %164 = vector.shape_cast %163 : vector<1x16x16xbf16> to vector<16x16xbf16>
    %cst_102 = arith.constant dense<0.000000e+00> : vector<256x16xf32>
    %165 = tpu.matmul %162, %164, %cst_102 {dimension_numbers = #tpu.dot_dimension_numbers<[1], [0], [0], [1], [0, 0, 1, 1], [], []>} : vector<256x16xbf16>, vector<16x16xbf16>, vector<256x16xf32> -> vector<256x16xf32>
    %166 = arith.addf %160, %165 : vector<256x16xf32>
    %c18_103 = arith.constant 18 : index
    %c0_104 = arith.constant 0 : index
    %167 = vector.load %arg11[%c18_103, %c0_104] : memref<290x16xf32, #tpu.memory_space<vmem>>, vector<256x16xf32>
    %c15_i32_105 = arith.constant 15 : i32
    %168 = vector.broadcast %c15_i32_105 : i32 to vector<256x1xi32>
    %169 = arith.cmpi slt, %16, %168 : vector<256x1xi32>
    %cst_106 = arith.constant 0.000000e+00 : f32
    %170 = vector.broadcast %cst_106 : f32 to vector<256x16xf32>
    %171 = vector.shape_cast %169 : vector<256x1xi1> to vector<256x1xi1>
    %172 = vector.broadcast %171 : vector<256x1xi1> to vector<256x16xi1>
    %173 = arith.select %172, %167, %170 : vector<256x16xi1>, vector<256x16xf32>
    %174 = arith.truncf %173 : vector<256x16xf32> to vector<256x16xbf16>
    %c5_107 = arith.constant 5 : index
    %c0_108 = arith.constant 0 : index
    %c0_109 = arith.constant 0 : index
    %175 = vector.load %arg4[%c5_107, %c0_108, %c0_109] : memref<9x16x16xbf16, #tpu.memory_space<vmem>>, vector<1x16x16xbf16>
    %176 = vector.shape_cast %175 : vector<1x16x16xbf16> to vector<16x16xbf16>
    %cst_110 = arith.constant dense<0.000000e+00> : vector<256x16xf32>
    %177 = tpu.matmul %174, %176, %cst_110 {dimension_numbers = #tpu.dot_dimension_numbers<[1], [0], [0], [1], [0, 0, 1, 1], [], []>} : vector<256x16xbf16>, vector<16x16xbf16>, vector<256x16xf32> -> vector<256x16xf32>
    %178 = arith.addf %166, %177 : vector<256x16xf32>
    %c32_111 = arith.constant 32 : index
    %c0_112 = arith.constant 0 : index
    %179 = vector.load %arg11[%c32_111, %c0_112] : memref<290x16xf32, #tpu.memory_space<vmem>>, vector<256x16xf32>
    %c1_i32_113 = arith.constant 1 : i32
    %180 = vector.broadcast %c1_i32_113 : i32 to vector<256x1xi32>
    %181 = arith.cmpi sge, %16, %180 : vector<256x1xi32>
    %cst_114 = arith.constant 0.000000e+00 : f32
    %182 = vector.broadcast %cst_114 : f32 to vector<256x16xf32>
    %183 = vector.shape_cast %181 : vector<256x1xi1> to vector<256x1xi1>
    %184 = vector.broadcast %183 : vector<256x1xi1> to vector<256x16xi1>
    %185 = arith.select %184, %179, %182 : vector<256x16xi1>, vector<256x16xf32>
    %186 = arith.truncf %185 : vector<256x16xf32> to vector<256x16xbf16>
    %c6_115 = arith.constant 6 : index
    %c0_116 = arith.constant 0 : index
    %c0_117 = arith.constant 0 : index
    %187 = vector.load %arg4[%c6_115, %c0_116, %c0_117] : memref<9x16x16xbf16, #tpu.memory_space<vmem>>, vector<1x16x16xbf16>
    %188 = vector.shape_cast %187 : vector<1x16x16xbf16> to vector<16x16xbf16>
    %cst_118 = arith.constant dense<0.000000e+00> : vector<256x16xf32>
    %189 = tpu.matmul %186, %188, %cst_118 {dimension_numbers = #tpu.dot_dimension_numbers<[1], [0], [0], [1], [0, 0, 1, 1], [], []>} : vector<256x16xbf16>, vector<16x16xbf16>, vector<256x16xf32> -> vector<256x16xf32>
    %190 = arith.addf %178, %189 : vector<256x16xf32>
    %c33_119 = arith.constant 33 : index
    %c0_120 = arith.constant 0 : index
    %191 = vector.load %arg11[%c33_119, %c0_120] : memref<290x16xf32, #tpu.memory_space<vmem>>, vector<256x16xf32>
    %192 = arith.truncf %191 : vector<256x16xf32> to vector<256x16xbf16>
    %c7_121 = arith.constant 7 : index
    %c0_122 = arith.constant 0 : index
    %c0_123 = arith.constant 0 : index
    %193 = vector.load %arg4[%c7_121, %c0_122, %c0_123] : memref<9x16x16xbf16, #tpu.memory_space<vmem>>, vector<1x16x16xbf16>
    %194 = vector.shape_cast %193 : vector<1x16x16xbf16> to vector<16x16xbf16>
    %cst_124 = arith.constant dense<0.000000e+00> : vector<256x16xf32>
    %195 = tpu.matmul %192, %194, %cst_124 {dimension_numbers = #tpu.dot_dimension_numbers<[1], [0], [0], [1], [0, 0, 1, 1], [], []>} : vector<256x16xbf16>, vector<16x16xbf16>, vector<256x16xf32> -> vector<256x16xf32>
    %196 = arith.addf %190, %195 : vector<256x16xf32>
    %c34_125 = arith.constant 34 : index
    %c0_126 = arith.constant 0 : index
    %197 = vector.load %arg11[%c34_125, %c0_126] : memref<290x16xf32, #tpu.memory_space<vmem>>, vector<256x16xf32>
    %c15_i32_127 = arith.constant 15 : i32
    %198 = vector.broadcast %c15_i32_127 : i32 to vector<256x1xi32>
    %199 = arith.cmpi slt, %16, %198 : vector<256x1xi32>
    %cst_128 = arith.constant 0.000000e+00 : f32
    %200 = vector.broadcast %cst_128 : f32 to vector<256x16xf32>
    %201 = vector.shape_cast %199 : vector<256x1xi1> to vector<256x1xi1>
    %202 = vector.broadcast %201 : vector<256x1xi1> to vector<256x16xi1>
    %203 = arith.select %202, %197, %200 : vector<256x16xi1>, vector<256x16xf32>
    %204 = arith.truncf %203 : vector<256x16xf32> to vector<256x16xbf16>
    %c8_129 = arith.constant 8 : index
    %c0_130 = arith.constant 0 : index
    %c0_131 = arith.constant 0 : index
    %205 = vector.load %arg4[%c8_129, %c0_130, %c0_131] : memref<9x16x16xbf16, #tpu.memory_space<vmem>>, vector<1x16x16xbf16>
    %206 = vector.shape_cast %205 : vector<1x16x16xbf16> to vector<16x16xbf16>
    %cst_132 = arith.constant dense<0.000000e+00> : vector<256x16xf32>
    %207 = tpu.matmul %204, %206, %cst_132 {dimension_numbers = #tpu.dot_dimension_numbers<[1], [0], [0], [1], [0, 0, 1, 1], [], []>} : vector<256x16xbf16>, vector<16x16xbf16>, vector<256x16xf32> -> vector<256x16xf32>
    %208 = arith.addf %196, %207 : vector<256x16xf32>
    %c0_133 = arith.constant 0 : index
    %c0_134 = arith.constant 0 : index
    %209 = vector.load %arg5[%c0_133, %c0_134] : memref<1x16xf32, #tpu.memory_space<vmem>>, vector<1x16xf32>
    %210 = vector.broadcast %209 : vector<1x16xf32> to vector<256x16xf32>
    %211 = arith.addf %208, %210 : vector<256x16xf32>
    %cst_135 = arith.constant 0.000000e+00 : f32
    %212 = vector.broadcast %cst_135 : f32 to vector<256x16xf32>
    %213 = arith.cmpf ogt, %211, %212 : vector<256x16xf32>
    %cst_136 = arith.constant 0.00999999977 : f32
    %214 = vector.broadcast %cst_136 : f32 to vector<256x16xf32>
    %215 = arith.mulf %214, %211 : vector<256x16xf32>
    %216 = arith.select %213, %211, %215 : vector<256x16xi1>, vector<256x16xf32>
    %217 = arith.truncf %216 : vector<256x16xf32> to vector<256x16xbf16>
    %cst_137 = arith.constant 0.000000e+00 : f32
    %218 = vector.broadcast %cst_137 : f32 to vector<290x16xf32>
    %c0_138 = arith.constant 0 : index
    %c0_139 = arith.constant 0 : index
    %219 = vector.load %arg12[%c0_138, %c0_139] : memref<290x16xf32, #tpu.memory_space<vmem>>, vector<290x16xf32>
    tpu.vector_store %arg12[%c0_138, %c0_139], %218 {strides = array<i32>} : memref<290x16xf32, #tpu.memory_space<vmem>>, vector<290x16xf32>,
    %220 = arith.extf %217 : vector<256x16xbf16> to vector<256x16xf32>
    %c17_140 = arith.constant 17 : index
    %c0_141 = arith.constant 0 : index
    %221 = vector.load %arg12[%c17_140, %c0_141] : memref<290x16xf32, #tpu.memory_space<vmem>>, vector<256x16xf32>
    tpu.vector_store %arg12[%c17_140, %c0_141], %220 {strides = array<i32>} : memref<290x16xf32, #tpu.memory_space<vmem>>, vector<256x16xf32>,
    %c0_142 = arith.constant 0 : index
    %c0_143 = arith.constant 0 : index
    %222 = vector.load %arg12[%c0_142, %c0_143] : memref<290x16xf32, #tpu.memory_space<vmem>>, vector<256x16xf32>
    %c1_i32_144 = arith.constant 1 : i32
    %223 = vector.broadcast %c1_i32_144 : i32 to vector<256x1xi32>
    %224 = arith.cmpi sge, %16, %223 : vector<256x1xi32>
    %cst_145 = arith.constant 0.000000e+00 : f32
    %225 = vector.broadcast %cst_145 : f32 to vector<256x16xf32>
    %226 = vector.shape_cast %224 : vector<256x1xi1> to vector<256x1xi1>
    %227 = vector.broadcast %226 : vector<256x1xi1> to vector<256x16xi1>
    %228 = arith.select %227, %222, %225 : vector<256x16xi1>, vector<256x16xf32>
    %229 = arith.truncf %228 : vector<256x16xf32> to vector<256x16xbf16>
    %c0_146 = arith.constant 0 : index
    %c0_147 = arith.constant 0 : index
    %c0_148 = arith.constant 0 : index
    %230 = vector.load %arg6[%c0_146, %c0_147, %c0_148] : memref<9x16x16xbf16, #tpu.memory_space<vmem>>, vector<1x16x16xbf16>
    %231 = vector.shape_cast %230 : vector<1x16x16xbf16> to vector<16x16xbf16>
    %cst_149 = arith.constant dense<0.000000e+00> : vector<256x16xf32>
    %232 = tpu.matmul %229, %231, %cst_149 {dimension_numbers = #tpu.dot_dimension_numbers<[1], [0], [0], [1], [0, 0, 1, 1], [], []>} : vector<256x16xbf16>, vector<16x16xbf16>, vector<256x16xf32> -> vector<256x16xf32>
    %c1_150 = arith.constant 1 : index
    %c0_151 = arith.constant 0 : index
    %233 = vector.load %arg12[%c1_150, %c0_151] : memref<290x16xf32, #tpu.memory_space<vmem>>, vector<256x16xf32>
    %234 = arith.truncf %233 : vector<256x16xf32> to vector<256x16xbf16>
    %c1_152 = arith.constant 1 : index
    %c0_153 = arith.constant 0 : index
    %c0_154 = arith.constant 0 : index
    %235 = vector.load %arg6[%c1_152, %c0_153, %c0_154] : memref<9x16x16xbf16, #tpu.memory_space<vmem>>, vector<1x16x16xbf16>
    %236 = vector.shape_cast %235 : vector<1x16x16xbf16> to vector<16x16xbf16>
    %cst_155 = arith.constant dense<0.000000e+00> : vector<256x16xf32>
    %237 = tpu.matmul %234, %236, %cst_155 {dimension_numbers = #tpu.dot_dimension_numbers<[1], [0], [0], [1], [0, 0, 1, 1], [], []>} : vector<256x16xbf16>, vector<16x16xbf16>, vector<256x16xf32> -> vector<256x16xf32>
    %238 = arith.addf %232, %237 : vector<256x16xf32>
    %c2_156 = arith.constant 2 : index
    %c0_157 = arith.constant 0 : index
    %239 = vector.load %arg12[%c2_156, %c0_157] : memref<290x16xf32, #tpu.memory_space<vmem>>, vector<256x16xf32>
    %c15_i32_158 = arith.constant 15 : i32
    %240 = vector.broadcast %c15_i32_158 : i32 to vector<256x1xi32>
    %241 = arith.cmpi slt, %16, %240 : vector<256x1xi32>
    %cst_159 = arith.constant 0.000000e+00 : f32
    %242 = vector.broadcast %cst_159 : f32 to vector<256x16xf32>
    %243 = vector.shape_cast %241 : vector<256x1xi1> to vector<256x1xi1>
    %244 = vector.broadcast %243 : vector<256x1xi1> to vector<256x16xi1>
    %245 = arith.select %244, %239, %242 : vector<256x16xi1>, vector<256x16xf32>
    %246 = arith.truncf %245 : vector<256x16xf32> to vector<256x16xbf16>
    %c2_160 = arith.constant 2 : index
    %c0_161 = arith.constant 0 : index
    %c0_162 = arith.constant 0 : index
    %247 = vector.load %arg6[%c2_160, %c0_161, %c0_162] : memref<9x16x16xbf16, #tpu.memory_space<vmem>>, vector<1x16x16xbf16>
    %248 = vector.shape_cast %247 : vector<1x16x16xbf16> to vector<16x16xbf16>
    %cst_163 = arith.constant dense<0.000000e+00> : vector<256x16xf32>
    %249 = tpu.matmul %246, %248, %cst_163 {dimension_numbers = #tpu.dot_dimension_numbers<[1], [0], [0], [1], [0, 0, 1, 1], [], []>} : vector<256x16xbf16>, vector<16x16xbf16>, vector<256x16xf32> -> vector<256x16xf32>
    %250 = arith.addf %238, %249 : vector<256x16xf32>
    %c16_164 = arith.constant 16 : index
    %c0_165 = arith.constant 0 : index
    %251 = vector.load %arg12[%c16_164, %c0_165] : memref<290x16xf32, #tpu.memory_space<vmem>>, vector<256x16xf32>
    %c1_i32_166 = arith.constant 1 : i32
    %252 = vector.broadcast %c1_i32_166 : i32 to vector<256x1xi32>
    %253 = arith.cmpi sge, %16, %252 : vector<256x1xi32>
    %cst_167 = arith.constant 0.000000e+00 : f32
    %254 = vector.broadcast %cst_167 : f32 to vector<256x16xf32>
    %255 = vector.shape_cast %253 : vector<256x1xi1> to vector<256x1xi1>
    %256 = vector.broadcast %255 : vector<256x1xi1> to vector<256x16xi1>
    %257 = arith.select %256, %251, %254 : vector<256x16xi1>, vector<256x16xf32>
    %258 = arith.truncf %257 : vector<256x16xf32> to vector<256x16xbf16>
    %c3_168 = arith.constant 3 : index
    %c0_169 = arith.constant 0 : index
    %c0_170 = arith.constant 0 : index
    %259 = vector.load %arg6[%c3_168, %c0_169, %c0_170] : memref<9x16x16xbf16, #tpu.memory_space<vmem>>, vector<1x16x16xbf16>
    %260 = vector.shape_cast %259 : vector<1x16x16xbf16> to vector<16x16xbf16>
    %cst_171 = arith.constant dense<0.000000e+00> : vector<256x16xf32>
    %261 = tpu.matmul %258, %260, %cst_171 {dimension_numbers = #tpu.dot_dimension_numbers<[1], [0], [0], [1], [0, 0, 1, 1], [], []>} : vector<256x16xbf16>, vector<16x16xbf16>, vector<256x16xf32> -> vector<256x16xf32>
    %262 = arith.addf %250, %261 : vector<256x16xf32>
    %c17_172 = arith.constant 17 : index
    %c0_173 = arith.constant 0 : index
    %263 = vector.load %arg12[%c17_172, %c0_173] : memref<290x16xf32, #tpu.memory_space<vmem>>, vector<256x16xf32>
    %264 = arith.truncf %263 : vector<256x16xf32> to vector<256x16xbf16>
    %c4_174 = arith.constant 4 : index
    %c0_175 = arith.constant 0 : index
    %c0_176 = arith.constant 0 : index
    %265 = vector.load %arg6[%c4_174, %c0_175, %c0_176] : memref<9x16x16xbf16, #tpu.memory_space<vmem>>, vector<1x16x16xbf16>
    %266 = vector.shape_cast %265 : vector<1x16x16xbf16> to vector<16x16xbf16>
    %cst_177 = arith.constant dense<0.000000e+00> : vector<256x16xf32>
    %267 = tpu.matmul %264, %266, %cst_177 {dimension_numbers = #tpu.dot_dimension_numbers<[1], [0], [0], [1], [0, 0, 1, 1], [], []>} : vector<256x16xbf16>, vector<16x16xbf16>, vector<256x16xf32> -> vector<256x16xf32>
    %268 = arith.addf %262, %267 : vector<256x16xf32>
    %c18_178 = arith.constant 18 : index
    %c0_179 = arith.constant 0 : index
    %269 = vector.load %arg12[%c18_178, %c0_179] : memref<290x16xf32, #tpu.memory_space<vmem>>, vector<256x16xf32>
    %c15_i32_180 = arith.constant 15 : i32
    %270 = vector.broadcast %c15_i32_180 : i32 to vector<256x1xi32>
    %271 = arith.cmpi slt, %16, %270 : vector<256x1xi32>
    %cst_181 = arith.constant 0.000000e+00 : f32
    %272 = vector.broadcast %cst_181 : f32 to vector<256x16xf32>
    %273 = vector.shape_cast %271 : vector<256x1xi1> to vector<256x1xi1>
    %274 = vector.broadcast %273 : vector<256x1xi1> to vector<256x16xi1>
    %275 = arith.select %274, %269, %272 : vector<256x16xi1>, vector<256x16xf32>
    %276 = arith.truncf %275 : vector<256x16xf32> to vector<256x16xbf16>
    %c5_182 = arith.constant 5 : index
    %c0_183 = arith.constant 0 : index
    %c0_184 = arith.constant 0 : index
    %277 = vector.load %arg6[%c5_182, %c0_183, %c0_184] : memref<9x16x16xbf16, #tpu.memory_space<vmem>>, vector<1x16x16xbf16>
    %278 = vector.shape_cast %277 : vector<1x16x16xbf16> to vector<16x16xbf16>
    %cst_185 = arith.constant dense<0.000000e+00> : vector<256x16xf32>
    %279 = tpu.matmul %276, %278, %cst_185 {dimension_numbers = #tpu.dot_dimension_numbers<[1], [0], [0], [1], [0, 0, 1, 1], [], []>} : vector<256x16xbf16>, vector<16x16xbf16>, vector<256x16xf32> -> vector<256x16xf32>
    %280 = arith.addf %268, %279 : vector<256x16xf32>
    %c32_186 = arith.constant 32 : index
    %c0_187 = arith.constant 0 : index
    %281 = vector.load %arg12[%c32_186, %c0_187] : memref<290x16xf32, #tpu.memory_space<vmem>>, vector<256x16xf32>
    %c1_i32_188 = arith.constant 1 : i32
    %282 = vector.broadcast %c1_i32_188 : i32 to vector<256x1xi32>
    %283 = arith.cmpi sge, %16, %282 : vector<256x1xi32>
    %cst_189 = arith.constant 0.000000e+00 : f32
    %284 = vector.broadcast %cst_189 : f32 to vector<256x16xf32>
    %285 = vector.shape_cast %283 : vector<256x1xi1> to vector<256x1xi1>
    %286 = vector.broadcast %285 : vector<256x1xi1> to vector<256x16xi1>
    %287 = arith.select %286, %281, %284 : vector<256x16xi1>, vector<256x16xf32>
    %288 = arith.truncf %287 : vector<256x16xf32> to vector<256x16xbf16>
    %c6_190 = arith.constant 6 : index
    %c0_191 = arith.constant 0 : index
    %c0_192 = arith.constant 0 : index
    %289 = vector.load %arg6[%c6_190, %c0_191, %c0_192] : memref<9x16x16xbf16, #tpu.memory_space<vmem>>, vector<1x16x16xbf16>
    %290 = vector.shape_cast %289 : vector<1x16x16xbf16> to vector<16x16xbf16>
    %cst_193 = arith.constant dense<0.000000e+00> : vector<256x16xf32>
    %291 = tpu.matmul %288, %290, %cst_193 {dimension_numbers = #tpu.dot_dimension_numbers<[1], [0], [0], [1], [0, 0, 1, 1], [], []>} : vector<256x16xbf16>, vector<16x16xbf16>, vector<256x16xf32> -> vector<256x16xf32>
    %292 = arith.addf %280, %291 : vector<256x16xf32>
    %c33_194 = arith.constant 33 : index
    %c0_195 = arith.constant 0 : index
    %293 = vector.load %arg12[%c33_194, %c0_195] : memref<290x16xf32, #tpu.memory_space<vmem>>, vector<256x16xf32>
    %294 = arith.truncf %293 : vector<256x16xf32> to vector<256x16xbf16>
    %c7_196 = arith.constant 7 : index
    %c0_197 = arith.constant 0 : index
    %c0_198 = arith.constant 0 : index
    %295 = vector.load %arg6[%c7_196, %c0_197, %c0_198] : memref<9x16x16xbf16, #tpu.memory_space<vmem>>, vector<1x16x16xbf16>
    %296 = vector.shape_cast %295 : vector<1x16x16xbf16> to vector<16x16xbf16>
    %cst_199 = arith.constant dense<0.000000e+00> : vector<256x16xf32>
    %297 = tpu.matmul %294, %296, %cst_199 {dimension_numbers = #tpu.dot_dimension_numbers<[1], [0], [0], [1], [0, 0, 1, 1], [], []>} : vector<256x16xbf16>, vector<16x16xbf16>, vector<256x16xf32> -> vector<256x16xf32>
    %298 = arith.addf %292, %297 : vector<256x16xf32>
    %c34_200 = arith.constant 34 : index
    %c0_201 = arith.constant 0 : index
    %299 = vector.load %arg12[%c34_200, %c0_201] : memref<290x16xf32, #tpu.memory_space<vmem>>, vector<256x16xf32>
    %c15_i32_202 = arith.constant 15 : i32
    %300 = vector.broadcast %c15_i32_202 : i32 to vector<256x1xi32>
    %301 = arith.cmpi slt, %16, %300 : vector<256x1xi32>
    %cst_203 = arith.constant 0.000000e+00 : f32
    %302 = vector.broadcast %cst_203 : f32 to vector<256x16xf32>
    %303 = vector.shape_cast %301 : vector<256x1xi1> to vector<256x1xi1>
    %304 = vector.broadcast %303 : vector<256x1xi1> to vector<256x16xi1>
    %305 = arith.select %304, %299, %302 : vector<256x16xi1>, vector<256x16xf32>
    %306 = arith.truncf %305 : vector<256x16xf32> to vector<256x16xbf16>
    %c8_204 = arith.constant 8 : index
    %c0_205 = arith.constant 0 : index
    %c0_206 = arith.constant 0 : index
    %307 = vector.load %arg6[%c8_204, %c0_205, %c0_206] : memref<9x16x16xbf16, #tpu.memory_space<vmem>>, vector<1x16x16xbf16>
    %308 = vector.shape_cast %307 : vector<1x16x16xbf16> to vector<16x16xbf16>
    %cst_207 = arith.constant dense<0.000000e+00> : vector<256x16xf32>
    %309 = tpu.matmul %306, %308, %cst_207 {dimension_numbers = #tpu.dot_dimension_numbers<[1], [0], [0], [1], [0, 0, 1, 1], [], []>} : vector<256x16xbf16>, vector<16x16xbf16>, vector<256x16xf32> -> vector<256x16xf32>
    %310 = arith.addf %298, %309 : vector<256x16xf32>
    %c0_208 = arith.constant 0 : index
    %c0_209 = arith.constant 0 : index
    %311 = vector.load %arg7[%c0_208, %c0_209] : memref<1x16xf32, #tpu.memory_space<vmem>>, vector<1x16xf32>
    %312 = vector.broadcast %311 : vector<1x16xf32> to vector<256x16xf32>
    %313 = arith.addf %310, %312 : vector<256x16xf32>
    %314 = arith.extf %115 : vector<256x16xbf16> to vector<256x16xf32>
    %315 = arith.addf %313, %314 : vector<256x16xf32>
    %cst_210 = arith.constant 0.000000e+00 : f32
    %316 = vector.broadcast %cst_210 : f32 to vector<256x16xf32>
    %317 = arith.cmpf ogt, %315, %316 : vector<256x16xf32>
    %cst_211 = arith.constant 0.00999999977 : f32
    %318 = vector.broadcast %cst_211 : f32 to vector<256x16xf32>
    %319 = arith.mulf %318, %315 : vector<256x16xf32>
    %320 = arith.select %317, %315, %319 : vector<256x16xi1>, vector<256x16xf32>
    %321 = arith.truncf %320 : vector<256x16xf32> to vector<256x16xbf16>
    %c0_212 = arith.constant 0 : index
    %c0_213 = arith.constant 0 : index
    %c0_214 = arith.constant 0 : index
    %322 = vector.load %arg8[%c0_212, %c0_213, %c0_214] : memref<4x64x256xbf16, #tpu.memory_space<vmem>>, vector<1x64x256xbf16>
    %323 = vector.shape_cast %322 : vector<1x64x256xbf16> to vector<64x256xbf16>
    %cst_215 = arith.constant dense<0.000000e+00> : vector<64x16xf32>
    %324 = tpu.matmul %323, %321, %cst_215 {dimension_numbers = #tpu.dot_dimension_numbers<[1], [0], [0], [1], [0, 0, 1, 1], [], []>} : vector<64x256xbf16>, vector<256x16xbf16>, vector<64x16xf32> -> vector<64x16xf32>
    %c1_216 = arith.constant 1 : index
    %c0_217 = arith.constant 0 : index
    %c0_218 = arith.constant 0 : index
    %325 = vector.load %arg8[%c1_216, %c0_217, %c0_218] : memref<4x64x256xbf16, #tpu.memory_space<vmem>>, vector<1x64x256xbf16>
    %326 = vector.shape_cast %325 : vector<1x64x256xbf16> to vector<64x256xbf16>
    %cst_219 = arith.constant dense<0.000000e+00> : vector<64x16xf32>
    %327 = tpu.matmul %326, %321, %cst_219 {dimension_numbers = #tpu.dot_dimension_numbers<[1], [0], [0], [1], [0, 0, 1, 1], [], []>} : vector<64x256xbf16>, vector<256x16xbf16>, vector<64x16xf32> -> vector<64x16xf32>
    %328 = arith.maximumf %324, %327 : vector<64x16xf32>
    %c2_220 = arith.constant 2 : index
    %c0_221 = arith.constant 0 : index
    %c0_222 = arith.constant 0 : index
    %329 = vector.load %arg8[%c2_220, %c0_221, %c0_222] : memref<4x64x256xbf16, #tpu.memory_space<vmem>>, vector<1x64x256xbf16>
    %330 = vector.shape_cast %329 : vector<1x64x256xbf16> to vector<64x256xbf16>
    %cst_223 = arith.constant dense<0.000000e+00> : vector<64x16xf32>
    %331 = tpu.matmul %330, %321, %cst_223 {dimension_numbers = #tpu.dot_dimension_numbers<[1], [0], [0], [1], [0, 0, 1, 1], [], []>} : vector<64x256xbf16>, vector<256x16xbf16>, vector<64x16xf32> -> vector<64x16xf32>
    %332 = arith.maximumf %328, %331 : vector<64x16xf32>
    %c3_224 = arith.constant 3 : index
    %c0_225 = arith.constant 0 : index
    %c0_226 = arith.constant 0 : index
    %333 = vector.load %arg8[%c3_224, %c0_225, %c0_226] : memref<4x64x256xbf16, #tpu.memory_space<vmem>>, vector<1x64x256xbf16>
    %334 = vector.shape_cast %333 : vector<1x64x256xbf16> to vector<64x256xbf16>
    %cst_227 = arith.constant dense<0.000000e+00> : vector<64x16xf32>
    %335 = tpu.matmul %334, %321, %cst_227 {dimension_numbers = #tpu.dot_dimension_numbers<[1], [0], [0], [1], [0, 0, 1, 1], [], []>} : vector<64x256xbf16>, vector<256x16xbf16>, vector<64x16xf32> -> vector<64x16xf32>
    %336 = arith.maximumf %332, %335 : vector<64x16xf32>
    %337 = arith.truncf %336 : vector<64x16xf32> to vector<64x16xbf16>
    %c0_228 = arith.constant 0 : index
    %c0_229 = arith.constant 0 : index
    %c0_230 = arith.constant 0 : index
    %338 = vector.load %arg9[%c0_228, %c0_229, %c0_230] : memref<1x64x16xbf16, #tpu.memory_space<vmem>>, vector<1x64x16xbf16>
    %339 = vector.shape_cast %338 : vector<1x64x16xbf16> to vector<64x16xbf16>
    %340 = vector.shape_cast %337 : vector<64x16xbf16> to vector<1x64x16xbf16>
    tpu.vector_store %arg9[%c0_228, %c0_229, %c0_230], %340 {strides = array<i32>} : memref<1x64x16xbf16, #tpu.memory_space<vmem>>, vector<1x64x16xbf16>,
    return
  }
  func.func @transform_0(%arg0: i32) -> (i32, i32, i32) {
    %c0_i32 = arith.constant 0 : i32
    %c0_i32_0 = arith.constant 0 : i32
    %c0_i32_1 = arith.constant 0 : i32
    return %arg0, %c0_i32, %c0_i32_0 : i32, i32, i32
  }
  func.func @transform_1(%arg0: i32) -> (i32, i32, i32) {
    %c0_i32 = arith.constant 0 : i32
    %c0_i32_0 = arith.constant 0 : i32
    %c0_i32_1 = arith.constant 0 : i32
    %c0_i32_2 = arith.constant 0 : i32
    return %c0_i32, %c0_i32_0, %c0_i32_1 : i32, i32, i32
  }
  func.func @transform_2(%arg0: i32) -> (i32, i32) {
    %c0_i32 = arith.constant 0 : i32
    %c0_i32_0 = arith.constant 0 : i32
    %c0_i32_1 = arith.constant 0 : i32
    return %c0_i32, %c0_i32_0 : i32, i32
  }
  func.func @transform_3(%arg0: i32) -> (i32, i32, i32) {
    %c0_i32 = arith.constant 0 : i32
    %c0_i32_0 = arith.constant 0 : i32
    %c0_i32_1 = arith.constant 0 : i32
    %c0_i32_2 = arith.constant 0 : i32
    return %c0_i32, %c0_i32_0, %c0_i32_1 : i32, i32, i32
  }
  func.func @transform_4(%arg0: i32) -> (i32, i32) {
    %c0_i32 = arith.constant 0 : i32
    %c0_i32_0 = arith.constant 0 : i32
    %c0_i32_1 = arith.constant 0 : i32
    return %c0_i32, %c0_i32_0 : i32, i32
  }
  func.func @transform_5(%arg0: i32) -> (i32, i32, i32) {
    %c0_i32 = arith.constant 0 : i32
    %c0_i32_0 = arith.constant 0 : i32
    %c0_i32_1 = arith.constant 0 : i32
    %c0_i32_2 = arith.constant 0 : i32
    return %c0_i32, %c0_i32_0, %c0_i32_1 : i32, i32, i32
  }
  func.func @transform_6(%arg0: i32) -> (i32, i32) {
    %c0_i32 = arith.constant 0 : i32
    %c0_i32_0 = arith.constant 0 : i32
    %c0_i32_1 = arith.constant 0 : i32
    return %c0_i32, %c0_i32_0 : i32, i32
  }
  func.func @transform_7(%arg0: i32) -> (i32, i32, i32) {
    %c0_i32 = arith.constant 0 : i32
    %c0_i32_0 = arith.constant 0 : i32
    %c0_i32_1 = arith.constant 0 : i32
    %c0_i32_2 = arith.constant 0 : i32
    return %c0_i32, %c0_i32_0, %c0_i32_1 : i32, i32, i32
  }
  func.func @transform_8(%arg0: i32) -> (i32, i32, i32) {
    %c0_i32 = arith.constant 0 : i32
    %c0_i32_0 = arith.constant 0 : i32
    %c0_i32_1 = arith.constant 0 : i32
    return %arg0, %c0_i32, %c0_i32_0 : i32, i32, i32
  }
}

</mosaic_0001>

<bundles_post_ra>
// kernel: tpu_custom_call.1
= control target key start
LH: loop header
LB: loop body
LE: loop exit
PB: predicated region body
PF: predicated region fallthrough
CT: control target
= control target key end

     0   :  { %13 = vsyncpa [#allocation6], 0  ;;  %s17659_s0 = inlined_call_operand.vmem [shape: bf16[2,256,4], index: 0, kind: input, shape index: {}]   ;;  %s17660_s1 = inlined_call_operand.vmem [shape: bf16[9,4,16], index: 1, kind: input, shape index: {}]   ;;  %s17661_s2 = inlined_call_operand.vmem [shape: f32[1,16], index: 2, kind: input, shape index: {}]   ;;  %s17662_s3 = inlined_call_operand.hbm [shape: bf16[9,16,16], index: 3, kind: input, shape index: {}]   ;;  %s17663_s4 = inlined_call_operand.vmem [shape: f32[1,16], index: 4, kind: input, shape index: {}]   ;;  %s17664_s5 = inlined_call_operand.hbm [shape: bf16[9,16,16], index: 5, kind: input, shape index: {}]   ;;  %s17665_s6 = inlined_call_operand.vmem [shape: f32[1,16], index: 6, kind: input, shape index: {}]   ;;  %s17666_s7 = inlined_call_operand.vmem [shape: bf16[4,64,256], index: 7, kind: input, shape index: {}]   ;;  %s17667_s8 = inlined_call_operand.vmem [shape: bf16[2,64,16], index: 8, kind: output, shape index: {}]  }
   0x1   :  { %14 = vsyncpa [#allocation8], 0  ;;  %s13829_s27 = smov 0  }
   0x2 LB: > { %s13835_s28 = sadd.s32 4294967295, %s13777_s27   ;;  %p10665_p0 = scmp.ge.s32.totalorder %s13777_s27, 1  ;;  %s13777_s27 = sphi %s13829_s27, %s20_s27  }
   0x3   : > { %p224_p1 = scmp.lt.s32.totalorder %s13777_s27, 3  ;;  %s13779_s29 = smov [#allocation5]  }
   0x4   : > { %s242_s30 = sshll.u32 %s13779_s29, 4  ;;  %p17668_p3 = scmp.eq.s32.totalorder %s13835_s28, 0  ;;  %s243_s30 = int_to_ptr.vmem [resolvable:$true] %s242_s30 }
   0x5   : > { %p13839_p2 = pnand %p10665_p0, %p224_p1  ;;  %s13780_s10 = smov [#allocation7]  }
   0x6   : > { %s258_s11 = sshll.u32 %s13780_s10, 4  ;;  %s13707_s15 = scalar_lea.hbm %s17662_s3, 1152  ;;  %s13852_s11 = int_to_ptr.vmem [resolvable:$true] %s258_s11 }
   0x7   : > { %s18029_s9 = scalar_select %p13839_p2, 1, 0 }
   0x8   : > { %p13617_p4 = pneg %p13839_p2  ;;  %p13708_p6 = scmp.ne.s32.totalorder %s17662_s3, %s13707_s15 }
   0x9   : > { %p13714_p10 = scmp.lt.u32.totalorder %s13707_s15, %s17662_s3 }
   0xa   : > { %p13848_p5 = pnand %p17668_p3, %p13617_p4 }
   0xc   : > { %p13709_p7 = pneg %p13848_p5 }
   0xe   : > { %p13710_p8 = pnand %p13709_p7, %p13708_p6 }
  0x10   : > { %p13711_p9 = pneg %p13710_p8 }
  0x12   : > { %p13716_p11 = pnand %p13714_p10, %p13711_p9 }
  0x14   : > { %13719 = shalt.err (!%p13716_p11)
}
  0x15   : > { %s13720_s20 = scalar_lea.vmem %s243_s30, 1152  ;;  %p13728_p1 = scmp.lt.s32.totalorder %s243_s30, %s243_s30 }
  0x16   : > { %p13721_p12 = scmp.ne.s32.totalorder %s243_s30, %s13720_s20  ;;  %p13729_p4 = scmp.lt.s32.totalorder %s13720_s20, %s13720_s20 }
  0x18   : > { %p13723_p13 = pnand %p13721_p12, %p13709_p7  ;;  %p13730_p3 = por %p13729_p4, %p13728_p1 }
  0x1a   : > { %p13724_p0 = pneg %p13723_p13 }
  0x1c   : > { %p13731_p2 = pnand %p13730_p3, %p13724_p0 }
  0x1e   : > { %13734 = shalt.err (!%p13731_p2)
}
  0x1f   : > { %s13781_s21 = smov 64   ;;  %s13782_s22 = smov 4  }
  0x20   : > { %13620 = dma.hbm_to_vmem [thread:$0]  (!%p13848_p5), %s17662_s3, 1152, %s243_s30, [#allocation6], %s13781_s21, %s13781_s21, %s13782_s22  }
  0x21   : > { %s13735_s29 = scalar_lea.hbm %s17664_s5, 1152 }
  0x22   : > { %p13736_p6 = scmp.ne.s32.totalorder %s17664_s5, %s13735_s29  ;;  %p13742_p8 = scmp.lt.u32.totalorder %s13735_s29, %s17664_s5 }
  0x24   : > { %p13738_p2 = pnand %p13736_p6, %p13709_p7 }
  0x26   : > { %p13739_p3 = pneg %p13738_p2 }
  0x28   : > { %p13744_p9 = pnand %p13742_p8, %p13739_p3 }
  0x2a   : > { %13747 = shalt.err (!%p13744_p9)
}
  0x2b   : > { %s13748_s30 = scalar_lea.vmem %s13852_s11, 1152  ;;  %p13756_p13 = scmp.lt.s32.totalorder %s13852_s11, %s13852_s11 }
  0x2c   : > { %p13749_p10 = scmp.ne.s32.totalorder %s13852_s11, %s13748_s30  ;;  %p13757_p0 = scmp.lt.s32.totalorder %s13748_s30, %s13748_s30 }
  0x2e   : > { %p13751_p11 = pnand %p13749_p10, %p13709_p7  ;;  %p13758_p1 = por %p13757_p0, %p13756_p13 }
  0x30   : > { %p13752_p12 = pneg %p13751_p11 }
  0x32   : > { %p13759_p4 = pnand %p13758_p1, %p13752_p12 }
  0x34   : > { %13762 = shalt.err (!%p13759_p4)
}
  0x35   : > { %13623 = dma.hbm_to_vmem [thread:$0]  (!%p13848_p5), %s17664_s5, 1152, %s13852_s11, [#allocation8], %s13781_s21, %s13781_s21, %s13782_s22  }
  0x36   : > { %p18031_p6 = scmp.ne.s32.totalorder %s18029_s9, 0 }
  0x38   : > { %288 = sbr.rel (%p18031_p6) target bundleno = 2536 (0x9e8), region = 52 }
  0x3f   : > { %p18032_p2 = scmp.eq.s32.totalorder %s13835_s28, 0 }
  0x41   : > { %13768 = dma.done.wait (%p18032_p2), [#allocation6], 1152   ;;  %p18033_p7 = pmov %p18032_p2 }
  0x42   : > { %p18034_p3 = pmov %p18032_p2 }
  0x43   : > { %13770 = vsyncadd (%p18033_p7), [#allocation6], 4294966144 }
  0x44   : > { %13772 = dma.done.wait (%p18034_p3), [#allocation8], 1152   ;;  %p18035_p8 = pmov %p18032_p2 }
  0x45   : > { %vm17703_vm0 = vcmask 31744   ;;  %p326_p9 = scmp.lt.s32.totalorder %s13835_s28, 1  ;;  %v337_v0 = vlaneseq  ;;  %v17673_v1 = vmov 0.0   ;;  %vm17670_vm1 = vcmask 1041408   ;;  %v10676_v7 = vld [vmem:[%s17660_s1 + $0x2] sm:$0x3] }
  0x46   : > { %13774 = vsyncadd (%p18035_p8), [#allocation8], 4294966144  ;;  %787 = vst.msk [vmem:[#allocation2] sm:$0xff] %vm17703_vm0, %v17673_v1  ;;  %v14011_v8 = vld [vmem:[%s17660_s1 + $0x6] sm:$0x3]  ;;  %13599 = vmatprep.subr.msk.bf16.mxu1 %vm17670_vm1, %v10676_v7  ;;  %v1166_v11 = vsel %vm17670_vm1, %v10676_v7, 0 }
  0x47   : > { %788 = vst.msk [vmem:[#allocation2 + $0x8] sm:$0xff] %vm17703_vm0, %v17673_v1  ;;  %789 = vst.msk [vmem:[#allocation2 + $0x10] sm:$0xff] %vm17703_vm0, %v17673_v1  ;;  %s19180_s28 = smov (!%p326_p9, %s13835_s28), 1  ;;  %v13989_v2 = vshrl.u32 %v337_v0, 7  ;;  %13602 = vmatprep.subr.msk.bf16.mxu0 %vm17670_vm1, %v14011_v8  ;;  %v14023_v14 = vsel %vm17670_vm1, %v14011_v8, 0  ;;  %11912 = vmatpush3.bf16.msra.mxu1 %v1166_v11  ;;  %v18036_v42 = vmov 0 }
  0x48   : > { %790 = vst.msk [vmem:[#allocation2 + $0x18] sm:$0xff] %vm17703_vm0, %v17673_v1  ;;  %791 = vst.msk [vmem:[#allocation2 + $0x20] sm:$0xff] %vm17703_vm0, %v17673_v1  ;;  %s11203_s9 = sshll.u32 %s19180_s28, 7  ;;  %12014 = vmatpush3.bf16.msra.mxu0 %v14023_v14  ;;  %v14043_v36 = vld [vmem:[%s17660_s1 + $0x8] sm:$0x3]  ;;  %v18039_v49 = vmov 0 }
  0x49   : > { %792 = vst.msk [vmem:[#allocation2 + $0x28] sm:$0xff] %vm17703_vm0, %v17673_v1  ;;  %793 = vst.msk [vmem:[#allocation2 + $0x30] sm:$0xff] %vm17703_vm0, %v17673_v1  ;;  %s13995_s18 = scalar_lea.vmem %s17659_s0, %s11203_s9  ;;  %v340_v3 = vadd.s32 16, %v13989_v2  ;;  %v374_v4 = vand.u32 15, %v13989_v2  ;;  %v14000_v5 = vadd.s32 32, %v13989_v2  ;;  %v14003_v6 = vadd.s32 48, %v13989_v2  ;;  %13604 = vmatprep.subr.msk.bf16.mxu0 %vm17670_vm1, %v14043_v36 }
  0x4a   : > { %794 = vst.msk [vmem:[#allocation2 + $0x38] sm:$0xff] %vm17703_vm0, %v17673_v1  ;;  %795 = vst.msk [vmem:[#allocation2 + $0x40] sm:$0xff] %vm17703_vm0, %v17673_v1  ;;  %v11214_v9 = vld [vmem:[%s13995_s18] sm:$0xff]   ;;  %v14015_v10 = vadd.s32 64, %v13989_v2  ;;  %v11277_v17 = vld [vmem:[%s13995_s18 + $0x8] sm:$0xff]   ;;  %v14049_v37 = vadd.s32 80, %v13989_v2 }
  0x4b   : > { %796 = vst.msk [vmem:[#allocation2 + $0x48] sm:$0xff] %vm17703_vm0, %v17673_v1  ;;  %797 = vst.msk [vmem:[#allocation2 + $0x50] sm:$0xff] %vm17703_vm0, %v17673_v1  ;;  %v11215_v15 = vunpack.c.l.bf16 %v11214_v9  ;;  %v11216_v16 = vunpack.c.h.bf16 %v11214_v9  ;;  %v388_v19 = vand.u32 15, %v340_v3  ;;  %v11219_v20 = vunpack.c.l.bf16 %v11277_v17  ;;  %v11278_v22 = vld [vmem:[%s13995_s18 + $0x10] sm:$0xff]   ;;  %v11279_v23 = vld [vmem:[%s13995_s18 + $0x18] sm:$0xff]   ;;  %s11204_s29 = sshll.u32 %s19180_s28, 5 }
  0x4c   : > { %798 = vst.msk [vmem:[#allocation2 + $0x58] sm:$0xff] %vm17703_vm0, %v17673_v1  ;;  %799 = vst.msk [vmem:[#allocation2 + $0x60] sm:$0xff] %vm17703_vm0, %v17673_v1  ;;  %v11220_v21 = vunpack.c.h.bf16 %v11277_v17  ;;  %v11280_v24 = vld [vmem:[%s13995_s18 + $0x20] sm:$0xff]   ;;  %v11223_v25 = vunpack.c.l.bf16 %v11278_v22  ;;  %v11224_v26 = vunpack.c.h.bf16 %v11278_v22  ;;  %v402_v27 = vand.u32 15, %v14000_v5  ;;  %v11281_v29 = vld [vmem:[%s13995_s18 + $0x28] sm:$0xff]   ;;  %s17638_s14 = scalar_lea.vmem %s17667_s8, %s11204_s29 }
  0x4d   : > { %800 = vst.msk [vmem:[#allocation2 + $0x68] sm:$0xff] %vm17703_vm0, %v17673_v1  ;;  %801 = vst.msk [vmem:[#allocation2 + $0x70] sm:$0xff] %vm17703_vm0, %v17673_v1  ;;  %v11227_v28 = vunpack.c.l.bf16 %v11279_v23  ;;  %v11282_v30 = vld [vmem:[%s13995_s18 + $0x30] sm:$0xff]   ;;  %v416_v31 = vand.u32 15, %v14003_v6  ;;  %v11228_v32 = vunpack.c.h.bf16 %v11279_v23  ;;  %v11231_v33 = vunpack.c.l.bf16 %v11280_v24  ;;  %v11283_v35 = vld [vmem:[%s13995_s18 + $0x38] sm:$0xff]  }
  0x4e   : > { %802 = vst.msk [vmem:[#allocation2 + $0x78] sm:$0xff] %vm17703_vm0, %v17673_v1  ;;  %803 = vst.msk [vmem:[#allocation2 + $0x80] sm:$0xff] %vm17703_vm0, %v17673_v1  ;;  %v1066_v12 = vld [vmem:[#allocation2 + $0x1] sm:$0xff]  ;;  %v1067_v13 = vld [vmem:[#allocation2 + $0x9] sm:$0xff]  ;;  %v11232_v34 = vunpack.c.h.bf16 %v11280_v24  ;;  %v11235_v38 = vunpack.c.l.bf16 %v11281_v29  ;;  %v11236_v39 = vunpack.c.h.bf16 %v11281_v29  ;;  %v14052_v40 = vadd.s32 96, %v13989_v2 }
  0x4f   : > { %804 = vst.msk [vmem:[#allocation2 + $0x88] sm:$0xff] %vm17703_vm0, %v17673_v1  ;;  %805 = vst.msk [vmem:[#allocation2 + $0x90] sm:$0xff] %vm17703_vm0, %v17673_v1  ;;  %v1098_v18 = vpack.c.bf16 %v1067_v13, %v1066_v12  ;;  %v11284_v41 = vld [vmem:[%s13995_s18 + $0x40] sm:$0xff]   ;;  %vm14057_vm2 = vcmp.ge.s32.totalorder %v374_v4, 1  ;;  %v11239_v43 = vunpack.c.l.bf16 %v11282_v30  ;;  %v11240_v44 = vunpack.c.h.bf16 %v11282_v30  ;;  %v11285_v46 = vld [vmem:[%s13995_s18 + $0x48] sm:$0xff]  }
  0x50   : > { %806 = vst.msk [vmem:[#allocation2 + $0x98] sm:$0xff] %vm17703_vm0, %v17673_v1  ;;  %807 = vst.msk [vmem:[#allocation2 + $0xa0] sm:$0xff] %vm17703_vm0, %v17673_v1  ;;  %v18037_v42 = vsel %vm14057_vm2, 4294967295, %v18036_v42  ;;  %v14065_v45 = vadd.s32 112, %v13989_v2  ;;  %v11286_v47 = vld [vmem:[%s13995_s18 + $0x50] sm:$0xff]   ;;  %vm14074_vm3 = vcmp.ge.s32.totalorder %v388_v19, 1  ;;  %v11243_v51 = vunpack.c.l.bf16 %v11283_v35 }
  0x51   : > { %808 = vst.msk [vmem:[#allocation2 + $0xa8] sm:$0xff] %vm17703_vm0, %v17673_v1  ;;  %809 = vst.msk [vmem:[#allocation2 + $0xb0] sm:$0xff] %vm17703_vm0, %v17673_v1  ;;  %11913 = vmatprep.mubr.msk.bf16.mxu1 %vm17703_vm0, %v1098_v18  ;;  %v14072_v48 = vld [vmem:[%s17660_s1] sm:$0x3]  ;;  %v18040_v49 = vsel %vm14074_vm3, 4294967295, %v18039_v49  ;;  %v430_v50 = vand.u32 15, %v14015_v10  ;;  %v11244_v52 = vunpack.c.h.bf16 %v11283_v35  ;;  %v11247_v57 = vunpack.c.l.bf16 %v11284_v41 }
  0x52   : > { %810 = vst.msk [vmem:[#allocation2 + $0xb8] sm:$0xff] %vm17703_vm0, %v17673_v1  ;;  %811 = vst.msk [vmem:[#allocation2 + $0xc0] sm:$0xff] %vm17703_vm0, %v17673_v1  ;;  %v11287_v53 = vld [vmem:[%s13995_s18 + $0x58] sm:$0xff]   ;;  %v11288_v54 = vld [vmem:[%s13995_s18 + $0x60] sm:$0xff]   ;;  %13600 = vmatprep.subr.msk.bf16.mxu1 %vm17670_vm1, %v14072_v48  ;;  %vm14085_vm4 = vcmp.ge.s32.totalorder %v402_v27, 1  ;;  %v18042_v55 = vmov 0  ;;  %v11248_v58 = vunpack.c.h.bf16 %v11284_v41  ;;  %v11251_v61 = vunpack.c.l.bf16 %v11285_v46 }
  0x53   : > { %812 = vst.msk [vmem:[#allocation2 + $0xc8] sm:$0xff] %vm17703_vm0, %v17673_v1  ;;  %813 = vst.msk [vmem:[#allocation2 + $0xd0] sm:$0xff] %vm17703_vm0, %v17673_v1  ;;  %v18043_v55 = vsel %vm14085_vm4, 4294967295, %v18042_v55  ;;  %vm14089_vm5 = vcmp.ge.s32.totalorder %v416_v31, 1  ;;  %v18045_v56 = vmov 0  ;;  %v11289_v59 = vld [vmem:[%s13995_s18 + $0x68] sm:$0xff]   ;;  %v11252_v62 = vunpack.c.h.bf16 %v11285_v46 }
  0x54   : > { %814 = vst.msk [vmem:[#allocation2 + $0xd8] sm:$0xff] %vm17703_vm0, %v17673_v1  ;;  %815 = vst.msk [vmem:[#allocation2 + $0xe0] sm:$0xff] %vm17703_vm0, %v17673_v1  ;;  %v18046_v56 = vsel %vm14089_vm5, 4294967295, %v18045_v56  ;;  %v11290_v60 = vld [vmem:[%s13995_s18 + $0x70] sm:$0xff]   ;;  %v11255_v63 = vunpack.c.l.bf16 %v11286_v47  ;;  %v11256_v0 = vunpack.c.h.bf16 %v11286_v47  ;;  %v11259_v6 = vunpack.c.l.bf16 %v11287_v53 }
  0x55   : > { %816 = vst.msk [vmem:[#allocation2 + $0xe8] sm:$0xff] %vm17703_vm0, %v17673_v1  ;;  %817 = vst.msk [vmem:[#allocation2 + $0xf0] sm:$0xff] %vm17703_vm0, %v17673_v1  ;;  %v11260_v7 = vunpack.c.h.bf16 %v11287_v53  ;;  %v11263_v9 = vunpack.c.l.bf16 %v11288_v54  ;;  %v11264_v11 = vunpack.c.h.bf16 %v11288_v54  ;;  %v11267_v18 = vunpack.c.l.bf16 %v11289_v59 }
  0x56   : > { %818 = vst.msk [vmem:[#allocation2 + $0xf8] sm:$0xff] %vm17703_vm0, %v17673_v1  ;;  %819 = vst.msk [vmem:[#allocation2 + $0x100] sm:$0xff] %vm17703_vm0, %v17673_v1  ;;  %v11268_v19 = vunpack.c.h.bf16 %v11289_v59  ;;  %v11271_v24 = vunpack.c.l.bf16 %v11290_v60  ;;  %v2388_v31 = vsel %vm17670_vm1, %v14043_v36, 0  ;;  %vm14154_vm6 = vcmp.ge.s32.totalorder %v430_v50, 1 }
  0x57   : > { %820 = vst.msk [vmem:[#allocation2 + $0x108] sm:$0xff] %vm17703_vm0, %v17673_v1  ;;  %821 = vst.msk [vmem:[#allocation2 + $0x110] sm:$0xff] %vm17703_vm0, %v17673_v1  ;;  %v444_v41 = vand.u32 15, %v14049_v37  ;;  %v18051_v54 = vmov 0 }
  0x58   : > { %822 = vst.msk [vmem:[#allocation2 + $0x118] sm:$0xff] %vm17703_vm0, %v17673_v1  ;;  %857 = vst.msk [vmem:[#allocation2 + $0x11] sm:$0xff] %vm17703_vm0, %v11215_v15 }
  0x59   : > { %858 = vst.msk [vmem:[#allocation2 + $0x19] sm:$0xff] %vm17703_vm0, %v11216_v16  ;;  %859 = vst.msk [vmem:[#allocation2 + $0x21] sm:$0xff] %vm17703_vm0, %v11219_v20  ;;  %vm14183_vm7 = vcmp.ge.s32.totalorder %v444_v41, 1 }
  0x5a   : > { %860 = vst.msk [vmem:[#allocation2 + $0x29] sm:$0xff] %vm17703_vm0, %v11220_v21  ;;  %861 = vst.msk [vmem:[#allocation2 + $0x31] sm:$0xff] %vm17703_vm0, %v11223_v25  ;;  %v11272_v25 = vunpack.c.h.bf16 %v11290_v60  ;;  %v18052_v54 = vsel %vm14183_vm7, 4294967295, %v18051_v54 }
  0x5b   : > { %862 = vst.msk [vmem:[#allocation2 + $0x39] sm:$0xff] %vm17703_vm0, %v11224_v26  ;;  %863 = vst.msk [vmem:[#allocation2 + $0x41] sm:$0xff] %vm17703_vm0, %v11227_v28  ;;  %v14129_v26 = vld [vmem:[%s17660_s1 + $0xa] sm:$0x3] }
  0x5c   : > { %18038 = vst [vmem:[#allocation11_spill] sm:$0xff] %v18037_v42  ;;  %864 = vst.msk [vmem:[#allocation2 + $0x49] sm:$0xff] %vm17703_vm0, %v11228_v32  ;;  %v1378_v32 = vsel %vm17670_vm1, %v14072_v48, 0  ;;  %v472_v48 = vand.u32 15, %v14065_v45 }
  0x5d   : > { %865 = vst.msk [vmem:[#allocation2 + $0x51] sm:$0xff] %vm17703_vm0, %v11231_v33  ;;  %866 = vst.msk [vmem:[#allocation2 + $0x59] sm:$0xff] %vm17703_vm0, %v11232_v34  ;;  %v14145_v33 = vld [vmem:[%s17660_s1 + $0x4] sm:$0x3] }
  0x5e   : > { %18041 = vst [vmem:[#allocation12_spill] sm:$0xff] %v18040_v49  ;;  %867 = vst.msk [vmem:[#allocation2 + $0x61] sm:$0xff] %vm17703_vm0, %v11235_v38  ;;  %vm14195_vm8 = vcmp.ge.s32.totalorder %v472_v48, 1 }
  0x5f   : > { %868 = vst.msk [vmem:[#allocation2 + $0x69] sm:$0xff] %vm17703_vm0, %v11236_v39  ;;  %18044 = vst [vmem:[#allocation13_spill] sm:$0xff] %v18043_v55  ;;  %v1068_v3 = vld [vmem:[#allocation2 + $0x11] sm:$0xff]  ;;  %v18048_v39 = vmov 0 }
  0x60   : > { %18047 = vst [vmem:[#allocation14_spill] sm:$0xff] %v18046_v56  ;;  %869 = vst.msk [vmem:[#allocation2 + $0x71] sm:$0xff] %vm17703_vm0, %v11239_v43  ;;  %v1069_v4 = vld [vmem:[#allocation2 + $0x19] sm:$0xff]  ;;  %v14099_v5 = vld [vmem:[#allocation2 + $0x10] sm:$0xff]  ;;  %v18049_v39 = vsel %vm14154_vm6, 4294967295, %v18048_v39 }
  0x61   : > { %870 = vst.msk [vmem:[#allocation2 + $0x79] sm:$0xff] %vm17703_vm0, %v11240_v44  ;;  %871 = vst.msk [vmem:[#allocation2 + $0x81] sm:$0xff] %vm17703_vm0, %v11243_v51  ;;  %v14103_v12 = vpack.c.bf16 %v1069_v4, %v1068_v3  ;;  %v14105_v13 = vld [vmem:[#allocation2 + $0x18] sm:$0xff]  ;;  %v1995_v15 = vsel %vm14057_vm2, %v14099_v5, 0.0  ;;  %v14110_v16 = vld [vmem:[#allocation2 + $0x20] sm:$0xff] }
  0x62   : > { %872 = vst.msk [vmem:[#allocation2 + $0x89] sm:$0xff] %vm17703_vm0, %v11244_v52  ;;  %873 = vst.msk [vmem:[#allocation2 + $0x91] sm:$0xff] %vm17703_vm0, %v11247_v57  ;;  %v14112_v17 = vld [vmem:[#allocation2 + $0x28] sm:$0xff]  ;;  %v2027_v20 = vpack.c.bf16 %v14105_v13, %v1995_v15  ;;  %v1997_v21 = vsel %vm14074_vm3, %v14110_v16, 0.0  ;;  %v1967_v29 = vld [vmem:[#allocation2 + $0x30] sm:$0xff]  ;;  %v458_v57 = vand.u32 15, %v14052_v40 }
  0x63   : > { %874 = vst.msk [vmem:[#allocation2 + $0x99] sm:$0xff] %vm17703_vm0, %v11248_v58  ;;  %875 = vst.msk [vmem:[#allocation2 + $0xa1] sm:$0xff] %vm17703_vm0, %v11251_v61  ;;  %v1070_v22 = vld [vmem:[#allocation2 + $0x21] sm:$0xff]  ;;  %v1071_v23 = vld [vmem:[#allocation2 + $0x29] sm:$0xff]  ;;  %11914 = vmatmul.mubr.msk.bf16.vlgmr.msra.gmra.mrb[0].mxu1 %vm17703_vm0, %v14103_v12  ;;  %v2028_v27 = vpack.c.bf16 %v14112_v17, %v1997_v21  ;;  %v1999_v38 = vsel %vm14085_vm4, %v1967_v29, 0.0  ;;  %v1023_v53 = vsel %vm14089_vm5, %v1967_v29, 0.0 }
  0x64   : > { %876 = vst.msk [vmem:[#allocation2 + $0xa9] sm:$0xff] %vm17703_vm0, %v11252_v62  ;;  %877 = vst.msk [vmem:[#allocation2 + $0xb1] sm:$0xff] %vm17703_vm0, %v11255_v63  ;;  %v14134_v28 = vpack.c.bf16 %v1071_v23, %v1070_v22  ;;  %v1968_v30 = vld [vmem:[#allocation2 + $0x38] sm:$0xff]  ;;  %12015 = vmatprep.mubr.msk.bf16.mxu0 %vm17703_vm0, %v2027_v20  ;;  %v14150_v36 = vld [vmem:[#allocation2 + $0x40] sm:$0xff]  ;;  %11946 = vmatpush3.bf16.msra.mxu1 %v1378_v32  ;;  %v18054_v63 = vmov 0  ;;  %vm14213_vm9 = vcmp.ge.s32.totalorder %v458_v57, 1 }
  0x65   : > { %878 = vst.msk [vmem:[#allocation2 + $0xb9] sm:$0xff] %vm17703_vm0, %v11256_v0  ;;  %879 = vst.msk [vmem:[#allocation2 + $0xc1] sm:$0xff] %vm17703_vm0, %v11259_v6  ;;  %v1072_v34 = vld [vmem:[#allocation2 + $0x31] sm:$0xff]  ;;  %v1073_v35 = vld [vmem:[#allocation2 + $0x39] sm:$0xff]  ;;  %12016 = vmatmul.mubr.msk.bf16.vlgmr.msra.gmra.mrb[0].mxu0 %vm17703_vm0, %v2028_v27  ;;  %v2029_v43 = vpack.c.bf16 %v1968_v30, %v1999_v38  ;;  %v2001_v47 = vsel %vm14089_vm5, %v14150_v36, 0.0  ;;  %13601 = vmatprep.subr.msk.bf16.mxu1 %vm17670_vm1, %v14145_v33  ;;  %v14188_v58 = vpack.c.bf16 %v1968_v30, %v1023_v53 }
  0x66   : > { %880 = vst.msk [vmem:[#allocation2 + $0xc9] sm:$0xff] %vm17703_vm0, %v11260_v7  ;;  %881 = vst.msk [vmem:[#allocation2 + $0xd1] sm:$0xff] %vm17703_vm0, %v11263_v9  ;;  %11917 = vmatprep.mubr.msk.bf16.mxu1 %vm17703_vm0, %v14134_v28  ;;  %v1074_v44 = vld [vmem:[#allocation2 + $0x41] sm:$0xff]  ;;  %v1075_v46 = vld [vmem:[#allocation2 + $0x49] sm:$0xff]  ;;  %12048 = vmatpush3.bf16.msra.mxu0 %v2388_v31  ;;  %v14172_v50 = vpack.c.bf16 %v1073_v35, %v1072_v34  ;;  %v18055_v63 = vsel %vm14195_vm8, 4294967295, %v18054_v63 }
  0x67   : > { %882 = vst.msk [vmem:[#allocation2 + $0xd9] sm:$0xff] %vm17703_vm0, %v11264_v11  ;;  %883 = vst.msk [vmem:[#allocation2 + $0xe1] sm:$0xff] %vm17703_vm0, %v11267_v18  ;;  %v14164_v10 = vld [vmem:[#allocation2 + $0x48] sm:$0xff]  ;;  %v1971_v37 = vld [vmem:[#allocation2 + $0x50] sm:$0xff]  ;;  %12019 = vmatprep.mubr.msk.bf16.mxu0 %vm17703_vm0, %v2029_v43  ;;  %13605 = vmatprep.subr.msk.bf16.mxu0 %vm17670_vm1, %v14129_v26  ;;  %v14181_v45 = vpack.c.bf16 %v1075_v46, %v1074_v44  ;;  %v18057_v11 = vmov 0 }
  0x68   : > { %884 = vst.msk [vmem:[#allocation2 + $0xe9] sm:$0xff] %vm17703_vm0, %v11268_v19  ;;  %18050 = vst [vmem:[#allocation15_spill] sm:$0xff] %v18049_v39  ;;  %v1972_v51 = vld [vmem:[#allocation2 + $0x58] sm:$0xff]  ;;  %v2003_v52 = vsel %vm14154_vm6, %v1971_v37, 0.0  ;;  %v2030_v59 = vpack.c.bf16 %v14164_v10, %v2001_v47  ;;  %v1027_v60 = vsel %vm14183_vm7, %v1971_v37, 0.0  ;;  %v14193_v62 = vld [vmem:[#allocation2 + $0x70] sm:$0xff] }
  0x69   : > { %885 = vst.msk [vmem:[#allocation2 + $0xf1] sm:$0xff] %vm17703_vm0, %v11271_v24  ;;  %886 = vst.msk [vmem:[#allocation2 + $0xf9] sm:$0xff] %vm17703_vm0, %v11272_v25  ;;  %v2031_v61 = vpack.c.bf16 %v1972_v51, %v2003_v52  ;;  %v14199_v0 = vpack.c.bf16 %v1972_v51, %v1027_v60  ;;  %v11291_v3 = vld [vmem:[%s13995_s18 + $0x78] sm:$0xff]   ;;  %v14204_v40 = vld [vmem:[#allocation2 + $0x60] sm:$0xff]  ;;  %v1031_v6 = vsel %vm14195_vm8, %v14193_v62, 0.0  ;;  %v18058_v11 = vsel %vm14213_vm9, 4294967295, %v18057_v11 }
  0x6a   : > { %18053 = vst [vmem:[#allocation16_spill] sm:$0xff] %v18052_v54  ;;  %18056 = vst [vmem:[#allocation17_spill] sm:$0xff] %v18055_v63  ;;  %v14206_v4 = vld [vmem:[#allocation2 + $0x78] sm:$0xff]  ;;  %v1078_v18 = vld [vmem:[#allocation2 + $0x61] sm:$0xff]  ;;  %v11275_v20 = vunpack.c.l.bf16 %v11291_v3  ;;  %v11276_v21 = vunpack.c.h.bf16 %v11291_v3  ;;  %v2005_v23 = vsel %vm14183_vm7, %v14204_v40, 0.0  ;;  %v2007_v25 = vsel %vm14213_vm9, %v14193_v62, 0.0 }
  0x6b   : > { %11918 = vmatmul.mubr.msk.bf16.gmra.mrb[4].mxu1 %vm17703_vm0, %v14172_v50  ;;  %v1076_v7 = vld [vmem:[#allocation2 + $0x51] sm:$0xff]  ;;  %v1077_v9 = vld [vmem:[#allocation2 + $0x59] sm:$0xff]  ;;  %18059 = vst [vmem:[#allocation18_spill] sm:$0xff] %v18058_v11  ;;  %v14218_v15 = vpack.c.bf16 %v14206_v4, %v1031_v6  ;;  %v1079_v19 = vld [vmem:[#allocation2 + $0x69] sm:$0xff]  ;;  %v2033_v30 = vpack.c.bf16 %v14206_v4, %v2007_v25  ;;  %v2714_v3 = vsel %vm17670_vm1, %v14129_v26, 0  ;;  %v354_v25 = vadd.s32 128, %v13989_v2 }
  0x6c   : > { %11921 = vmatprep.mubr.msk.bf16.mxu1 %vm17703_vm0, %v14181_v45  ;;  %v14222_v22 = vld [vmem:[#allocation2 + $0x68] sm:$0xff]  ;;  %v1103_v24 = vpack.c.bf16 %v1077_v9, %v1076_v7  ;;  %887 = vst.msk [vmem:[#allocation2 + $0x101] sm:$0xff] %vm17703_vm0, %v11275_v20  ;;  %888 = vst.msk [vmem:[#allocation2 + $0x109] sm:$0xff] %vm17703_vm0, %v11276_v21  ;;  %v1104_v27 = vpack.c.bf16 %v1079_v19, %v1078_v18  ;;  %v14235_v31 = vld [vmem:[#allocation2 + $0x80] sm:$0xff]  ;;  %v345_v11 = vadd.s32 56, %v13989_v2  ;;  %v18111_v54 = vmov 0 }
  0x6d   : > { %12020 = vmatmul.mubr.msk.bf16.gmra.mrb[4].mxu0 %vm17703_vm0, %v2030_v59  ;;  %v2032_v29 = vpack.c.bf16 %v14222_v22, %v2005_v23  ;;  %v1080_v32 = vld [vmem:[#allocation2 + $0x71] sm:$0xff]  ;;  %v1081_v34 = vld [vmem:[#allocation2 + $0x79] sm:$0xff]  ;;  %v1082_v35 = vld [vmem:[#allocation2 + $0x81] sm:$0xff]  ;;  %v2009_v43 = vsel %vm14195_vm8, %v14235_v31, 0.0 }
  0x6e   : > { %12023 = vmatprep.mubr.msk.bf16.mxu0 %vm17703_vm0, %v2031_v61  ;;  %v1083_v38 = vld [vmem:[#allocation2 + $0x89] sm:$0xff]  ;;  %v1105_v44 = vpack.c.bf16 %v1081_v34, %v1080_v32  ;;  %v1084_v37 = vld [vmem:[#allocation2 + $0x91] sm:$0xff]  ;;  %v1085_v48 = vld [vmem:[#allocation2 + $0x99] sm:$0xff]  ;;  %v486_v32 = vand.u32 15, %v354_v25 }
  0x6f   : > { %v14240_v41 = vld [vmem:[#allocation2 + $0x88] sm:$0xff]  ;;  %v14245_v46 = vpack.c.bf16 %v1083_v38, %v1082_v35  ;;  %v1107_v53 = vpack.c.bf16 %v1085_v48, %v1084_v37  ;;  %v1088_v59 = vld [vmem:[#allocation2 + $0xb1] sm:$0xff]  ;;  %v1089_v60 = vld [vmem:[#allocation2 + $0xb9] sm:$0xff] }
  0x70   : > { %v2034_v47 = vpack.c.bf16 %v14240_v41, %v2009_v43  ;;  %v1086_v51 = vld [vmem:[#allocation2 + $0xa1] sm:$0xff]  ;;  %v1087_v52 = vld [vmem:[#allocation2 + $0xa9] sm:$0xff]  ;;  %v14270_v7 = vpack.c.bf16 %v1089_v60, %v1088_v59  ;;  %v1092_v9 = vld [vmem:[#allocation2 + $0xd1] sm:$0xff]  ;;  %v2951_v43 = vsel %vm14183_vm7, %v14193_v62, 0.0  ;;  %v1019_v62 = vsel %vm14074_vm3, %v14099_v5, 0.0 }
  0x71   : > { %v14254_v57 = vpack.c.bf16 %v1087_v52, %v1086_v51  ;;  %v1090_v61 = vld [vmem:[#allocation2 + $0xc1] sm:$0xff]  ;;  %v14264_v6 = vld [vmem:[%s17660_s1 + $0xc] sm:$0x3]  ;;  %v1093_v18 = vld [vmem:[#allocation2 + $0xd9] sm:$0xff]  ;;  %vm14332_vm10 = vcmp.ge.s32.totalorder %v486_v32, 1  ;;  %v1021_v5 = vsel %vm14085_vm4, %v14110_v16, 0.0 }
  0x72   : > { %v1094_v19 = vld [vmem:[#allocation2 + $0xe1] sm:$0xff]  ;;  %v1096_v23 = vld [vmem:[#allocation2 + $0xf1] sm:$0xff]  ;;  %v1051_v16 = vpack.c.bf16 %v14112_v17, %v1021_v5  ;;  %v362_v32 = vadd.s32 192, %v13989_v2 }
  0x73   : > { %11922 = vmatmul.mubr.msk.bf16.gmra.mrb[8].mxu1 %vm17703_vm0, %v1103_v24  ;;  %v889_v21 = vld [vmem:[#allocation2] sm:$0xff]  ;;  %v14299_v38 = vld [vmem:[#allocation2 + $0x90] sm:$0xff]  ;;  %v14304_v37 = vld [vmem:[#allocation2 + $0x98] sm:$0xff] }
  0x74   : > { %11925 = vmatprep.mubr.msk.bf16.mxu1 %vm17703_vm0, %v1104_v27  ;;  %v14312_v48 = vld [vmem:[#allocation2 + $0xa0] sm:$0xff]  ;;  %v2955_v52 = vsel %vm14195_vm8, %v14299_v38, 0.0  ;;  %v14326_v59 = vld [vmem:[#allocation2 + $0xa8] sm:$0xff]  ;;  %v14361_v25 = vld [vmem:[#allocation2 + $0xb0] sm:$0xff] }
  0x75   : > { %12024 = vmatmul.mubr.msk.bf16.gmra.mrb[8].mxu0 %vm17703_vm0, %v2032_v29  ;;  %v1097_v29 = vld [vmem:[#allocation2 + $0xf9] sm:$0xff]  ;;  %v14329_v60 = vpack.c.bf16 %v14304_v37, %v2955_v52  ;;  %v14417_v5 = vld [vmem:[#allocation2 + $0xd0] sm:$0xff] }
  0x76   : > { %12027 = vmatprep.mubr.msk.bf16.mxu0 %vm17703_vm0, %v2033_v30  ;;  %v356_v30 = vadd.s32 144, %v13989_v2  ;;  %v14297_v34 = vpack.c.bf16 %v1097_v29, %v1096_v23  ;;  %v1768_v29 = vsel %vm17670_vm1, %v14145_v33, 0  ;;  %v18066_v33 = vmov 0  ;;  %v2915_v42 = vld [vmem:[#allocation2 + $0x50] sm:$0xff] }
  0x78   : > { %v500_v35 = vand.u32 15, %v356_v30  ;;  %v14368_v30 = vld [vmem:[#allocation2 + $0xb8] sm:$0xff] }
  0x7a   : > { %vm14336_vm11 = vcmp.ge.s32.totalorder %v500_v35, 1  ;;  %v14390_v35 = vld [vmem:[#allocation2 + $0xc0] sm:$0xff] }
  0x7b   : > { %11926 = vmatmul.mubr.msk.bf16.gmra.mrb[12].mxu1 %vm17703_vm0, %v1105_v44 }
  0x7c   : > { %11929 = vmatprep.mubr.msk.bf16.mxu1 %vm17703_vm0, %v14245_v46 }
  0x7d   : > { %12028 = vmatmul.mubr.msk.bf16.gmra.mrb[12].mxu0 %vm17703_vm0, %v2034_v47 }
  0x7e   : > { %12049 = vmatprep.mubr.msk.bf16.mxu0 %vm17703_vm0, %v14103_v12  ;;  %v1091_v12 = vld [vmem:[#allocation2 + $0xc9] sm:$0xff] }
  0x7f   : > { %v14274_v26 = vpack.c.bf16 %v1091_v12, %v1090_v61  ;;  %v18060_v61 = vmov 0  ;;  %v360_v12 = vadd.s32 176, %v13989_v2 }
  0x80   : > { %v18061_v61 = vsel %vm14332_vm10, 4294967295, %v18060_v61 }
  0x81   : > { %18062 = vst [vmem:[#allocation19_spill] sm:$0xff] %v18061_v61  ;;  %v528_v23 = vand.u32 15, %v360_v12 }
  0x83   : > { %11930 = vmatmul.mubr.msk.bf16.gmra.mrb[16].mxu1 %vm17703_vm0, %v1107_v53  ;;  %vm14385_vm13 = vcmp.ge.s32.totalorder %v528_v23, 1  ;;  %v18075_v23 = vmov 0 }
  0x84   : > { %11933 = vmatprep.mubr.msk.bf16.mxu1 %vm17703_vm0, %v14254_v57 }
  0x85   : > { %12050 = vmatmul.mubr.msk.bf16.vlgmr.msra.gmra.mrb[0].mxu0 %vm17703_vm0, %v14134_v28  ;;  %v1095_v28 = vld [vmem:[#allocation2 + $0xe9] sm:$0xff] }
  0x86   : > { %12053 = vmatprep.mubr.msk.bf16.mxu0 %vm17703_vm0, %v14172_v50  ;;  %12082 = vmatpush3.bf16.msra.mxu0 %v2714_v3  ;;  %v14283_v50 = vpack.c.bf16 %v1093_v18, %v1092_v9  ;;  %v14285_v20 = vpack.c.bf16 %v1095_v28, %v1094_v19  ;;  %v18063_v3 = vmov 0  ;;  %v2011_v9 = vsel %vm14332_vm10, %v14299_v38, 0.0 }
  0x87   : > { %13606 = vmatprep.subr.msk.bf16.mxu0 %vm17670_vm1, %v14264_v6  ;;  %v18064_v3 = vsel %vm14336_vm11, 4294967295, %v18063_v3  ;;  %v2013_v18 = vsel %vm14336_vm11, %v14312_v48, 0.0  ;;  %v14354_v19 = vpack.c.bf16 %v14304_v37, %v2011_v9 }
  0x88   : > { %18065 = vst [vmem:[#allocation20_spill] sm:$0xff] %v18064_v3  ;;  %v14357_v28 = vpack.c.bf16 %v14326_v59, %v2013_v18  ;;  %v14422_v18 = vld [vmem:[#allocation2 + $0xd8] sm:$0xff]  ;;  %v18096_v3 = vmov 0 }
  0x8b   : > { %11934 = vmatmul.mubr.msk.bf16.gmra.mrb[20].mxu1 %vm17703_vm0, %v14270_v7 }
  0x8c   : > { %11937 = vmatprep.mubr.msk.bf16.mxu1 %vm17703_vm0, %v14274_v26 }
  0x8d   : > { %12054 = vmatmul.mubr.msk.bf16.gmra.mrb[4].mxu0 %vm17703_vm0, %v14181_v45  ;;  %v890_v45 = vld [vmem:[#allocation2 + $0x8] sm:$0xff] }
  0x8e   : > { %12057 = vmatprep.mubr.msk.bf16.mxu0 %vm17703_vm0, %v1103_v24  ;;  %v1017_v24 = vsel %vm14057_vm2, %v889_v21, 0.0 }
  0x8f   : > { %v1049_v47 = vpack.c.bf16 %v890_v45, %v1017_v24  ;;  %v18069_v24 = vmov 0 }
  0x90   : > { %v18070_v24 = vsel %vm14385_vm13, 4294967295, %v18069_v24 }
  0x91   : > { %18071 = vst [vmem:[#allocation22_spill] sm:$0xff] %v18070_v24  ;;  %v368_v24 = vadd.s32 240, %v13989_v2 }
  0x93   : > { %11938 = vmatmul.mubr.msk.bf16.gmra.mrb[24].mxu1 %vm17703_vm0, %v14283_v50 }
  0x94   : > { %11941 = vmatprep.mubr.msk.bf16.mxu1 %vm17703_vm0, %v14285_v20 }
  0x95   : > { %12058 = vmatmul.mubr.msk.bf16.gmra.mrb[8].mxu0 %vm17703_vm0, %v1104_v27  ;;  %v14307_v27 = vpack.c.bf16 %v14206_v4, %v2951_v43  ;;  %v358_v4 = vadd.s32 160, %v13989_v2  ;;  %v364_v43 = vadd.s32 208, %v13989_v2 }
  0x96   : > { %12061 = vmatprep.mubr.msk.bf16.mxu0 %vm17703_vm0, %v1105_v44  ;;  %v2953_v44 = vsel %vm14213_vm9, %v14235_v31, 0.0 }
  0x97   : > { %v14315_v51 = vpack.c.bf16 %v14240_v41, %v2953_v44  ;;  %v514_v21 = vand.u32 15, %v358_v4  ;;  %v14398_v44 = vld [vmem:[#allocation2 + $0xc8] sm:$0xff]  ;;  %v556_v12 = vand.u32 15, %v364_v43 }
  0x99   : > { %vm14381_vm12 = vcmp.ge.s32.totalorder %v514_v21, 1  ;;  %v18072_v21 = vmov 0  ;;  %vm14441_vm15 = vcmp.ge.s32.totalorder %v556_v12, 1  ;;  %v14475_v12 = vld [vmem:[#allocation2 + $0xf8] sm:$0xff] }
  0x9a   : > { %v18067_v33 = vsel %vm14381_vm12, 4294967295, %v18066_v33  ;;  %v2015_v52 = vsel %vm14381_vm12, %v14361_v25, 0.0  ;;  %v2961_v9 = vsel %vm14381_vm12, %v14390_v35, 0.0  ;;  %v18076_v23 = vsel %vm14441_vm15, 4294967295, %v18075_v23 }
  0x9b   : > { %11942 = vmatmul.mubr.msk.bf16.gmra.mrb[28].mxu1 %vm17703_vm0, %v14297_v34  ;;  %18068 = vst [vmem:[#allocation21_spill] sm:$0xff] %v18067_v33  ;;  %18077 = vst [vmem:[#allocation24_spill] sm:$0xff] %v18076_v23 }
  0x9c   : > { %11947 = vmatprep.mubr.msk.bf16.mxu1 %vm17703_vm0, %v1049_v47  ;;  %v1025_v47 = vsel %vm14154_vm6, %v14150_v36, 0.0 }
  0x9d   : > { %12062 = vmatmul.mubr.msk.bf16.gmra.mrb[12].mxu0 %vm17703_vm0, %v14245_v46  ;;  %v1050_v46 = vpack.c.bf16 %v14105_v13, %v1019_v62  ;;  %v2959_v13 = vsel %vm14336_vm11, %v14361_v25, 0.0  ;;  %v2017_v62 = vsel %vm14385_vm13, %v14390_v35, 0.0  ;;  %v1053_v4 = vpack.c.bf16 %v14164_v10, %v1025_v47 }
  0x9e   : > { %12065 = vmatprep.mubr.msk.bf16.mxu0 %vm17703_vm0, %v1107_v53  ;;  %v2957_v53 = vsel %vm14332_vm10, %v14312_v48, 0.0  ;;  %v14378_v17 = vpack.c.bf16 %v14368_v30, %v2959_v13  ;;  %v14414_v36 = vpack.c.bf16 %v14398_v44, %v2017_v62  ;;  %v14453_v13 = vld [vmem:[#allocation2 + $0xe8] sm:$0xff] }
  0x9f   : > { %v14371_v45 = vpack.c.bf16 %v14326_v59, %v2957_v53  ;;  %v14446_v53 = vld [vmem:[#allocation2 + $0xe0] sm:$0xff] }
  0xa0   : > { %v2021_v43 = vsel %vm14441_vm15, %v14446_v53, 0.0 }
  0xa3   : > { %11948 = vmatmul.mubr.msk.bf16.vlgmr.msra.gmra.mrb[0].mxu1 %vm17703_vm0, %v1050_v46  ;;  %v2963_v46 = vsel %vm14385_vm13, %v14417_v5, 0.0 }
  0xa4   : > { %11951 = vmatprep.mubr.msk.bf16.mxu1 %vm17703_vm0, %v1051_v16  ;;  %11980 = vmatpush3.bf16.msra.mxu1 %v1768_v29  ;;  %v14433_v10 = vpack.c.bf16 %v14422_v18, %v2963_v46  ;;  %v339_v16 = vadd.s32 8, %v13989_v2  ;;  %v366_v29 = vadd.s32 224, %v13989_v2 }
  0xa5   : > { %12066 = vmatmul.mubr.msk.bf16.gmra.mrb[16].mxu0 %vm17703_vm0, %v14254_v57  ;;  %13603 = vmatprep.subr.msk.bf16.mxu1 %vm17670_vm1, %v14011_v8  ;;  %v14411_v57 = vpack.c.bf16 %v14368_v30, %v2015_v52  ;;  %v542_v8 = vand.u32 15, %v362_v32 }
  0xa6   : > { %12069 = vmatprep.mubr.msk.bf16.mxu0 %vm17703_vm0, %v14270_v7  ;;  %v14425_v7 = vpack.c.bf16 %v14398_v44, %v2961_v9  ;;  %v381_v52 = vand.u32 15, %v339_v16  ;;  %v570_v62 = vand.u32 15, %v366_v29  ;;  %v18079_v16 = vmov 0  ;;  %v14494_v29 = vld [vmem:[#allocation2 + $0x1a] sm:$0xff] }
  0xa7   : > { %vm14437_vm14 = vcmp.ge.s32.totalorder %v542_v8, 1 }
  0xa8   : > { %v18073_v21 = vsel %vm14437_vm14, 4294967295, %v18072_v21  ;;  %v2019_v32 = vsel %vm14437_vm14, %v14417_v5, 0.0  ;;  %v2965_v8 = vsel %vm14437_vm14, %v14446_v53, 0.0  ;;  %vm14490_vm1 = vcmp.lt.s32.totalorder %v381_v52, 15  ;;  %v2320_v52 = vld [vmem:[#allocation2 + $0x109] sm:$0xff] }
  0xa9   : > { %18074 = vst [vmem:[#allocation23_spill] sm:$0xff] %v18073_v21  ;;  %v14464_v47 = vpack.c.bf16 %v14422_v18, %v2019_v32  ;;  %v18080_v16 = vsel %vm14490_vm1, 4294967295, %v18079_v16  ;;  %vm14497_vm8 = vcmp.ge.s32.totalorder %v570_v62, 1  ;;  %v18082_v32 = vmov 0 }
  0xaa   : > { %18081 = vst [vmem:[#allocation26_spill] sm:$0xff] %v18080_v16  ;;  %v18083_v32 = vsel %vm14497_vm8, 4294967295, %v18082_v32 }
  0xab   : > { %11952 = vmatmul.mubr.msk.bf16.gmra.mrb[4].mxu1 %vm17703_vm0, %v14188_v58  ;;  %v1029_v58 = vsel %vm14213_vm9, %v14204_v40, 0.0  ;;  %18084 = vst [vmem:[#allocation27_spill] sm:$0xff] %v18083_v32 }
  0xac   : > { %11955 = vmatprep.mubr.msk.bf16.mxu1 %vm17703_vm0, %v1053_v4  ;;  %v1055_v40 = vpack.c.bf16 %v14222_v22, %v1029_v58  ;;  %v14470_v4 = vld [vmem:[#allocation2 + $0xf0] sm:$0xff]  ;;  %v341_v22 = vadd.s32 24, %v13989_v2  ;;  %v343_v58 = vadd.s32 40, %v13989_v2 }
  0xad   : > { %12070 = vmatmul.mubr.msk.bf16.gmra.mrb[20].mxu0 %vm17703_vm0, %v14274_v26  ;;  %v14467_v26 = vpack.c.bf16 %v14453_v13, %v2021_v43  ;;  %v2967_v9 = vsel %vm14441_vm15, %v14470_v4, 0.0  ;;  %v2023_v43 = vsel %vm14497_vm8, %v14470_v4, 0.0 }
  0xae   : > { %12073 = vmatprep.mubr.msk.bf16.mxu0 %vm17703_vm0, %v14283_v50  ;;  %v14478_v50 = vpack.c.bf16 %v14453_v13, %v2965_v8  ;;  %v14487_v46 = vpack.c.bf16 %v14475_v12, %v2967_v9  ;;  %v14512_v62 = vpack.c.bf16 %v14475_v12, %v2023_v43  ;;  %v14514_v8 = vld [vmem:[#allocation2 + $0x12] sm:$0xff]  ;;  %v395_v9 = vand.u32 15, %v341_v22  ;;  %v14529_v43 = vld [vmem:[#allocation2 + $0x2a] sm:$0xff] }
  0xaf   : > { %v409_v1 = vand.u32 15, %v343_v58  ;;  %18090 = vst [vmem:[#allocation31_spill] sm:$0xff] %v14529_v43  ;;  %v18091_v22 = vmov 0  ;;  %v14540_v58 = vld [vmem:[#allocation2 + $0x3a] sm:$0xff] }
  0xb0   : > { %18078 = vst [vmem:[#allocation25_spill] sm:$0xff] %v14487_v46  ;;  %18085 = vst [vmem:[#allocation28_spill] sm:$0xff] %v14512_v62  ;;  %v1542_v46 = vld [vmem:[#allocation2 + $0xa] sm:$0xff]  ;;  %v18125_v62 = vmov 0 }
  0xb1   : > { %vm14536_vm9 = vcmp.lt.s32.totalorder %v409_v1, 15  ;;  %18094 = vst [vmem:[#allocation33_spill] sm:$0xff] %v14540_v58 }
  0xb2   : > { %v18092_v22 = vsel %vm14536_vm9, 4294967295, %v18091_v22 }
  0xb3   : > { %11956 = vmatmul.mubr.msk.bf16.gmra.mrb[8].mxu1 %vm17703_vm0, %v14199_v0  ;;  %v1033_v0 = vsel %vm14332_vm10, %v14235_v31, 0.0  ;;  %vm14525_vm10 = vcmp.lt.s32.totalorder %v395_v9, 15  ;;  %18093 = vst [vmem:[#allocation32_spill] sm:$0xff] %v18092_v22  ;;  %v423_v9 = vand.u32 15, %v345_v11 }
  0xb4   : > { %11959 = vmatprep.mubr.msk.bf16.mxu1 %vm17703_vm0, %v1055_v40  ;;  %v2319_v40 = vld [vmem:[#allocation2 + $0x101] sm:$0xff]  ;;  %v1057_v31 = vpack.c.bf16 %v14240_v41, %v1033_v0  ;;  %v1035_v41 = vsel %vm14336_vm11, %v14299_v38, 0.0  ;;  %v1037_v0 = vsel %vm14381_vm12, %v14312_v48, 0.0  ;;  %v2618_v1 = vsel %vm14525_vm10, %v14529_v43, 0.0 }
  0xb5   : > { %12074 = vmatmul.mubr.msk.bf16.gmra.mrb[24].mxu0 %vm17703_vm0, %v14285_v20  ;;  %v2616_v20 = vsel %vm14490_vm1, %v14494_v29, 0.0  ;;  %v14520_v61 = vpack.c.bf16 %v2320_v52, %v2319_v40  ;;  %v14549_v40 = vld [vmem:[#allocation2 + $0x22] sm:$0xff]  ;;  %v1058_v38 = vpack.c.bf16 %v14304_v37, %v1035_v41  ;;  %v14555_v52 = vld [vmem:[#allocation2 + $0x32] sm:$0xff]  ;;  %vm14564_vm12 = vcmp.lt.s32.totalorder %v423_v9, 15  ;;  %v14568_v37 = vld [vmem:[#allocation2 + $0x4a] sm:$0xff] }
  0xb6   : > { %12077 = vmatprep.mubr.msk.bf16.mxu0 %vm17703_vm0, %v14297_v34  ;;  %v2647_v63 = vpack.c.bf16 %v2616_v20, %v14514_v8  ;;  %v18087_v34 = vmov 0  ;;  %18095 = vst [vmem:[#allocation34_spill] sm:$0xff] %v14555_v52  ;;  %v2620_v20 = vsel %vm14536_vm9, %v14540_v58, 0.0  ;;  %v18097_v3 = vsel %vm14564_vm12, 4294967295, %v18096_v3  ;;  %18099 = vst [vmem:[#allocation36_spill] sm:$0xff] %v14568_v37 }
  0xb7   : > { %18086 = vst [vmem:[#allocation29_spill] sm:$0xff] %v14520_v61  ;;  %v18088_v34 = vsel %vm14525_vm10, 4294967295, %v18087_v34  ;;  %v2649_v33 = vpack.c.bf16 %v2620_v20, %v14555_v52  ;;  %18098 = vst [vmem:[#allocation35_spill] sm:$0xff] %v18097_v3  ;;  %v349_v41 = vadd.s32 88, %v13989_v2  ;;  %vm18100_vm11 = vcmask 1041408  }
  0xb8   : > { %18089 = vst [vmem:[#allocation30_spill] sm:$0xff] %v18088_v34  ;;  %v3040_v11 = vsel %vm18100_vm11, %v14264_v6, 0  ;;  %v1041_v6 = vsel %vm14437_vm14, %v14390_v35, 0.0  ;;  %v2622_v20 = vsel %vm14564_vm12, %v14568_v37, 0.0 }
  0xbb   : > { %11960 = vmatmul.mubr.msk.bf16.gmra.mrb[12].mxu1 %vm17703_vm0, %v14218_v15  ;;  %v347_v15 = vadd.s32 72, %v13989_v2 }
  0xbc   : > { %11963 = vmatprep.mubr.msk.bf16.mxu1 %vm17703_vm0, %v1057_v31  ;;  %v1059_v31 = vpack.c.bf16 %v14326_v59, %v1037_v0  ;;  %v1039_v59 = vsel %vm14385_vm13, %v14361_v25, 0.0  ;;  %v14581_v0 = vld [vmem:[#allocation2 + $0x5a] sm:$0xff]  ;;  %v14594_v25 = vld [vmem:[#allocation2 + $0x42] sm:$0xff] }
  0xbd   : > { %12078 = vmatmul.mubr.msk.bf16.gmra.mrb[28].mxu0 %vm17703_vm0, %v14520_v61  ;;  %v437_v48 = vand.u32 15, %v347_v15  ;;  %v18101_v15 = vmov 0  ;;  %v1060_v9 = vpack.c.bf16 %v14368_v30, %v1039_v59  ;;  %v2650_v21 = vpack.c.bf16 %v2622_v20, %v14594_v25  ;;  %v14616_v59 = vld [vmem:[#allocation2 + $0x6a] sm:$0xff] }
  0xbe   : > { %12083 = vmatprep.mubr.msk.bf16.mxu0 %vm17703_vm0, %v2647_v63  ;;  %v2648_v63 = vpack.c.bf16 %v2618_v1, %v14549_v40  ;;  %v351_v1 = vadd.s32 104, %v13989_v2  ;;  %v18105_v30 = vmov 0  ;;  %v355_v20 = vadd.s32 136, %v13989_v2 }
  0xbf   : > { %vm14577_vm7 = vcmp.lt.s32.totalorder %v437_v48, 15 }
  0xc0   : > { %v18102_v15 = vsel %vm14577_vm7, 4294967295, %v18101_v15  ;;  %v2624_v48 = vsel %vm14577_vm7, %v14581_v0, 0.0  ;;  %v465_v35 = vand.u32 15, %v351_v1  ;;  %v18108_v1 = vmov 0 }
  0xc1   : > { %18103 = vst [vmem:[#allocation37_spill] sm:$0xff] %v18102_v15 }
  0xc3   : > { %11964 = vmatmul.mubr.msk.bf16.gmra.mrb[16].mxu1 %vm17703_vm0, %v1058_v38  ;;  %v14587_v38 = vld [vmem:[%s17660_s1 + $0xe] sm:$0x3] }
  0xc4   : > { %11967 = vmatprep.mubr.msk.bf16.mxu1 %vm17703_vm0, %v1059_v31  ;;  %v14600_v31 = vld [vmem:[#allocation2 + $0x52] sm:$0xff] }
  0xc5   : > { %12084 = vmatmul.mubr.msk.bf16.vlgmr.msra.gmra.mrb[0].mxu0 %vm17703_vm0, %v2648_v63  ;;  %18104 = vst [vmem:[#allocation38_spill] sm:$0xff] %v14600_v31  ;;  %v451_v63 = vand.u32 15, %v349_v41  ;;  %v353_v41 = vadd.s32 120, %v13989_v2 }
  0xc6   : > { %12087 = vmatprep.mubr.msk.bf16.mxu0 %vm17703_vm0, %v2649_v33  ;;  %12116 = vmatpush3.bf16.msra.mxu0 %v3040_v11  ;;  %v1061_v33 = vpack.c.bf16 %v14398_v44, %v1041_v6  ;;  %v2651_v11 = vpack.c.bf16 %v2624_v48, %v14600_v31  ;;  %v1043_v44 = vsel %vm14441_vm15, %v14417_v5, 0.0  ;;  %v14627_v6 = vld [vmem:[#allocation2 + $0x7a] sm:$0xff]  ;;  %v584_v48 = vand.u32 15, %v368_v24 }
  0xc7   : > { %13607 = vmatprep.subr.msk.bf16.mxu0 %vm18100_vm11, %v14587_v38  ;;  %vm14612_vm14 = vcmp.lt.s32.totalorder %v451_v63, 15  ;;  %vm14623_vm11 = vcmp.lt.s32.totalorder %v465_v35, 15  ;;  %v14635_v63 = vld [vmem:[#allocation2 + $0x62] sm:$0xff]  ;;  %v14641_v35 = vld [vmem:[#allocation2 + $0x72] sm:$0xff]  ;;  %v479_v23 = vand.u32 15, %v353_v41  ;;  %v493_v24 = vand.u32 15, %v355_v20 }
  0xc8   : > { %v18106_v30 = vsel %vm14612_vm14, 4294967295, %v18105_v30  ;;  %v18109_v1 = vsel %vm14623_vm11, 4294967295, %v18108_v1  ;;  %v2626_v5 = vsel %vm14612_vm14, %v14616_v59, 0.0  ;;  %vm18114_vm15 = vcmask 31744  }
  0xc9   : > { %18107 = vst [vmem:[#allocation39_spill] sm:$0xff] %v18106_v30  ;;  %18110 = vst [vmem:[#allocation40_spill] sm:$0xff] %v18109_v1  ;;  %vm14654_vm13 = vcmp.lt.s32.totalorder %v479_v23, 15  ;;  %vm14665_vm6 = vcmp.lt.s32.totalorder %v493_v24, 15  ;;  %v18120_v20 = vmov 0  ;;  %v359_v23 = vadd.s32 168, %v13989_v2 }
  0xca   : > { %v18121_v20 = vsel %vm14665_vm6, 4294967295, %v18120_v20  ;;  %v18150_v30 = vmov 0 }
  0xcb   : > { %11968 = vmatmul.mubr.msk.bf16.gmra.mrb[20].mxu1 %vm17703_vm0, %v1060_v9  ;;  %v1045_v9 = vsel %vm14497_vm8, %v14446_v53, 0.0  ;;  %vm18119_vm8 = vmmov %vm18114_vm15  ;;  %18122 = vst [vmem:[#allocation44_spill] sm:$0xff] %v18121_v20  ;;  %v521_v16 = vand.u32 15, %v359_v23  ;;  %v18129_v23 = vmov 0 }
  0xcc   : > { %11971 = vmatprep.mubr.msk.bf16.mxu1 %vm17703_vm0, %v1061_v33  ;;  %v1062_v33 = vpack.c.bf16 %v14422_v18, %v1043_v44  ;;  %v1063_v53 = vpack.c.bf16 %v14453_v13, %v1045_v9  ;;  %v18115_v18 = vmov 0  ;;  %v14658_v44 = vld [vmem:[#allocation2 + $0x8a] sm:$0xff]  ;;  %v357_v13 = vadd.s32 152, %v13989_v2  ;;  %v14669_v9 = vld [vmem:[#allocation2 + $0x9a] sm:$0xff]  ;;  %vm18124_vm5 = vmmov %vm18119_vm8 }
  0xcd   : > { %12088 = vmatmul.mubr.msk.bf16.gmra.mrb[4].mxu0 %vm17703_vm0, %v2650_v21  ;;  %v2628_v21 = vsel %vm14623_vm11, %v14627_v6, 0.0  ;;  %v18116_v18 = vsel %vm14654_vm13, 4294967295, %v18115_v18  ;;  %18118 = vst [vmem:[#allocation43_spill] sm:$0xff] %v14658_v44  ;;  %v2632_v24 = vsel %vm14665_vm6, %v14669_v9, 0.0 }
  0xce   : > { %12091 = vmatprep.mubr.msk.bf16.mxu0 %vm17703_vm0, %v2651_v11  ;;  %v2652_v11 = vpack.c.bf16 %v2626_v5, %v14635_v63  ;;  %vm14648_vm0 = vcmp.ge.s32.totalorder %v584_v48, 1  ;;  %v2653_v61 = vpack.c.bf16 %v2628_v21, %v14641_v35  ;;  %18117 = vst [vmem:[#allocation42_spill] sm:$0xff] %v18116_v18  ;;  %v1541_v48 = vld [vmem:[#allocation2 + $0x2] sm:$0xff]  ;;  %v1670_v5 = vsel %vm14490_vm1, %v1542_v46, 0.0 }
  0xcf   : > { %v18112_v54 = vsel %vm14648_vm0, 4294967295, %v18111_v54  ;;  %v1047_v41 = vsel %vm14648_vm0, %v14470_v4, 0.0  ;;  %v2630_v4 = vsel %vm14654_vm13, %v14658_v44, 0.0  ;;  %vm14701_vm1 = vcmp.lt.s32.totalorder %v521_v16, 15  ;;  %vm18132_vm0 = vmmov %vm18124_vm5 }
  0xd0   : > { %18113 = vst [vmem:[#allocation41_spill] sm:$0xff] %v18112_v54  ;;  %v1064_v21 = vpack.c.bf16 %v14475_v12, %v1047_v41  ;;  %v1701_v54 = vpack.c.bf16 %v1670_v5, %v1541_v48  ;;  %v14694_v12 = vld [vmem:[#allocation2 + $0xaa] sm:$0xff]  ;;  %v361_v41 = vadd.s32 184, %v13989_v2  ;;  %v18130_v23 = vsel %vm14701_vm1, 4294967295, %v18129_v23  ;;  %v14705_v48 = vld [vmem:[#allocation2 + $0xba] sm:$0xff] }
  0xd1   : > { %18131 = vst [vmem:[#allocation46_spill] sm:$0xff] %v18130_v23  ;;  %v363_v5 = vadd.s32 200, %v13989_v2 }
  0xd3   : > { %11972 = vmatmul.mubr.msk.bf16.gmra.mrb[24].mxu1 %vm18114_vm15, %v1062_v33  ;;  %vm18123_vm15 = vmmov %vm18119_vm8  ;;  %v14676_v33 = vld [vmem:[#allocation2 + $0x82] sm:$0xff]  ;;  %v549_v22 = vand.u32 15, %v363_v5  ;;  %v18137_v5 = vmov 0 }
  0xd4   : > { %11975 = vmatprep.mubr.msk.bf16.mxu1 %vm18119_vm8, %v1063_v53  ;;  %v14682_v53 = vld [vmem:[#allocation2 + $0x92] sm:$0xff]  ;;  %v2654_v46 = vpack.c.bf16 %v2630_v4, %v14676_v33  ;;  %v1674_v4 = vsel %vm14536_vm9, %v14529_v43, 0.0  ;;  %v18133_v43 = vmov 0 }
  0xd5   : > { %12092 = vmatmul.mubr.msk.bf16.gmra.mrb[8].mxu0 %vm18123_vm15, %v2652_v11  ;;  %v507_v11 = vand.u32 15, %v357_v13  ;;  %vm18128_vm15 = vmmov %vm18124_vm5  ;;  %v1672_v13 = vsel %vm14525_vm10, %v14494_v29, 0.0  ;;  %vm14739_vm9 = vcmp.lt.s32.totalorder %v549_v22, 15 }
  0xd6   : > { %12095 = vmatprep.mubr.msk.bf16.mxu0 %vm18124_vm5, %v2653_v61  ;;  %v2655_v61 = vpack.c.bf16 %v2632_v24, %v14682_v53  ;;  %v1702_v29 = vpack.c.bf16 %v1672_v13, %v14514_v8  ;;  %v2636_v24 = vsel %vm14701_vm1, %v14705_v48, 0.0  ;;  %v14732_v8 = vld [vmem:[#allocation2 + $0xca] sm:$0xff]  ;;  %v365_v13 = vadd.s32 216, %v13989_v2  ;;  %vm18148_vm10 = vmmov %vm18132_vm0 }
  0xd7   : > { %vm14690_vm8 = vcmp.lt.s32.totalorder %v507_v11, 15  ;;  %v535_v11 = vand.u32 15, %v361_v41  ;;  %v1676_v41 = vsel %vm14564_vm12, %v14540_v58, 0.0  ;;  %v18138_v5 = vsel %vm14739_vm9, 4294967295, %v18137_v5 }
  0xd8   : > { %v18126_v62 = vsel %vm14690_vm8, 4294967295, %v18125_v62  ;;  %v2634_v16 = vsel %vm14690_vm8, %v14694_v12, 0.0  ;;  %18139 = vst [vmem:[#allocation48_spill] sm:$0xff] %v18138_v5  ;;  %v18141_v58 = vmov 0 }
  0xd9   : > { %18127 = vst [vmem:[#allocation45_spill] sm:$0xff] %v18126_v62 }
  0xdb   : > { %11976 = vmatmul.mubr.msk.bf16.gmra.mrb[28].mxu1 %vm18124_vm5, %v1064_v21  ;;  %v14719_v21 = vld [vmem:[#allocation2 + $0xb2] sm:$0xff] }
  0xdc   : > { %11981 = vmatprep.mubr.msk.bf16.mxu1 %vm18128_vm15, %v1701_v54  ;;  %v14713_v54 = vld [vmem:[#allocation2 + $0xa2] sm:$0xff]  ;;  %v2657_v34 = vpack.c.bf16 %v2636_v24, %v14719_v21  ;;  %vm14728_vm15 = vcmp.lt.s32.totalorder %v535_v11, 15  ;;  %v1704_v11 = vpack.c.bf16 %v1676_v41, %v14555_v52  ;;  %v14771_v41 = vld [vmem:[#allocation2 + $0xea] sm:$0xff]  ;;  %v369_v52 = vadd.s32 248, %v13989_v2 }
  0xdd   : > { %12096 = vmatmul.mubr.msk.bf16.gmra.mrb[12].mxu0 %vm18124_vm5, %v2654_v46  ;;  %v1703_v46 = vpack.c.bf16 %v1674_v4, %v14549_v40  ;;  %v18134_v43 = vsel %vm14728_vm15, 4294967295, %v18133_v43  ;;  %vm18136_vm5 = vmmov %vm18132_vm0  ;;  %v14743_v4 = vld [vmem:[#allocation2 + $0xda] sm:$0xff]  ;;  %v14752_v24 = vld [vmem:[#allocation2 + $0xc2] sm:$0xff]  ;;  %v2638_v22 = vsel %vm14728_vm15, %v14732_v8, 0.0 }
  0xde   : > { %12099 = vmatprep.mubr.msk.bf16.mxu0 %vm18132_vm0, %v2655_v61  ;;  %v2656_v61 = vpack.c.bf16 %v2634_v16, %v14713_v54  ;;  %18135 = vst [vmem:[#allocation47_spill] sm:$0xff] %v18134_v43  ;;  %v367_v16 = vadd.s32 232, %v13989_v2  ;;  %v14789_v2 = vld [vmem:[#allocation2 + $0xe2] sm:$0xff] }
  0xe0   : > { %v577_v3 = vand.u32 15, %v367_v16  ;;  %v18145_v16 = vmov 0 }
  0xe2   : > { %vm14778_vm12 = vcmp.lt.s32.totalorder %v577_v3, 15 }
  0xe3   : > { %11982 = vmatmul.mubr.msk.bf16.vlgmr.msra.gmra.mrb[0].mxu1 %vm18132_vm0, %v1702_v29  ;;  %v1678_v29 = vsel %vm14577_vm7, %v14568_v37, 0.0  ;;  %vm18144_vm7 = vmmov %vm18132_vm0  ;;  %v18146_v16 = vsel %vm14778_vm12, 4294967295, %v18145_v16 }
  0xe4   : > { %11985 = vmatprep.mubr.msk.bf16.mxu1 %vm18136_vm5, %v1703_v46  ;;  %12830 = vmatpush3.bf16.msra.mxu1 %v14023_v14  ;;  %vm18140_vm5 = vmmov %vm18132_vm0  ;;  %v14758_v46 = vld [vmem:[#allocation2 + $0xd2] sm:$0xff]  ;;  %v2640_v14 = vsel %vm14739_vm9, %v14743_v4, 0.0  ;;  %v1705_v15 = vpack.c.bf16 %v1678_v29, %v14594_v25  ;;  %18147 = vst [vmem:[#allocation50_spill] sm:$0xff] %v18146_v16  ;;  %v14782_v29 = vld [vmem:[#allocation2 + $0xfa] sm:$0xff] }
  0xe5   : > { %12100 = vmatmul.mubr.msk.bf16.gmra.mrb[16].mxu0 %vm18132_vm0, %v2656_v61  ;;  %v563_v61 = vand.u32 15, %v365_v13  ;;  %v2659_v37 = vpack.c.bf16 %v2640_v14, %v14758_v46  ;;  %v1680_v13 = vsel %vm14612_vm14, %v14581_v0, 0.0  ;;  %v2644_v14 = vsel %vm14778_vm12, %v14782_v29, 0.0 }
  0xe6   : > { %12103 = vmatprep.mubr.msk.bf16.mxu0 %vm18140_vm5, %v2657_v34  ;;  %v2658_v34 = vpack.c.bf16 %v2638_v22, %v14752_v24  ;;  %v1682_v22 = vsel %vm14623_vm11, %v14616_v59, 0.0  ;;  %v1706_v3 = vpack.c.bf16 %v1680_v13, %v14600_v31  ;;  %v14808_v13 = vld [vmem:[#allocation2 + $0x10a] sm:$0xff]  ;;  %v18154_v31 = vmov 0.0  }
  0xe7   : > { %vm14767_vm5 = vcmp.lt.s32.totalorder %v563_v61, 15  ;;  %v591_v61 = vand.u32 15, %v369_v52  ;;  %18153 = vst [vmem:[#allocation52_spill] sm:$0xff] %v14808_v13  ;;  %v1684_v52 = vsel %vm14654_vm13, %v14627_v6, 0.0 }
  0xe8   : > { %v18142_v58 = vsel %vm14767_vm5, 4294967295, %v18141_v58 }
  0xe9   : > { %18143 = vst [vmem:[#allocation49_spill] sm:$0xff] %v18142_v58 }
  0xeb   : > { %11986 = vmatmul.mubr.msk.bf16.gmra.mrb[4].mxu1 %vm18132_vm0, %v1704_v11  ;;  %v14795_v11 = vld [vmem:[#allocation2 + $0xf2] sm:$0xff] }
  0xec   : > { %11989 = vmatprep.mubr.msk.bf16.mxu1 %vm18144_vm7, %v1705_v15  ;;  %v2642_v15 = vsel %vm14767_vm5, %v14771_v41, 0.0  ;;  %vm823_vm7 = vcmask 25600  }
  0xed   : > { %12104 = vmatmul.mubr.msk.bf16.gmra.mrb[20].mxu0 %vm18132_vm0, %v2658_v34  ;;  %v1707_v34 = vpack.c.bf16 %v1682_v22, %v14635_v63  ;;  %v2660_v1 = vpack.c.bf16 %v2642_v15, %v14789_v2  ;;  %824 = vst.msk [vmem:[#allocation2 + $0x120] sm:$0x3] %vm823_vm7, %v18154_v31  ;;  %v2909_v22 = vld [vmem:[#allocation2 + $0x20] sm:$0xff]  ;;  %v1686_v15 = vsel %vm14665_vm6, %v14658_v44, 0.0 }
  0xee   : > { %12107 = vmatprep.mubr.msk.bf16.mxu0 %vm18148_vm10, %v2659_v37  ;;  %v2661_v37 = vpack.c.bf16 %v2644_v14, %v14795_v11  ;;  %vm18149_vm10 = vmmov %vm18132_vm0  ;;  %vm14804_vm0 = vcmp.lt.s32.totalorder %v591_v61, 15  ;;  %v1708_v61 = vpack.c.bf16 %v1684_v52, %v14641_v35  ;;  %v2941_v31 = vsel %vm14057_vm2, %v2909_v22, 0.0  ;;  %v2913_v44 = vld [vmem:[#allocation2 + $0x40] sm:$0xff]  ;;  %v2912_v22 = vld [vmem:[#allocation2 + $0x38] sm:$0xff] }
  0xef   : > { %v18151_v30 = vsel %vm14804_vm0, 4294967295, %v18150_v30  ;;  %vm18155_vm11 = vmmov %vm18149_vm10  ;;  %v2646_v14 = vsel %vm14804_vm0, %v14808_v13, 0.0  ;;  %v1688_v13 = vsel %vm14690_vm8, %v14669_v9, 0.0  ;;  %v1690_v52 = vsel %vm14701_vm1, %v14694_v12, 0.0 }
  0xf0   : > { %18152 = vst [vmem:[#allocation51_spill] sm:$0xff] %v18151_v30  ;;  %vm18156_vm14 = vmmov %vm18149_vm10 }
  0xf1   : > { %vm18159_vm7 = vmmov %vm18149_vm10 }
  0xf3   : > { %11990 = vmatmul.mubr.msk.bf16.gmra.mrb[8].mxu1 %vm18149_vm10, %v1706_v3  ;;  %v14820_v3 = vld [vmem:[#allocation2 + $0x102] sm:$0xff] }
  0xf4   : > { %11993 = vmatprep.mubr.msk.bf16.mxu1 %vm18155_vm11, %v1707_v34  ;;  %v2910_v34 = vld [vmem:[#allocation2 + $0x28] sm:$0xff]  ;;  %v2662_v18 = vpack.c.bf16 %v2646_v14, %v14820_v3  ;;  %vm18158_vm11 = vmmov %vm18149_vm10 }
  0xf5   : > { %12108 = vmatmul.mubr.msk.bf16.gmra.mrb[24].mxu0 %vm18156_vm14, %v2660_v1  ;;  %v1709_v1 = vpack.c.bf16 %v1686_v15, %v14676_v33  ;;  %v2973_v20 = vpack.c.bf16 %v2910_v34, %v2941_v31  ;;  %vm18157_vm14 = vmmov %vm18149_vm10  ;;  %v1710_v15 = vpack.c.bf16 %v1688_v13, %v14682_v53  ;;  %v2914_v14 = vld [vmem:[#allocation2 + $0x48] sm:$0xff]  ;;  %v1711_v34 = vpack.c.bf16 %v1690_v52, %v14713_v54 }
  0xf6   : > { %12111 = vmatprep.mubr.msk.bf16.mxu0 %vm18149_vm10, %v2661_v37  ;;  %v2911_v37 = vld [vmem:[#allocation2 + $0x30] sm:$0xff]  ;;  %vm18160_vm10 = vmmov %vm18159_vm7  ;;  %v1692_v13 = vsel %vm14728_vm15, %v14705_v48, 0.0  ;;  %v1694_v52 = vsel %vm14739_vm9, %v14732_v8, 0.0 }
  0xf7   : > { %v2943_v31 = vsel %vm14074_vm3, %v2911_v37, 0.0  ;;  %v2917_v37 = vld [vmem:[#allocation2 + $0x60] sm:$0xff] }
  0xfb   : > { %11994 = vmatmul.mubr.msk.bf16.gmra.mrb[12].mxu1 %vm18157_vm14, %v1708_v61  ;;  %v2945_v61 = vsel %vm14085_vm4, %v2913_v44, 0.0  ;;  %vm18161_vm14 = vmmov %vm18159_vm7  ;;  %v14856_v44 = vld [vmem:[%s17660_s1 + $0x10] sm:$0x3]  ;;  %vm18167_vm4 = vcmask 1041408  }
  0xfc   : > { %11997 = vmatprep.mubr.msk.bf16.mxu1 %vm18158_vm11, %v1709_v1  ;;  %v2974_v1 = vpack.c.bf16 %v2912_v22, %v2943_v31  ;;  %vm18162_vm11 = vcmask 1041408   ;;  %v1712_v31 = vpack.c.bf16 %v1692_v13, %v14719_v21 }
  0xfd   : > { %12112 = vmatmul.mubr.msk.bf16.gmra.mrb[28].mxu0 %vm18159_vm7, %v2662_v18  ;;  %v2975_v18 = vpack.c.bf16 %v2914_v14, %v2945_v61  ;;  %v1713_v61 = vpack.c.bf16 %v1694_v52, %v14752_v24 }
  0xfe   : > { %12117 = vmatprep.mubr.msk.bf16.mxu0 %vm18160_vm10, %v2973_v20  ;;  %v3334_v20 = vsel %vm18162_vm11, %v14587_v38, 0  ;;  %vm18163_vm10 = vmmov %vm18159_vm7  ;;  %v2916_v38 = vld [vmem:[#allocation2 + $0x58] sm:$0xff]  ;;  %vm18165_vm11 = vnez %v18046_v56 }
  0xff   : > { %v2947_v22 = vsel %vm18165_vm11, %v2915_v42, 0.0  ;;  %v1696_v42 = vsel %vm14767_vm5, %v14743_v4, 0.0  ;;  %vm18169_vm11 = vmmov %vm18163_vm10 }
 0x103   : > { %11998 = vmatmul.mubr.msk.bf16.gmra.mrb[16].mxu1 %vm18161_vm14, %v1710_v15  ;;  %vm18164_vm14 = vmmov %vm18159_vm7  ;;  %v2918_v15 = vld [vmem:[#allocation2 + $0x68] sm:$0xff] }
 0x104   : > { %12001 = vmatprep.mubr.msk.bf16.mxu1 %vm18159_vm7, %v1711_v34  ;;  %vm18166_vm7 = vnez %v18049_v39  ;;  %v2976_v34 = vpack.c.bf16 %v2916_v38, %v2947_v22  ;;  %v3236_v38 = vld [vmem:[#allocation2 + $0x29] sm:$0xff] }
 0x105   : > { %12118 = vmatmul.mubr.msk.bf16.vlgmr.msra.gmra.mrb[0].mxu0 %vm18163_vm10, %v2974_v1  ;;  %v2949_v14 = vsel %vm18166_vm7, %v2917_v37, 0.0  ;;  %vm18170_vm7 = vmmov %vm18163_vm10  ;;  %v1700_v37 = vsel %vm14804_vm0, %v14782_v29, 0.0 }
 0x106   : > { %12121 = vmatprep.mubr.msk.bf16.mxu0 %vm18164_vm14, %v2975_v18  ;;  %12150 = vmatpush3.bf16.msra.mxu0 %v3334_v20  ;;  %v2977_v1 = vpack.c.bf16 %v2918_v15, %v2949_v14  ;;  %vm18168_vm14 = vmmov %vm18163_vm10  ;;  %v1698_v18 = vsel %vm14778_vm12, %v14771_v41, 0.0  ;;  %v1714_v20 = vpack.c.bf16 %v1696_v42, %v14758_v46  ;;  %v1716_v52 = vpack.c.bf16 %v1700_v37, %v14795_v11  ;;  %v3238_v15 = vld [vmem:[#allocation2 + $0x39] sm:$0xff]  ;;  %v3239_v14 = vld [vmem:[#allocation2 + $0x41] sm:$0xff] }
 0x107   : > { %13608 = vmatprep.subr.msk.bf16.mxu0 %vm18167_vm4, %v14856_v44  ;;  %v1715_v13 = vpack.c.bf16 %v1698_v18, %v14789_v2  ;;  %vm18171_vm4 = vmmov %vm18170_vm7  ;;  %v3241_v18 = vld [vmem:[#allocation2 + $0x51] sm:$0xff]  ;;  %v3244_v37 = vld [vmem:[#allocation2 + $0x69] sm:$0xff] }
 0x108   : > { %vm18176_vm3 = vmmov %vm18171_vm4 }
 0x109   : > { %vm18179_vm2 = vmmov %vm18176_vm3 }
 0x10b   : > { %12002 = vmatmul.mubr.msk.bf16.gmra.mrb[20].mxu1 %vm18163_vm10, %v1712_v31  ;;  %vm18172_vm10 = vmmov %vm18171_vm4  ;;  %v3237_v31 = vld [vmem:[#allocation2 + $0x31] sm:$0xff] }
 0x10c   : > { %12005 = vmatprep.mubr.msk.bf16.mxu1 %vm18168_vm14, %v1713_v61  ;;  %vm18174_vm14 = vmmov %vm18171_vm4  ;;  %v3240_v61 = vld [vmem:[#allocation2 + $0x49] sm:$0xff] }
 0x10d   : > { %12122 = vmatmul.mubr.msk.bf16.gmra.mrb[4].mxu0 %vm18169_vm11, %v2976_v34  ;;  %vm18173_vm11 = vmmov %vm18171_vm4  ;;  %v3268_v34 = vpack.c.bf16 %v3238_v15, %v3237_v31  ;;  %v3256_v31 = vld [vmem:[#allocation2 + $0xc9] sm:$0xff] }
 0x10e   : > { %12125 = vmatprep.mubr.msk.bf16.mxu0 %vm18170_vm7, %v2977_v1  ;;  %vm18175_vm7 = vmmov %vm18171_vm4  ;;  %v3269_v1 = vpack.c.bf16 %v3240_v61, %v3239_v14  ;;  %v3257_v61 = vld [vmem:[#allocation2 + $0xd1] sm:$0xff] }
 0x113   : > { %12006 = vmatmul.mubr.msk.bf16.gmra.mrb[24].mxu1 %vm18171_vm4, %v1714_v20  ;;  %vm18177_vm4 = vmmov %vm18176_vm3  ;;  %v3242_v20 = vld [vmem:[#allocation2 + $0x59] sm:$0xff] }
 0x114   : > { %12009 = vmatprep.mubr.msk.bf16.mxu1 %vm18172_vm10, %v1715_v13  ;;  %vm18178_vm10 = vmmov %vm18176_vm3  ;;  %v3243_v13 = vld [vmem:[#allocation2 + $0x61] sm:$0xff] }
 0x115   : > { %12126 = vmatmul.mubr.msk.bf16.gmra.mrb[8].mxu0 %vm18173_vm11, %v14307_v27  ;;  %vm18180_vm11 = vmmov %vm18179_vm2  ;;  %v1993_v27 = vld [vmem:[#allocation2 + $0x100] sm:$0xff] }
 0x116   : > { %12129 = vmatprep.mubr.msk.bf16.mxu0 %vm18174_vm14, %v14315_v51  ;;  %vm18181_vm14 = vmmov %vm18179_vm2  ;;  %v1994_v51 = vld [vmem:[#allocation2 + $0x108] sm:$0xff] }
 0x11b   : > { %12010 = vmatmul.mubr.msk.bf16.gmra.mrb[28].mxu1 %vm18175_vm7, %v1716_v52  ;;  %vm18182_vm7 = vmmov %vm18179_vm2  ;;  %v3270_v52 = vpack.c.bf16 %v3242_v20, %v3241_v18 }
 0x11c   : > { %12031 = vmatprep.mubr.msk.bf16.mxu1 %vm18176_vm3, %v14354_v19  ;;  %vm18183_vm3 = vmmov %vm18179_vm2 }
 0x11d   : > { %12130 = vmatmul.mubr.msk.bf16.gmra.mrb[12].mxu0 %vm18177_vm4, %v14329_v60  ;;  %vm18184_vm4 = vmmov %vm18179_vm2 }
 0x11e   : > { %12133 = vmatprep.mubr.msk.bf16.mxu0 %vm18178_vm10, %v14371_v45  ;;  %vm18185_vm10 = vmmov %vm18179_vm2  ;;  %v18188_v45 = vld [vmem:[#allocation28_spill] sm:$0xff] }
 0x123   : > { %12032 = vmatmul.mubr.msk.bf16.vlgmr.msra.gmra.mrb[16].mxu1 %vm18179_vm2, %v14357_v28  ;;  %v2939_v28 = vld [vmem:[#allocation2 + $0x110] sm:$0xff] }
 0x124   : > { %12035 = vmatprep.mubr.msk.bf16.mxu1 %vm18180_vm11, %v14411_v57  ;;  %vm18186_vm11 = vnez %v18083_v32 }
 0x125   : > { %12134 = vmatmul.mubr.msk.bf16.gmra.mrb[16].mxu0 %vm18181_vm14, %v14378_v17  ;;  %v2969_v60 = vsel %vm18186_vm11, %v1993_v27, 0.0  ;;  %vm18187_vm14 = vmmov %vm18179_vm2  ;;  %v18190_v17 = vld [vmem:[#allocation41_spill] sm:$0xff] }
 0x126   : > { %12137 = vmatprep.mubr.msk.bf16.mxu0 %vm18182_vm7, %v14425_v7  ;;  %v2987_v19 = vpack.c.bf16 %v1994_v51, %v2969_v60  ;;  %vm18189_vm7 = vmmov %vm18179_vm2  ;;  %v2940_v7 = vld [vmem:[#allocation2 + $0x118] sm:$0xff] }
 0x127   : > { %v3246_v60 = vld [vmem:[#allocation2 + $0x79] sm:$0xff] }
 0x12b   : > { %12036 = vmatmul.mubr.msk.bf16.gmra.mrb[20].mxu1 %vm18183_vm3, %v14414_v36  ;;  %vm18191_vm3 = vnez %v18190_v17  ;;  %v18192_v36 = vld [vmem:[#allocation25_spill] sm:$0xff] }
 0x12c   : > { %12039 = vmatprep.mubr.msk.bf16.mxu1 %vm18184_vm4, %v14464_v47  ;;  %v2025_v57 = vsel %vm18191_vm3, %v1993_v27, 0.0  ;;  %vm18193_vm4 = vmmov %vm18179_vm2  ;;  %v3271_v27 = vpack.c.bf16 %v3244_v37, %v3243_v13  ;;  %v3261_v13 = vld [vmem:[#allocation2 + $0xf1] sm:$0xff]  ;;  %v3262_v37 = vld [vmem:[#allocation2 + $0xf9] sm:$0xff] }
 0x12d   : > { %12138 = vmatmul.mubr.msk.bf16.gmra.mrb[20].mxu0 %vm18185_vm10, %v14433_v10  ;;  %vm18194_vm10 = vmmov %vm18179_vm2  ;;  %v2971_v10 = vsel %vm18191_vm3, %v2939_v28, 0.0  ;;  %v2042_v47 = vpack.c.bf16 %v1994_v51, %v2025_v57  ;;  %v3245_v51 = vld [vmem:[#allocation2 + $0x71] sm:$0xff]  ;;  %v3248_v28 = vld [vmem:[#allocation2 + $0x89] sm:$0xff] }
 0x12e   : > { %12141 = vmatprep.mubr.msk.bf16.mxu0 %vm18179_vm2, %v14478_v50  ;;  %v3235_v50 = vld [vmem:[#allocation2 + $0x21] sm:$0xff]  ;;  %vm18199_vm3 = vmmov %vm18179_vm2  ;;  %v3249_v57 = vld [vmem:[#allocation2 + $0x91] sm:$0xff] }
 0x12f   : > { %v3267_v22 = vpack.c.bf16 %v3236_v38, %v3235_v50  ;;  %v3253_v38 = vld [vmem:[#allocation2 + $0xb1] sm:$0xff] }
 0x133   : > { %12040 = vmatmul.mubr.msk.bf16.gmra.mrb[24].mxu1 %vm18187_vm14, %v14467_v26  ;;  %v2988_v26 = vpack.c.bf16 %v2940_v7, %v2971_v10  ;;  %vm18195_vm14 = vmmov %vm18179_vm2  ;;  %v3251_v7 = vld [vmem:[#allocation2 + $0xa1] sm:$0xff]  ;;  %v3252_v10 = vld [vmem:[#allocation2 + $0xa9] sm:$0xff] }
 0x134   : > { %12043 = vmatprep.mubr.msk.bf16.mxu1 %vm18189_vm7, %v18188_v45  ;;  %vm18196_vm7 = vmmov %vm18179_vm2  ;;  %v3275_v50 = vpack.c.bf16 %v3252_v10, %v3251_v7  ;;  %v18217_v7 = vld [vmem:[#allocation30_spill] sm:$0xff] }
 0x135   : > { %12142 = vmatmul.mubr.msk.bf16.gmra.mrb[24].mxu0 %vm18193_vm4, %v18192_v36  ;;  %vm18197_vm4 = vcmask 1041408   ;;  %v3250_v36 = vld [vmem:[#allocation2 + $0x99] sm:$0xff] }
 0x136   : > { %12145 = vmatprep.mubr.msk.bf16.mxu0 %vm18194_vm10, %v2987_v19  ;;  %v3660_v42 = vsel %vm18197_vm4, %v14856_v44, 0  ;;  %vm18198_vm10 = vmmov %vm18179_vm2  ;;  %v3247_v19 = vld [vmem:[#allocation2 + $0x81] sm:$0xff]  ;;  %v3272_v44 = vpack.c.bf16 %v3246_v60, %v3245_v51  ;;  %v3265_v51 = vld [vmem:[#allocation2 + $0x111] sm:$0xff] }
 0x137   : > { %v3273_v45 = vpack.c.bf16 %v3248_v28, %v3247_v19  ;;  %vm18203_vm4 = vmmov %vm18179_vm2  ;;  %v3266_v60 = vld [vmem:[#allocation2 + $0x119] sm:$0xff]  ;;  %v18211_v19 = vld [vmem:[#allocation31_spill] sm:$0xff] }
 0x138   : > { %v18212_v28 = vld [vmem:[#allocation26_spill] sm:$0xff] }
 0x13b   : > { %12044 = vmatmul.mubr.msk.bf16.gmra.mrb[28].mxu1 %vm18179_vm2, %v2042_v47  ;;  %v3274_v47 = vpack.c.bf16 %v3250_v36, %v3249_v57  ;;  %v18216_v36 = vld [vmem:[#allocation33_spill] sm:$0xff] }
 0x13d   : > { %12146 = vmatmul.mubr.msk.bf16.gmra.mrb[28].mxu0 %vm18195_vm14, %v2988_v26  ;;  %vm18200_vm14 = vmmov %vm18179_vm2  ;;  %v3254_v26 = vld [vmem:[#allocation2 + $0xb9] sm:$0xff] }
 0x13e   : > { %12151 = vmatprep.mubr.msk.bf16.mxu0 %vm18196_vm7, %v3267_v22  ;;  %vm18201_vm7 = vmmov %vm18179_vm2  ;;  %v3255_v22 = vld [vmem:[#allocation2 + $0xc1] sm:$0xff]  ;;  %v3276_v15 = vpack.c.bf16 %v3254_v26, %v3253_v38 }
 0x13f   : > { %v3277_v14 = vpack.c.bf16 %v3256_v31, %v3255_v22  ;;  %v18222_v26 = vld [vmem:[#allocation34_spill] sm:$0xff] }
 0x145   : > { %12152 = vmatmul.mubr.msk.bf16.vlgmr.msra.gmra.mrb[0].mxu0 %vm18198_vm10, %v3268_v34  ;;  %vm18204_vm10 = vmmov %vm18179_vm2  ;;  %v3258_v34 = vld [vmem:[#allocation2 + $0xd9] sm:$0xff] }
 0x146   : > { %12155 = vmatprep.mubr.msk.bf16.mxu0 %vm18199_vm3, %v3269_v1  ;;  %12184 = vmatpush3.bf16.msra.mxu0 %v3660_v42  ;;  %vm18202_vm3 = vmmov %vm18179_vm2  ;;  %v3259_v1 = vld [vmem:[#allocation2 + $0xe1] sm:$0xff]  ;;  %v3260_v42 = vld [vmem:[#allocation2 + $0xe9] sm:$0xff]  ;;  %v3278_v18 = vpack.c.bf16 %v3258_v34, %v3257_v61 }
 0x147   : > { %v3279_v20 = vpack.c.bf16 %v3260_v42, %v3259_v1  ;;  %v18229_v34 = vld [vmem:[#allocation38_spill] sm:$0xff] }
 0x14d   : > { %12156 = vmatmul.mubr.msk.bf16.gmra.mrb[4].mxu0 %vm18179_vm2, %v3270_v52  ;;  %v3280_v52 = vpack.c.bf16 %v3262_v37, %v3261_v13  ;;  %v18235_v13 = vld [vmem:[#allocation40_spill] sm:$0xff] }
 0x14e   : > { %12159 = vmatprep.mubr.msk.bf16.mxu0 %vm18200_vm14, %v3271_v27  ;;  %vm18205_vm14 = vmmov %vm18179_vm2  ;;  %v18209_v27 = vld [vmem:[#allocation29_spill] sm:$0xff] }
 0x155   : > { %12160 = vmatmul.mubr.msk.bf16.gmra.mrb[8].mxu0 %vm18201_vm7, %v3272_v44  ;;  %vm18206_vm7 = vmmov %vm18179_vm2 }
 0x156   : > { %12163 = vmatprep.mubr.msk.bf16.mxu0 %vm18202_vm3, %v3273_v45  ;;  %vm18207_vm3 = vmmov %vm18179_vm2  ;;  %v3282_v45 = vpack.c.bf16 %v3266_v60, %v3265_v51 }
 0x15d   : > { %12164 = vmatmul.mubr.msk.bf16.gmra.mrb[12].mxu0 %vm18203_vm4, %v3274_v47  ;;  %vm18208_vm4 = vmmov %vm18179_vm2  ;;  %v18219_v47 = vld [vmem:[#allocation36_spill] sm:$0xff] }
 0x15e   : > { %12167 = vmatprep.mubr.msk.bf16.mxu0 %vm18204_vm10, %v3275_v50  ;;  %vm18210_vm10 = vmmov %vm18179_vm2  ;;  %v18220_v50 = vld [vmem:[#allocation32_spill] sm:$0xff] }
 0x165   : > { %12168 = vmatmul.mubr.msk.bf16.gmra.mrb[16].mxu0 %vm18179_vm2, %v3276_v15  ;;  %vm18213_vm2 = vnez %v18212_v28 }
 0x166   : > { %12171 = vmatprep.mubr.msk.bf16.mxu0 %vm18205_vm14, %v3277_v14  ;;  %v3562_v44 = vsel %vm18213_vm2, %v18211_v19, 0.0  ;;  %vm18214_vm14 = vmmov %vm18207_vm3  ;;  %v18227_v14 = vld [vmem:[#allocation37_spill] sm:$0xff] }
 0x167   : > { %v3593_v57 = vpack.c.bf16 %v3562_v44, %v14549_v40  ;;  %v18225_v40 = vld [vmem:[#allocation35_spill] sm:$0xff]  ;;  %v3560_v44 = vld [vmem:[#allocation2 + $0x11a] sm:$0xff] }
 0x16d   : > { %12172 = vmatmul.mubr.msk.bf16.gmra.mrb[20].mxu0 %vm18206_vm7, %v3278_v18  ;;  %vm18215_vm7 = vmmov %vm18207_vm3 }
 0x16e   : > { %12175 = vmatprep.mubr.msk.bf16.mxu0 %vm18207_vm3, %v3279_v20  ;;  %vm18218_vm3 = vnez %v18217_v7  ;;  %vm18224_vm11 = vmmov %vm18215_vm7  ;;  %v18234_v20 = vld [vmem:[#allocation43_spill] sm:$0xff] }
 0x16f   : > { %v3564_v10 = vsel %vm18218_vm3, %v18216_v36, 0.0 }
 0x170   : > { %v3594_v22 = vpack.c.bf16 %v3564_v10, %v18222_v26 }
 0x175   : > { %12176 = vmatmul.mubr.msk.bf16.gmra.mrb[24].mxu0 %vm18208_vm4, %v3280_v52  ;;  %vm18221_vm4 = vnez %v18220_v50  ;;  %v3576_v52 = vsel %vm14654_vm13, %v14669_v9, 0.0  ;;  %v3582_v9 = vsel %vm14701_vm1, %v14732_v8, 0.0 }
 0x176   : > { %12179 = vmatprep.mubr.msk.bf16.mxu0 %vm18210_vm10, %v18209_v27  ;;  %v3566_v38 = vsel %vm18221_vm4, %v18219_v47, 0.0  ;;  %vm18223_vm10 = vmmov %vm18215_vm7  ;;  %v3600_v51 = vpack.c.bf16 %v3576_v52, %v14682_v53  ;;  %v3584_v53 = vsel %vm14728_vm15, %v14743_v4, 0.0 }
 0x177   : > { %v3595_v31 = vpack.c.bf16 %v3566_v38, %v14594_v25  ;;  %vm18230_vm4 = vmmov %vm18223_vm10  ;;  %v18232_v25 = vld [vmem:[#allocation39_spill] sm:$0xff] }
 0x178   : > { %vm18231_vm3 = vmmov %vm18230_vm4 }
 0x17d   : > { %12180 = vmatmul.mubr.msk.bf16.gmra.mrb[28].mxu0 %vm18214_vm14, %v3282_v45  ;;  %vm18226_vm14 = vnez %v18225_v40  ;;  %v3592_v45 = vsel %vm14804_vm0, %v3560_v44, 0.0  ;;  %vm18274_vm0 = vnez %v18046_v56 }
 0x17e   : > { %12185 = vmatprep.mubr.msk.bf16.mxu0 %vm18215_vm7, %v3593_v57  ;;  %v3568_v15 = vsel %vm18226_vm14, %v14581_v0, 0.0  ;;  %vm18228_vm7 = vnez %v18227_v14  ;;  %vm18238_vm14 = vmmov %vm18231_vm3 }
 0x17f   : > { %v3570_v61 = vsel %vm18228_vm7, %v14616_v59, 0.0  ;;  %v3596_v1 = vpack.c.bf16 %v3568_v15, %v18229_v34  ;;  %vm18237_vm7 = vmmov %vm18231_vm3 }
 0x180   : > { %v3597_v42 = vpack.c.bf16 %v3570_v61, %v14635_v63 }
 0x185   : > { %12186 = vmatmul.mubr.msk.bf16.vlgmr.msra.gmra.mrb[0].mxu0 %vm18223_vm10, %v3594_v22  ;;  %vm18233_vm10 = vnez %v18232_v25 }
 0x186   : > { %12189 = vmatprep.mubr.msk.bf16.mxu0 %vm18224_vm11, %v3595_v31  ;;  %v3572_v18 = vsel %vm18233_vm10, %v14627_v6, 0.0  ;;  %vm18236_vm11 = vnez %v18235_v13  ;;  %v3578_v6 = vsel %vm14665_vm6, %v14694_v12, 0.0  ;;  %v3603_v12 = vpack.c.bf16 %v3582_v9, %v14752_v24  ;;  %v18245_v24 = vld [vmem:[#allocation52_spill] sm:$0xff] }
 0x187   : > { %v3574_v0 = vsel %vm18236_vm11, %v18234_v20, 0.0  ;;  %v3598_v37 = vpack.c.bf16 %v3572_v18, %v14641_v35  ;;  %v3601_v60 = vpack.c.bf16 %v3578_v6, %v14713_v54  ;;  %v3580_v35 = vsel %vm14690_vm8, %v14705_v48, 0.0  ;;  %v13641_v20 = vld [vmem:[#allocation5 + $0x8] sm:$0xff]  }
 0x188   : > { %v3599_v59 = vpack.c.bf16 %v3574_v0, %v14676_v33  ;;  %v3602_v33 = vpack.c.bf16 %v3580_v35, %v14719_v21  ;;  %v3586_v48 = vsel %vm14739_vm9, %v14771_v41, 0.0  ;;  %v3604_v54 = vpack.c.bf16 %v3584_v53, %v14758_v46  ;;  %12217 = vmatprep.subr.bf16.mxu1 %v13641_v20 }
 0x189   : > { %v3605_v8 = vpack.c.bf16 %v3586_v48, %v14789_v2  ;;  %v3588_v21 = vsel %vm14767_vm5, %v14782_v29, 0.0  ;;  %v3590_v4 = vsel %vm14778_vm12, %v18245_v24, 0.0  ;;  %v3559_v2 = vld [vmem:[#allocation2 + $0x112] sm:$0xff]  ;;  %v18248_v18 = vmov 0.0   ;;  %12218 = vmatpush3.bf16.msra.mxu1 %v13641_v20 }
 0x18a   : > { %v3606_v19 = vpack.c.bf16 %v3588_v21, %v14795_v11  ;;  %v3607_v41 = vpack.c.bf16 %v3590_v4, %v14820_v3  ;;  %v3608_v11 = vpack.c.bf16 %v3592_v45, %v3559_v2 }
 0x18d   : > { %12190 = vmatmul.mubr.msk.bf16.gmra.mrb[4].mxu0 %vm18230_vm4, %v3596_v1  ;;  %vm18241_vm4 = vmmov %vm18231_vm3 }
 0x18e   : > { %12193 = vmatprep.mubr.msk.bf16.mxu0 %vm18231_vm3, %v3597_v42 }
 0x195   : > { %12194 = vmatmul.mubr.msk.bf16.gmra.mrb[8].mxu0 %vm18237_vm7, %v3598_v37  ;;  %vm18243_vm7 = vmmov %vm18231_vm3 }
 0x196   : > { %12197 = vmatprep.mubr.msk.bf16.mxu0 %vm18238_vm14, %v3599_v59  ;;  %vm18242_vm14 = vmmov %vm18231_vm3 }
 0x19d   : > { %12198 = vmatmul.mubr.msk.bf16.gmra.mrb[12].mxu0 %vm18231_vm3, %v3600_v51 }
 0x19e   : > { %12201 = vmatprep.mubr.msk.bf16.mxu0 %vm18241_vm4, %v3601_v60  ;;  %vm18244_vm4 = vmmov %vm18231_vm3 }
 0x1a5   : > { %12202 = vmatmul.mubr.msk.bf16.gmra.mrb[16].mxu0 %vm18242_vm14, %v3602_v33  ;;  %vm18246_vm14 = vmmov %vm18231_vm3 }
 0x1a6   : > { %12205 = vmatprep.mubr.msk.bf16.mxu0 %vm18243_vm7, %v3603_v12  ;;  %vm18247_vm7 = vmmov %vm18231_vm3 }
 0x1ad   : > { %12206 = vmatmul.mubr.msk.bf16.gmra.mrb[20].mxu0 %vm18231_vm3, %v3604_v54 }
 0x1ae   : > { %12209 = vmatprep.mubr.msk.bf16.mxu0 %vm18244_vm4, %v3605_v8  ;;  %vm17802_vm4 = vcmask 130048  }
 0x1af   : > { %3915 = vst.msk [vmem:[#allocation3 + $0x20] sm:$0xff] %vm17802_vm4, %v18248_v18  ;;  %3916 = vst.msk [vmem:[#allocation3 + $0x28] sm:$0xff] %vm17802_vm4, %v18248_v18 }
 0x1b0   : > { %3917 = vst.msk [vmem:[#allocation3 + $0x30] sm:$0xff] %vm17802_vm4, %v18248_v18  ;;  %3911 = vst.msk [vmem:[#allocation3] sm:$0xff] %vm17802_vm4, %v18248_v18 }
 0x1b1   : > { %3912 = vst.msk [vmem:[#allocation3 + $0x8] sm:$0xff] %vm17802_vm4, %v18248_v18  ;;  %3913 = vst.msk [vmem:[#allocation3 + $0x10] sm:$0xff] %vm17802_vm4, %v18248_v18 }
 0x1b2   : > { %3914 = vst.msk [vmem:[#allocation3 + $0x18] sm:$0xff] %vm17802_vm4, %v18248_v18  ;;  %3918 = vst.msk [vmem:[#allocation3 + $0x38] sm:$0xff] %vm17802_vm4, %v18248_v18 }
 0x1b3   : > { %3919 = vst.msk [vmem:[#allocation3 + $0x40] sm:$0xff] %vm17802_vm4, %v18248_v18  ;;  %3920 = vst.msk [vmem:[#allocation3 + $0x48] sm:$0xff] %vm17802_vm4, %v18248_v18 }
 0x1b4   : > { %3921 = vst.msk [vmem:[#allocation3 + $0x50] sm:$0xff] %vm17802_vm4, %v18248_v18  ;;  %3922 = vst.msk [vmem:[#allocation3 + $0x58] sm:$0xff] %vm17802_vm4, %v18248_v18 }
 0x1b5   : > { %12210 = vmatmul.mubr.msk.bf16.gmra.mrb[24].mxu0 %vm18246_vm14, %v3606_v19  ;;  %3923 = vst.msk [vmem:[#allocation3 + $0x60] sm:$0xff] %vm17802_vm4, %v18248_v18  ;;  %3924 = vst.msk [vmem:[#allocation3 + $0x68] sm:$0xff] %vm17802_vm4, %v18248_v18 }
 0x1b6   : > { %v15024_v46 = vpop.f32.mrb[0].mxu1  ;;  %12213 = vmatprep.mubr.msk.bf16.mxu0 %vm18247_vm7, %v3607_v41  ;;  %3925 = vst.msk [vmem:[#allocation3 + $0x70] sm:$0xff] %vm17802_vm4, %v18248_v18  ;;  %3926 = vst.msk [vmem:[#allocation3 + $0x78] sm:$0xff] %vm17802_vm4, %v18248_v18  ;;  %v15237_v41 = vld [vmem:[#allocation5] sm:$0xff]   ;;  %vm18260_vm7 = vnez %v18040_v49 }
 0x1b7   : > { %v15029_v29 = vpop.f32.mrb[1].mxu1  ;;  %3927 = vst.msk [vmem:[#allocation3 + $0x80] sm:$0xff] %vm17802_vm4, %v18248_v18  ;;  %3928 = vst.msk [vmem:[#allocation3 + $0x88] sm:$0xff] %vm17802_vm4, %v18248_v18  ;;  %12251 = vmatprep.subr.bf16.mxu1 %v15237_v41 }
 0x1b8   : > { %v15031_v57 = vpop.f32.mrb[2].mxu1  ;;  %3929 = vst.msk [vmem:[#allocation3 + $0x90] sm:$0xff] %vm17802_vm4, %v18248_v18  ;;  %3930 = vst.msk [vmem:[#allocation3 + $0x98] sm:$0xff] %vm17802_vm4, %v18248_v18  ;;  %v4095_v0 = vld [vmem:[#allocation3 + $0x1] sm:$0xff]  ;;  %v4096_v37 = vld [vmem:[#allocation3 + $0x9] sm:$0xff] }
 0x1b9   : > { %v15033_v36 = vpop.f32.mrb[3].mxu1  ;;  %3931 = vst.msk [vmem:[#allocation3 + $0xa0] sm:$0xff] %vm17802_vm4, %v18248_v18  ;;  %3932 = vst.msk [vmem:[#allocation3 + $0xa8] sm:$0xff] %vm17802_vm4, %v18248_v18  ;;  %v4127_v59 = vpack.c.bf16 %v4096_v37, %v4095_v0 }
 0x1ba   : > { %3933 = vst.msk [vmem:[#allocation3 + $0xb0] sm:$0xff] %vm17802_vm4, %v18248_v18  ;;  %3934 = vst.msk [vmem:[#allocation3 + $0xb8] sm:$0xff] %vm17802_vm4, %v18248_v18 }
 0x1bb   : > { %3935 = vst.msk [vmem:[#allocation3 + $0xc0] sm:$0xff] %vm17802_vm4, %v18248_v18  ;;  %3936 = vst.msk [vmem:[#allocation3 + $0xc8] sm:$0xff] %vm17802_vm4, %v18248_v18  ;;  %12219 = vmatprep.mubr.msk.bf16.mxu1 %vm17802_vm4, %v4127_v59 }
 0x1bc   : > { %3937 = vst.msk [vmem:[#allocation3 + $0xd0] sm:$0xff] %vm17802_vm4, %v18248_v18  ;;  %3938 = vst.msk [vmem:[#allocation3 + $0xd8] sm:$0xff] %vm17802_vm4, %v18248_v18 }
 0x1bd   : > { %12214 = vmatmul.mubr.msk.bf16.gmra.mrb[28].mxu0 %vm18231_vm3, %v3608_v11  ;;  %3939 = vst.msk [vmem:[#allocation3 + $0xe0] sm:$0xff] %vm17802_vm4, %v18248_v18  ;;  %3940 = vst.msk [vmem:[#allocation3 + $0xe8] sm:$0xff] %vm17802_vm4, %v18248_v18  ;;  %v15244_v11 = vld [vmem:[%s17661_s2] ss:$0 sm:$0xff]  ;;  %vm18273_vm3 = vnez %v18043_v55 }
 0x1be   : > { %v15036_v3 = vpop.f32.mrb[4].mxu1  ;;  %3941 = vst.msk [vmem:[#allocation3 + $0xf0] sm:$0xff] %vm17802_vm4, %v18248_v18  ;;  %3942 = vst.msk [vmem:[#allocation3 + $0xf8] sm:$0xff] %vm17802_vm4, %v18248_v18 }
 0x1bf   : > { %v15038_v10 = vpop.f32.mrb[5].mxu1  ;;  %3943 = vst.msk [vmem:[#allocation3 + $0x100] sm:$0xff] %vm17802_vm4, %v18248_v18  ;;  %3944 = vst.msk [vmem:[#allocation3 + $0x108] sm:$0xff] %vm17802_vm4, %v18248_v18 }
 0x1c0   : > { %v15040_v47 = vpop.f32.mrb[6].mxu1  ;;  %3945 = vst.msk [vmem:[#allocation3 + $0x110] sm:$0xff] %vm17802_vm4, %v18248_v18  ;;  %3946 = vst.msk [vmem:[#allocation3 + $0x118] sm:$0xff] %vm17802_vm4, %v18248_v18 }
 0x1c1   : > { %v15042_v38 = vpop.f32.mrb[7].mxu1  ;;  %6973 = vst.msk [vmem:[#allocation4] sm:$0xff] %vm17802_vm4, %v18248_v18  ;;  %6974 = vst.msk [vmem:[#allocation4 + $0x8] sm:$0xff] %vm17802_vm4, %v18248_v18 }
 0x1c2   : > { %6975 = vst.msk [vmem:[#allocation4 + $0x10] sm:$0xff] %vm17802_vm4, %v18248_v18  ;;  %6976 = vst.msk [vmem:[#allocation4 + $0x18] sm:$0xff] %vm17802_vm4, %v18248_v18 }
 0x1c3   : > { %6977 = vst.msk [vmem:[#allocation4 + $0x20] sm:$0xff] %vm17802_vm4, %v18248_v18  ;;  %6978 = vst.msk [vmem:[#allocation4 + $0x28] sm:$0xff] %vm17802_vm4, %v18248_v18 }
 0x1c4   : > { %6979 = vst.msk [vmem:[#allocation4 + $0x30] sm:$0xff] %vm17802_vm4, %v18248_v18  ;;  %6980 = vst.msk [vmem:[#allocation4 + $0x38] sm:$0xff] %vm17802_vm4, %v18248_v18 }
 0x1c5   : > { %6981 = vst.msk [vmem:[#allocation4 + $0x40] sm:$0xff] %vm17802_vm4, %v18248_v18  ;;  %6982 = vst.msk [vmem:[#allocation4 + $0x48] sm:$0xff] %vm17802_vm4, %v18248_v18 }
 0x1c6   : > { %v15044_v26 = vpop.f32.mrb[8].mxu1  ;;  %6983 = vst.msk [vmem:[#allocation4 + $0x50] sm:$0xff] %vm17802_vm4, %v18248_v18  ;;  %6984 = vst.msk [vmem:[#allocation4 + $0x58] sm:$0xff] %vm17802_vm4, %v18248_v18 }
 0x1c7   : > { %v15046_v22 = vpop.f32.mrb[9].mxu1  ;;  %6985 = vst.msk [vmem:[#allocation4 + $0x60] sm:$0xff] %vm17802_vm4, %v18248_v18  ;;  %6986 = vst.msk [vmem:[#allocation4 + $0x68] sm:$0xff] %vm17802_vm4, %v18248_v18 }
 0x1c8   : > { %v15048_v31 = vpop.f32.mrb[10].mxu1  ;;  %6987 = vst.msk [vmem:[#allocation4 + $0x70] sm:$0xff] %vm17802_vm4, %v18248_v18  ;;  %6988 = vst.msk [vmem:[#allocation4 + $0x78] sm:$0xff] %vm17802_vm4, %v18248_v18 }
 0x1c9   : > { %v15050_v15 = vpop.f32.mrb[11].mxu1  ;;  %6989 = vst.msk [vmem:[#allocation4 + $0x80] sm:$0xff] %vm17802_vm4, %v18248_v18  ;;  %6990 = vst.msk [vmem:[#allocation4 + $0x88] sm:$0xff] %vm17802_vm4, %v18248_v18 }
 0x1ca   : > { %6991 = vst.msk [vmem:[#allocation4 + $0x90] sm:$0xff] %vm17802_vm4, %v18248_v18  ;;  %6992 = vst.msk [vmem:[#allocation4 + $0x98] sm:$0xff] %vm17802_vm4, %v18248_v18 }
 0x1cb   : > { %6993 = vst.msk [vmem:[#allocation4 + $0xa0] sm:$0xff] %vm17802_vm4, %v18248_v18  ;;  %6994 = vst.msk [vmem:[#allocation4 + $0xa8] sm:$0xff] %vm17802_vm4, %v18248_v18 }
 0x1cc   : > { %6995 = vst.msk [vmem:[#allocation4 + $0xb0] sm:$0xff] %vm17802_vm4, %v18248_v18  ;;  %6996 = vst.msk [vmem:[#allocation4 + $0xb8] sm:$0xff] %vm17802_vm4, %v18248_v18 }
 0x1cd   : > { %6997 = vst.msk [vmem:[#allocation4 + $0xc0] sm:$0xff] %vm17802_vm4, %v18248_v18  ;;  %6998 = vst.msk [vmem:[#allocation4 + $0xc8] sm:$0xff] %vm17802_vm4, %v18248_v18 }
 0x1ce   : > { %v15052_v61 = vpop.f32.mrb[12].mxu1  ;;  %6999 = vst.msk [vmem:[#allocation4 + $0xd0] sm:$0xff] %vm17802_vm4, %v18248_v18  ;;  %7000 = vst.msk [vmem:[#allocation4 + $0xd8] sm:$0xff] %vm17802_vm4, %v18248_v18 }
 0x1cf   : > { %v15054_v34 = vpop.f32.mrb[13].mxu1  ;;  %7001 = vst.msk [vmem:[#allocation4 + $0xe0] sm:$0xff] %vm17802_vm4, %v18248_v18  ;;  %7002 = vst.msk [vmem:[#allocation4 + $0xe8] sm:$0xff] %vm17802_vm4, %v18248_v18 }
 0x1d0   : > { %v15056_v1 = vpop.f32.mrb[14].mxu1  ;;  %7003 = vst.msk [vmem:[#allocation4 + $0xf0] sm:$0xff] %vm17802_vm4, %v18248_v18  ;;  %7004 = vst.msk [vmem:[#allocation4 + $0xf8] sm:$0xff] %vm17802_vm4, %v18248_v18 }
 0x1d1   : > { %v15058_v42 = vpop.f32.mrb[15].mxu1  ;;  %7005 = vst.msk [vmem:[#allocation4 + $0x100] sm:$0xff] %vm17802_vm4, %v18248_v18  ;;  %7006 = vst.msk [vmem:[#allocation4 + $0x108] sm:$0xff] %vm17802_vm4, %v18248_v18 }
 0x1d2   : > { %7007 = vst.msk [vmem:[#allocation4 + $0x110] sm:$0xff] %vm17802_vm4, %v18248_v18  ;;  %7008 = vst.msk [vmem:[#allocation4 + $0x118] sm:$0xff] %vm17802_vm4, %v18248_v18 }
 0x1f6   : > { %v15205_v52 = vpop.f32.mrb[16].mxu1 }
 0x1f7   : > { %v15207_v6 = vpop.f32.mrb[17].mxu1 }
 0x1f8   : > { %v15209_v51 = vpop.f32.mrb[18].mxu1 }
 0x1f9   : > { %v15211_v60 = vpop.f32.mrb[19].mxu1 }
 0x1fe   : > { %v15213_v35 = vpop.f32.mrb[20].mxu1 }
 0x1ff   : > { %v15215_v9 = vpop.f32.mrb[21].mxu1 }
 0x200   : > { %v15217_v33 = vpop.f32.mrb[22].mxu1 }
 0x201   : > { %v15219_v12 = vpop.f32.mrb[23].mxu1 }
 0x206   : > { %v15221_v53 = vpop.f32.mrb[24].mxu1 }
 0x207   : > { %v15223_v48 = vpop.f32.mrb[25].mxu1 }
 0x208   : > { %v15225_v54 = vpop.f32.mrb[26].mxu1 }
 0x209   : > { %v15227_v8 = vpop.f32.mrb[27].mxu1 }
 0x20e   : > { %v15229_v21 = vpop.f32.mrb[28].mxu1 }
 0x20f   : > { %v15231_v24 = vpop.f32.mrb[29].mxu1 }
 0x210   : > { %v15233_v4 = vpop.f32.mrb[30].mxu1 }
 0x211   : > { %v15235_v19 = vpop.f32.mrb[31].mxu1 }
 0x258   : > { %v12187_v44 = vpop.f32.mrb[0].mxu0 }
 0x259   : > { %v12831_v2 = vadd.f32 %v12187_v44, %v15024_v46  ;;  %v3696_v45 = vpop.f32.mrb[1].mxu0 }
 0x25a   : > { %v12832_v20 = vadd.f32 %v3696_v45, %v15029_v29  ;;  %v12188_v0 = vpop.f32.mrb[2].mxu0 }
 0x25b   : > { %v12833_v37 = vadd.f32 %v12188_v0, %v15031_v57  ;;  %v3699_v59 = vpop.f32.mrb[3].mxu0  ;;  %v3864_v30 = vadd.f32 %v12831_v2, %v15244_v11 }
 0x25c   : > { %v12834_v18 = vadd.f32 %v3699_v59, %v15033_v36  ;;  %v3862_v46 = vadd.f32 %v12832_v20, %v15244_v11 }
 0x25d   : > { %v3865_v17 = vadd.f32 %v12833_v37, %v15244_v11 }
 0x25e   : > { %v3863_v44 = vadd.f32 %v12834_v18, %v15244_v11 }
 0x25f   : > { %v15253_v16 = vpack.c.bf16 %v3865_v17, %v3864_v30 }
 0x260   : > { %v15255_v58 = vpack.c.bf16 %v3863_v44, %v3862_v46  ;;  %v12191_v32 = vpop.f32.mrb[4].mxu0 }
 0x261   : > { %18249 = vst [vmem:[#allocation28_spill] sm:$0xff] %v15253_v16  ;;  %v17786_v29 = vunpack.c.l.bf16 %v15253_v16  ;;  %v17782_v57 = vunpack.c.h.bf16 %v15253_v16  ;;  %v12835_v45 = vadd.f32 %v12191_v32, %v15036_v3  ;;  %v3712_v36 = vpop.f32.mrb[5].mxu0 }
 0x262   : > { %18250 = vst [vmem:[#allocation25_spill] sm:$0xff] %v15255_v58  ;;  %v17784_v2 = vunpack.c.l.bf16 %v15255_v58  ;;  %v17779_v0 = vunpack.c.h.bf16 %v15255_v58  ;;  %v12836_v20 = vadd.f32 %v3712_v36, %v15038_v10  ;;  %v12192_v37 = vpop.f32.mrb[6].mxu0 }
 0x263   : > { %3983 = vst.msk [vmem:[#allocation3 + $0x21] sm:$0xff] %vm17802_vm4, %v17786_v29  ;;  %3984 = vst.msk [vmem:[#allocation3 + $0x29] sm:$0xff] %vm17802_vm4, %v17782_v57  ;;  %v12837_v30 = vadd.f32 %v12192_v37, %v15040_v47  ;;  %v3715_v17 = vpop.f32.mrb[7].mxu0  ;;  %v3868_v3 = vadd.f32 %v12835_v45, %v15244_v11 }
 0x264   : > { %3981 = vst.msk [vmem:[#allocation3 + $0x11] sm:$0xff] %vm17802_vm4, %v17784_v2  ;;  %3982 = vst.msk [vmem:[#allocation3 + $0x19] sm:$0xff] %vm17802_vm4, %v17779_v0  ;;  %v12838_v32 = vadd.f32 %v3715_v17, %v15042_v38  ;;  %v3866_v18 = vadd.f32 %v12836_v20, %v15244_v11 }
 0x265   : > { %v3869_v10 = vadd.f32 %v12837_v30, %v15244_v11 }
 0x266   : > { %v3867_v59 = vadd.f32 %v12838_v32, %v15244_v11 }
 0x267   : > { %v15281_v47 = vpack.c.bf16 %v3869_v10, %v3868_v3 }
 0x268   : > { %v15283_v46 = vpack.c.bf16 %v3867_v59, %v3866_v18  ;;  %v12195_v44 = vpop.f32.mrb[8].mxu0 }
 0x269   : > { %18251 = vst [vmem:[#allocation29_spill] sm:$0xff] %v15281_v47  ;;  %v17781_v36 = vunpack.c.l.bf16 %v15281_v47  ;;  %v17780_v37 = vunpack.c.h.bf16 %v15281_v47  ;;  %v12839_v0 = vadd.f32 %v12195_v44, %v15044_v26  ;;  %v3728_v38 = vpop.f32.mrb[9].mxu0 }
 0x26a   : > { %18252 = vst [vmem:[#allocation31_spill] sm:$0xff] %v15283_v46  ;;  %v17783_v45 = vunpack.c.l.bf16 %v15283_v46  ;;  %v17785_v30 = vunpack.c.h.bf16 %v15283_v46  ;;  %v12840_v20 = vadd.f32 %v3728_v38, %v15046_v22  ;;  %v12196_v17 = vpop.f32.mrb[10].mxu0  ;;  %v4099_v32 = vld [vmem:[#allocation3 + $0x21] sm:$0xff]  ;;  %v4100_v3 = vld [vmem:[#allocation3 + $0x29] sm:$0xff] }
 0x26b   : > { %3987 = vst.msk [vmem:[#allocation3 + $0x41] sm:$0xff] %vm17802_vm4, %v17781_v36  ;;  %3988 = vst.msk [vmem:[#allocation3 + $0x49] sm:$0xff] %vm17802_vm4, %v17780_v37  ;;  %v12841_v26 = vadd.f32 %v12196_v17, %v15048_v31  ;;  %v3731_v10 = vpop.f32.mrb[11].mxu0  ;;  %v4097_v18 = vld [vmem:[#allocation3 + $0x11] sm:$0xff]  ;;  %v4098_v59 = vld [vmem:[#allocation3 + $0x19] sm:$0xff]  ;;  %v3872_v17 = vadd.f32 %v12839_v0, %v15244_v11  ;;  %v15315_v57 = vpack.c.bf16 %v4100_v3, %v4099_v32 }
 0x26c   : > { %3985 = vst.msk [vmem:[#allocation3 + $0x31] sm:$0xff] %vm17802_vm4, %v17783_v45  ;;  %3986 = vst.msk [vmem:[#allocation3 + $0x39] sm:$0xff] %vm17802_vm4, %v17785_v30  ;;  %v12842_v22 = vadd.f32 %v3731_v10, %v15050_v15  ;;  %v15305_v44 = vpack.c.bf16 %v4098_v59, %v4097_v18  ;;  %v15307_v38 = vld [vmem:[#allocation3 + $0x10] sm:$0xff]  ;;  %v15309_v37 = vld [vmem:[#allocation3 + $0x20] sm:$0xff]  ;;  %v3870_v15 = vadd.f32 %v12840_v20, %v15244_v11 }
 0x26d   : > { %v15311_v31 = vld [vmem:[#allocation5 + $0x10] sm:$0xff]   ;;  %v3873_v36 = vadd.f32 %v12841_v26, %v15244_v11  ;;  %18254 = vst [vmem:[#allocation36_spill] sm:$0xff] %v15315_v57  ;;  %v15317_v45 = vld [vmem:[#allocation3 + $0x18] sm:$0xff]  ;;  %v15332_v0 = vld [vmem:[#allocation3 + $0x28] sm:$0xff]  ;;  %v4940_v3 = vsel %vm18260_vm7, %v15309_v37, 0.0 }
 0x26e   : > { %18253 = vst [vmem:[#allocation33_spill] sm:$0xff] %v15305_v44  ;;  %v15319_v2 = vld [vmem:[#allocation3 + $0x1a] sm:$0xff]  ;;  %v3871_v10 = vadd.f32 %v12842_v22, %v15244_v11  ;;  %12220 = vmatmul.mubr.msk.bf16.vlgmr.msra.gmra.mrb[32].mxu1 %vm17802_vm4, %v15305_v44  ;;  %v15325_v18 = vld [vmem:[#allocation3 + $0x12] sm:$0xff] }
 0x26f   : > { %18255 = vst [vmem:[#allocation34_spill] sm:$0xff] %v15319_v2  ;;  %18256 = vst [vmem:[#allocation38_spill] sm:$0xff] %v15325_v18  ;;  %v15327_v59 = vpack.c.bf16 %v3873_v36, %v3872_v17  ;;  %12223 = vmatprep.mubr.msk.bf16.mxu1 %vm17802_vm4, %v15315_v57  ;;  %12252 = vmatpush3.bf16.msra.mxu1 %v15237_v41  ;;  %v18258_v32 = vld [vmem:[#allocation11_spill] sm:$0xff]  ;;  %v15347_v41 = vpack.c.bf16 %v15332_v0, %v4940_v3  ;;  %v5567_v17 = vsel %vm18213_vm2, %v15319_v2, 0.0  ;;  %vm18283_vm2 = vcmask 130048  }
 0x270   : > { %vm18259_vm14 = vnez %v18258_v32  ;;  %v15340_v26 = vpack.c.bf16 %v3871_v10, %v3870_v15  ;;  %v12199_v22 = vpop.f32.mrb[12].mxu0  ;;  %12285 = vmatprep.subr.bf16.mxu1 %v15311_v31  ;;  %v15356_v46 = vpack.c.bf16 %v5567_v17, %v15325_v18  ;;  %vm18285_vm12 = vmmov %vm18283_vm2 }
 0x271   : > { %18257 = vst [vmem:[#allocation43_spill] sm:$0xff] %v15327_v59  ;;  %v4938_v20 = vsel %vm18259_vm14, %v15307_v38, 0.0  ;;  %18263 = vst [vmem:[#allocation54_spill] sm:$0xff] %v15347_v41  ;;  %v12843_v15 = vadd.f32 %v12199_v22, %v15052_v61  ;;  %v3744_v10 = vpop.f32.mrb[13].mxu0  ;;  %v5896_v30 = vsel %vm18259_vm14, %v15309_v37, 0.0  ;;  %v18265_v29 = vunpack.c.l.bf16 %v15327_v59 }
 0x272   : > { %18261 = vst [vmem:[#allocation52_spill] sm:$0xff] %v15340_v26  ;;  %v15344_v36 = vpack.c.bf16 %v15317_v45, %v4938_v20  ;;  %18264 = vst [vmem:[#allocation55_spill] sm:$0xff] %v15356_v46  ;;  %v17799_v20 = vunpack.c.l.bf16 %v15340_v26  ;;  %v12844_v3 = vadd.f32 %v3744_v10, %v15054_v34  ;;  %v12200_v58 = vpop.f32.mrb[14].mxu0  ;;  %v4103_v16 = vld [vmem:[#allocation3 + $0x41] sm:$0xff]  ;;  %v4104_v57 = vld [vmem:[#allocation3 + $0x49] sm:$0xff]  ;;  %v18266_v61 = vunpack.c.h.bf16 %v15327_v59 }
 0x273   : > { %3991 = vst.msk [vmem:[#allocation3 + $0x61] sm:$0xff] %vm17802_vm4, %v18265_v29  ;;  %v12845_v22 = vadd.f32 %v12200_v58, %v15056_v1  ;;  %v3747_v17 = vpop.f32.mrb[15].mxu0  ;;  %v4101_v47 = vld [vmem:[#allocation3 + $0x31] sm:$0xff]  ;;  %v4102_v34 = vld [vmem:[#allocation3 + $0x39] sm:$0xff]  ;;  %v15372_v10 = vpack.c.bf16 %v15332_v0, %v5896_v30  ;;  %v18268_v46 = vunpack.c.h.bf16 %v15340_v26  ;;  %v3876_v1 = vadd.f32 %v12843_v15, %v15244_v11  ;;  %v15403_v15 = vld [vmem:[#allocation3 + $0x48] sm:$0xff] }
 0x274   : > { %18262 = vst [vmem:[#allocation53_spill] sm:$0xff] %v15344_v36  ;;  %3992 = vst.msk [vmem:[#allocation3 + $0x69] sm:$0xff] %vm17802_vm4, %v18266_v61  ;;  %v12846_v29 = vadd.f32 %v3747_v17, %v15058_v42  ;;  %v15381_v59 = vpack.c.bf16 %v4102_v34, %v4101_v47  ;;  %v15383_v61 = vld [vmem:[#allocation3 + $0x30] sm:$0xff]  ;;  %v15385_v58 = vld [vmem:[#allocation3 + $0x40] sm:$0xff] }
 0x275   : > { %18267 = vst [vmem:[#allocation56_spill] sm:$0xff] %v15372_v10  ;;  %3989 = vst.msk [vmem:[#allocation3 + $0x51] sm:$0xff] %vm17802_vm4, %v17799_v20  ;;  %v3877_v30 = vadd.f32 %v12845_v22, %v15244_v11  ;;  %v15389_v10 = vpack.c.bf16 %v4104_v57, %v4103_v16  ;;  %v15391_v44 = vld [vmem:[#allocation3 + $0x38] sm:$0xff]  ;;  %v15393_v20 = vld [vmem:[#allocation3 + $0x2a] sm:$0xff]  ;;  %v4942_v57 = vsel %vm18273_vm3, %v15383_v61, 0.0 }
 0x276   : > { %3990 = vst.msk [vmem:[#allocation3 + $0x59] sm:$0xff] %vm17802_vm4, %v18268_v46  ;;  %18269 = vst [vmem:[#allocation57_spill] sm:$0xff] %v15381_v59  ;;  %v3874_v46 = vadd.f32 %v12844_v3, %v15244_v11  ;;  %v3875_v42 = vadd.f32 %v12846_v29, %v15244_v11  ;;  %12224 = vmatmul.mubr.msk.bf16.gmra.mrb[36].mxu1 %vm17802_vm4, %v15381_v59  ;;  %v15405_v16 = vld [vmem:[#allocation3 + $0x3a] sm:$0xff]  ;;  %v4944_v3 = vsel %vm18274_vm0, %v15385_v58, 0.0  ;;  %v15415_v34 = vld [vmem:[#allocation3 + $0x22] sm:$0xff] }
 0x277   : > { %18270 = vst [vmem:[#allocation58_spill] sm:$0xff] %v15389_v10  ;;  %v15399_v47 = vpack.c.bf16 %v3877_v30, %v3876_v1  ;;  %12227 = vmatprep.mubr.msk.bf16.mxu1 %vm17802_vm4, %v15389_v10  ;;  %18272 = vst [vmem:[#allocation60_spill] sm:$0xff] %v15403_v15  ;;  %v15417_v29 = vld [vmem:[#allocation3 + $0x32] sm:$0xff]  ;;  %v15420_v1 = vpack.c.bf16 %v15391_v44, %v4942_v57  ;;  %v15423_v30 = vpack.c.bf16 %v15403_v15, %v4944_v3 }
 0x278   : > { %v15413_v22 = vpack.c.bf16 %v3875_v42, %v3874_v46  ;;  %v12203_v17 = vpop.f32.mrb[16].mxu0  ;;  %18276 = vst [vmem:[#allocation62_spill] sm:$0xff] %v15417_v29  ;;  %vm18279_vm4 = vnez %v18217_v7  ;;  %vm18287_vm5 = vmmov %vm18283_vm2 }
 0x279   : > { %18271 = vst [vmem:[#allocation59_spill] sm:$0xff] %v15399_v47  ;;  %18277 = vst [vmem:[#allocation63_spill] sm:$0xff] %v15420_v1  ;;  %v5569_v26 = vsel %vm18279_vm4, %v15393_v20, 0.0  ;;  %v12847_v42 = vadd.f32 %v12203_v17, %v15205_v52  ;;  %v3760_v59 = vpop.f32.mrb[17].mxu0  ;;  %vm18281_vm4 = vnez %v18220_v50  ;;  %v18282_v46 = vunpack.c.l.bf16 %v15399_v47 }
 0x27a   : > { %18275 = vst [vmem:[#allocation61_spill] sm:$0xff] %v15413_v22  ;;  %18278 = vst [vmem:[#allocation64_spill] sm:$0xff] %v15423_v30  ;;  %v15432_v41 = vpack.c.bf16 %v5569_v26, %v15415_v34  ;;  %v17816_v57 = vunpack.c.l.bf16 %v15413_v22  ;;  %v12848_v3 = vadd.f32 %v3760_v59, %v15207_v6  ;;  %v12204_v30 = vpop.f32.mrb[18].mxu0  ;;  %v4107_v36 = vld [vmem:[#allocation3 + $0x61] sm:$0xff]  ;;  %v5571_v10 = vsel %vm18281_vm4, %v15405_v16, 0.0 }
 0x27b   : > { %v4108_v18 = vld [vmem:[#allocation3 + $0x69] sm:$0xff]  ;;  %3995 = vst.msk [vmem:[#allocation3 + $0x81] sm:$0xff] %vm18283_vm2, %v18282_v46  ;;  %v18284_v52 = vunpack.c.h.bf16 %v15399_v47  ;;  %v12849_v26 = vadd.f32 %v12204_v30, %v15209_v51  ;;  %v3763_v17 = vpop.f32.mrb[19].mxu0  ;;  %v15448_v59 = vpack.c.bf16 %v5571_v10, %v15417_v29  ;;  %vm18289_vm4 = vmmov %vm18283_vm2  ;;  %v3880_v30 = vadd.f32 %v12847_v42, %v15244_v11 }
 0x27c   : > { %18280 = vst [vmem:[#allocation65_spill] sm:$0xff] %v15432_v41  ;;  %v4105_v1 = vld [vmem:[#allocation3 + $0x51] sm:$0xff]  ;;  %3993 = vst.msk [vmem:[#allocation3 + $0x71] sm:$0xff] %vm18287_vm5, %v17816_v57  ;;  %v18288_v41 = vunpack.c.h.bf16 %v15413_v22  ;;  %v12850_v46 = vadd.f32 %v3763_v17, %v15211_v60  ;;  %v15479_v42 = vld [vmem:[#allocation3 + $0x68] sm:$0xff] }
 0x27d   : > { %3996 = vst.msk [vmem:[#allocation3 + $0x89] sm:$0xff] %vm18285_vm12, %v18284_v52  ;;  %v4106_v6 = vld [vmem:[#allocation3 + $0x59] sm:$0xff]  ;;  %18286 = vst [vmem:[#allocation66_spill] sm:$0xff] %v15448_v59  ;;  %v15459_v52 = vld [vmem:[#allocation3 + $0x50] sm:$0xff]  ;;  %v3881_v10 = vadd.f32 %v12849_v26, %v15244_v11  ;;  %v15465_v59 = vpack.c.bf16 %v4108_v18, %v4107_v36 }
 0x27e   : > { %3994 = vst.msk [vmem:[#allocation3 + $0x79] sm:$0xff] %vm18289_vm4, %v18288_v41  ;;  %v15457_v47 = vpack.c.bf16 %v4106_v6, %v4105_v1  ;;  %18291 = vst [vmem:[#allocation68_spill] sm:$0xff] %v15459_v52  ;;  %v15461_v51 = vld [vmem:[#allocation3 + $0x60] sm:$0xff]  ;;  %v15467_v2 = vld [vmem:[#allocation3 + $0x58] sm:$0xff]  ;;  %v3878_v41 = vadd.f32 %v12848_v3, %v15244_v11  ;;  %v3879_v60 = vadd.f32 %v12850_v46, %v15244_v11 }
 0x27f   : > { %18292 = vst [vmem:[#allocation69_spill] sm:$0xff] %v15465_v59  ;;  %v15469_v57 = vld [vmem:[#allocation3 + $0x4a] sm:$0xff]  ;;  %vm18294_vm12 = vmmov %vm18283_vm2  ;;  %v15475_v1 = vpack.c.bf16 %v3881_v10, %v3880_v30  ;;  %v15481_v18 = vld [vmem:[#allocation3 + $0x5a] sm:$0xff] }
 0x280   : > { %18290 = vst [vmem:[#allocation67_spill] sm:$0xff] %v15457_v47  ;;  %18293 = vst [vmem:[#allocation70_spill] sm:$0xff] %v15469_v57  ;;  %12228 = vmatmul.mubr.msk.bf16.gmra.mrb[40].mxu1 %vm18294_vm12, %v15457_v47  ;;  %v18299_v3 = vld [vmem:[#allocation16_spill] sm:$0xff]  ;;  %v15489_v17 = vpack.c.bf16 %v3879_v60, %v3878_v41  ;;  %v12207_v6 = vpop.f32.mrb[20].mxu0  ;;  %v15493_v30 = vld [vmem:[#allocation3 + $0x52] sm:$0xff]  ;;  %vm18306_vm12 = vnez %v18225_v40 }
 0x281   : > { %18295 = vst [vmem:[#allocation71_spill] sm:$0xff] %v15475_v1  ;;  %vm18296_vm5 = vmmov %vm18283_vm2  ;;  %vm18298_vm2 = vnez %v18049_v39  ;;  %vm18300_vm4 = vnez %v18299_v3  ;;  %v15491_v46 = vld [vmem:[#allocation3 + $0x42] sm:$0xff]  ;;  %v12851_v60 = vadd.f32 %v12207_v6, %v15213_v35  ;;  %v3776_v29 = vpop.f32.mrb[21].mxu0  ;;  %v18309_v41 = vunpack.c.l.bf16 %v15475_v1 }
 0x282   : > { %12231 = vmatprep.mubr.msk.bf16.mxu1 %vm18296_vm5, %v15465_v59  ;;  %18297 = vst [vmem:[#allocation72_spill] sm:$0xff] %v15481_v18  ;;  %v4946_v36 = vsel %vm18298_vm2, %v15459_v52, 0.0  ;;  %v4948_v26 = vsel %vm18300_vm4, %v15461_v51, 0.0  ;;  %18301 = vst [vmem:[#allocation73_spill] sm:$0xff] %v15489_v17  ;;  %v5573_v59 = vsel %vm18306_vm12, %v15469_v57, 0.0  ;;  %v4111_v7 = vld [vmem:[#allocation3 + $0x81] sm:$0xff]  ;;  %vm18308_vm5 = vnez %v18227_v14 }
 0x283   : > { %18302 = vst [vmem:[#allocation74_spill] sm:$0xff] %v15491_v46  ;;  %18303 = vst [vmem:[#allocation75_spill] sm:$0xff] %v15493_v30  ;;  %v15496_v10 = vpack.c.bf16 %v15467_v2, %v4946_v36  ;;  %v15499_v22 = vpack.c.bf16 %v15479_v42, %v4948_v26  ;;  %v15508_v50 = vpack.c.bf16 %v5573_v59, %v15491_v46  ;;  %v17829_v36 = vunpack.c.l.bf16 %v15489_v17 }
 0x284   : > { %v12852_v26 = vadd.f32 %v3776_v29, %v15215_v9  ;;  %v4112_v40 = vld [vmem:[#allocation3 + $0x89] sm:$0xff]  ;;  %v5575_v47 = vsel %vm18308_vm5, %v15481_v18, 0.0  ;;  %vm18310_vm12 = vcmask 130048   ;;  %v18311_v35 = vunpack.c.h.bf16 %v15475_v1 }
 0x285   : > { %18304 = vst [vmem:[#allocation76_spill] sm:$0xff] %v15496_v10  ;;  %18305 = vst [vmem:[#allocation77_spill] sm:$0xff] %v15499_v22  ;;  %v12208_v22 = vpop.f32.mrb[22].mxu0  ;;  %v4109_v10 = vld [vmem:[#allocation3 + $0x71] sm:$0xff]  ;;  %v4110_v9 = vld [vmem:[#allocation3 + $0x79] sm:$0xff]  ;;  %v15524_v29 = vpack.c.bf16 %v5575_v47, %v15493_v30 }
 0x286   : > { %18307 = vst [vmem:[#allocation78_spill] sm:$0xff] %v15508_v50  ;;  %3999 = vst.msk [vmem:[#allocation3 + $0xa1] sm:$0xff] %vm18310_vm12, %v18309_v41  ;;  %v12853_v59 = vadd.f32 %v12208_v22, %v15217_v33  ;;  %v3779_v6 = vpop.f32.mrb[23].mxu0  ;;  %v18315_v50 = vunpack.c.h.bf16 %v15489_v17  ;;  %v15533_v1 = vpack.c.bf16 %v4110_v9, %v4109_v10  ;;  %v15537_v33 = vld [vmem:[#allocation3 + $0x80] sm:$0xff]  ;;  %v3884_v22 = vadd.f32 %v12851_v60, %v15244_v11  ;;  %v15543_v14 = vld [vmem:[#allocation3 + $0x78] sm:$0xff] }
 0x287   : > { %vm18312_vm4 = vmmov %vm18310_vm12  ;;  %18313 = vst [vmem:[#allocation79_spill] sm:$0xff] %v15524_v29  ;;  %v12854_v41 = vadd.f32 %v3779_v6, %v15219_v12  ;;  %v15541_v29 = vpack.c.bf16 %v4112_v40, %v4111_v7  ;;  %v15555_v60 = vld [vmem:[#allocation3 + $0x88] sm:$0xff]  ;;  %v15557_v7 = vld [vmem:[#allocation3 + $0x7a] sm:$0xff] }
 0x288   : > { %4000 = vst.msk [vmem:[#allocation3 + $0xa9] sm:$0xff] %vm18312_vm4, %v18311_v35  ;;  %vm18314_vm2 = vmmov %vm18312_vm4  ;;  %v15535_v35 = vld [vmem:[#allocation3 + $0x70] sm:$0xff]  ;;  %v3885_v47 = vadd.f32 %v12853_v59, %v15244_v11  ;;  %v18325_v40 = vld [vmem:[#allocation18_spill] sm:$0xff]  ;;  %v5579_v30 = vsel %vm18236_vm11, %v15557_v7, 0.0 }
 0x289   : > { %3997 = vst.msk [vmem:[#allocation3 + $0x91] sm:$0xff] %vm18314_vm2, %v17829_v36  ;;  %vm18316_vm5 = vmmov %vm18314_vm2  ;;  %v15545_v36 = vld [vmem:[#allocation3 + $0x6a] sm:$0xff]  ;;  %v3883_v12 = vadd.f32 %v12854_v41, %v15244_v11  ;;  %12232 = vmatmul.mubr.msk.bf16.gmra.mrb[44].mxu1 %vm18314_vm2, %v15533_v1  ;;  %vm18326_vm12 = vnez %v18325_v40  ;;  %v12211_v41 = vpop.f32.mrb[24].mxu0 }
 0x28a   : > { %3998 = vst.msk [vmem:[#allocation3 + $0x99] sm:$0xff] %vm18316_vm5, %v18315_v50  ;;  %18317 = vst [vmem:[#allocation80_spill] sm:$0xff] %v15533_v1  ;;  %v3882_v50 = vadd.f32 %v12852_v26, %v15244_v11  ;;  %v15551_v10 = vpack.c.bf16 %v3885_v47, %v3884_v22  ;;  %v4950_v59 = vsel %vm18326_vm12, %v15535_v35, 0.0  ;;  %v18327_v26 = vld [vmem:[#allocation17_spill] sm:$0xff]  ;;  %v15567_v22 = vld [vmem:[#allocation3 + $0x62] sm:$0xff]  ;;  %v5577_v1 = vsel %vm18233_vm10, %v15545_v36, 0.0 }
 0x28b   : > { %18318 = vst [vmem:[#allocation81_spill] sm:$0xff] %v15535_v35  ;;  %18319 = vst [vmem:[#allocation82_spill] sm:$0xff] %v15537_v33  ;;  %vm18328_vm5 = vnez %v18327_v26  ;;  %v15569_v47 = vld [vmem:[#allocation3 + $0x72] sm:$0xff]  ;;  %v15572_v17 = vpack.c.bf16 %v15543_v14, %v4950_v59  ;;  %v3792_v46 = vpop.f32.mrb[25].mxu0  ;;  %v15584_v18 = vpack.c.bf16 %v5577_v1, %v15567_v22 }
 0x28c   : > { %18320 = vst [vmem:[#allocation83_spill] sm:$0xff] %v15541_v29  ;;  %18321 = vst [vmem:[#allocation84_spill] sm:$0xff] %v15545_v36  ;;  %v4952_v6 = vsel %vm18328_vm5, %v15537_v33, 0.0  ;;  %v15565_v9 = vpack.c.bf16 %v3883_v12, %v3882_v50  ;;  %v12855_v12 = vadd.f32 %v12211_v41, %v15221_v53  ;;  %v18335_v50 = vunpack.c.l.bf16 %v15551_v10 }
 0x28d   : > { %18322 = vst [vmem:[#allocation85_spill] sm:$0xff] %v15551_v10  ;;  %vm18323_vm4 = vmmov %vm18314_vm2  ;;  %v4115_v57 = vld [vmem:[#allocation3 + $0xa1] sm:$0xff]  ;;  %v18336_v53 = vunpack.c.h.bf16 %v15551_v10 }
 0x28e   : > { %12235 = vmatprep.mubr.msk.bf16.mxu1 %vm18323_vm4, %v15541_v29  ;;  %18324 = vst [vmem:[#allocation86_spill] sm:$0xff] %v15557_v7  ;;  %18329 = vst [vmem:[#allocation18_spill] sm:$0xff] %v15565_v9  ;;  %v15575_v29 = vpack.c.bf16 %v15555_v60, %v4952_v6  ;;  %v17849_v59 = vunpack.c.l.bf16 %v15565_v9  ;;  %v12856_v6 = vadd.f32 %v3792_v46, %v15223_v48 }
 0x28f   : > { %18330 = vst [vmem:[#allocation17_spill] sm:$0xff] %v15567_v22  ;;  %18331 = vst [vmem:[#allocation87_spill] sm:$0xff] %v15569_v47  ;;  %v4116_v25 = vld [vmem:[#allocation3 + $0xa9] sm:$0xff]  ;;  %v15600_v46 = vpack.c.bf16 %v5579_v30, %v15569_v47 }
 0x290   : > { %18332 = vst [vmem:[#allocation88_spill] sm:$0xff] %v15572_v17  ;;  %18333 = vst [vmem:[#allocation89_spill] sm:$0xff] %v15575_v29  ;;  %v12212_v29 = vpop.f32.mrb[26].mxu0  ;;  %v4113_v17 = vld [vmem:[#allocation3 + $0x91] sm:$0xff] }
 0x291   : > { %18334 = vst [vmem:[#allocation90_spill] sm:$0xff] %v15584_v18  ;;  %4003 = vst.msk [vmem:[#allocation3 + $0xc1] sm:$0xff] %vm18314_vm2, %v18335_v50  ;;  %v12857_v1 = vadd.f32 %v12212_v29, %v15225_v54  ;;  %v3795_v41 = vpop.f32.mrb[27].mxu0  ;;  %v4114_v48 = vld [vmem:[#allocation3 + $0x99] sm:$0xff]  ;;  %v18340_v18 = vunpack.c.h.bf16 %v15565_v9  ;;  %v3888_v29 = vadd.f32 %v12855_v12, %v15244_v11  ;;  %v15631_v12 = vld [vmem:[#allocation3 + $0xa8] sm:$0xff] }
 0x292   : > { %vm18337_vm4 = vmmov %vm18314_vm2  ;;  %18338 = vst [vmem:[#allocation91_spill] sm:$0xff] %v15600_v46  ;;  %v12858_v50 = vadd.f32 %v3795_v41, %v15227_v8  ;;  %v15609_v10 = vpack.c.bf16 %v4114_v48, %v4113_v17  ;;  %v15613_v54 = vld [vmem:[#allocation3 + $0xa0] sm:$0xff]  ;;  %v15617_v46 = vpack.c.bf16 %v4116_v25, %v4115_v57  ;;  %v15619_v47 = vld [vmem:[#allocation3 + $0x98] sm:$0xff] }
 0x293   : > { %4004 = vst.msk [vmem:[#allocation3 + $0xc9] sm:$0xff] %vm18337_vm4, %v18336_v53  ;;  %vm18339_vm10 = vmmov %vm18314_vm2  ;;  %v15611_v53 = vld [vmem:[#allocation3 + $0x90] sm:$0xff]  ;;  %v3889_v30 = vadd.f32 %v12857_v1, %v15244_v11  ;;  %v15633_v25 = vld [vmem:[#allocation3 + $0x9a] sm:$0xff] }
 0x294   : > { %4001 = vst.msk [vmem:[#allocation3 + $0xb1] sm:$0xff] %vm18339_vm10, %v17849_v59  ;;  %vm18341_vm11 = vmmov %vm18314_vm2  ;;  %v15621_v59 = vld [vmem:[#allocation3 + $0x8a] sm:$0xff]  ;;  %v3887_v8 = vadd.f32 %v12858_v50, %v15244_v11  ;;  %v18351_v57 = vld [vmem:[#allocation19_spill] sm:$0xff]  ;;  %v12215_v50 = vpop.f32.mrb[28].mxu0  ;;  %v5583_v13 = vsel %vm14665_vm6, %v15633_v25, 0.0 }
 0x295   : > { %4002 = vst.msk [vmem:[#allocation3 + $0xb9] sm:$0xff] %vm18341_vm11, %v18340_v18  ;;  %18342 = vst [vmem:[#allocation92_spill] sm:$0xff] %v15609_v10  ;;  %v3886_v18 = vadd.f32 %v12856_v6, %v15244_v11  ;;  %v15627_v17 = vpack.c.bf16 %v3889_v30, %v3888_v29  ;;  %v18353_v6 = vld [vmem:[#allocation20_spill] sm:$0xff]  ;;  %v15645_v30 = vld [vmem:[#allocation3 + $0x92] sm:$0xff]  ;;  %v3808_v7 = vpop.f32.mrb[29].mxu0 }
 0x296   : > { %18343 = vst [vmem:[#allocation93_spill] sm:$0xff] %v15611_v53  ;;  %18344 = vst [vmem:[#allocation94_spill] sm:$0xff] %v15617_v46  ;;  %vm18354_vm4 = vnez %v18353_v6  ;;  %v15643_v29 = vld [vmem:[#allocation3 + $0x82] sm:$0xff] }
 0x297   : > { %18345 = vst [vmem:[#allocation95_spill] sm:$0xff] %v15621_v59  ;;  %vm18346_vm10 = vmmov %vm18314_vm2  ;;  %v4956_v41 = vsel %vm18354_vm4, %v15613_v54, 0.0  ;;  %v15641_v48 = vpack.c.bf16 %v3887_v8, %v3886_v18  ;;  %v12859_v8 = vadd.f32 %v12215_v50, %v15229_v21  ;;  %v18360_v18 = vunpack.c.l.bf16 %v15627_v17 }
 0x298   : > { %12236 = vmatmul.mubr.msk.bf16.gmra.mrb[48].mxu1 %vm18346_vm10, %v15609_v10  ;;  %18347 = vst [vmem:[#allocation96_spill] sm:$0xff] %v15627_v17  ;;  %vm18348_vm11 = vmmov %vm18314_vm2  ;;  %vm18352_vm2 = vnez %v18351_v57  ;;  %v5581_v10 = vsel %vm14654_vm13, %v15621_v59, 0.0  ;;  %v4119_v36 = vld [vmem:[#allocation3 + $0xc1] sm:$0xff]  ;;  %v18361_v21 = vunpack.c.h.bf16 %v15627_v17 }
 0x299   : > { %12239 = vmatprep.mubr.msk.bf16.mxu1 %vm18348_vm11, %v15617_v46  ;;  %18349 = vst [vmem:[#allocation97_spill] sm:$0xff] %v15631_v12  ;;  %18350 = vst [vmem:[#allocation98_spill] sm:$0xff] %v15633_v25  ;;  %v4954_v1 = vsel %vm18352_vm2, %v15611_v53, 0.0  ;;  %v15651_v46 = vpack.c.bf16 %v15631_v12, %v4956_v41  ;;  %v15660_v22 = vpack.c.bf16 %v5581_v10, %v15643_v29 }
 0x29a   : > { %18355 = vst [vmem:[#allocation19_spill] sm:$0xff] %v15641_v48  ;;  %18356 = vst [vmem:[#allocation99_spill] sm:$0xff] %v15645_v30  ;;  %v15648_v9 = vpack.c.bf16 %v15619_v47, %v4954_v1  ;;  %v17869_v1 = vunpack.c.l.bf16 %v15641_v48  ;;  %v12860_v41 = vadd.f32 %v3808_v7, %v15231_v24  ;;  %v4120_v63 = vld [vmem:[#allocation3 + $0xc9] sm:$0xff]  ;;  %v15676_v7 = vpack.c.bf16 %v5583_v13, %v15645_v30 }
 0x29b   : > { %18358 = vst [vmem:[#allocation101_spill] sm:$0xff] %v15651_v46  ;;  %18359 = vst [vmem:[#allocation102_spill] sm:$0xff] %v15660_v22  ;;  %v12216_v46 = vpop.f32.mrb[30].mxu0  ;;  %v18365_v22 = vunpack.c.h.bf16 %v15641_v48 }
 0x29c   : > { %18357 = vst [vmem:[#allocation100_spill] sm:$0xff] %v15648_v9  ;;  %4007 = vst.msk [vmem:[#allocation3 + $0xe1] sm:$0xff] %vm18346_vm10, %v18360_v18  ;;  %v12861_v10 = vadd.f32 %v12216_v46, %v15233_v4  ;;  %v3811_v50 = vpop.f32.mrb[31].mxu0  ;;  %v4117_v9 = vld [vmem:[#allocation3 + $0xb1] sm:$0xff]  ;;  %v4118_v24 = vld [vmem:[#allocation3 + $0xb9] sm:$0xff]  ;;  %v3892_v46 = vadd.f32 %v12859_v8, %v15244_v11 }
 0x29d   : > { %vm18362_vm11 = vmmov %vm18346_vm10  ;;  %18363 = vst [vmem:[#allocation103_spill] sm:$0xff] %v15676_v7  ;;  %v12862_v18 = vadd.f32 %v3811_v50, %v15235_v19  ;;  %v15685_v17 = vpack.c.bf16 %v4118_v24, %v4117_v9  ;;  %v15689_v4 = vld [vmem:[#allocation3 + $0xc0] sm:$0xff]  ;;  %v15693_v7 = vpack.c.bf16 %v4120_v63, %v4119_v36  ;;  %v15695_v27 = vld [vmem:[#allocation3 + $0xb8] sm:$0xff] }
 0x29e   : > { %4008 = vst.msk [vmem:[#allocation3 + $0xe9] sm:$0xff] %vm18362_vm11, %v18361_v21  ;;  %vm18364_vm13 = vmmov %vm18346_vm10  ;;  %v15687_v21 = vld [vmem:[#allocation3 + $0xb0] sm:$0xff]  ;;  %v3893_v13 = vadd.f32 %v12861_v10, %v15244_v11  ;;  %v15703_v9 = vld [vmem:[#allocation3 + $0xba] sm:$0xff] }
 0x29f   : > { %4005 = vst.msk [vmem:[#allocation3 + $0xd1] sm:$0xff] %vm18364_vm13, %v17869_v1  ;;  %vm18366_vm6 = vmmov %vm18346_vm10  ;;  %v15697_v1 = vld [vmem:[#allocation3 + $0xaa] sm:$0xff]  ;;  %v3891_v19 = vadd.f32 %v12862_v18, %v15244_v11  ;;  %v15711_v36 = vld [vmem:[#allocation3 + $0xb2] sm:$0xff] }
 0x2a0   : > { %4006 = vst.msk [vmem:[#allocation3 + $0xd9] sm:$0xff] %vm18366_vm6, %v18365_v22  ;;  %18367 = vst [vmem:[#allocation104_spill] sm:$0xff] %v15685_v17  ;;  %v3890_v22 = vadd.f32 %v12860_v41, %v15244_v11  ;;  %12240 = vmatmul.mubr.msk.bf16.gmra.mrb[52].mxu1 %vm18366_vm6, %v15685_v17  ;;  %v15705_v50 = vpack.c.bf16 %v3893_v13, %v3892_v46  ;;  %v15709_v63 = vld [vmem:[#allocation3 + $0xc8] sm:$0xff]  ;;  %v18377_v8 = vld [vmem:[#allocation21_spill] sm:$0xff]  ;;  %v5585_v48 = vsel %vm14690_vm8, %v15697_v1, 0.0  ;;  %v5898_v17 = vsel %vm18260_vm7, %v15383_v61, 0.0 }
 0x2a1   : > { %18368 = vst [vmem:[#allocation105_spill] sm:$0xff] %v15687_v21  ;;  %18369 = vst [vmem:[#allocation106_spill] sm:$0xff] %v15689_v4  ;;  %vm18378_vm10 = vnez %v18377_v8  ;;  %v18379_v11 = vld [vmem:[#allocation22_spill] sm:$0xff]  ;;  %v15721_v18 = vld [vmem:[#allocation3 + $0xa2] sm:$0xff]  ;;  %v15757_v23 = vpack.c.bf16 %v15391_v44, %v5898_v17 }
 0x2a2   : > { %18370 = vst [vmem:[#allocation107_spill] sm:$0xff] %v15693_v7  ;;  %18371 = vst [vmem:[#allocation108_spill] sm:$0xff] %v15695_v27  ;;  %v4958_v41 = vsel %vm18378_vm10, %v15687_v21, 0.0  ;;  %vm18380_vm11 = vnez %v18379_v11  ;;  %v15719_v24 = vpack.c.bf16 %v3891_v19, %v3890_v22  ;;  %v15735_v30 = vpack.c.bf16 %v5585_v48, %v15721_v18 }
 0x2a3   : > { %18372 = vst [vmem:[#allocation109_spill] sm:$0xff] %v15697_v1  ;;  %18373 = vst [vmem:[#allocation110_spill] sm:$0xff] %v15703_v9  ;;  %v4960_v10 = vsel %vm18380_vm11, %v15689_v4, 0.0  ;;  %v15724_v46 = vpack.c.bf16 %v15695_v27, %v4958_v41  ;;  %v5587_v22 = vsel %vm14701_vm1, %v15703_v9, 0.0  ;;  %v18387_v48 = vunpack.c.h.bf16 %v15705_v50 }
 0x2a4   : > { %18374 = vst [vmem:[#allocation111_spill] sm:$0xff] %v15705_v50  ;;  %vm18375_vm13 = vmmov %vm18366_vm6  ;;  %v15727_v13 = vpack.c.bf16 %v15709_v63, %v4960_v10  ;;  %v4123_v10 = vld [vmem:[#allocation3 + $0xe1] sm:$0xff]  ;;  %v15743_v62 = vpack.c.bf16 %v5587_v22, %v15711_v36  ;;  %v5900_v22 = vsel %vm18273_vm3, %v15385_v58, 0.0 }
 0x2a5   : > { %12243 = vmatprep.mubr.msk.bf16.mxu1 %vm18375_vm13, %v15693_v7  ;;  %18376 = vst [vmem:[#allocation112_spill] sm:$0xff] %v15711_v36  ;;  %18381 = vst [vmem:[#allocation113_spill] sm:$0xff] %v15719_v24  ;;  %v17882_v7 = vunpack.c.l.bf16 %v15705_v50  ;;  %v15796_v1 = vld [vmem:[#allocation3 + $0xe8] sm:$0xff] }
 0x2a6   : > { %18382 = vst [vmem:[#allocation114_spill] sm:$0xff] %v15721_v18  ;;  %18383 = vst [vmem:[#allocation115_spill] sm:$0xff] %v15724_v46  ;;  %v4013_v46 = vld [vmem:[#allocation3] sm:$0xff]  ;;  %v4121_v19 = vld [vmem:[#allocation3 + $0xd1] sm:$0xff]  ;;  %v15780_v18 = vpack.c.bf16 %v15403_v15, %v5900_v22 }
 0x2a7   : > { %18384 = vst [vmem:[#allocation116_spill] sm:$0xff] %v15727_v13  ;;  %18385 = vst [vmem:[#allocation117_spill] sm:$0xff] %v15735_v30  ;;  %v4124_v13 = vld [vmem:[#allocation3 + $0xe9] sm:$0xff]  ;;  %v4122_v41 = vld [vmem:[#allocation3 + $0xd9] sm:$0xff] }
 0x2a8   : > { %18386 = vst [vmem:[#allocation118_spill] sm:$0xff] %v15743_v62  ;;  %4011 = vst.msk [vmem:[#allocation3 + $0x101] sm:$0xff] %vm18366_vm6, %v17882_v7  ;;  %v15754_v30 = vld [vmem:[#allocation3 + $0xd0] sm:$0xff]  ;;  %v18390_v62 = vunpack.c.l.bf16 %v15719_v24  ;;  %v18392_v7 = vunpack.c.h.bf16 %v15719_v24  ;;  %v15770_v50 = vld [vmem:[#allocation3 + $0xd8] sm:$0xff] }
 0x2a9   : > { %vm18388_vm13 = vmmov %vm18366_vm6  ;;  %18389 = vst [vmem:[#allocation119_spill] sm:$0xff] %v15757_v23  ;;  %v15772_v36 = vld [vmem:[#allocation3 + $0xe0] sm:$0xff]  ;;  %v15774_v17 = vld [vmem:[#allocation3 + $0xca] sm:$0xff] }
 0x2aa   : > { %4012 = vst.msk [vmem:[#allocation3 + $0x109] sm:$0xff] %vm18388_vm13, %v18387_v48  ;;  %vm18391_vm1 = vmmov %vm18366_vm6  ;;  %v15768_v48 = vpack.c.bf16 %v4122_v41, %v4121_v19  ;;  %v18396_v23 = vld [vmem:[#allocation23_spill] sm:$0xff]  ;;  %v15784_v24 = vld [vmem:[#allocation3 + $0xd2] sm:$0xff]  ;;  %v5902_v41 = vsel %vm18274_vm0, %v15459_v52, 0.0 }
 0x2ab   : > { %4009 = vst.msk [vmem:[#allocation3 + $0xf1] sm:$0xff] %vm18391_vm1, %v18390_v62  ;;  %vm18393_vm6 = vmmov %vm18391_vm1  ;;  %vm18397_vm13 = vnez %v18396_v23  ;;  %v15782_v62 = vpack.c.bf16 %v4124_v13, %v4123_v10  ;;  %v18401_v22 = vld [vmem:[#allocation24_spill] sm:$0xff] }
 0x2ac   : > { %4010 = vst.msk [vmem:[#allocation3 + $0xf9] sm:$0xff] %vm18393_vm6, %v18392_v7  ;;  %18394 = vst [vmem:[#allocation120_spill] sm:$0xff] %v15768_v48  ;;  %v4962_v9 = vsel %vm18397_vm13, %v15754_v30, 0.0  ;;  %v15786_v7 = vld [vmem:[#allocation3 + $0xda] sm:$0xff]  ;;  %12244 = vmatmul.mubr.msk.bf16.gmra.mrb[56].mxu1 %vm18391_vm1, %v15768_v48  ;;  %vm18402_vm6 = vnez %v18401_v22  ;;  %v15805_v10 = vld [vmem:[#allocation3 + $0xc2] sm:$0xff]  ;;  %v5589_v48 = vsel %vm14728_vm15, %v15774_v17, 0.0 }
 0x2ad   : > { %18395 = vst [vmem:[#allocation121_spill] sm:$0xff] %v15774_v17  ;;  %18398 = vst [vmem:[#allocation122_spill] sm:$0xff] %v15780_v18  ;;  %v15789_v19 = vpack.c.bf16 %v15770_v50, %v4962_v9  ;;  %v4964_v13 = vsel %vm18402_vm6, %v15772_v36, 0.0  ;;  %v4045_v9 = vsel %vm18259_vm14, %v4013_v46, 0.0  ;;  %v4014_v52 = vld [vmem:[#allocation3 + $0x8] sm:$0xff]  ;;  %v15817_v15 = vpack.c.bf16 %v5589_v48, %v15805_v10 }
 0x2ae   : > { %18399 = vst [vmem:[#allocation123_spill] sm:$0xff] %v15782_v62  ;;  %vm18403_vm8 = vmmov %vm18391_vm1  ;;  %v15808_v18 = vpack.c.bf16 %v15796_v1, %v4964_v13  ;;  %v15823_v46 = vpack.c.bf16 %v15467_v2, %v5902_v41  ;;  %vm18410_vm1 = vnez %v18299_v3  ;;  %v5908_v48 = vsel %vm18326_vm12, %v15537_v33, 0.0 }
 0x2af   : > { %18400 = vst [vmem:[#allocation124_spill] sm:$0xff] %v15789_v19  ;;  %12247 = vmatprep.mubr.msk.bf16.mxu1 %vm18403_vm8, %v15782_v62  ;;  %v5591_v19 = vsel %vm14739_vm9, %v15786_v7, 0.0  ;;  %18405 = vst [vmem:[#allocation126_spill] sm:$0xff] %v15817_v15  ;;  %vm18408_vm8 = vnez %v18049_v39  ;;  %v4077_v33 = vpack.c.bf16 %v4014_v52, %v4045_v9  ;;  %v15872_v9 = vld [vmem:[#allocation3 + $0xe2] sm:$0xff]  ;;  %v5920_v49 = vsel %vm18397_vm13, %v15772_v36, 0.0 }
 0x2b0   : > { %18404 = vst [vmem:[#allocation125_spill] sm:$0xff] %v15808_v18  ;;  %v15820_v32 = vpack.c.bf16 %v5591_v19, %v15784_v24  ;;  %18407 = vst [vmem:[#allocation128_spill] sm:$0xff] %v15823_v46  ;;  %v5904_v13 = vsel %vm18408_vm8, %v15461_v51, 0.0  ;;  %v5906_v18 = vsel %vm18410_vm1, %v15535_v35, 0.0  ;;  %v5910_v19 = vsel %vm18328_vm5, %v15611_v53, 0.0  ;;  %v18452_v39 = vld [vmem:[#allocation75_spill] sm:$0xff] }
 0x2b1   : > { %v15829_v62 = vpack.c.bf16 %v15479_v42, %v5904_v13  ;;  %v15841_v41 = vpack.c.bf16 %v15543_v14, %v5906_v18  ;;  %v15844_v46 = vpack.c.bf16 %v15555_v60, %v5908_v48  ;;  %v15847_v13 = vpack.c.bf16 %v15619_v47, %v5910_v19 }
 0x2b2   : > { %18406 = vst [vmem:[#allocation127_spill] sm:$0xff] %v15820_v32  ;;  %v4125_v32 = vld [vmem:[#allocation3 + $0xf1] sm:$0xff]  ;;  %v5914_v18 = vsel %vm18354_vm4, %v15687_v21, 0.0 }
 0x2b3   : > { %18409 = vst [vmem:[#allocation129_spill] sm:$0xff] %v15829_v62  ;;  %18411 = vst [vmem:[#allocation130_spill] sm:$0xff] %v15841_v41  ;;  %v5912_v62 = vsel %vm18352_vm2, %v15613_v54, 0.0  ;;  %v4126_v15 = vld [vmem:[#allocation3 + $0xf9] sm:$0xff]  ;;  %v15852_v35 = vld [vmem:[#allocation3 + $0xf0] sm:$0xff]  ;;  %v15870_v52 = vpack.c.bf16 %v15695_v27, %v5914_v18  ;;  %vm18423_vm2 = vcmask 130048  }
 0x2b4   : > { %18412 = vst [vmem:[#allocation131_spill] sm:$0xff] %v15844_v46  ;;  %18413 = vst [vmem:[#allocation132_spill] sm:$0xff] %v15847_v13  ;;  %v15855_v53 = vpack.c.bf16 %v15631_v12, %v5912_v62  ;;  %v15860_v48 = vpack.c.bf16 %v4126_v15, %v4125_v32  ;;  %v15862_v19 = vld [vmem:[#allocation3 + $0xf8] sm:$0xff]  ;;  %v15864_v13 = vld [vmem:[#allocation3 + $0xea] sm:$0xff]  ;;  %v5916_v12 = vsel %vm18378_vm10, %v15689_v4, 0.0  ;;  %v4047_v27 = vsel %vm18260_vm7, %v15307_v38, 0.0 }
 0x2b5   : > { %18414 = vst [vmem:[#allocation133_spill] sm:$0xff] %v15852_v35  ;;  %v18417_v46 = vld [vmem:[#allocation27_spill] sm:$0xff]  ;;  %18419 = vst [vmem:[#allocation136_spill] sm:$0xff] %v15870_v52  ;;  %v15874_v62 = vld [vmem:[#allocation3 + $0xf2] sm:$0xff]  ;;  %v5922_v38 = vsel %vm18402_vm6, %v15852_v35, 0.0 }
 0x2b6   : > { %18415 = vst [vmem:[#allocation134_spill] sm:$0xff] %v15855_v53  ;;  %18416 = vst [vmem:[#allocation135_spill] sm:$0xff] %v15860_v48  ;;  %vm18418_vm14 = vnez %v18417_v46  ;;  %v15876_v53 = vld [vmem:[#allocation3 + $0xfa] sm:$0xff]  ;;  %v18421_v15 = vld [vmem:[#allocation49_spill] sm:$0xff]  ;;  %12248 = vmatmul.mubr.msk.bf16.gmra.mrb[60].mxu1 %vm18423_vm2, %v15860_v48  ;;  %v15905_v48 = vpack.c.bf16 %v15709_v63, %v5916_v12 }
 0x2b7   : > { %v4966_v41 = vsel %vm18418_vm14, %v15852_v35, 0.0  ;;  %vm18422_vm4 = vnez %v18421_v15  ;;  %v15889_v18 = vld [vmem:[#allocation3 + $0x100] sm:$0xff]  ;;  %vm18426_vm5 = vmmov %vm18423_vm2  ;;  %v4078_v35 = vpack.c.bf16 %v15317_v45, %v4047_v27  ;;  %v18440_v45 = vld [vmem:[#allocation30_spill] sm:$0xff] }
 0x2b8   : > { %v15879_v32 = vpack.c.bf16 %v15862_v19, %v4966_v41  ;;  %v5593_v21 = vsel %vm18422_vm4, %v15864_v13, 0.0  ;;  %18424 = vst [vmem:[#allocation49_spill] sm:$0xff] %v15889_v18  ;;  %12253 = vmatprep.mubr.msk.bf16.mxu1 %vm18426_vm5, %v4077_v33  ;;  %v18427_v41 = vld [vmem:[#allocation50_spill] sm:$0xff]  ;;  %18430 = vst [vmem:[#allocation139_spill] sm:$0xff] %v15905_v48  ;;  %v5924_v12 = vsel %vm18418_vm14, %v15889_v18, 0.0  ;;  %v15928_v48 = vpack.c.bf16 %v15796_v1, %v5920_v49  ;;  %v15940_v18 = vld [vmem:[#allocation5 + $0x18] sm:$0xff]  }
 0x2b9   : > { %v15892_v52 = vpack.c.bf16 %v5593_v21, %v15872_v9  ;;  %vm18428_vm12 = vnez %v18427_v41  ;;  %v5918_v21 = vsel %vm18380_vm11, %v15754_v30, 0.0  ;;  %vm18436_vm5 = vmmov %vm18423_vm2  ;;  %vm18437_vm2 = vnez %v18212_v28 }
 0x2ba   : > { %18420 = vst [vmem:[#allocation137_spill] sm:$0xff] %v15879_v32  ;;  %v5595_v32 = vsel %vm18428_vm12, %v15876_v53, 0.0  ;;  %v15913_v33 = vpack.c.bf16 %v15770_v50, %v5918_v21  ;;  %18433 = vst [vmem:[#allocation142_spill] sm:$0xff] %v15928_v48  ;;  %v15931_v21 = vpack.c.bf16 %v15862_v19, %v5922_v38  ;;  %v6525_v38 = vsel %vm18437_vm2, %v15393_v20, 0.0  ;;  %v18457_v48 = vld [vmem:[#allocation17_spill] sm:$0xff] }
 0x2bb   : > { %18425 = vst [vmem:[#allocation138_spill] sm:$0xff] %v15892_v52  ;;  %v15902_v4 = vpack.c.bf16 %v5595_v32, %v15874_v62  ;;  %v15910_v52 = vld [vmem:[#allocation3 + $0x108] sm:$0xff]  ;;  %v4049_v32 = vsel %vm18273_vm3, %v15309_v37, 0.0  ;;  %v4053_v37 = vsel %vm18408_vm8, %v15385_v58, 0.0  ;;  %vm18438_vm7 = vmmov %vm18436_vm5  ;;  %v15954_v27 = vpack.c.bf16 %v6525_v38, %v15415_v34 }
 0x2bc   : > { %18431 = vst [vmem:[#allocation140_spill] sm:$0xff] %v15910_v52  ;;  %18432 = vst [vmem:[#allocation141_spill] sm:$0xff] %v15913_v33  ;;  %v15934_v33 = vpack.c.bf16 %v15910_v52, %v5924_v12  ;;  %v4079_v55 = vpack.c.bf16 %v15332_v0, %v4049_v32  ;;  %v18445_v58 = vld [vmem:[#allocation72_spill] sm:$0xff] }
 0x2bd   : > { %18429 = vst [vmem:[#allocation50_spill] sm:$0xff] %v15902_v4  ;;  %18434 = vst [vmem:[#allocation143_spill] sm:$0xff] %v15931_v21  ;;  %v4051_v4 = vsel %vm18274_vm0, %v15383_v61, 0.0  ;;  %v18443_v61 = vld [vmem:[#allocation32_spill] sm:$0xff] }
 0x2be   : > { %18435 = vst [vmem:[#allocation144_spill] sm:$0xff] %v15934_v33  ;;  %12254 = vmatmul.mubr.msk.bf16.vlgmr.msra.gmra.mrb[32].mxu1 %vm18436_vm5, %v4078_v35  ;;  %v4080_v49 = vpack.c.bf16 %v15391_v44, %v4051_v4  ;;  %18439 = vst [vmem:[#allocation145_spill] sm:$0xff] %v15954_v27  ;;  %vm18441_vm5 = vnez %v18440_v45  ;;  %v18442_v44 = vld [vmem:[#allocation70_spill] sm:$0xff]  ;;  %vm18444_vm0 = vnez %v18443_v61  ;;  %v18446_v4 = vld [vmem:[#allocation35_spill] sm:$0xff] }
 0x2bf   : > { %12257 = vmatprep.mubr.msk.bf16.mxu1 %vm18438_vm7, %v4079_v55  ;;  %12286 = vmatpush3.bf16.msra.mxu1 %v15311_v31  ;;  %v6527_v0 = vsel %vm18441_vm5, %v15405_v16, 0.0  ;;  %v6529_v35 = vsel %vm18444_vm0, %v18442_v44, 0.0  ;;  %vm18447_vm8 = vnez %v18446_v4  ;;  %v18448_v55 = vld [vmem:[#allocation62_spill] sm:$0xff]  ;;  %v18454_v27 = vld [vmem:[#allocation84_spill] sm:$0xff]  ;;  %v18455_v33 = vld [vmem:[#allocation37_spill] sm:$0xff] }
 0x2c0   : > { %v6531_v12 = vsel %vm18447_vm8, %v18445_v58, 0.0  ;;  %12319 = vmatprep.subr.bf16.mxu1 %v15940_v18  ;;  %v15967_v32 = vpack.c.bf16 %v6527_v0, %v18448_v55  ;;  %v18450_v31 = vld [vmem:[#allocation74_spill] sm:$0xff]  ;;  %vm18456_vm7 = vnez %v18455_v33  ;;  %v18460_v58 = vld [vmem:[#allocation39_spill] sm:$0xff]  ;;  %v18462_v0 = vld [vmem:[#allocation40_spill] sm:$0xff] }
 0x2c1   : > { %v15970_v38 = vpack.c.bf16 %v6529_v35, %v18450_v31  ;;  %v15973_v56 = vpack.c.bf16 %v6531_v12, %v18452_v39  ;;  %v6533_v21 = vsel %vm18456_vm7, %v18454_v27, 0.0  ;;  %v18459_v44 = vld [vmem:[#allocation86_spill] sm:$0xff]  ;;  %vm18461_vm3 = vnez %v18460_v58  ;;  %v18472_v27 = vld [vmem:[#allocation44_spill] sm:$0xff]  ;;  %v18477_v31 = vld [vmem:[#allocation45_spill] sm:$0xff] }
 0x2c2   : > { %18449 = vst [vmem:[#allocation62_spill] sm:$0xff] %v15967_v32  ;;  %v15979_v52 = vpack.c.bf16 %v6533_v21, %v18457_v48  ;;  %v6535_v4 = vsel %vm18461_vm3, %v18459_v44, 0.0  ;;  %vm18463_vm8 = vnez %v18462_v0  ;;  %v18464_v35 = vld [vmem:[#allocation42_spill] sm:$0xff]  ;;  %v18471_v44 = vld [vmem:[#allocation109_spill] sm:$0xff]  ;;  %vm18473_vm3 = vnez %v18472_v27 }
 0x2c3   : > { %18451 = vst [vmem:[#allocation146_spill] sm:$0xff] %v15970_v38  ;;  %18453 = vst [vmem:[#allocation147_spill] sm:$0xff] %v15973_v56  ;;  %v6537_v32 = vsel %vm18463_vm8, %v15621_v59, 0.0  ;;  %vm18465_vm0 = vnez %v18464_v35  ;;  %v15990_v56 = vld [vmem:[#allocation3 + $0x10a] sm:$0xff]  ;;  %v18466_v38 = vld [vmem:[#allocation87_spill] sm:$0xff]  ;;  %v6541_v0 = vsel %vm18473_vm3, %v18471_v44, 0.0 }
 0x2c4   : > { %18458 = vst [vmem:[#allocation148_spill] sm:$0xff] %v15979_v52  ;;  %v6539_v12 = vsel %vm18465_vm0, %v15633_v25, 0.0  ;;  %v15993_v39 = vpack.c.bf16 %v6535_v4, %v18466_v38  ;;  %v15996_v21 = vpack.c.bf16 %v6537_v32, %v15643_v29  ;;  %v18469_v52 = vld [vmem:[#allocation99_spill] sm:$0xff]  ;;  %v18474_v58 = vld [vmem:[#allocation114_spill] sm:$0xff]  ;;  %vm18478_vm0 = vnez %v18477_v31 }
 0x2c5   : > { %v15999_v48 = vpack.c.bf16 %v6539_v12, %v18469_v52  ;;  %v16004_v59 = vld [vmem:[#allocation3 + $0x102] sm:$0xff]  ;;  %v16007_v35 = vpack.c.bf16 %v6541_v0, %v18474_v58  ;;  %v18476_v25 = vld [vmem:[#allocation110_spill] sm:$0xff]  ;;  %v6547_v12 = vsel %vm14728_vm15, %v15786_v7, 0.0  ;;  %vm18485_vm15 = vcmask 130048  }
 0x2c6   : > { %18467 = vst [vmem:[#allocation87_spill] sm:$0xff] %v15993_v39  ;;  %18468 = vst [vmem:[#allocation149_spill] sm:$0xff] %v15996_v21  ;;  %v6543_v4 = vsel %vm18478_vm0, %v18476_v25, 0.0  ;;  %v18479_v39 = vld [vmem:[#allocation46_spill] sm:$0xff]  ;;  %v16025_v0 = vpack.c.bf16 %v6547_v12, %v15784_v24  ;;  %v18483_v25 = vld [vmem:[#allocation60_spill] sm:$0xff]  ;;  %12258 = vmatmul.mubr.msk.bf16.gmra.mrb[36].mxu1 %vm18485_vm15, %v4080_v49 }
 0x2c7   : > { %18470 = vst [vmem:[#allocation150_spill] sm:$0xff] %v15999_v48  ;;  %18475 = vst [vmem:[#allocation109_spill] sm:$0xff] %v16007_v35  ;;  %vm18480_vm8 = vnez %v18479_v39  ;;  %v18481_v48 = vld [vmem:[#allocation112_spill] sm:$0xff]  ;;  %v6549_v35 = vsel %vm14739_vm9, %v15864_v13, 0.0  ;;  %v4081_v58 = vpack.c.bf16 %v18483_v25, %v4053_v37 }
 0x2c8   : > { %v6545_v32 = vsel %vm18480_vm8, %v15774_v17, 0.0  ;;  %v16019_v21 = vpack.c.bf16 %v6543_v4, %v18481_v48  ;;  %18482 = vst [vmem:[#allocation45_spill] sm:$0xff] %v16025_v0  ;;  %v16032_v17 = vpack.c.bf16 %v6549_v35, %v15872_v9  ;;  %v6551_v4 = vsel %vm18422_vm4, %v15876_v53, 0.0  ;;  %vm18486_vm9 = vmmov %vm18485_vm15  ;;  %v18487_v25 = vld [vmem:[#allocation68_spill] sm:$0xff] }
 0x2c9   : > { %v16022_v52 = vpack.c.bf16 %v6545_v32, %v15805_v10  ;;  %v6553_v32 = vsel %vm18428_vm12, %v15990_v56, 0.0  ;;  %v16042_v12 = vpack.c.bf16 %v6551_v4, %v15874_v62  ;;  %12261 = vmatprep.mubr.msk.bf16.mxu1 %vm18486_vm9, %v4081_v58  ;;  %v4055_v37 = vsel %vm18410_vm1, %v18487_v25, 0.0  ;;  %vm18489_vm15 = vmmov %vm18486_vm9  ;;  %v18491_v4 = vld [vmem:[#allocation81_spill] sm:$0xff] }
 0x2ca   : > { %18484 = vst [vmem:[#allocation112_spill] sm:$0xff] %v16032_v17  ;;  %v16045_v0 = vpack.c.bf16 %v6553_v32, %v16004_v59  ;;  %vm18488_vm4 = vnez %v18325_v40  ;;  %v4082_v17 = vpack.c.bf16 %v15467_v2, %v4055_v37  ;;  %vm18490_vm12 = vmmov %vm18486_vm9  ;;  %vm18492_vm8 = vnez %v18327_v26  ;;  %v18493_v32 = vld [vmem:[#allocation82_spill] sm:$0xff]  ;;  %v18497_v2 = vld [vmem:[#allocation93_spill] sm:$0xff] }
 0x2cb   : > { %v4057_v35 = vsel %vm18488_vm4, %v15461_v51, 0.0  ;;  %v4059_v58 = vsel %vm18492_vm8, %v18491_v4, 0.0  ;;  %vm18494_vm9 = vnez %v18351_v57  ;;  %vm18495_vm4 = vmmov %vm18490_vm12 }
 0x2cc   : > { %v4083_v49 = vpack.c.bf16 %v15479_v42, %v4057_v35  ;;  %v4061_v25 = vsel %vm18494_vm9, %v18493_v32, 0.0  ;;  %v4084_v3 = vpack.c.bf16 %v15543_v14, %v4059_v58  ;;  %vm18496_vm1 = vmmov %vm18495_vm4  ;;  %v18499_v35 = vld [vmem:[#allocation97_spill] sm:$0xff]  ;;  %v18504_v58 = vld [vmem:[#allocation108_spill] sm:$0xff] }
 0x2cd   : > { %v4085_v51 = vpack.c.bf16 %v15555_v60, %v4061_v25  ;;  %vm18501_vm9 = vmmov %vm18496_vm1  ;;  %v18502_v14 = vld [vmem:[#allocation105_spill] sm:$0xff]  ;;  %v18503_v60 = vld [vmem:[#allocation106_spill] sm:$0xff]  ;;  %v4073_v25 = vsel %vm18418_vm14, %v15772_v36, 0.0 }
 0x2ce   : > { %12262 = vmatmul.mubr.msk.bf16.gmra.mrb[40].mxu1 %vm18489_vm15, %v4082_v17  ;;  %vm18498_vm15 = vnez %v18353_v6  ;;  %v4065_v17 = vsel %vm18378_vm10, %v15613_v54, 0.0  ;;  %v4069_v4 = vsel %vm18397_vm13, %v18503_v60, 0.0  ;;  %vm18511_vm14 = vmmov %vm18496_vm1 }
 0x2cf   : > { %12265 = vmatprep.mubr.msk.bf16.mxu1 %vm18490_vm12, %v4083_v49  ;;  %v4063_v42 = vsel %vm18498_vm15, %v18497_v2, 0.0  ;;  %v4087_v49 = vpack.c.bf16 %v18499_v35, %v4065_v17  ;;  %vm18500_vm12 = vmmov %vm18496_vm1  ;;  %v4089_v54 = vpack.c.bf16 %v15709_v63, %v4069_v4  ;;  %v4091_v2 = vpack.c.bf16 %v15796_v1, %v4073_v25  ;;  %v4577_v63 = vld [vmem:[#allocation3 + $0xa] sm:$0xff]  ;;  %v4576_v35 = vld [vmem:[#allocation3 + $0x2] sm:$0xff] }
 0x2d0   : > { %v4086_v37 = vpack.c.bf16 %v15619_v47, %v4063_v42  ;;  %v4071_v47 = vsel %vm18402_vm6, %v15754_v30, 0.0  ;;  %v18508_v42 = vld [vmem:[#allocation133_spill] sm:$0xff]  ;;  %v4609_v30 = vsel %vm18437_vm2, %v4577_v63, 0.0  ;;  %v18512_v1 = vld [vmem:[#allocation34_spill] sm:$0xff]  ;;  %vm18516_vm2 = vmmov %vm18496_vm1 }
 0x2d1   : > { %v18509_v17 = vld [vmem:[#allocation41_spill] sm:$0xff]  ;;  %v4640_v36 = vpack.c.bf16 %v4609_v30, %v4576_v35  ;;  %v18520_v25 = vld [vmem:[#allocation74_spill] sm:$0xff]  ;;  %v18525_v63 = vld [vmem:[#allocation84_spill] sm:$0xff] }
 0x2d2   : > { %v13645_v4 = vld [vmem:[#allocation5 + $0x20] sm:$0xff]  }
 0x2d3   : > { %v18529_v30 = vld [vmem:[#allocation17_spill] sm:$0xff] }
 0x2d6   : > { %12266 = vmatmul.mubr.msk.bf16.gmra.mrb[44].mxu1 %vm18495_vm4, %v4084_v3  ;;  %v4067_v3 = vsel %vm18380_vm11, %v18502_v14, 0.0  ;;  %vm18505_vm4 = vmmov %vm18496_vm1 }
 0x2d7   : > { %12269 = vmatprep.mubr.msk.bf16.mxu1 %vm18496_vm1, %v4085_v51  ;;  %v4088_v32 = vpack.c.bf16 %v18504_v58, %v4067_v3  ;;  %v4090_v51 = vpack.c.bf16 %v15770_v50, %v4071_v47  ;;  %v4611_v50 = vsel %vm18441_vm5, %v18512_v1, 0.0  ;;  %v18514_v3 = vld [vmem:[#allocation38_spill] sm:$0xff] }
 0x2d8   : > { %v4641_v60 = vpack.c.bf16 %v4611_v50, %v18514_v3  ;;  %v18535_v50 = vld [vmem:[#allocation95_spill] sm:$0xff] }
 0x2de   : > { %12270 = vmatmul.mubr.msk.bf16.gmra.mrb[48].mxu1 %vm18500_vm12, %v4086_v37  ;;  %vm18507_vm12 = vmmov %vm18496_vm1 }
 0x2df   : > { %12273 = vmatprep.mubr.msk.bf16.mxu1 %vm18501_vm9, %v4087_v49  ;;  %vm18506_vm9 = vmmov %vm18496_vm1 }
 0x2e6   : > { %12274 = vmatmul.mubr.msk.bf16.gmra.mrb[52].mxu1 %vm18505_vm4, %v4088_v32  ;;  %vm18510_vm4 = vnez %v18509_v17  ;;  %v7075_v17 = vld [vmem:[#allocation4 + $0x8] sm:$0xff] }
 0x2e7   : > { %12277 = vmatprep.mubr.msk.bf16.mxu1 %vm18496_vm1, %v4089_v54  ;;  %v4075_v37 = vsel %vm18510_vm4, %v18508_v42, 0.0  ;;  %v18519_v54 = vld [vmem:[#allocation70_spill] sm:$0xff]  ;;  %v18526_v42 = vld [vmem:[#allocation40_spill] sm:$0xff] }
 0x2e8   : > { %v4092_v49 = vpack.c.bf16 %v15862_v19, %v4075_v37  ;;  %v18517_v19 = vld [vmem:[#allocation35_spill] sm:$0xff]  ;;  %vm18527_vm5 = vnez %v18526_v42 }
 0x2e9   : > { %v18528_v37 = vld [vmem:[#allocation75_spill] sm:$0xff] }
 0x2ee   : > { %12278 = vmatmul.mubr.msk.bf16.gmra.mrb[56].mxu1 %vm18506_vm9, %v4090_v51  ;;  %vm18513_vm9 = vnez %v18443_v61 }
 0x2ef   : > { %12281 = vmatprep.mubr.msk.bf16.mxu1 %vm18507_vm12, %v4091_v2  ;;  %v4613_v14 = vsel %vm18513_vm9, %v15393_v20, 0.0  ;;  %vm18515_vm12 = vmmov %vm18496_vm1  ;;  %v4617_v20 = vsel %vm18456_vm7, %v18519_v54, 0.0  ;;  %v18523_v2 = vld [vmem:[#allocation39_spill] sm:$0xff] }
 0x2f0   : > { %v4642_v58 = vpack.c.bf16 %v4613_v14, %v15415_v34  ;;  %v4644_v51 = vpack.c.bf16 %v4617_v20, %v18520_v25  ;;  %v18522_v34 = vld [vmem:[#allocation72_spill] sm:$0xff]  ;;  %vm18530_vm9 = vmmov %vm18496_vm1  ;;  %v4625_v14 = vsel %vm18473_vm3, %v18535_v50, 0.0  ;;  %v18540_v20 = vld [vmem:[#allocation99_spill] sm:$0xff] }
 0x2f1   : > { %vm18531_vm7 = vmmov %vm18496_vm1  ;;  %v18541_v25 = vld [vmem:[#allocation114_spill] sm:$0xff]  ;;  %v18569_v50 = vld [vmem:[#allocation89_spill] sm:$0xff] }
 0x2f6   : > { %12282 = vmatmul.mubr.msk.bf16.gmra.mrb[60].mxu1 %vm18496_vm1, %v4092_v49 }
 0x2f7   : > { %12287 = vmatprep.mubr.msk.bf16.mxu1 %vm18511_vm14, %v4640_v36  ;;  %vm18518_vm14 = vnez %v18517_v19  ;;  %v18533_v36 = vld [vmem:[#allocation42_spill] sm:$0xff] }
 0x2f8   : > { %v4615_v32 = vsel %vm18518_vm14, %v15405_v16, 0.0  ;;  %v4621_v16 = vsel %vm18527_vm5, %v18525_v63, 0.0  ;;  %vm18537_vm5 = vmmov %vm18531_vm7  ;;  %vm3947_vm14 = vcmask 123904  }
 0x2f9   : > { %v4643_v47 = vpack.c.bf16 %v4615_v32, %v18448_v55  ;;  %v4646_v49 = vpack.c.bf16 %v4621_v16, %v18529_v30  ;;  %v18532_v55 = vld [vmem:[#allocation86_spill] sm:$0xff]  ;;  %vm18543_vm3 = vmmov %vm18537_vm5 }
 0x2fe   : > { %12288 = vmatmul.mubr.msk.bf16.vlgmr.msra.gmra.mrb[32].mxu1 %vm18515_vm12, %v4641_v60  ;;  %vm18521_vm12 = vmmov %vm18496_vm1  ;;  %v4648_v60 = vpack.c.bf16 %v4625_v14, %v15643_v29  ;;  %v18544_v29 = vld [vmem:[#allocation110_spill] sm:$0xff]  ;;  %v18571_v14 = vld [vmem:[#allocation100_spill] sm:$0xff] }
 0x2ff   : > { %12291 = vmatprep.mubr.msk.bf16.mxu1 %vm18516_vm2, %v4642_v58  ;;  %12320 = vmatpush3.bf16.msra.mxu1 %v15940_v18  ;;  %vm18524_vm2 = vnez %v18523_v2  ;;  %v18538_v58 = vld [vmem:[#allocation98_spill] sm:$0xff] }
 0x300   : > { %12353 = vmatprep.subr.bf16.mxu1 %v13645_v4  ;;  %v4619_v18 = vsel %vm18524_vm2, %v18522_v34, 0.0  ;;  %v4627_v32 = vsel %vm18478_vm0, %v18538_v58, 0.0  ;;  %v18546_v34 = vld [vmem:[#allocation121_spill] sm:$0xff]  ;;  %vm18549_vm0 = vmmov %vm18543_vm3  ;;  %v18579_v58 = vld [vmem:[#allocation124_spill] sm:$0xff] }
 0x301   : > { %v4645_v35 = vpack.c.bf16 %v4619_v18, %v18528_v37  ;;  %vm18570_vm2 = vmmov %vm18549_vm0 }
 0x306   : > { %12292 = vmatmul.mubr.msk.bf16.gmra.mrb[36].mxu1 %vm18496_vm1, %v4643_v47  ;;  %vm18534_vm1 = vnez %v18533_v36  ;;  %v4649_v47 = vpack.c.bf16 %v4627_v32, %v18540_v20  ;;  %v18580_v32 = vld [vmem:[#allocation125_spill] sm:$0xff] }
 0x307   : > { %12295 = vmatprep.mubr.msk.bf16.mxu1 %vm18521_vm12, %v4644_v51  ;;  %v4623_v1 = vsel %vm18534_vm1, %v18532_v55, 0.0  ;;  %vm18536_vm12 = vmmov %vm18531_vm7  ;;  %v18558_v55 = vld [vmem:[#allocation54_spill] sm:$0xff]  ;;  %v18584_v20 = vld [vmem:[#allocation49_spill] sm:$0xff] }
 0x308   : > { %v4647_v3 = vpack.c.bf16 %v4623_v1, %v18466_v38  ;;  %vm18561_vm1 = vmmov %vm18549_vm0  ;;  %v18567_v1 = vld [vmem:[#allocation88_spill] sm:$0xff] }
 0x30e   : > { %12296 = vmatmul.mubr.msk.bf16.gmra.mrb[40].mxu1 %vm18530_vm9, %v4645_v35  ;;  %vm18542_vm9 = vmmov %vm18537_vm5 }
 0x30f   : > { %12299 = vmatprep.mubr.msk.bf16.mxu1 %vm18531_vm7, %v4646_v49  ;;  %vm18539_vm7 = vnez %v18479_v39 }
 0x310   : > { %v4629_v54 = vsel %vm18539_vm7, %v18471_v44, 0.0  ;;  %vm18548_vm7 = vmmov %vm18543_vm3 }
 0x311   : > { %v4650_v51 = vpack.c.bf16 %v4629_v54, %v18541_v25  ;;  %v18582_v54 = vld [vmem:[#allocation137_spill] sm:$0xff]  ;;  %v18585_v25 = vld [vmem:[#allocation140_spill] sm:$0xff] }
 0x316   : > { %12300 = vmatmul.mubr.msk.bf16.gmra.mrb[44].mxu1 %vm18536_vm12, %v4647_v3  ;;  %vm18545_vm12 = vnez %v18134_v43  ;;  %v18575_v3 = vld [vmem:[#allocation115_spill] sm:$0xff] }
 0x317   : > { %12303 = vmatprep.mubr.msk.bf16.mxu1 %vm18537_vm5, %v4648_v60  ;;  %v4631_v38 = vsel %vm18545_vm12, %v18544_v29, 0.0  ;;  %vm18547_vm5 = vnez %v18138_v5  ;;  %vm18553_vm12 = vmmov %vm18549_vm0  ;;  %v18577_v60 = vld [vmem:[#allocation116_spill] sm:$0xff]  ;;  %v18587_v29 = vld [vmem:[#allocation33_spill] sm:$0xff] }
 0x318   : > { %v4633_v18 = vsel %vm18547_vm5, %v18546_v34, 0.0  ;;  %v4651_v63 = vpack.c.bf16 %v4631_v38, %v18481_v48  ;;  %vm18552_vm5 = vmmov %vm18549_vm0  ;;  %v13647_v38 = vld [vmem:[#allocation5 + $0x30] sm:$0xff]   ;;  %v18589_v34 = vld [vmem:[#allocation36_spill] sm:$0xff] }
 0x319   : > { %v4652_v44 = vpack.c.bf16 %v4633_v18, %v15805_v10  ;;  %v18554_v10 = vld [vmem:[#allocation51_spill] sm:$0xff]  ;;  %v18591_v18 = vld [vmem:[#allocation57_spill] sm:$0xff] }
 0x31e   : > { %12304 = vmatmul.mubr.msk.bf16.gmra.mrb[48].mxu1 %vm18542_vm9, %v4649_v47  ;;  %vm18550_vm9 = vnez %v18421_v15  ;;  %v4968_v47 = vsel %vm18510_vm4, %v18584_v20, 0.0  ;;  %v18631_v20 = vld [vmem:[#allocation103_spill] sm:$0xff] }
 0x31f   : > { %12307 = vmatprep.mubr.msk.bf16.mxu1 %vm18543_vm3, %v4650_v51  ;;  %v4635_v16 = vsel %vm18550_vm9, %v15786_v7, 0.0  ;;  %vm18551_vm3 = vnez %v18427_v41  ;;  %v18556_v7 = vld [vmem:[#allocation53_spill] sm:$0xff]  ;;  %vm18557_vm9 = vmmov %vm18549_vm0  ;;  %v4985_v51 = vpack.c.bf16 %v18585_v25, %v4968_v47  ;;  %v18634_v25 = vld [vmem:[#allocation118_spill] sm:$0xff] }
 0x320   : > { %v4637_v37 = vsel %vm18551_vm3, %v15864_v13, 0.0  ;;  %v4653_v35 = vpack.c.bf16 %v4635_v16, %v15784_v24  ;;  %v13646_v13 = vld [vmem:[#allocation5 + $0x28] sm:$0xff]   ;;  %vm18559_vm3 = vmmov %vm18549_vm0  ;;  %v18560_v24 = vld [vmem:[#allocation63_spill] sm:$0xff] }
 0x321   : > { %v4654_v30 = vpack.c.bf16 %v4637_v37, %v15872_v9  ;;  %v18562_v9 = vld [vmem:[#allocation64_spill] sm:$0xff]  ;;  %v18596_v16 = vld [vmem:[#allocation69_spill] sm:$0xff] }
 0x322   : > { %v18598_v37 = vld [vmem:[#allocation80_spill] sm:$0xff]  ;;  %v18632_v47 = vld [vmem:[#allocation117_spill] sm:$0xff] }
 0x326   : > { %12308 = vmatmul.mubr.msk.bf16.gmra.mrb[52].mxu1 %vm18548_vm7, %v4651_v63  ;;  %vm18555_vm7 = vnez %v18554_v10  ;;  %v18593_v63 = vld [vmem:[#allocation58_spill] sm:$0xff] }
 0x327   : > { %12311 = vmatprep.mubr.msk.bf16.mxu1 %vm18549_vm0, %v4652_v44  ;;  %v4639_v48 = vsel %vm18555_vm7, %v15876_v53, 0.0  ;;  %v18564_v53 = vld [vmem:[#allocation76_spill] sm:$0xff]  ;;  %v18594_v44 = vld [vmem:[#allocation67_spill] sm:$0xff] }
 0x328   : > { %v4655_v49 = vpack.c.bf16 %v4639_v48, %v15874_v62  ;;  %v18566_v62 = vld [vmem:[#allocation77_spill] sm:$0xff]  ;;  %v18604_v48 = vld [vmem:[#allocation94_spill] sm:$0xff] }
 0x32e   : > { %12312 = vmatmul.mubr.msk.bf16.gmra.mrb[56].mxu1 %vm18552_vm5, %v4653_v35  ;;  %vm18565_vm5 = vmmov %vm18549_vm0  ;;  %v18600_v35 = vld [vmem:[#allocation83_spill] sm:$0xff] }
 0x32f   : > { %12315 = vmatprep.mubr.msk.bf16.mxu1 %vm18553_vm12, %v4654_v30  ;;  %vm18563_vm12 = vmmov %vm18549_vm0  ;;  %v18602_v30 = vld [vmem:[#allocation92_spill] sm:$0xff] }
 0x336   : > { %12316 = vmatmul.mubr.msk.bf16.gmra.mrb[60].mxu1 %vm18549_vm0, %v4655_v49  ;;  %v18606_v49 = vld [vmem:[#allocation104_spill] sm:$0xff] }
 0x337   : > { %12321 = vmatprep.mubr.msk.bf16.mxu1 %vm18557_vm9, %v18556_v7  ;;  %vm18568_vm9 = vmmov %vm18549_vm0  ;;  %v18607_v7 = vld [vmem:[#allocation107_spill] sm:$0xff] }
 0x33e   : > { %12322 = vmatmul.mubr.msk.bf16.vlgmr.msra.gmra.mrb[32].mxu1 %vm18559_vm3, %v18558_v55  ;;  %vm18572_vm3 = vmmov %vm18549_vm0  ;;  %v18611_v55 = vld [vmem:[#allocation123_spill] sm:$0xff] }
 0x33f   : > { %12325 = vmatprep.mubr.msk.bf16.mxu1 %vm18561_vm1, %v18560_v24  ;;  %12354 = vmatpush3.bf16.msra.mxu1 %v13645_v4  ;;  %v18573_v4 = vld [vmem:[#allocation101_spill] sm:$0xff]  ;;  %vm18574_vm1 = vmmov %vm18549_vm0  ;;  %v18613_v24 = vld [vmem:[#allocation135_spill] sm:$0xff] }
 0x340   : > { %12387 = vmatprep.subr.bf16.mxu1 %v13646_v13 }
 0x346   : > { %12326 = vmatmul.mubr.msk.bf16.gmra.mrb[36].mxu1 %vm18563_vm12, %v18562_v9  ;;  %vm18576_vm12 = vmmov %vm18549_vm0  ;;  %v5266_v9 = vld [vmem:[#allocation3 + $0x101] sm:$0xff] }
 0x347   : > { %12329 = vmatprep.mubr.msk.bf16.mxu1 %vm18565_vm5, %v18564_v53  ;;  %vm18578_vm5 = vmmov %vm18549_vm0  ;;  %v5267_v53 = vld [vmem:[#allocation3 + $0x109] sm:$0xff] }
 0x34e   : > { %12330 = vmatmul.mubr.msk.bf16.gmra.mrb[40].mxu1 %vm18549_vm0, %v18566_v62  ;;  %v16247_v62 = vpack.c.bf16 %v5267_v53, %v5266_v9  ;;  %v18666_v9 = vld [vmem:[#allocation141_spill] sm:$0xff]  ;;  %v18668_v53 = vld [vmem:[#allocation142_spill] sm:$0xff] }
 0x34f   : > { %12333 = vmatprep.mubr.msk.bf16.mxu1 %vm18568_vm9, %v18567_v1  ;;  %vm18581_vm9 = vmmov %vm18549_vm0  ;;  %v18616_v1 = vld [vmem:[#allocation55_spill] sm:$0xff] }
 0x356   : > { %12334 = vmatmul.mubr.msk.bf16.gmra.mrb[44].mxu1 %vm18570_vm2, %v18569_v50  ;;  %vm18583_vm2 = vmmov %vm18549_vm0  ;;  %v13648_v50 = vld [vmem:[#allocation5 + $0x38] sm:$0xff]  }
 0x357   : > { %12337 = vmatprep.mubr.msk.bf16.mxu1 %vm18572_vm3, %v18571_v14  ;;  %vm18586_vm3 = vmmov %vm18549_vm0  ;;  %v18618_v14 = vld [vmem:[#allocation65_spill] sm:$0xff] }
 0x35e   : > { %12338 = vmatmul.mubr.msk.bf16.gmra.mrb[48].mxu1 %vm18574_vm1, %v18573_v4  ;;  %vm18588_vm1 = vmmov %vm18549_vm0  ;;  %v18619_v4 = vld [vmem:[#allocation66_spill] sm:$0xff] }
 0x35f   : > { %12341 = vmatprep.mubr.msk.bf16.mxu1 %vm18576_vm12, %v18575_v3  ;;  %vm18590_vm12 = vmmov %vm18549_vm0  ;;  %v18621_v3 = vld [vmem:[#allocation78_spill] sm:$0xff] }
 0x366   : > { %12342 = vmatmul.mubr.msk.bf16.gmra.mrb[52].mxu1 %vm18578_vm5, %v18577_v60  ;;  %vm18592_vm5 = vmmov %vm18549_vm0  ;;  %v18623_v60 = vld [vmem:[#allocation79_spill] sm:$0xff] }
 0x367   : > { %12345 = vmatprep.mubr.msk.bf16.mxu1 %vm18549_vm0, %v18579_v58  ;;  %v18625_v58 = vld [vmem:[#allocation90_spill] sm:$0xff] }
 0x36e   : > { %12346 = vmatmul.mubr.msk.bf16.gmra.mrb[56].mxu1 %vm18581_vm9, %v18580_v32  ;;  %vm18595_vm9 = vmmov %vm18549_vm0  ;;  %v18627_v32 = vld [vmem:[#allocation91_spill] sm:$0xff] }
 0x36f   : > { %12349 = vmatprep.mubr.msk.bf16.mxu1 %vm18583_vm2, %v18582_v54  ;;  %vm18597_vm2 = vmmov %vm18549_vm0  ;;  %v18629_v54 = vld [vmem:[#allocation102_spill] sm:$0xff] }
 0x376   : > { %12350 = vmatmul.mubr.msk.bf16.gmra.mrb[60].mxu1 %vm18586_vm3, %v4985_v51  ;;  %vm18599_vm3 = vmmov %vm18549_vm0  ;;  %v18636_v51 = vld [vmem:[#allocation126_spill] sm:$0xff] }
 0x377   : > { %12355 = vmatprep.mubr.msk.bf16.mxu1 %vm18588_vm1, %v18587_v29  ;;  %vm18601_vm1 = vmmov %vm18549_vm0  ;;  %v18638_v29 = vld [vmem:[#allocation127_spill] sm:$0xff] }
 0x37e   : > { %12356 = vmatmul.mubr.msk.bf16.vlgmr.msra.gmra.mrb[32].mxu1 %vm18590_vm12, %v18589_v34  ;;  %vm18603_vm12 = vmmov %vm18549_vm0  ;;  %v18642_v34 = vld [vmem:[#allocation50_spill] sm:$0xff] }
 0x37f   : > { %12359 = vmatprep.mubr.msk.bf16.mxu1 %vm18592_vm5, %v18591_v18  ;;  %12388 = vmatpush3.bf16.msra.mxu1 %v13646_v13  ;;  %vm18605_vm5 = vmmov %vm18549_vm0  ;;  %v18609_v13 = vld [vmem:[#allocation120_spill] sm:$0xff]  ;;  %v18644_v18 = vmov 0.0  }
 0x380   : > { %12421 = vmatprep.subr.bf16.mxu1 %v13647_v38  ;;  %3948 = vst.msk [vmem:[#allocation3 + $0x120] sm:$0x3] %vm3947_vm14, %v18644_v18  ;;  %7009 = vst.msk [vmem:[#allocation4 + $0x120] sm:$0x3] %vm3947_vm14, %v18644_v18  ;;  %v6200_v18 = vld [vmem:[#allocation3 + $0x51] sm:$0xff] }
 0x381   : > { %vm18652_vm14 = vmmov %vm18549_vm0 }
 0x386   : > { %12360 = vmatmul.mubr.msk.bf16.gmra.mrb[36].mxu1 %vm18549_vm0, %v18593_v63  ;;  %v5597_v63 = vsel %vm18555_vm7, %v15990_v56, 0.0  ;;  %v18653_v56 = vld [vmem:[#allocation129_spill] sm:$0xff] }
 0x387   : > { %12363 = vmatprep.mubr.msk.bf16.mxu1 %vm18595_vm9, %v18594_v44  ;;  %vm18608_vm9 = vmmov %vm18549_vm0  ;;  %v5613_v44 = vpack.c.bf16 %v5597_v63, %v16004_v59  ;;  %v18655_v59 = vld [vmem:[#allocation130_spill] sm:$0xff] }
 0x388   : > { %v6201_v63 = vld [vmem:[#allocation3 + $0x59] sm:$0xff] }
 0x38e   : > { %12364 = vmatmul.mubr.msk.bf16.gmra.mrb[40].mxu1 %vm18597_vm2, %v18596_v16  ;;  %vm18610_vm2 = vmmov %vm18549_vm0  ;;  %v18645_v16 = vld [vmem:[#allocation56_spill] sm:$0xff] }
 0x38f   : > { %12367 = vmatprep.mubr.msk.bf16.mxu1 %vm18599_vm3, %v18598_v37  ;;  %vm18612_vm3 = vmmov %vm18549_vm0  ;;  %v13649_v37 = vld [vmem:[#allocation5 + $0x40] sm:$0xff]  }
 0x396   : > { %12368 = vmatmul.mubr.msk.bf16.gmra.mrb[44].mxu1 %vm18601_vm1, %v18600_v35  ;;  %vm18614_vm1 = vmmov %vm18549_vm0  ;;  %v18647_v35 = vld [vmem:[#allocation119_spill] sm:$0xff] }
 0x397   : > { %12371 = vmatprep.mubr.msk.bf16.mxu1 %vm18603_vm12, %v18602_v30  ;;  %vm18615_vm12 = vmmov %vm18549_vm0  ;;  %v18649_v30 = vld [vmem:[#allocation122_spill] sm:$0xff] }
 0x39e   : > { %12372 = vmatmul.mubr.msk.bf16.gmra.mrb[48].mxu1 %vm18605_vm5, %v18604_v48  ;;  %vm18617_vm5 = vmmov %vm18549_vm0  ;;  %v18651_v48 = vld [vmem:[#allocation128_spill] sm:$0xff] }
 0x39f   : > { %12375 = vmatprep.mubr.msk.bf16.mxu1 %vm18549_vm0, %v18606_v49  ;;  %v18657_v49 = vld [vmem:[#allocation131_spill] sm:$0xff] }
 0x3a6   : > { %12376 = vmatmul.mubr.msk.bf16.gmra.mrb[52].mxu1 %vm18608_vm9, %v18607_v7  ;;  %vm18620_vm9 = vmmov %vm18549_vm0  ;;  %v18659_v7 = vld [vmem:[#allocation132_spill] sm:$0xff] }
 0x3a7   : > { %12379 = vmatprep.mubr.msk.bf16.mxu1 %vm18610_vm2, %v18609_v13  ;;  %vm18622_vm2 = vmmov %vm18549_vm0  ;;  %v18660_v13 = vld [vmem:[#allocation134_spill] sm:$0xff] }
 0x3ae   : > { %12380 = vmatmul.mubr.msk.bf16.gmra.mrb[56].mxu1 %vm18612_vm3, %v18611_v55  ;;  %vm18624_vm3 = vmmov %vm18549_vm0  ;;  %v18662_v55 = vld [vmem:[#allocation136_spill] sm:$0xff] }
 0x3af   : > { %12383 = vmatprep.mubr.msk.bf16.mxu1 %vm18614_vm1, %v18613_v24  ;;  %vm18626_vm1 = vmmov %vm18549_vm0  ;;  %v18664_v24 = vld [vmem:[#allocation139_spill] sm:$0xff] }
 0x3b6   : > { %12384 = vmatmul.mubr.msk.bf16.gmra.mrb[60].mxu1 %vm18615_vm12, %v16247_v62  ;;  %vm18628_vm12 = vmmov %vm18549_vm0 }
 0x3b7   : > { %12389 = vmatprep.mubr.msk.bf16.mxu1 %vm18617_vm5, %v18616_v1  ;;  %vm18630_vm5 = vmmov %vm18549_vm0  ;;  %v18670_v1 = vld [vmem:[#allocation143_spill] sm:$0xff] }
 0x3be   : > { %12390 = vmatmul.mubr.msk.bf16.vlgmr.msra.gmra.mrb[32].mxu1 %vm18549_vm0, %v18618_v14  ;;  %v18672_v14 = vld [vmem:[#allocation144_spill] sm:$0xff] }
 0x3bf   : > { %12393 = vmatprep.mubr.msk.bf16.mxu1 %vm18620_vm9, %v18619_v4  ;;  %12422 = vmatpush3.bf16.msra.mxu1 %v13647_v38  ;;  %vm18633_vm9 = vmmov %vm18549_vm0  ;;  %v18640_v38 = vld [vmem:[#allocation138_spill] sm:$0xff] }
 0x3c0   : > { %12455 = vmatprep.subr.bf16.mxu1 %v13648_v50  ;;  %v5895_v4 = vld [vmem:[#allocation3 + $0x118] sm:$0xff] }
 0x3c6   : > { %12394 = vmatmul.mubr.msk.bf16.gmra.mrb[36].mxu1 %vm18622_vm2, %v18621_v3  ;;  %vm18635_vm2 = vmmov %vm18549_vm0 }
 0x3c7   : > { %12397 = vmatprep.mubr.msk.bf16.mxu1 %vm18624_vm3, %v18623_v60  ;;  %vm18637_vm3 = vmmov %vm18549_vm0  ;;  %v6194_v60 = vld [vmem:[#allocation3 + $0x21] sm:$0xff] }
 0x3ce   : > { %12398 = vmatmul.mubr.msk.bf16.gmra.mrb[40].mxu1 %vm18626_vm1, %v18625_v58  ;;  %vm18639_vm1 = vmmov %vm18549_vm0  ;;  %v6195_v58 = vld [vmem:[#allocation3 + $0x29] sm:$0xff] }
 0x3cf   : > { %12401 = vmatprep.mubr.msk.bf16.mxu1 %vm18628_vm12, %v18627_v32  ;;  %vm18641_vm12 = vmmov %vm18549_vm0 }
 0x3d6   : > { %12402 = vmatmul.mubr.msk.bf16.gmra.mrb[44].mxu1 %vm18630_vm5, %v18629_v54  ;;  %vm18643_vm5 = vmmov %vm18549_vm0  ;;  %v6226_v54 = vpack.c.bf16 %v6195_v58, %v6194_v60 }
 0x3d7   : > { %12405 = vmatprep.mubr.msk.bf16.mxu1 %vm18549_vm0, %v18631_v20  ;;  %v13650_v20 = vld [vmem:[#allocation7 + $0x8] sm:$0xff]  }
 0x3d8   : > { %12523 = vmatprep.subr.bf16.mxu0 %v13650_v20 }
 0x3d9   : > { %12524 = vmatpush3.bf16.msra.mxu0 %v13650_v20  ;;  %v6218_v20 = vld [vmem:[#allocation3 + $0xe1] sm:$0xff] }
 0x3de   : > { %12406 = vmatmul.mubr.msk.bf16.gmra.mrb[48].mxu1 %vm18633_vm9, %v18632_v47  ;;  %vm18646_vm9 = vmmov %vm18549_vm0  ;;  %v6196_v47 = vld [vmem:[#allocation3 + $0x31] sm:$0xff] }
 0x3df   : > { %12409 = vmatprep.mubr.msk.bf16.mxu1 %vm18635_vm2, %v18634_v25  ;;  %vm18648_vm2 = vmmov %vm18549_vm0  ;;  %v6197_v25 = vld [vmem:[#allocation3 + $0x39] sm:$0xff] }
 0x3e6   : > { %12410 = vmatmul.mubr.msk.bf16.gmra.mrb[52].mxu1 %vm18637_vm3, %v18636_v51  ;;  %vm18650_vm3 = vmmov %vm18549_vm0  ;;  %v6198_v51 = vld [vmem:[#allocation3 + $0x41] sm:$0xff] }
 0x3e7   : > { %12413 = vmatprep.mubr.msk.bf16.mxu1 %vm18639_vm1, %v18638_v29  ;;  %vm18654_vm1 = vmmov %vm18549_vm0  ;;  %v6199_v29 = vld [vmem:[#allocation3 + $0x49] sm:$0xff] }
 0x3ee   : > { %12414 = vmatmul.mubr.msk.bf16.gmra.mrb[56].mxu1 %vm18641_vm12, %v18640_v38  ;;  %vm18656_vm12 = vmmov %vm18549_vm0  ;;  %v6227_v38 = vpack.c.bf16 %v6197_v25, %v6196_v47  ;;  %v6219_v47 = vld [vmem:[#allocation3 + $0xe9] sm:$0xff] }
 0x3ef   : > { %12417 = vmatprep.mubr.msk.bf16.mxu1 %vm18643_vm5, %v18642_v34  ;;  %vm18658_vm5 = vmmov %vm18549_vm0  ;;  %v6228_v34 = vpack.c.bf16 %v6199_v29, %v6198_v51  ;;  %v6238_v51 = vpack.c.bf16 %v6219_v47, %v6218_v20  ;;  %v6220_v29 = vld [vmem:[#allocation3 + $0xf1] sm:$0xff] }
 0x3f6   : > { %12418 = vmatmul.mubr.msk.bf16.gmra.mrb[60].mxu1 %vm18549_vm0, %v5613_v44  ;;  %v6202_v44 = vld [vmem:[#allocation3 + $0x61] sm:$0xff] }
 0x3f7   : > { %12423 = vmatprep.mubr.msk.bf16.mxu1 %vm18646_vm9, %v18645_v16  ;;  %vm18661_vm9 = vmmov %vm18549_vm0  ;;  %v6203_v16 = vld [vmem:[#allocation3 + $0x69] sm:$0xff] }
 0x3fe   : > { %12424 = vmatmul.mubr.msk.bf16.vlgmr.msra.gmra.mrb[32].mxu1 %vm18648_vm2, %v18647_v35  ;;  %vm18663_vm2 = vmmov %vm18549_vm0  ;;  %v6229_v35 = vpack.c.bf16 %v6201_v63, %v6200_v18  ;;  %v6224_v18 = vld [vmem:[#allocation3 + $0x111] sm:$0xff]  ;;  %v6225_v63 = vld [vmem:[#allocation3 + $0x119] sm:$0xff] }
 0x3ff   : > { %12427 = vmatprep.mubr.msk.bf16.mxu1 %vm18650_vm3, %v18649_v30  ;;  %12456 = vmatpush3.bf16.msra.mxu1 %v13648_v50  ;;  %vm18665_vm3 = vmmov %vm18549_vm0  ;;  %v5894_v50 = vld [vmem:[#allocation3 + $0x110] sm:$0xff]  ;;  %v6230_v30 = vpack.c.bf16 %v6203_v16, %v6202_v44  ;;  %v6241_v44 = vpack.c.bf16 %v6225_v63, %v6224_v18 }
 0x400   : > { %12489 = vmatprep.subr.bf16.mxu1 %v13649_v37  ;;  %v5926_v3 = vsel %vm18510_vm4, %v5894_v50, 0.0  ;;  %v6212_v50 = vld [vmem:[#allocation3 + $0xb1] sm:$0xff]  ;;  %vm18819_vm4 = vnez %v18455_v33 }
 0x401   : > { %v5943_v32 = vpack.c.bf16 %v5895_v4, %v5926_v3  ;;  %v6214_v4 = vld [vmem:[#allocation3 + $0xc1] sm:$0xff]  ;;  %v6215_v3 = vld [vmem:[#allocation3 + $0xc9] sm:$0xff] }
 0x402   : > { %v6236_v58 = vpack.c.bf16 %v6215_v3, %v6214_v4  ;;  %v18688_v16 = vld [vmem:[#allocation145_spill] sm:$0xff] }
 0x406   : > { %12428 = vmatmul.mubr.msk.bf16.gmra.mrb[36].mxu1 %vm18652_vm14, %v18651_v48  ;;  %vm18667_vm14 = vmmov %vm18549_vm0  ;;  %v6204_v48 = vld [vmem:[#allocation3 + $0x71] sm:$0xff] }
 0x407   : > { %12431 = vmatprep.mubr.msk.bf16.mxu1 %vm18654_vm1, %v18653_v56  ;;  %vm18669_vm1 = vmmov %vm18549_vm0  ;;  %v6205_v56 = vld [vmem:[#allocation3 + $0x79] sm:$0xff] }
 0x40e   : > { %12432 = vmatmul.mubr.msk.bf16.gmra.mrb[40].mxu1 %vm18656_vm12, %v18655_v59  ;;  %vm18671_vm12 = vmmov %vm18549_vm0  ;;  %v6206_v59 = vld [vmem:[#allocation3 + $0x81] sm:$0xff] }
 0x40f   : > { %12435 = vmatprep.mubr.msk.bf16.mxu1 %vm18658_vm5, %v18657_v49  ;;  %vm18673_vm5 = vmmov %vm18549_vm0  ;;  %v6207_v49 = vld [vmem:[#allocation3 + $0x89] sm:$0xff] }
 0x416   : > { %12436 = vmatmul.mubr.msk.bf16.gmra.mrb[44].mxu1 %vm18549_vm0, %v18659_v7  ;;  %v6231_v7 = vpack.c.bf16 %v6205_v56, %v6204_v48  ;;  %v18694_v48 = vld [vmem:[#allocation147_spill] sm:$0xff]  ;;  %v18696_v56 = vld [vmem:[#allocation148_spill] sm:$0xff] }
 0x417   : > { %12439 = vmatprep.mubr.msk.bf16.mxu1 %vm18661_vm9, %v18660_v13  ;;  %vm18674_vm9 = vmmov %vm18549_vm0  ;;  %v6232_v13 = vpack.c.bf16 %v6207_v49, %v6206_v59  ;;  %v18700_v59 = vld [vmem:[#allocation149_spill] sm:$0xff]  ;;  %v18702_v49 = vld [vmem:[#allocation150_spill] sm:$0xff] }
 0x41e   : > { %12440 = vmatmul.mubr.msk.bf16.gmra.mrb[48].mxu1 %vm18663_vm2, %v18662_v55  ;;  %vm18675_vm2 = vmmov %vm18549_vm0  ;;  %v6209_v55 = vld [vmem:[#allocation3 + $0x99] sm:$0xff] }
 0x41f   : > { %12443 = vmatprep.mubr.msk.bf16.mxu1 %vm18665_vm3, %v18664_v24  ;;  %vm18676_vm3 = vmmov %vm18549_vm0  ;;  %v6210_v24 = vld [vmem:[#allocation3 + $0xa1] sm:$0xff] }
 0x426   : > { %12444 = vmatmul.mubr.msk.bf16.gmra.mrb[52].mxu1 %vm18667_vm14, %v18666_v9  ;;  %vm18677_vm14 = vmmov %vm18549_vm0  ;;  %v6211_v9 = vld [vmem:[#allocation3 + $0xa9] sm:$0xff] }
 0x427   : > { %12447 = vmatprep.mubr.msk.bf16.mxu1 %vm18669_vm1, %v18668_v53  ;;  %vm18678_vm1 = vmmov %vm18549_vm0 }
 0x42e   : > { %12448 = vmatmul.mubr.msk.bf16.gmra.mrb[56].mxu1 %vm18671_vm12, %v18670_v1  ;;  %vm18679_vm12 = vmmov %vm18549_vm0  ;;  %v6234_v1 = vpack.c.bf16 %v6211_v9, %v6210_v24  ;;  %v6522_v24 = vld [vmem:[#allocation3 + $0x112] sm:$0xff] }
 0x42f   : > { %12451 = vmatprep.mubr.msk.bf16.mxu1 %vm18673_vm5, %v18672_v14  ;;  %vm18680_vm5 = vmmov %vm18549_vm0  ;;  %v6213_v14 = vld [vmem:[#allocation3 + $0xb9] sm:$0xff] }
 0x430   : > { %v6235_v60 = vpack.c.bf16 %v6213_v14, %v6212_v50  ;;  %v16372_v50 = vld [vmem:[#allocation7] sm:$0xff]  }
 0x431   : > { %12557 = vmatprep.subr.bf16.mxu0 %v16372_v50 }
 0x436   : > { %12452 = vmatmul.mubr.msk.bf16.gmra.mrb[60].mxu1 %vm18549_vm0, %v5943_v32  ;;  %v6216_v32 = vld [vmem:[#allocation3 + $0xd1] sm:$0xff] }
 0x437   : > { %12457 = vmatprep.mubr.msk.bf16.mxu1 %vm18674_vm9, %v6226_v54  ;;  %vm18681_vm9 = vmmov %vm18549_vm0  ;;  %v6217_v54 = vld [vmem:[#allocation3 + $0xd9] sm:$0xff] }
 0x438   : > { %v6237_v25 = vpack.c.bf16 %v6217_v54, %v6216_v32 }
 0x43e   : > { %12458 = vmatmul.mubr.msk.bf16.vlgmr.msra.gmra.mrb[32].mxu1 %vm18675_vm2, %v6227_v38  ;;  %vm18682_vm2 = vmmov %vm18549_vm0  ;;  %v6221_v38 = vld [vmem:[#allocation3 + $0xf9] sm:$0xff] }
 0x43f   : > { %12461 = vmatprep.mubr.msk.bf16.mxu1 %vm18676_vm3, %v6228_v34  ;;  %12490 = vmatpush3.bf16.msra.mxu1 %v13649_v37  ;;  %v6208_v37 = vld [vmem:[#allocation3 + $0x91] sm:$0xff]  ;;  %vm18683_vm3 = vmmov %vm18549_vm0  ;;  %v6239_v34 = vpack.c.bf16 %v6221_v38, %v6220_v29 }
 0x440   : > { %v6233_v53 = vpack.c.bf16 %v6209_v55, %v6208_v37  ;;  %v18709_v37 = vld [vmem:[#allocation112_spill] sm:$0xff]  ;;  %v6523_v55 = vld [vmem:[#allocation3 + $0x11a] sm:$0xff] }
 0x446   : > { %12462 = vmatmul.mubr.msk.bf16.gmra.mrb[36].mxu1 %vm18677_vm14, %v6229_v35  ;;  %vm18684_vm14 = vmmov %vm18549_vm0  ;;  %v18690_v35 = vld [vmem:[#allocation62_spill] sm:$0xff] }
 0x447   : > { %12465 = vmatprep.mubr.msk.bf16.mxu1 %vm18678_vm1, %v6230_v30  ;;  %vm18685_vm1 = vmmov %vm18549_vm0  ;;  %v18692_v30 = vld [vmem:[#allocation146_spill] sm:$0xff] }
 0x44e   : > { %12466 = vmatmul.mubr.msk.bf16.gmra.mrb[40].mxu1 %vm18679_vm12, %v6231_v7  ;;  %vm18686_vm12 = vmmov %vm18549_vm0  ;;  %v18703_v7 = vld [vmem:[#allocation109_spill] sm:$0xff] }
 0x44f   : > { %12469 = vmatprep.mubr.msk.bf16.mxu1 %vm18680_vm5, %v6232_v13  ;;  %vm18687_vm5 = vmmov %vm18549_vm0  ;;  %v18707_v13 = vld [vmem:[#allocation45_spill] sm:$0xff] }
 0x456   : > { %12470 = vmatmul.mubr.msk.bf16.gmra.mrb[44].mxu1 %vm18549_vm0, %v6233_v53  ;;  %v7157_v53 = vld [vmem:[#allocation4 + $0x9] sm:$0xff] }
 0x457   : > { %12473 = vmatprep.mubr.msk.bf16.mxu1 %vm18681_vm9, %v6234_v1  ;;  %vm18689_vm9 = vmmov %vm18549_vm0 }
 0x45e   : > { %12474 = vmatmul.mubr.msk.bf16.gmra.mrb[48].mxu1 %vm18682_vm2, %v6235_v60  ;;  %vm18691_vm2 = vmmov %vm18549_vm0 }
 0x45f   : > { %12477 = vmatprep.mubr.msk.bf16.mxu1 %vm18683_vm3, %v6236_v58  ;;  %vm18693_vm3 = vmmov %vm18549_vm0 }
 0x466   : > { %12478 = vmatmul.mubr.msk.bf16.gmra.mrb[52].mxu1 %vm18684_vm14, %v6237_v25  ;;  %vm18695_vm14 = vmmov %vm18549_vm0 }
 0x467   : > { %12481 = vmatprep.mubr.msk.bf16.mxu1 %vm18685_vm1, %v6238_v51  ;;  %vm18697_vm1 = vmmov %vm18549_vm0 }
 0x46e   : > { %12482 = vmatmul.mubr.msk.bf16.gmra.mrb[56].mxu1 %vm18686_vm12, %v6239_v34  ;;  %vm18699_vm12 = vmmov %vm18549_vm0 }
 0x46f   : > { %12485 = vmatprep.mubr.msk.bf16.mxu1 %vm18687_vm5, %v16247_v62  ;;  %v18698_v62 = vld [vmem:[#allocation87_spill] sm:$0xff]  ;;  %vm18701_vm5 = vmmov %vm18549_vm0 }
 0x476   : > { %12486 = vmatmul.mubr.msk.bf16.gmra.mrb[60].mxu1 %vm18549_vm0, %v6241_v44 }
 0x477   : > { %12491 = vmatprep.mubr.msk.bf16.mxu1 %vm18689_vm9, %v18688_v16  ;;  %vm18704_vm9 = vmmov %vm18549_vm0 }
 0x47e   : > { %12492 = vmatmul.mubr.msk.bf16.vlgmr.msra.gmra.mrb[32].mxu1 %vm18691_vm2, %v18690_v35  ;;  %vm18705_vm2 = vmmov %vm18549_vm0 }
 0x47f   : > { %12495 = vmatprep.mubr.msk.bf16.mxu1 %vm18693_vm3, %v18692_v30  ;;  %vm18706_vm3 = vmmov %vm18549_vm0 }
 0x486   : > { %12496 = vmatmul.mubr.msk.bf16.gmra.mrb[36].mxu1 %vm18695_vm14, %v18694_v48  ;;  %vm18708_vm14 = vmmov %vm18549_vm0 }
 0x487   : > { %12499 = vmatprep.mubr.msk.bf16.mxu1 %vm18697_vm1, %v18696_v56  ;;  %vm18710_vm1 = vmmov %vm18549_vm0 }
 0x48e   : > { %12500 = vmatmul.mubr.msk.bf16.gmra.mrb[40].mxu1 %vm18699_vm12, %v18698_v62  ;;  %vm18711_vm12 = vmmov %vm18549_vm0 }
 0x48f   : > { %12503 = vmatprep.mubr.msk.bf16.mxu1 %vm18701_vm5, %v18700_v59  ;;  %vm18712_vm5 = vmmov %vm18549_vm0 }
 0x496   : > { %12504 = vmatmul.mubr.msk.bf16.gmra.mrb[44].mxu1 %vm18549_vm0, %v18702_v49 }
 0x497   : > { %12507 = vmatprep.mubr.msk.bf16.mxu1 %vm18704_vm9, %v18703_v7  ;;  %vm18713_vm9 = vmmov %vm18549_vm0 }
 0x49e   : > { %12508 = vmatmul.mubr.msk.bf16.gmra.mrb[48].mxu1 %vm18705_vm2, %v16019_v21  ;;  %v6555_v21 = vsel %vm18555_vm7, %v6523_v55, 0.0 }
 0x49f   : > { %12511 = vmatprep.mubr.msk.bf16.mxu1 %vm18706_vm3, %v16022_v52  ;;  %v6571_v9 = vpack.c.bf16 %v6555_v21, %v6522_v24  ;;  %v7156_v52 = vld [vmem:[#allocation4 + $0x1] sm:$0xff] }
 0x4a0   : > { %v7188_v1 = vpack.c.bf16 %v7157_v53, %v7156_v52 }
 0x4a2   : > { %12525 = vmatprep.mubr.msk.bf16.mxu0 %vm18713_vm9, %v7188_v1  ;;  %vm18716_vm9 = vmmov %vm18549_vm0 }
 0x4a6   : > { %12512 = vmatmul.mubr.msk.bf16.gmra.mrb[52].mxu1 %vm18708_vm14, %v18707_v13 }
 0x4a7   : > { %12515 = vmatprep.mubr.msk.bf16.mxu1 %vm18710_vm1, %v18709_v37 }
 0x4ae   : > { %12516 = vmatmul.mubr.msk.bf16.gmra.mrb[56].mxu1 %vm18711_vm12, %v16042_v12  ;;  %vm18714_vm12 = vmmov %vm18549_vm0 }
 0x4af   : > { %12519 = vmatprep.mubr.msk.bf16.mxu1 %vm18712_vm5, %v16045_v0  ;;  %v16378_v0 = vld [vmem:[%s17663_s4] ss:$0 sm:$0xff]  ;;  %vm18715_vm5 = vmmov %vm18549_vm0 }
 0x4b6   : > { %12520 = vmatmul.mubr.msk.bf16.gmra.mrb[60].mxu1 %vm18549_vm0, %v6571_v9 }
 0x551   : > { %v12493_v12 = vpop.f32.mrb[32].mxu1 }
 0x552   : > { %v6831_v14 = vadd.f32 %v12493_v12, %v16378_v0  ;;  %v6663_v4 = vpop.f32.mrb[33].mxu1 }
 0x553   : > { %v6829_v3 = vadd.f32 %v16378_v0, %v6663_v4  ;;  %v12494_v60 = vpop.f32.mrb[34].mxu1 }
 0x554   : > { %v6895_v58 = vmul.f32 0.01, %v6831_v14  ;;  %v6832_v32 = vadd.f32 %v12494_v60, %v16378_v0  ;;  %v6666_v54 = vpop.f32.mrb[35].mxu1  ;;  %vm6863_vm2 = vcmp.gt.f32.partialorder %v6831_v14, 0.0 }
 0x555   : > { %v6893_v20 = vmul.f32 0.01, %v6829_v3  ;;  %v6830_v47 = vadd.f32 %v16378_v0, %v6666_v54  ;;  %vm6861_vm3 = vcmp.gt.f32.partialorder %v6829_v3, 0.0 }
 0x556   : > { %vm6864_vm14 = vcmp.gt.f32.partialorder %v6832_v32, 0.0  ;;  %v6896_v25 = vmul.f32 0.01, %v6832_v32  ;;  %v6927_v29 = vsel %vm6863_vm2, %v6831_v14, %v6895_v58 }
 0x557   : > { %vm6862_vm1 = vcmp.gt.f32.partialorder %v6830_v47, 0.0  ;;  %v6894_v51 = vmul.f32 0.01, %v6830_v47  ;;  %v6925_v34 = vsel %vm6861_vm3, %v6829_v3, %v6893_v20 }
 0x558   : > { %v6928_v38 = vsel %vm6864_vm14, %v6832_v32, %v6896_v25 }
 0x559   : > { %v6958_v18 = vpack.c.bf16 %v6928_v38, %v6927_v29  ;;  %v6926_v63 = vsel %vm6862_vm1, %v6830_v47, %v6894_v51  ;;  %v12497_v44 = vpop.f32.mrb[36].mxu1 }
 0x55a   : > { %v6957_v16 = vpack.c.bf16 %v6926_v63, %v6925_v34  ;;  %v6835_v35 = vadd.f32 %v12497_v44, %v16378_v0  ;;  %v6679_v30 = vpop.f32.mrb[37].mxu1 }
 0x55b   : > { %v7012_v48 = vunpack.c.l.bf16 %v6958_v18  ;;  %v7013_v56 = vunpack.c.h.bf16 %v6958_v18  ;;  %v6833_v62 = vadd.f32 %v16378_v0, %v6679_v30  ;;  %v12498_v59 = vpop.f32.mrb[38].mxu1 }
 0x55c   : > { %v7010_v49 = vunpack.c.l.bf16 %v6957_v16  ;;  %v7011_v7 = vunpack.c.h.bf16 %v6957_v16  ;;  %v6682_v13 = vpop.f32.mrb[39].mxu1  ;;  %v6899_v37 = vmul.f32 0.01, %v6835_v35  ;;  %v6836_v55 = vadd.f32 %v12498_v59, %v16378_v0 }
 0x55d   : > { %7044 = vst.msk [vmem:[#allocation4 + $0x21] sm:$0xff] %vm18714_vm12, %v7012_v48  ;;  %v6834_v24 = vadd.f32 %v16378_v0, %v6682_v13  ;;  %vm6867_vm2 = vcmp.gt.f32.partialorder %v6835_v35, 0.0  ;;  %v6897_v21 = vmul.f32 0.01, %v6833_v62  ;;  %vm6865_vm3 = vcmp.gt.f32.partialorder %v6833_v62, 0.0 }
 0x55e   : > { %7045 = vst.msk [vmem:[#allocation4 + $0x29] sm:$0xff] %vm18715_vm5, %v7013_v56  ;;  %vm6868_vm14 = vcmp.gt.f32.partialorder %v6836_v55, 0.0  ;;  %v6900_v9 = vmul.f32 0.01, %v6836_v55  ;;  %v6931_v53 = vsel %vm6867_vm2, %v6835_v35, %v6899_v37  ;;  %vm18717_vm5 = vmmov %vm18549_vm0 }
 0x55f   : > { %7042 = vst.msk [vmem:[#allocation4 + $0x11] sm:$0xff] %vm18549_vm0, %v7010_v49  ;;  %vm6866_vm1 = vcmp.gt.f32.partialorder %v6834_v24, 0.0  ;;  %v6898_v52 = vmul.f32 0.01, %v6834_v24  ;;  %v6929_v14 = vsel %vm6865_vm3, %v6833_v62, %v6897_v21  ;;  %v16400_v62 = vld [vmem:[#allocation7 + $0x10] sm:$0xff]   ;;  %vm18720_vm2 = vmmov %vm18549_vm0 }
 0x560   : > { %7043 = vst.msk [vmem:[#allocation4 + $0x19] sm:$0xff] %vm18716_vm9, %v7011_v7  ;;  %v6932_v1 = vsel %vm6868_vm14, %v6836_v55, %v6900_v9  ;;  %vm18719_vm9 = vmmov %vm18549_vm0 }
 0x561   : > { %v12501_v12 = vpop.f32.mrb[40].mxu1  ;;  %v6960_v4 = vpack.c.bf16 %v6932_v1, %v6931_v53  ;;  %v6930_v3 = vsel %vm6866_vm1, %v6834_v24, %v6898_v52 }
 0x562   : > { %v6839_v60 = vadd.f32 %v12501_v12, %v16378_v0  ;;  %v6695_v58 = vpop.f32.mrb[41].mxu1  ;;  %v6959_v32 = vpack.c.bf16 %v6930_v3, %v6929_v14 }
 0x563   : > { %v6837_v54 = vadd.f32 %v16378_v0, %v6695_v58  ;;  %v12502_v20 = vpop.f32.mrb[42].mxu1  ;;  %v7016_v47 = vunpack.c.l.bf16 %v6960_v4  ;;  %v7017_v25 = vunpack.c.h.bf16 %v6960_v4 }
 0x564   : > { %v6698_v51 = vpop.f32.mrb[43].mxu1  ;;  %v7160_v29 = vld [vmem:[#allocation4 + $0x21] sm:$0xff]  ;;  %v7014_v34 = vunpack.c.l.bf16 %v6959_v32  ;;  %v7015_v18 = vunpack.c.h.bf16 %v6959_v32  ;;  %vm6871_vm12 = vcmp.gt.f32.partialorder %v6839_v60, 0.0  ;;  %v6903_v63 = vmul.f32 0.01, %v6839_v60 }
 0x565   : > { %v7161_v38 = vld [vmem:[#allocation4 + $0x29] sm:$0xff]  ;;  %7048 = vst.msk [vmem:[#allocation4 + $0x41] sm:$0xff] %vm18717_vm5, %v7016_v47  ;;  %v6901_v35 = vmul.f32 0.01, %v6837_v54  ;;  %v6840_v30 = vadd.f32 %v12502_v20, %v16378_v0  ;;  %v6838_v48 = vadd.f32 %v16378_v0, %v6698_v51  ;;  %vm6869_vm3 = vcmp.gt.f32.partialorder %v6837_v54, 0.0  ;;  %vm18722_vm5 = vmmov %vm18549_vm0 }
 0x566   : > { %v7158_v44 = vld [vmem:[#allocation4 + $0x11] sm:$0xff]  ;;  %7049 = vst.msk [vmem:[#allocation4 + $0x49] sm:$0xff] %vm18549_vm0, %v7017_v25  ;;  %v16404_v59 = vpack.c.bf16 %v7161_v38, %v7160_v29  ;;  %v6935_v13 = vsel %vm6871_vm12, %v6839_v60, %v6903_v63 }
 0x567   : > { %v7159_v16 = vld [vmem:[#allocation4 + $0x19] sm:$0xff]  ;;  %7046 = vst.msk [vmem:[#allocation4 + $0x31] sm:$0xff] %vm18719_vm9, %v7014_v34  ;;  %vm6872_vm14 = vcmp.gt.f32.partialorder %v6840_v30, 0.0  ;;  %v6904_v49 = vmul.f32 0.01, %v6840_v30  ;;  %vm6870_vm1 = vcmp.gt.f32.partialorder %v6838_v48, 0.0  ;;  %v6933_v24 = vsel %vm6869_vm3, %v6837_v54, %v6901_v35  ;;  %vm18725_vm3 = vmmov %vm18549_vm0 }
 0x568   : > { %v16398_v56 = vpack.c.bf16 %v7159_v16, %v7158_v44  ;;  %7047 = vst.msk [vmem:[#allocation4 + $0x39] sm:$0xff] %vm18720_vm2, %v7015_v18  ;;  %18721 = vst [vmem:[#allocation68_spill] sm:$0xff] %v16404_v59  ;;  %v6902_v7 = vmul.f32 0.01, %v6838_v48  ;;  %v16412_v55 = vld [vmem:[#allocation4 + $0x10] sm:$0xff]  ;;  %v16421_v38 = vld [vmem:[#allocation4 + $0x18] sm:$0xff] }
 0x569   : > { %v12505_v37 = vpop.f32.mrb[44].mxu1  ;;  %v6936_v21 = vsel %vm6872_vm14, %v6840_v30, %v6904_v49  ;;  %vm18726_vm14 = vmmov %vm18549_vm0  ;;  %v16629_v61 = vld [vmem:[#allocation4 + $0x20] sm:$0xff] }
 0x56a   : > { %18718 = vst [vmem:[#allocation60_spill] sm:$0xff] %v16398_v56  ;;  %12526 = vmatmul.mubr.msk.bf16.vlgmr.msra.gmra.mrb[32].mxu0 %vm18722_vm5, %v16398_v56  ;;  %v6934_v9 = vsel %vm6870_vm1, %v6838_v48, %v6902_v7  ;;  %v6843_v52 = vadd.f32 %v12505_v37, %v16378_v0  ;;  %v6711_v53 = vpop.f32.mrb[45].mxu1  ;;  %v6962_v1 = vpack.c.bf16 %v6936_v21, %v6935_v13  ;;  %vm18727_vm1 = vmmov %vm18549_vm0 }
 0x56b   : > { %12529 = vmatprep.mubr.msk.bf16.mxu0 %vm18549_vm0, %v16404_v59  ;;  %12558 = vmatpush3.bf16.msra.mxu0 %v16372_v50  ;;  %v6961_v12 = vpack.c.bf16 %v6934_v9, %v6933_v24  ;;  %v6841_v14 = vadd.f32 %v16378_v0, %v6711_v53  ;;  %v12506_v4 = vpop.f32.mrb[46].mxu1  ;;  %v18723_v50 = vld [vmem:[#allocation11_spill] sm:$0xff]  ;;  %vm18728_vm5 = vmmov %vm18549_vm0  ;;  %18799 = vst [vmem:[#allocation101_spill] sm:$0xff] %v16629_v61 }
 0x56c   : > { %12591 = vmatprep.subr.bf16.mxu0 %v16400_v62  ;;  %v6907_v3 = vmul.f32 0.01, %v6843_v52  ;;  %v6844_v60 = vadd.f32 %v12506_v4, %v16378_v0  ;;  %v6714_v58 = vpop.f32.mrb[47].mxu1  ;;  %vm18724_vm12 = vnez %v18723_v50  ;;  %v7020_v54 = vunpack.c.l.bf16 %v6962_v1  ;;  %v7164_v51 = vld [vmem:[#allocation4 + $0x41] sm:$0xff] }
 0x56d   : > { %v7999_v32 = vsel %vm18724_vm12, %v16412_v55, 0.0  ;;  %v7021_v20 = vunpack.c.h.bf16 %v6962_v1  ;;  %v7018_v47 = vunpack.c.l.bf16 %v6961_v12  ;;  %v7019_v25 = vunpack.c.h.bf16 %v6961_v12  ;;  %v7165_v29 = vld [vmem:[#allocation4 + $0x49] sm:$0xff] }
 0x56e   : > { %vm6875_vm9 = vcmp.gt.f32.partialorder %v6843_v52, 0.0  ;;  %vm6876_vm2 = vcmp.gt.f32.partialorder %v6844_v60, 0.0  ;;  %v7162_v34 = vld [vmem:[#allocation4 + $0x31] sm:$0xff]  ;;  %7052 = vst.msk [vmem:[#allocation4 + $0x61] sm:$0xff] %vm18725_vm3, %v7020_v54  ;;  %v6905_v63 = vmul.f32 0.01, %v6841_v14  ;;  %v6842_v16 = vadd.f32 %v16378_v0, %v6714_v58 }
 0x56f   : > { %v7163_v18 = vld [vmem:[#allocation4 + $0x39] sm:$0xff]  ;;  %7053 = vst.msk [vmem:[#allocation4 + $0x69] sm:$0xff] %vm18726_vm14, %v7021_v20  ;;  %v6908_v44 = vmul.f32 0.01, %v6844_v60  ;;  %vm6873_vm0 = vcmp.gt.f32.partialorder %v6841_v14, 0.0  ;;  %v16430_v30 = vpack.c.bf16 %v7165_v29, %v7164_v51  ;;  %v16433_v48 = vpack.c.bf16 %v16421_v38, %v7999_v32  ;;  %vm18732_vm14 = vmmov %vm18727_vm1 }
 0x570   : > { %7050 = vst.msk [vmem:[#allocation4 + $0x51] sm:$0xff] %vm18727_vm1, %v7018_v47  ;;  %v16428_v35 = vpack.c.bf16 %v7163_v18, %v7162_v34  ;;  %v6939_v49 = vsel %vm6875_vm9, %v6843_v52, %v6907_v3  ;;  %vm6874_vm3 = vcmp.gt.f32.partialorder %v6842_v16, 0.0  ;;  %v6906_v13 = vmul.f32 0.01, %v6842_v16 }
 0x571   : > { %7051 = vst.msk [vmem:[#allocation4 + $0x59] sm:$0xff] %vm18728_vm5, %v7019_v25  ;;  %18730 = vst [vmem:[#allocation82_spill] sm:$0xff] %v16430_v30  ;;  %v6940_v7 = vsel %vm6876_vm2, %v6844_v60, %v6908_v44  ;;  %v12509_v37 = vpop.f32.mrb[48].mxu1  ;;  %v6937_v53 = vsel %vm6873_vm0, %v6841_v14, %v6905_v63 }
 0x572   : > { %18729 = vst [vmem:[#allocation81_spill] sm:$0xff] %v16428_v35  ;;  %18731 = vst [vmem:[#allocation93_spill] sm:$0xff] %v16433_v48  ;;  %12530 = vmatmul.mubr.msk.bf16.gmra.mrb[36].mxu0 %vm18732_vm14, %v16428_v35  ;;  %v6964_v24 = vpack.c.bf16 %v6940_v7, %v6939_v49  ;;  %v6847_v21 = vadd.f32 %v12509_v37, %v16378_v0  ;;  %v6727_v9 = vpop.f32.mrb[49].mxu1  ;;  %v6938_v1 = vsel %vm6874_vm3, %v6842_v16, %v6906_v13 }
 0x573   : > { %12533 = vmatprep.mubr.msk.bf16.mxu0 %vm18727_vm1, %v16430_v30  ;;  %v6845_v12 = vadd.f32 %v16378_v0, %v6727_v9  ;;  %v12510_v4 = vpop.f32.mrb[50].mxu1  ;;  %v6963_v60 = vpack.c.bf16 %v6938_v1, %v6937_v53  ;;  %vm18733_vm2 = vmmov %vm18727_vm1 }
 0x574   : > { %v7024_v52 = vunpack.c.l.bf16 %v6964_v24  ;;  %v7025_v3 = vunpack.c.h.bf16 %v6964_v24  ;;  %v6730_v58 = vpop.f32.mrb[51].mxu1  ;;  %v6911_v32 = vmul.f32 0.01, %v6847_v21  ;;  %v6848_v54 = vadd.f32 %v12510_v4, %v16378_v0  ;;  %vm18734_vm5 = vmmov %vm18727_vm1 }
 0x575   : > { %v7022_v20 = vunpack.c.l.bf16 %v6963_v60  ;;  %v7023_v47 = vunpack.c.h.bf16 %v6963_v60  ;;  %v6909_v25 = vmul.f32 0.01, %v6845_v12  ;;  %v6846_v14 = vadd.f32 %v16378_v0, %v6730_v58  ;;  %v7168_v34 = vld [vmem:[#allocation4 + $0x61] sm:$0xff]  ;;  %vm18735_vm14 = vmmov %vm18727_vm1 }
 0x576   : > { %7056 = vst.msk [vmem:[#allocation4 + $0x81] sm:$0xff] %vm18733_vm2, %v7024_v52  ;;  %vm6877_vm0 = vcmp.gt.f32.partialorder %v6845_v12, 0.0  ;;  %vm6880_vm3 = vcmp.gt.f32.partialorder %v6848_v54, 0.0  ;;  %v6912_v18 = vmul.f32 0.01, %v6848_v54  ;;  %v7169_v63 = vld [vmem:[#allocation4 + $0x69] sm:$0xff] }
 0x577   : > { %7057 = vst.msk [vmem:[#allocation4 + $0x89] sm:$0xff] %vm18734_vm5, %v7025_v3  ;;  %v7166_v51 = vld [vmem:[#allocation4 + $0x51] sm:$0xff]  ;;  %vm6878_vm9 = vcmp.gt.f32.partialorder %v6846_v14, 0.0  ;;  %v6910_v44 = vmul.f32 0.01, %v6846_v14  ;;  %vm18737_vm2 = vcmp.gt.f32.partialorder %v6847_v21, 0.0  ;;  %v16450_v37 = vpack.c.bf16 %v7169_v63, %v7168_v34  ;;  %vm18739_vm5 = vmmov %vm18727_vm1 }
 0x578   : > { %v7167_v29 = vld [vmem:[#allocation4 + $0x59] sm:$0xff]  ;;  %7054 = vst.msk [vmem:[#allocation4 + $0x71] sm:$0xff] %vm18735_vm14, %v7022_v20  ;;  %v6943_v49 = vsel %vm18737_vm2, %v6847_v21, %v6911_v32  ;;  %v6944_v7 = vsel %vm6880_vm3, %v6848_v54, %v6912_v18  ;;  %v6941_v24 = vsel %vm6877_vm0, %v6845_v12, %v6909_v25  ;;  %vm18740_vm14 = vmmov %vm18727_vm1 }
 0x579   : > { %7055 = vst.msk [vmem:[#allocation4 + $0x79] sm:$0xff] %vm18727_vm1, %v7023_v47  ;;  %v16447_v16 = vpack.c.bf16 %v7167_v29, %v7166_v51  ;;  %v12513_v13 = vpop.f32.mrb[52].mxu1  ;;  %18738 = vst [vmem:[#allocation105_spill] sm:$0xff] %v16450_v37  ;;  %v6966_v9 = vpack.c.bf16 %v6944_v7, %v6943_v49  ;;  %v6942_v53 = vsel %vm6878_vm9, %v6846_v14, %v6910_v44  ;;  %v16659_v22 = vld [vmem:[#allocation4 + $0x5a] sm:$0xff] }
 0x57a   : > { %v6851_v1 = vadd.f32 %v12513_v13, %v16378_v0  ;;  %v6743_v4 = vpop.f32.mrb[53].mxu1  ;;  %v6965_v52 = vpack.c.bf16 %v6942_v53, %v6941_v24  ;;  %vm18741_vm9 = vmmov %vm18727_vm1  ;;  %18810 = vst [vmem:[#allocation57_spill] sm:$0xff] %v16659_v22 }
 0x57b   : > { %18736 = vst [vmem:[#allocation97_spill] sm:$0xff] %v16447_v16  ;;  %12534 = vmatmul.mubr.msk.bf16.gmra.mrb[40].mxu0 %vm18739_vm5, %v16447_v16  ;;  %v6849_v3 = vadd.f32 %v16378_v0, %v6743_v4  ;;  %v12514_v21 = vpop.f32.mrb[54].mxu1  ;;  %v7028_v60 = vunpack.c.l.bf16 %v6966_v9  ;;  %v7029_v58 = vunpack.c.h.bf16 %v6966_v9  ;;  %vm18742_vm0 = vmmov %vm18727_vm1 }
 0x57c   : > { %12537 = vmatprep.mubr.msk.bf16.mxu0 %vm18740_vm14, %v16450_v37  ;;  %v6746_v32 = vpop.f32.mrb[55].mxu1  ;;  %v7026_v54 = vunpack.c.l.bf16 %v6965_v52  ;;  %v7027_v12 = vunpack.c.h.bf16 %v6965_v52  ;;  %v6915_v20 = vmul.f32 0.01, %v6851_v1  ;;  %vm6883_vm3 = vcmp.gt.f32.partialorder %v6851_v1, 0.0  ;;  %vm18743_vm1 = vmmov %vm18742_vm0 }
 0x57d   : > { %7060 = vst.msk [vmem:[#allocation4 + $0xa1] sm:$0xff] %vm18741_vm9, %v7028_v60  ;;  %v6913_v47 = vmul.f32 0.01, %v6849_v3  ;;  %v6852_v25 = vadd.f32 %v12514_v21, %v16378_v0  ;;  %v6850_v14 = vadd.f32 %v16378_v0, %v6746_v32  ;;  %v7172_v51 = vld [vmem:[#allocation4 + $0x81] sm:$0xff]  ;;  %vm18744_vm2 = vmmov %vm18742_vm0  ;;  %vm6881_vm5 = vcmp.gt.f32.partialorder %v6849_v3, 0.0 }
 0x57e   : > { %7061 = vst.msk [vmem:[#allocation4 + $0xa9] sm:$0xff] %vm18742_vm0, %v7029_v58  ;;  %v7173_v29 = vld [vmem:[#allocation4 + $0x89] sm:$0xff]  ;;  %v6947_v49 = vsel %vm6883_vm3, %v6851_v1, %v6915_v20  ;;  %vm18747_vm3 = vmmov %vm18742_vm0 }
 0x57f   : > { %7058 = vst.msk [vmem:[#allocation4 + $0x91] sm:$0xff] %vm18743_vm1, %v7026_v54  ;;  %v7170_v34 = vld [vmem:[#allocation4 + $0x71] sm:$0xff]  ;;  %vm6884_vm14 = vcmp.gt.f32.partialorder %v6852_v25, 0.0  ;;  %v6916_v63 = vmul.f32 0.01, %v6852_v25  ;;  %vm6882_vm9 = vcmp.gt.f32.partialorder %v6850_v14, 0.0  ;;  %v16466_v24 = vpack.c.bf16 %v7173_v29, %v7172_v51 }
 0x580   : > { %7059 = vst.msk [vmem:[#allocation4 + $0x99] sm:$0xff] %vm18744_vm2, %v7027_v12  ;;  %v7171_v18 = vld [vmem:[#allocation4 + $0x79] sm:$0xff]  ;;  %v6914_v44 = vmul.f32 0.01, %v6850_v14  ;;  %v6945_v9 = vsel %vm6881_vm5, %v6849_v3, %v6913_v47  ;;  %vm18748_vm5 = vmmov %vm18742_vm0 }
 0x581   : > { %v16464_v7 = vpack.c.bf16 %v7171_v18, %v7170_v34  ;;  %v12517_v13 = vpop.f32.mrb[56].mxu1  ;;  %18746 = vst [vmem:[#allocation108_spill] sm:$0xff] %v16466_v24  ;;  %v6948_v53 = vsel %vm6884_vm14, %v6852_v25, %v6916_v63  ;;  %vm18749_vm14 = vmmov %vm18742_vm0 }
 0x582   : > { %v6946_v4 = vsel %vm6882_vm9, %v6850_v14, %v6914_v44  ;;  %v6855_v52 = vadd.f32 %v12517_v13, %v16378_v0  ;;  %v6759_v21 = vpop.f32.mrb[57].mxu1  ;;  %v6968_v60 = vpack.c.bf16 %v6948_v53, %v6947_v49  ;;  %vm18750_vm9 = vmmov %vm18742_vm0 }
 0x583   : > { %18745 = vst [vmem:[#allocation106_spill] sm:$0xff] %v16464_v7  ;;  %v6967_v58 = vpack.c.bf16 %v6946_v4, %v6945_v9  ;;  %12538 = vmatmul.mubr.msk.bf16.gmra.mrb[44].mxu0 %vm18742_vm0, %v16464_v7  ;;  %v6853_v32 = vadd.f32 %v16378_v0, %v6759_v21  ;;  %v12518_v54 = vpop.f32.mrb[58].mxu1 }
 0x584   : > { %v6919_v1 = vmul.f32 0.01, %v6855_v52  ;;  %12541 = vmatprep.mubr.msk.bf16.mxu0 %vm18747_vm3, %v16466_v24  ;;  %v6856_v12 = vadd.f32 %v12518_v54, %v16378_v0  ;;  %v6762_v3 = vpop.f32.mrb[59].mxu1  ;;  %v7032_v20 = vunpack.c.l.bf16 %v6968_v60  ;;  %v7033_v47 = vunpack.c.h.bf16 %v6968_v60  ;;  %v7176_v49 = vld [vmem:[#allocation4 + $0xa1] sm:$0xff] }
 0x585   : > { %v7030_v25 = vunpack.c.l.bf16 %v6967_v58  ;;  %v7031_v14 = vunpack.c.h.bf16 %v6967_v58  ;;  %vm6887_vm1 = vcmp.gt.f32.partialorder %v6855_v52, 0.0  ;;  %v6917_v34 = vmul.f32 0.01, %v6853_v32  ;;  %v7177_v13 = vld [vmem:[#allocation4 + $0xa9] sm:$0xff] }
 0x586   : > { %vm6888_vm2 = vcmp.gt.f32.partialorder %v6856_v12, 0.0  ;;  %v7174_v51 = vld [vmem:[#allocation4 + $0x91] sm:$0xff]  ;;  %7064 = vst.msk [vmem:[#allocation4 + $0xc1] sm:$0xff] %vm18748_vm5, %v7032_v20  ;;  %v6920_v18 = vmul.f32 0.01, %v6856_v12  ;;  %v6854_v63 = vadd.f32 %v16378_v0, %v6762_v3  ;;  %vm6885_vm3 = vcmp.gt.f32.partialorder %v6853_v32, 0.0  ;;  %vm18753_vm5 = vmmov %vm18742_vm0 }
 0x587   : > { %v7175_v29 = vld [vmem:[#allocation4 + $0x99] sm:$0xff]  ;;  %7065 = vst.msk [vmem:[#allocation4 + $0xc9] sm:$0xff] %vm18749_vm14, %v7033_v47  ;;  %v6951_v9 = vsel %vm6887_vm1, %v6855_v52, %v6919_v1  ;;  %v16483_v54 = vpack.c.bf16 %v7177_v13, %v7176_v49  ;;  %v6949_v47 = vsel %vm6885_vm3, %v6853_v32, %v6917_v34  ;;  %vm18754_vm1 = vmmov %vm18742_vm0 }
 0x588   : > { %7062 = vst.msk [vmem:[#allocation4 + $0xb1] sm:$0xff] %vm18750_vm9, %v7030_v25  ;;  %v16480_v44 = vpack.c.bf16 %v7175_v29, %v7174_v51  ;;  %v6952_v53 = vsel %vm6888_vm2, %v6856_v12, %v6920_v18  ;;  %vm6886_vm7 = vcmp.gt.f32.partialorder %v6854_v63, 0.0  ;;  %v6918_v4 = vmul.f32 0.01, %v6854_v63  ;;  %vm18755_vm14 = vmmov %vm18742_vm0 }
 0x589   : > { %7063 = vst.msk [vmem:[#allocation4 + $0xb9] sm:$0xff] %vm18742_vm0, %v7031_v14  ;;  %v12521_v21 = vpop.f32.mrb[60].mxu1  ;;  %v6970_v60 = vpack.c.bf16 %v6952_v53, %v6951_v9  ;;  %18752 = vst [vmem:[#allocation34_spill] sm:$0xff] %v16483_v54  ;;  %v16494_v53 = vld [vmem:[#allocation4 + $0x30] sm:$0xff] }
 0x58a   : > { %18751 = vst [vmem:[#allocation133_spill] sm:$0xff] %v16480_v44  ;;  %v6859_v58 = vadd.f32 %v12521_v21, %v16378_v0  ;;  %v6775_v20 = vpop.f32.mrb[61].mxu1  ;;  %v6950_v25 = vsel %vm6886_vm7, %v6854_v63, %v6918_v4  ;;  %vm18756_vm7 = vmmov %vm18742_vm0 }
 0x58b   : > { %12542 = vmatmul.mubr.msk.bf16.gmra.mrb[48].mxu0 %vm18753_vm5, %v16480_v44  ;;  %v6857_v3 = vadd.f32 %v16378_v0, %v6775_v20  ;;  %v12522_v14 = vpop.f32.mrb[62].mxu1  ;;  %v7036_v51 = vunpack.c.l.bf16 %v6970_v60  ;;  %v7037_v52 = vunpack.c.h.bf16 %v6970_v60  ;;  %v6969_v1 = vpack.c.bf16 %v6950_v25, %v6949_v47  ;;  %vm18757_vm3 = vmmov %vm18754_vm1  ;;  %v16506_v44 = vld [vmem:[#allocation4 + $0x38] sm:$0xff] }
 0x58c   : > { %12545 = vmatprep.mubr.msk.bf16.mxu0 %vm18754_vm1, %v16483_v54  ;;  %v6778_v12 = vpop.f32.mrb[63].mxu1  ;;  %vm6891_vm2 = vcmp.gt.f32.partialorder %v6859_v58, 0.0  ;;  %v6923_v29 = vmul.f32 0.01, %v6859_v58  ;;  %v6860_v18 = vadd.f32 %v12522_v14, %v16378_v0  ;;  %vm18758_vm5 = vmmov %vm18754_vm1  ;;  %v18760_v14 = vld [vmem:[#allocation13_spill] sm:$0xff] }
 0x58d   : > { %7068 = vst.msk [vmem:[#allocation4 + $0xe1] sm:$0xff] %vm18755_vm14, %v7036_v51  ;;  %v7034_v32 = vunpack.c.l.bf16 %v6969_v1  ;;  %v7035_v34 = vunpack.c.h.bf16 %v6969_v1  ;;  %v6921_v63 = vmul.f32 0.01, %v6857_v3  ;;  %v6858_v49 = vadd.f32 %v16378_v0, %v6778_v12  ;;  %v7180_v21 = vld [vmem:[#allocation4 + $0xc1] sm:$0xff] }
 0x58e   : > { %7069 = vst.msk [vmem:[#allocation4 + $0xe9] sm:$0xff] %vm18756_vm7, %v7037_v52  ;;  %vm6889_vm9 = vcmp.gt.f32.partialorder %v6857_v3, 0.0  ;;  %vm6892_vm0 = vcmp.gt.f32.partialorder %v6860_v18, 0.0  ;;  %v6924_v4 = vmul.f32 0.01, %v6860_v18  ;;  %v7181_v60 = vld [vmem:[#allocation4 + $0xc9] sm:$0xff]  ;;  %v6955_v25 = vsel %vm6891_vm2, %v6859_v58, %v6923_v29  ;;  %vm18763_vm7 = vmmov %vm18757_vm3 }
 0x58f   : > { %v7178_v13 = vld [vmem:[#allocation4 + $0xb1] sm:$0xff]  ;;  %7066 = vst.msk [vmem:[#allocation4 + $0xd1] sm:$0xff] %vm18757_vm3, %v7034_v32  ;;  %vm6890_vm1 = vcmp.gt.f32.partialorder %v6858_v49, 0.0  ;;  %v6922_v20 = vmul.f32 0.01, %v6858_v49  ;;  %vm18761_vm14 = vnez %v18760_v14  ;;  %v6953_v52 = vsel %vm6889_vm9, %v6857_v3, %v6921_v63  ;;  %v16514_v58 = vld [vmem:[#allocation4 + $0x60] sm:$0xff]  ;;  %vm18764_vm2 = vmmov %vm18757_vm3 }
 0x590   : > { %v7179_v9 = vld [vmem:[#allocation4 + $0xb9] sm:$0xff]  ;;  %7067 = vst.msk [vmem:[#allocation4 + $0xd9] sm:$0xff] %vm18758_vm5, %v7035_v34  ;;  %v6956_v0 = vsel %vm6892_vm0, %v6860_v18, %v6924_v4  ;;  %v8003_v51 = vsel %vm18761_vm14, %v16494_v53, 0.0  ;;  %v16504_v54 = vpack.c.bf16 %v7181_v60, %v7180_v21  ;;  %v16518_v3 = vld [vmem:[#allocation4 + $0x48] sm:$0xff]  ;;  %vm18766_vm9 = vmmov %vm18764_vm2 }
 0x591   : > { %v16498_v47 = vpack.c.bf16 %v7179_v9, %v7178_v13  ;;  %v6972_v1 = vpack.c.bf16 %v6956_v0, %v6955_v25  ;;  %v6954_v12 = vsel %vm6890_vm1, %v6858_v49, %v6922_v20  ;;  %v16510_v34 = vld [vmem:[#allocation4 + $0x40] sm:$0xff]  ;;  %v16512_v13 = vld [vmem:[#allocation4 + $0x50] sm:$0xff]  ;;  %v16520_v63 = vld [vmem:[#allocation4 + $0x58] sm:$0xff]  ;;  %v16531_v25 = vpack.c.bf16 %v16506_v44, %v8003_v51 }
 0x592   : > { %18762 = vst [vmem:[#allocation70_spill] sm:$0xff] %v16504_v54  ;;  %v6971_v32 = vpack.c.bf16 %v6954_v12, %v6953_v52  ;;  %v16522_v49 = vld [vmem:[#allocation4 + $0x70] sm:$0xff]  ;;  %v16524_v21 = vld [vmem:[#allocation4 + $0x68] sm:$0xff]  ;;  %v16526_v60 = vld [vmem:[#allocation4 + $0x78] sm:$0xff] }
 0x593   : > { %18759 = vst [vmem:[#allocation38_spill] sm:$0xff] %v16498_v47  ;;  %12546 = vmatmul.mubr.msk.bf16.gmra.mrb[52].mxu0 %vm18763_vm7, %v16498_v47  ;;  %v7040_v29 = vunpack.c.l.bf16 %v6972_v1  ;;  %v7041_v18 = vunpack.c.h.bf16 %v6972_v1  ;;  %v16528_v20 = vld [vmem:[#allocation4 + $0x80] sm:$0xff]  ;;  %18765 = vst [vmem:[#allocation74_spill] sm:$0xff] %v16531_v25  ;;  %v16535_v1 = vld [vmem:[#allocation4 + $0x88] sm:$0xff] }
 0x594   : > { %12549 = vmatprep.mubr.msk.bf16.mxu0 %vm18764_vm2, %v16504_v54  ;;  %v7038_v9 = vunpack.c.l.bf16 %v6971_v32  ;;  %v7039_v4 = vunpack.c.h.bf16 %v6971_v32  ;;  %vm18767_vm0 = vmmov %vm18764_vm2  ;;  %v7184_v0 = vld [vmem:[#allocation4 + $0xe1] sm:$0xff]  ;;  %v16537_v12 = vld [vmem:[#allocation4 + $0x90] sm:$0xff] }
 0x595   : > { %7072 = vst.msk [vmem:[#allocation4 + $0x101] sm:$0xff] %vm18766_vm9, %v7040_v29  ;;  %v7074_v52 = vld [vmem:[#allocation4] sm:$0xff]  ;;  %v18768_v32 = vld [vmem:[#allocation14_spill] sm:$0xff]  ;;  %v18770_v47 = vld [vmem:[#allocation15_spill] sm:$0xff]  ;;  %vm18779_vm9 = vnez %v18325_v40 }
 0x596   : > { %7073 = vst.msk [vmem:[#allocation4 + $0x109] sm:$0xff] %vm18767_vm0, %v7041_v18  ;;  %vm18769_vm3 = vnez %v18768_v32  ;;  %vm18771_vm5 = vnez %v18770_v47  ;;  %v18772_v51 = vld [vmem:[#allocation16_spill] sm:$0xff]  ;;  %vm18774_vm7 = vmmov %vm18767_vm0  ;;  %v7182_v18 = vld [vmem:[#allocation4 + $0xd1] sm:$0xff]  ;;  %v8011_v59 = vsel %vm18779_vm9, %v16522_v49, 0.0  ;;  %v7106_v10 = vsel %vm18724_vm12, %v7074_v52, 0.0 }
 0x597   : > { %v8005_v54 = vsel %vm18769_vm3, %v16510_v34, 0.0  ;;  %v8007_v24 = vsel %vm18771_vm5, %v16512_v13, 0.0  ;;  %vm18773_vm1 = vnez %v18772_v51  ;;  %7070 = vst.msk [vmem:[#allocation4 + $0xf1] sm:$0xff] %vm18774_vm7, %v7038_v9  ;;  %vm18775_vm2 = vmmov %vm18767_vm0  ;;  %v7183_v7 = vld [vmem:[#allocation4 + $0xd9] sm:$0xff]  ;;  %v7185_v37 = vld [vmem:[#allocation4 + $0xe9] sm:$0xff]  ;;  %vm18791_vm0 = vnez %v18351_v57 }
 0x598   : > { %v8009_v29 = vsel %vm18773_vm1, %v16514_v58, 0.0  ;;  %7071 = vst.msk [vmem:[#allocation4 + $0xf9] sm:$0xff] %vm18775_vm2, %v7039_v4  ;;  %v16551_v16 = vpack.c.bf16 %v16518_v3, %v8005_v54  ;;  %v16554_v30 = vpack.c.bf16 %v16520_v63, %v8007_v24  ;;  %v16562_v56 = vpack.c.bf16 %v7183_v7, %v7182_v18  ;;  %v16564_v9 = vld [vmem:[#allocation4 + $0x98] sm:$0xff]  ;;  %v16566_v4 = vld [vmem:[#allocation4 + $0xa0] sm:$0xff]  ;;  %v16568_v25 = vld [vmem:[#allocation4 + $0xb0] sm:$0xff] }
 0x599   : > { %v16557_v35 = vpack.c.bf16 %v16524_v21, %v8009_v29  ;;  %18781 = vst [vmem:[#allocation86_spill] sm:$0xff] %v16568_v25  ;;  %v16571_v54 = vpack.c.bf16 %v16526_v60, %v8011_v59  ;;  %v8013_v24 = vsel %vm18492_vm8, %v16528_v20, 0.0  ;;  %v16576_v29 = vld [vmem:[#allocation4 + $0xb8] sm:$0xff]  ;;  %v16585_v18 = vpack.c.bf16 %v7185_v37, %v7184_v0  ;;  %v16589_v48 = vld [vmem:[#allocation4 + $0xe0] sm:$0xff]  ;;  %vm18792_vm7 = vmmov %vm18775_vm2 }
 0x59a   : > { %18776 = vst [vmem:[#allocation72_spill] sm:$0xff] %v16551_v16  ;;  %18777 = vst [vmem:[#allocation84_spill] sm:$0xff] %v16554_v30  ;;  %v16580_v30 = vld [vmem:[#allocation4 + $0xd0] sm:$0xff]  ;;  %v16583_v7 = vpack.c.bf16 %v16535_v1, %v8013_v24  ;;  %v16587_v16 = vld [vmem:[#allocation4 + $0xd8] sm:$0xff]  ;;  %v8019_v45 = vsel %vm18378_vm10, %v16568_v25, 0.0  ;;  %v8969_v32 = vsel %vm18779_vm9, %v16528_v20, 0.0 }
 0x59b   : > { %18778 = vst [vmem:[#allocation75_spill] sm:$0xff] %v16557_v35  ;;  %18780 = vst [vmem:[#allocation17_spill] sm:$0xff] %v16562_v56  ;;  %v16578_v35 = vld [vmem:[#allocation4 + $0xc0] sm:$0xff]  ;;  %12550 = vmatmul.mubr.msk.bf16.gmra.mrb[56].mxu0 %vm18792_vm7, %v16562_v56  ;;  %v16600_v24 = vld [vmem:[#allocation4 + $0xa8] sm:$0xff]  ;;  %v16621_v56 = vpack.c.bf16 %v16576_v29, %v8019_v45  ;;  %v8025_v45 = vsel %vm18402_vm6, %v16589_v48, 0.0  ;;  %vm18803_vm7 = vnez %v18212_v28  ;;  %v7138_v28 = vpack.c.bf16 %v7075_v17, %v7106_v10 }
 0x59c   : > { %18782 = vst [vmem:[#allocation95_spill] sm:$0xff] %v16571_v54  ;;  %18783 = vst [vmem:[#allocation98_spill] sm:$0xff] %v16576_v29  ;;  %v16591_v59 = vld [vmem:[#allocation4 + $0x1a] sm:$0xff]  ;;  %v8015_v54 = vsel %vm18791_vm0, %v16537_v12, 0.0  ;;  %v16602_v37 = vld [vmem:[#allocation4 + $0x12] sm:$0xff]  ;;  %12553 = vmatprep.mubr.msk.bf16.mxu0 %vm18775_vm2, %v16585_v18  ;;  %vm18811_vm2 = vnez %v18417_v46  ;;  %vm18837_vm6 = vnez %v18138_v5  ;;  %v7126_v26 = vsel %vm18378_vm10, %v16566_v4, 0.0 }
 0x59d   : > { %18784 = vst [vmem:[#allocation99_spill] sm:$0xff] %v16578_v35  ;;  %18785 = vst [vmem:[#allocation114_spill] sm:$0xff] %v16580_v30  ;;  %v16605_v0 = vpack.c.bf16 %v16564_v9, %v8015_v54  ;;  %v16615_v50 = vld [vmem:[#allocation4 + $0xc8] sm:$0xff]  ;;  %v8021_v54 = vsel %vm18380_vm11, %v16578_v35, 0.0  ;;  %v16680_v46 = vld [vmem:[#allocation4 + $0x72] sm:$0xff] }
 0x59e   : > { %18786 = vst [vmem:[#allocation110_spill] sm:$0xff] %v16583_v7  ;;  %18787 = vst [vmem:[#allocation121_spill] sm:$0xff] %v16585_v18  ;;  %v8017_v7 = vsel %vm18498_vm15, %v16566_v4, 0.0  ;;  %v16631_v18 = vld [vmem:[#allocation4 + $0xe8] sm:$0xff]  ;;  %v16634_v8 = vpack.c.bf16 %v16615_v50, %v8021_v54  ;;  %v16645_v11 = vld [vmem:[#allocation4 + $0xf0] sm:$0xff] }
 0x59f   : > { %18788 = vst [vmem:[#allocation53_spill] sm:$0xff] %v16587_v16  ;;  %18789 = vst [vmem:[#allocation54_spill] sm:$0xff] %v16589_v48  ;;  %v16618_v52 = vpack.c.bf16 %v16600_v24, %v8017_v7  ;;  %v7187_v23 = vld [vmem:[#allocation4 + $0xf9] sm:$0xff]  ;;  %v16682_v17 = vld [vmem:[#allocation4 + $0x8a] sm:$0xff]  ;;  %v8636_v48 = vsel %vm18819_vm4, %v16659_v22, 0.0  ;;  %vm18825_vm4 = vnez %v18526_v42 }
 0x5a0   : > { %18790 = vst [vmem:[#allocation63_spill] sm:$0xff] %v16591_v59  ;;  %18793 = vst [vmem:[#allocation64_spill] sm:$0xff] %v16600_v24  ;;  %v16684_v10 = vld [vmem:[#allocation4 + $0x9a] sm:$0xff]  ;;  %v16726_v22 = vld [vmem:[#allocation4 + $0xea] sm:$0xff] }
 0x5a1   : > { %18794 = vst [vmem:[#allocation76_spill] sm:$0xff] %v16602_v37  ;;  %18795 = vst [vmem:[#allocation77_spill] sm:$0xff] %v16605_v0  ;;  %v8023_v0 = vsel %vm18397_vm13, %v16580_v30, 0.0  ;;  %v16648_v30 = vpack.c.bf16 %v16631_v18, %v8025_v45  ;;  %v16666_v45 = vld [vmem:[#allocation4 + $0x52] sm:$0xff]  ;;  %v16709_v29 = vld [vmem:[#allocation4 + $0xda] sm:$0xff] }
 0x5a2   : > { %18796 = vst [vmem:[#allocation88_spill] sm:$0xff] %v16615_v50  ;;  %18797 = vst [vmem:[#allocation89_spill] sm:$0xff] %v16618_v52  ;;  %v16637_v7 = vpack.c.bf16 %v16587_v16, %v8023_v0  ;;  %v7186_v52 = vld [vmem:[#allocation4 + $0xf1] sm:$0xff]  ;;  %v16664_v16 = vld [vmem:[#allocation4 + $0x42] sm:$0xff]  ;;  %v16715_v6 = vpack.c.bf16 %v8636_v48, %v16666_v45 }
 0x5a3   : > { %18798 = vst [vmem:[#allocation100_spill] sm:$0xff] %v16621_v56  ;;  %18800 = vst [vmem:[#allocation115_spill] sm:$0xff] %v16631_v18  ;;  %v8628_v56 = vsel %vm18803_vm7, %v16591_v59, 0.0  ;;  %v16653_v0 = vpack.c.bf16 %v7187_v23, %v7186_v52  ;;  %v8027_v59 = vsel %vm18811_vm2, %v16645_v11, 0.0  ;;  %v18813_v52 = vld [vmem:[#allocation12_spill] sm:$0xff]  ;;  %vm18818_vm7 = vnez %v18517_v19  ;;  %v16707_v50 = vld [vmem:[#allocation4 + $0xca] sm:$0xff] }
 0x5a4   : > { %18801 = vst [vmem:[#allocation116_spill] sm:$0xff] %v16634_v8  ;;  %18802 = vst [vmem:[#allocation124_spill] sm:$0xff] %v16637_v7  ;;  %v16651_v54 = vpack.c.bf16 %v8628_v56, %v16602_v37  ;;  %v16655_v7 = vld [vmem:[#allocation4 + $0xf8] sm:$0xff]  ;;  %v16657_v8 = vld [vmem:[#allocation4 + $0x4a] sm:$0xff]  ;;  %vm18814_vm12 = vnez %v18813_v52  ;;  %vm18820_vm2 = vcmask 130048  }
 0x5a5   : > { %18804 = vst [vmem:[#allocation125_spill] sm:$0xff] %v16645_v11  ;;  %18805 = vst [vmem:[#allocation137_spill] sm:$0xff] %v16648_v30  ;;  %v16668_v30 = vld [vmem:[#allocation4 + $0x6a] sm:$0xff]  ;;  %v16670_v56 = vld [vmem:[#allocation4 + $0x7a] sm:$0xff]  ;;  %v16673_v23 = vpack.c.bf16 %v16655_v7, %v8027_v59  ;;  %v7110_v11 = vsel %vm18761_vm14, %v16629_v61, 0.0  ;;  %12554 = vmatmul.mubr.msk.bf16.gmra.mrb[60].mxu0 %vm18820_vm2, %v16653_v0 }
 0x5a6   : > { %18806 = vst [vmem:[#allocation49_spill] sm:$0xff] %v16651_v54  ;;  %18807 = vst [vmem:[#allocation140_spill] sm:$0xff] %v16653_v0  ;;  %v7108_v54 = vsel %vm18814_vm12, %v16412_v55, 0.0  ;;  %v16678_v37 = vld [vmem:[#allocation4 + $0x62] sm:$0xff]  ;;  %v16691_v59 = vld [vmem:[#allocation4 + $0x92] sm:$0xff]  ;;  %v8634_v55 = vsel %vm18818_vm7, %v16657_v8, 0.0  ;;  %vm18824_vm7 = vnez %v18523_v2  ;;  %12559 = vmatprep.mubr.msk.bf16.mxu0 %vm18820_vm2, %v7138_v28  ;;  %vm18832_vm2 = vnez %v18477_v31 }
 0x5a7   : > { %18808 = vst [vmem:[#allocation33_spill] sm:$0xff] %v16655_v7  ;;  %18809 = vst [vmem:[#allocation36_spill] sm:$0xff] %v16657_v8  ;;  %v16689_v18 = vld [vmem:[#allocation4 + $0x82] sm:$0xff]  ;;  %v16695_v7 = vld [vmem:[#allocation4 + $0xba] sm:$0xff]  ;;  %v16712_v35 = vpack.c.bf16 %v8634_v55, %v16664_v16  ;;  %v8638_v33 = vsel %vm18824_vm7, %v16668_v30, 0.0  ;;  %v8640_v0 = vsel %vm18825_vm4, %v16670_v56, 0.0  ;;  %vm18828_vm7 = vnez %v18533_v36 }
 0x5a8   : > { %18812 = vst [vmem:[#allocation58_spill] sm:$0xff] %v16673_v23  ;;  %18815 = vst [vmem:[#allocation67_spill] sm:$0xff] %v16684_v10  ;;  %v16693_v23 = vld [vmem:[#allocation4 + $0xaa] sm:$0xff]  ;;  %v16705_v61 = vld [vmem:[#allocation4 + $0xb2] sm:$0xff]  ;;  %v16731_v55 = vpack.c.bf16 %v8638_v33, %v16678_v37  ;;  %v16734_v48 = vpack.c.bf16 %v8640_v0, %v16680_v46  ;;  %vm18829_vm4 = vnez %v18472_v27 }
 0x5a9   : > { %18816 = vst [vmem:[#allocation69_spill] sm:$0xff] %v16691_v59  ;;  %18817 = vst [vmem:[#allocation80_spill] sm:$0xff] %v16695_v7  ;;  %v16724_v19 = vld [vmem:[#allocation4 + $0xd2] sm:$0xff]  ;;  %v16728_v8 = vld [vmem:[#allocation4 + $0xfa] sm:$0xff]  ;;  %v8644_v28 = vsel %vm18829_vm4, %v16684_v10, 0.0  ;;  %v8646_v0 = vsel %vm18832_vm2, %v16693_v23, 0.0  ;;  %vm18836_vm4 = vnez %v18134_v43 }
 0x5aa   : > { %18821 = vst [vmem:[#allocation83_spill] sm:$0xff] %v16709_v29  ;;  %18822 = vst [vmem:[#allocation92_spill] sm:$0xff] %v16712_v35  ;;  %v16742_v35 = vld [vmem:[#allocation4 + $0xa2] sm:$0xff]  ;;  %v16744_v42 = vld [vmem:[#allocation4 + $0xf2] sm:$0xff]  ;;  %v16750_v33 = vpack.c.bf16 %v8644_v28, %v16691_v59  ;;  %v8652_v28 = vsel %vm18837_vm6, %v16709_v29, 0.0 }
 0x5ab   : > { %18823 = vst [vmem:[#allocation94_spill] sm:$0xff] %v16715_v6  ;;  %18826 = vst [vmem:[#allocation104_spill] sm:$0xff] %v16731_v55  ;;  %v8642_v6 = vsel %vm18828_vm7, %v16682_v17, 0.0  ;;  %vm18833_vm7 = vnez %v18479_v39  ;;  %v16758_v55 = vld [vmem:[#allocation4 + $0xc2] sm:$0xff]  ;;  %v16761_v27 = vpack.c.bf16 %v8646_v0, %v16742_v35  ;;  %v16780_v0 = vpack.c.bf16 %v8652_v28, %v16724_v19 }
 0x5ac   : > { %18827 = vst [vmem:[#allocation107_spill] sm:$0xff] %v16734_v48  ;;  %v16747_v2 = vpack.c.bf16 %v8642_v6, %v16689_v18  ;;  %18831 = vst [vmem:[#allocation123_spill] sm:$0xff] %v16750_v33  ;;  %v8648_v48 = vsel %vm18833_vm7, %v16695_v7, 0.0  ;;  %v8650_v6 = vsel %vm18836_vm4, %v16707_v50, 0.0  ;;  %v16772_v33 = vld [vmem:[#allocation4 + $0x28] sm:$0xff]  ;;  %vm18841_vm7 = vnez %v18421_v15  ;;  %v16837_v47 = vld [vmem:[#allocation4 + $0x100] sm:$0xff] }
 0x5ad   : > { %18834 = vst [vmem:[#allocation135_spill] sm:$0xff] %v16761_v27  ;;  %v16764_v36 = vpack.c.bf16 %v8648_v48, %v16705_v61  ;;  %18838 = vst [vmem:[#allocation65_spill] sm:$0xff] %v16772_v33  ;;  %v16777_v39 = vpack.c.bf16 %v8650_v6, %v16758_v55  ;;  %v8654_v48 = vsel %vm18841_vm7, %v16726_v22, 0.0  ;;  %vm18842_vm4 = vnez %v18427_v41  ;;  %v16876_v52 = vld [vmem:[#allocation4 + $0x108] sm:$0xff]  ;;  %v18917_v57 = vld [vmem:[#allocation64_spill] sm:$0xff] }
 0x5ae   : > { %18830 = vst [vmem:[#allocation120_spill] sm:$0xff] %v16747_v2  ;;  %v16774_v2 = vld [vmem:[#allocation4 + $0xe2] sm:$0xff]  ;;  %18840 = vst [vmem:[#allocation78_spill] sm:$0xff] %v16780_v0  ;;  %v7139_v27 = vpack.c.bf16 %v16421_v38, %v7108_v54  ;;  %v7140_v5 = vpack.c.bf16 %v16772_v33, %v7110_v11  ;;  %v7112_v28 = vsel %vm18769_vm3, %v16494_v53, 0.0  ;;  %v7114_v0 = vsel %vm18771_vm5, %v16510_v34, 0.0 }
 0x5af   : > { %18835 = vst [vmem:[#allocation55_spill] sm:$0xff] %v16764_v36  ;;  %18839 = vst [vmem:[#allocation66_spill] sm:$0xff] %v16777_v39  ;;  %v8656_v36 = vsel %vm18842_vm4, %v16728_v8, 0.0  ;;  %v16791_v43 = vpack.c.bf16 %v8654_v48, %v16774_v2  ;;  %v16802_v39 = vld [vmem:[#allocation7 + $0x18] sm:$0xff]   ;;  %v8959_v11 = vsel %vm18814_vm12, %v16494_v53, 0.0  ;;  %v8961_v38 = vsel %vm18761_vm14, %v16510_v34, 0.0 }
 0x5b0   : > { %v16794_v6 = vpack.c.bf16 %v8656_v36, %v16744_v42  ;;  %18845 = vst [vmem:[#allocation91_spill] sm:$0xff] %v16802_v39  ;;  %v16811_v36 = vpack.c.bf16 %v16506_v44, %v8959_v11  ;;  %v16814_v54 = vpack.c.bf16 %v16518_v3, %v8961_v38  ;;  %v8963_v48 = vsel %vm18769_vm3, %v16512_v13, 0.0  ;;  %18852 = vst [vmem:[#allocation126_spill] sm:$0xff] %v16837_v47  ;;  %v18969_v15 = vld [vmem:[#allocation93_spill] sm:$0xff] }
 0x5b1   : > { %18843 = vst [vmem:[#allocation79_spill] sm:$0xff] %v16791_v43  ;;  %vm18848_vm4 = vcmask 130048   ;;  %v16824_v53 = vpack.c.bf16 %v16520_v63, %v8963_v48  ;;  %v8967_v34 = vsel %vm18773_vm1, %v16522_v49, 0.0  ;;  %v8971_v11 = vsel %vm18492_vm8, %v16537_v12, 0.0  ;;  %v18864_v43 = vld [vmem:[#allocation114_spill] sm:$0xff]  ;;  %18868 = vst [vmem:[#allocation128_spill] sm:$0xff] %v16876_v52 }
 0x5b2   : > { %18844 = vst [vmem:[#allocation90_spill] sm:$0xff] %v16794_v6  ;;  %18846 = vst [vmem:[#allocation102_spill] sm:$0xff] %v16811_v36  ;;  %v8965_v6 = vsel %vm18771_vm5, %v16514_v58, 0.0  ;;  %12560 = vmatmul.mubr.msk.bf16.vlgmr.msra.gmra.mrb[32].mxu0 %vm18848_vm4, %v7139_v27  ;;  %v16840_v27 = vpack.c.bf16 %v16526_v60, %v8967_v34  ;;  %v8973_v38 = vsel %vm18791_vm0, %v16566_v4, 0.0  ;;  %v8975_v34 = vsel %vm18498_vm15, %v16568_v25, 0.0  ;;  %v18922_v48 = vld [vmem:[#allocation98_spill] sm:$0xff] }
 0x5b3   : > { %18847 = vst [vmem:[#allocation103_spill] sm:$0xff] %v16814_v54  ;;  %18849 = vst [vmem:[#allocation117_spill] sm:$0xff] %v16824_v53  ;;  %v16827_v14 = vpack.c.bf16 %v16524_v21, %v8965_v6  ;;  %12592 = vmatpush3.bf16.msra.mxu0 %v16400_v62  ;;  %v16843_v6 = vpack.c.bf16 %v16535_v1, %v8969_v32  ;;  %v16856_v62 = vpack.c.bf16 %v16600_v24, %v8973_v38  ;;  %v18858_v32 = vld [vmem:[#allocation99_spill] sm:$0xff]  ;;  %v18862_v54 = vld [vmem:[#allocation88_spill] sm:$0xff] }
 0x5b4   : > { %vm18851_vm14 = vmmov %vm18848_vm4  ;;  %18853 = vst [vmem:[#allocation127_spill] sm:$0xff] %v16840_v27  ;;  %12625 = vmatprep.subr.bf16.mxu0 %v16802_v39  ;;  %v8977_v27 = vsel %vm18378_vm10, %v18858_v32, 0.0  ;;  %v18866_v38 = vld [vmem:[#allocation54_spill] sm:$0xff]  ;;  %v18869_v39 = vld [vmem:[#allocation53_spill] sm:$0xff] }
 0x5b5   : > { %18850 = vst [vmem:[#allocation118_spill] sm:$0xff] %v16827_v14  ;;  %12563 = vmatprep.mubr.msk.bf16.mxu0 %vm18851_vm14, %v7140_v5  ;;  %18854 = vst [vmem:[#allocation138_spill] sm:$0xff] %v16843_v6  ;;  %v16853_v5 = vpack.c.bf16 %v16564_v9, %v8971_v11  ;;  %v18860_v14 = vld [vmem:[#allocation98_spill] sm:$0xff]  ;;  %v16868_v36 = vpack.c.bf16 %v18862_v54, %v8977_v27  ;;  %v8981_v33 = vsel %vm18397_vm13, %v18866_v38, 0.0  ;;  %v18871_v32 = vld [vmem:[#allocation115_spill] sm:$0xff] }
 0x5b6   : > { %18856 = vst [vmem:[#allocation56_spill] sm:$0xff] %v16856_v62  ;;  %v16865_v53 = vpack.c.bf16 %v18860_v14, %v8975_v34  ;;  %v16882_v24 = vpack.c.bf16 %v18871_v32, %v8981_v33  ;;  %v18873_v34 = vld [vmem:[#allocation125_spill] sm:$0xff]  ;;  %v7116_v33 = vsel %vm18773_vm1, %v16512_v13, 0.0  ;;  %vm18881_vm5 = vmmov %vm18851_vm14  ;;  %v18923_v6 = vld [vmem:[#allocation88_spill] sm:$0xff] }
 0x5b7   : > { %18855 = vst [vmem:[#allocation50_spill] sm:$0xff] %v16853_v5  ;;  %18863 = vst [vmem:[#allocation122_spill] sm:$0xff] %v16868_v36  ;;  %v8979_v5 = vsel %vm18380_vm11, %v18864_v43, 0.0  ;;  %v18876_v36 = vld [vmem:[#allocation27_spill] sm:$0xff]  ;;  %v18878_v54 = vld [vmem:[#allocation33_spill] sm:$0xff] }
 0x5b8   : > { %18861 = vst [vmem:[#allocation119_spill] sm:$0xff] %v16865_v53  ;;  %v16879_v25 = vpack.c.bf16 %v18869_v39, %v8979_v5  ;;  %18872 = vst [vmem:[#allocation130_spill] sm:$0xff] %v16882_v24  ;;  %v18874_v53 = vld [vmem:[#allocation24_spill] sm:$0xff]  ;;  %vm18877_vm3 = vnez %v18876_v36  ;;  %v7141_v5 = vpack.c.bf16 %v16506_v44, %v7112_v28  ;;  %v7118_v24 = vsel %vm18779_vm9, %v16514_v58, 0.0  ;;  %v18887_v28 = vld [vmem:[#allocation35_spill] sm:$0xff] }
 0x5b9   : > { %vm18875_vm4 = vnez %v18874_v53  ;;  %v8985_v43 = vsel %vm18877_vm3, %v16837_v47, 0.0  ;;  %vm18882_vm14 = vmmov %vm18881_vm5  ;;  %v18884_v44 = vld [vmem:[#allocation32_spill] sm:$0xff]  ;;  %vm18888_vm3 = vnez %v18887_v28  ;;  %v18891_v58 = vld [vmem:[#allocation37_spill] sm:$0xff] }
 0x5ba   : > { %18870 = vst [vmem:[#allocation129_spill] sm:$0xff] %v16879_v25  ;;  %v8983_v27 = vsel %vm18875_vm4, %v18873_v34, 0.0  ;;  %v16894_v38 = vpack.c.bf16 %v16876_v52, %v8985_v43  ;;  %v7142_v25 = vpack.c.bf16 %v16518_v3, %v7114_v0  ;;  %12564 = vmatmul.mubr.msk.bf16.gmra.mrb[36].mxu0 %vm18881_vm5, %v7141_v5  ;;  %v7144_v43 = vpack.c.bf16 %v16524_v21, %v7118_v24  ;;  %v18886_v0 = vld [vmem:[#allocation57_spill] sm:$0xff]  ;;  %v18893_v21 = vld [vmem:[#allocation39_spill] sm:$0xff]  ;;  %v18933_v53 = vld [vmem:[#allocation26_spill] sm:$0xff] }
 0x5bb   : > { %v16891_v14 = vpack.c.bf16 %v18878_v54, %v8983_v27  ;;  %v7143_v27 = vpack.c.bf16 %v16520_v63, %v7116_v33  ;;  %vm18885_vm12 = vnez %v18884_v44  ;;  %v9592_v13 = vsel %vm18888_vm3, %v18886_v0, 0.0  ;;  %v18897_v33 = vld [vmem:[#allocation40_spill] sm:$0xff]  ;;  %v19043_v44 = vld [vmem:[#allocation107_spill] sm:$0xff] }
 0x5bc   : > { %18880 = vst [vmem:[#allocation132_spill] sm:$0xff] %v16894_v38  ;;  %12567 = vmatprep.mubr.msk.bf16.mxu0 %vm18882_vm14, %v7142_v25  ;;  %v18883_v38 = vld [vmem:[#allocation36_spill] sm:$0xff]  ;;  %v16918_v40 = vpack.c.bf16 %v9592_v13, %v16666_v45  ;;  %vm18892_vm1 = vnez %v18891_v58  ;;  %vm18894_vm9 = vnez %v18893_v21  ;;  %vm18898_vm5 = vnez %v18897_v33  ;;  %v18899_v13 = vld [vmem:[#allocation42_spill] sm:$0xff] }
 0x5bd   : > { %18879 = vst [vmem:[#allocation131_spill] sm:$0xff] %v16891_v14  ;;  %v9590_v3 = vsel %vm18885_vm12, %v18883_v38, 0.0  ;;  %v9594_v63 = vsel %vm18892_vm1, %v16668_v30, 0.0  ;;  %v9596_v25 = vsel %vm18894_vm9, %v16670_v56, 0.0  ;;  %vm18900_vm14 = vnez %v18899_v13 }
 0x5be   : > { %v16915_v51 = vpack.c.bf16 %v9590_v3, %v16664_v16  ;;  %18890 = vst [vmem:[#allocation136_spill] sm:$0xff] %v16918_v40  ;;  %v16927_v24 = vpack.c.bf16 %v9594_v63, %v16678_v37  ;;  %v16930_v5 = vpack.c.bf16 %v9596_v25, %v16680_v46  ;;  %v9598_v3 = vsel %vm18898_vm5, %v16682_v17, 0.0  ;;  %v18903_v63 = vld [vmem:[#allocation44_spill] sm:$0xff] }
 0x5bf   : > { %v9600_v40 = vsel %vm18900_vm14, %v16684_v10, 0.0  ;;  %v16941_v14 = vpack.c.bf16 %v9598_v3, %v16689_v18  ;;  %vm18904_vm9 = vnez %v18903_v63  ;;  %v18907_v3 = vld [vmem:[#allocation46_spill] sm:$0xff] }
 0x5c0   : > { %18889 = vst [vmem:[#allocation134_spill] sm:$0xff] %v16915_v51  ;;  %18895 = vst [vmem:[#allocation139_spill] sm:$0xff] %v16927_v24  ;;  %v16938_v51 = vld [vmem:[#allocation4 + $0x10a] sm:$0xff]  ;;  %v16944_v52 = vpack.c.bf16 %v9600_v40, %v16691_v59  ;;  %v9602_v25 = vsel %vm18904_vm9, %v16693_v23, 0.0  ;;  %v16952_v24 = vld [vmem:[#allocation4 + $0x102] sm:$0xff]  ;;  %vm18908_vm14 = vnez %v18907_v3 }
 0x5c1   : > { %18896 = vst [vmem:[#allocation141_spill] sm:$0xff] %v16930_v5  ;;  %18901 = vst [vmem:[#allocation142_spill] sm:$0xff] %v16941_v14  ;;  %v9604_v5 = vsel %vm18832_vm2, %v16695_v7, 0.0  ;;  %v16955_v47 = vpack.c.bf16 %v9602_v25, %v16742_v35  ;;  %v9606_v40 = vsel %vm18908_vm14, %v16707_v50, 0.0  ;;  %vm18913_vm2 = vcmask 130048  }
 0x5c2   : > { %18902 = vst [vmem:[#allocation143_spill] sm:$0xff] %v16944_v52  ;;  %v16958_v10 = vpack.c.bf16 %v9604_v5, %v16705_v61  ;;  %v18909_v52 = vld [vmem:[#allocation47_spill] sm:$0xff]  ;;  %v16967_v59 = vpack.c.bf16 %v9606_v40, %v16758_v55  ;;  %v9612_v5 = vsel %vm18841_vm7, %v16728_v8, 0.0  ;;  %12568 = vmatmul.mubr.msk.bf16.gmra.mrb[40].mxu0 %vm18913_vm2, %v7143_v27  ;;  %vm18915_vm14 = vmmov %vm18913_vm2 }
 0x5c3   : > { %18905 = vst [vmem:[#allocation144_spill] sm:$0xff] %v16955_v47  ;;  %vm18910_vm5 = vnez %v18909_v52  ;;  %v9610_v47 = vsel %vm18837_vm6, %v16726_v22, 0.0  ;;  %12571 = vmatprep.mubr.msk.bf16.mxu0 %vm18915_vm14, %v7144_v43  ;;  %v7124_v43 = vsel %vm18498_vm15, %v16537_v12, 0.0 }
 0x5c4   : > { %18906 = vst [vmem:[#allocation145_spill] sm:$0xff] %v16958_v10  ;;  %v9608_v14 = vsel %vm18910_vm5, %v16709_v29, 0.0  ;;  %v16980_v10 = vpack.c.bf16 %v9610_v47, %v16774_v2  ;;  %v16983_v29 = vpack.c.bf16 %v9612_v5, %v16744_v42  ;;  %vm18914_vm5 = vnez %v18427_v41 }
 0x5c5   : > { %v16970_v7 = vpack.c.bf16 %v9608_v14, %v16724_v19  ;;  %v9614_v14 = vsel %vm18914_vm5, %v16938_v51, 0.0  ;;  %v7122_v47 = vsel %vm18791_vm0, %v16528_v20, 0.0  ;;  %vm18916_vm5 = vmmov %vm18913_vm2  ;;  %v7148_v20 = vpack.c.bf16 %v18917_v57, %v7126_v26  ;;  %v18931_v26 = vld [vmem:[#allocation41_spill] sm:$0xff] }
 0x5c6   : > { %v16990_v40 = vpack.c.bf16 %v9614_v14, %v16952_v24  ;;  %v7146_v5 = vpack.c.bf16 %v16535_v1, %v7122_v47  ;;  %vm18919_vm0 = vmmov %vm18913_vm2  ;;  %vm18932_vm14 = vnez %v18931_v26  ;;  %v7637_v57 = vld [vmem:[#allocation4 + $0x2] sm:$0xff]  ;;  %v9261_v26 = vld [vmem:[#allocation4 + $0x51] sm:$0xff] }
 0x5c7   : > { %18911 = vst [vmem:[#allocation62_spill] sm:$0xff] %v16970_v7  ;;  %v7120_v7 = vsel %vm18492_vm8, %v16522_v49, 0.0  ;;  %v7147_v49 = vpack.c.bf16 %v16564_v9, %v7124_v43  ;;  %vm18918_vm8 = vmmov %vm18913_vm2  ;;  %v18926_v9 = vld [vmem:[#allocation114_spill] sm:$0xff] }
 0x5c8   : > { %v7145_v27 = vpack.c.bf16 %v16526_v60, %v7120_v7  ;;  %v18920_v60 = vld [vmem:[#allocation86_spill] sm:$0xff]  ;;  %v18921_v7 = vld [vmem:[#allocation99_spill] sm:$0xff]  ;;  %vm18924_vm10 = vmmov %vm18919_vm0  ;;  %v7132_v47 = vsel %vm18875_vm4, %v18926_v9, 0.0  ;;  %vm18934_vm4 = vnez %v18933_v53 }
 0x5c9   : > { %v7128_v1 = vsel %vm18380_vm11, %v18920_v60, 0.0  ;;  %v7130_v12 = vsel %vm18397_vm13, %v18921_v7, 0.0  ;;  %vm18925_vm15 = vmmov %vm18919_vm0  ;;  %v7638_v43 = vld [vmem:[#allocation4 + $0xa] sm:$0xff]  ;;  %v18943_v9 = vld [vmem:[#allocation91_spill] sm:$0xff] }
 0x5ca   : > { %12572 = vmatmul.mubr.msk.bf16.gmra.mrb[44].mxu0 %vm18913_vm2, %v7145_v27  ;;  %v7149_v14 = vpack.c.bf16 %v18922_v48, %v7128_v1  ;;  %v7150_v4 = vpack.c.bf16 %v18923_v6, %v7130_v12  ;;  %v18927_v27 = vld [vmem:[#allocation54_spill] sm:$0xff]  ;;  %vm18929_vm11 = vmmov %vm18919_vm0  ;;  %v18940_v12 = vld [vmem:[#allocation76_spill] sm:$0xff] }
 0x5cb   : > { %12575 = vmatprep.mubr.msk.bf16.mxu0 %vm18916_vm5, %v7146_v5  ;;  %vm18928_vm5 = vnez %v18876_v36  ;;  %v7151_v5 = vpack.c.bf16 %v18869_v39, %v7132_v47  ;;  %vm18930_vm13 = vmmov %vm18919_vm0  ;;  %v17040_v39 = vld [vmem:[#allocation4 + $0x2a] sm:$0xff]  ;;  %v17057_v47 = vld [vmem:[#allocation4 + $0x32] sm:$0xff] }
 0x5cc   : > { %v7134_v11 = vsel %vm18928_vm5, %v18927_v27, 0.0  ;;  %vm18935_vm2 = vmmov %vm18919_vm0  ;;  %v18938_v1 = vld [vmem:[#allocation30_spill] sm:$0xff]  ;;  %v19112_v53 = vld [vmem:[#allocation139_spill] sm:$0xff] }
 0x5cd   : > { %v7152_v62 = vpack.c.bf16 %v18871_v32, %v7134_v11  ;;  %v18937_v32 = vld [vmem:[#allocation63_spill] sm:$0xff]  ;;  %v7678_v11 = vsel %vm18892_vm1, %v18883_v38, 0.0  ;;  %vm18944_vm5 = vmmov %vm18935_vm2 }
 0x5d2   : > { %12576 = vmatmul.mubr.msk.bf16.gmra.mrb[48].mxu0 %vm18918_vm8, %v7147_v49  ;;  %v7136_v49 = vsel %vm18932_vm14, %v18873_v34, 0.0  ;;  %vm18936_vm8 = vmmov %vm18919_vm0  ;;  %v7674_v34 = vsel %vm18885_vm12, %v17040_v39, 0.0 }
 0x5d3   : > { %12579 = vmatprep.mubr.msk.bf16.mxu0 %vm18919_vm0, %v7148_v20  ;;  %v7670_v20 = vsel %vm18934_vm4, %v7638_v43, 0.0  ;;  %v7153_v36 = vpack.c.bf16 %v18878_v54, %v7136_v49  ;;  %vm18939_vm0 = vnez %v18938_v1  ;;  %v13654_v54 = vld [vmem:[#allocation7 + $0x20] sm:$0xff]   ;;  %v19118_v1 = vld [vmem:[#allocation143_spill] sm:$0xff] }
 0x5d4   : > { %v7701_v60 = vpack.c.bf16 %v7670_v20, %v7637_v57  ;;  %v7672_v7 = vsel %vm18939_vm0, %v18937_v32, 0.0  ;;  %v13655_v20 = vld [vmem:[#allocation7 + $0x28] sm:$0xff]  }
 0x5d5   : > { %v7702_v48 = vpack.c.bf16 %v7672_v7, %v18940_v12  ;;  %v18983_v32 = vld [vmem:[#allocation95_spill] sm:$0xff]  ;;  %v18985_v7 = vld [vmem:[#allocation110_spill] sm:$0xff]  ;;  %v18989_v12 = vld [vmem:[#allocation89_spill] sm:$0xff] }
 0x5da   : > { %12580 = vmatmul.mubr.msk.bf16.gmra.mrb[52].mxu0 %vm18924_vm10, %v7149_v14  ;;  %v17049_v14 = vld [vmem:[#allocation4 + $0x22] sm:$0xff]  ;;  %vm18941_vm10 = vmmov %vm18935_vm2 }
 0x5db   : > { %12583 = vmatprep.mubr.msk.bf16.mxu0 %vm18925_vm15, %v7150_v4  ;;  %v7703_v6 = vpack.c.bf16 %v7674_v34, %v17049_v14  ;;  %v17053_v4 = vld [vmem:[#allocation4 + $0x3a] sm:$0xff]  ;;  %vm18942_vm15 = vmmov %vm18935_vm2  ;;  %v18987_v34 = vld [vmem:[#allocation77_spill] sm:$0xff] }
 0x5dc   : > { %v7676_v27 = vsel %vm18888_vm3, %v17053_v4, 0.0  ;;  %vm18948_vm3 = vmmov %vm18944_vm5 }
 0x5dd   : > { %vm18949_vm1 = vmmov %vm18948_vm3 }
 0x5e2   : > { %12584 = vmatmul.mubr.msk.bf16.gmra.mrb[56].mxu0 %vm18929_vm11, %v7151_v5  ;;  %v7704_v5 = vpack.c.bf16 %v7676_v27, %v17057_v47  ;;  %vm18945_vm11 = vmmov %vm18935_vm2  ;;  %v18999_v27 = vld [vmem:[#allocation58_spill] sm:$0xff] }
 0x5e3   : > { %12587 = vmatprep.mubr.msk.bf16.mxu0 %vm18930_vm13, %v7152_v62  ;;  %v7705_v62 = vpack.c.bf16 %v7678_v11, %v16664_v16  ;;  %vm18946_vm13 = vnez %v18893_v21  ;;  %v18956_v21 = vld [vmem:[#allocation69_spill] sm:$0xff]  ;;  %v19001_v11 = vld [vmem:[#allocation126_spill] sm:$0xff] }
 0x5e4   : > { %v7680_v43 = vsel %vm18946_vm13, %v18886_v0, 0.0  ;;  %v7686_v0 = vsel %vm18904_vm9, %v16682_v17, 0.0  ;;  %vm18957_vm9 = vmmov %vm18949_vm1 }
 0x5e5   : > { %v7706_v49 = vpack.c.bf16 %v7680_v43, %v16666_v45  ;;  %vm18958_vm13 = vmmov %vm18949_vm1 }
 0x5ea   : > { %12588 = vmatmul.mubr.msk.bf16.gmra.mrb[60].mxu0 %vm18935_vm2, %v7153_v36  ;;  %vm18947_vm2 = vnez %v18897_v33  ;;  %v18976_v36 = vld [vmem:[#allocation74_spill] sm:$0xff] }
 0x5eb   : > { %12593 = vmatprep.mubr.msk.bf16.mxu0 %vm18936_vm8, %v7701_v60  ;;  %v7682_v28 = vsel %vm18947_vm2, %v16668_v30, 0.0  ;;  %vm18950_vm8 = vnez %v18899_v13  ;;  %v7709_v30 = vpack.c.bf16 %v7686_v0, %v16689_v18  ;;  %vm18960_vm2 = vnez %v18909_v52  ;;  %v18982_v60 = vld [vmem:[#allocation75_spill] sm:$0xff]  ;;  %v19009_v0 = vld [vmem:[#allocation82_spill] sm:$0xff] }
 0x5ec   : > { %v7707_v38 = vpack.c.bf16 %v7682_v28, %v16678_v37  ;;  %v7684_v16 = vsel %vm18950_vm8, %v16670_v56, 0.0  ;;  %v18953_v37 = vld [vmem:[#allocation67_spill] sm:$0xff]  ;;  %vm18963_vm8 = vnez %v18427_v41  ;;  %v18972_v41 = vld [vmem:[#allocation12_spill] sm:$0xff] }
 0x5ed   : > { %v7708_v58 = vpack.c.bf16 %v7684_v16, %v16680_v46  ;;  %v18959_v46 = vld [vmem:[#allocation80_spill] sm:$0xff]  ;;  %v7698_v52 = vsel %vm18963_vm8, %v16726_v22, 0.0  ;;  %v18971_v22 = vld [vmem:[#allocation101_spill] sm:$0xff]  ;;  %vm18984_vm8 = vmmov %vm18949_vm1 }
 0x5ee   : > { %v7692_v18 = vsel %vm18960_vm2, %v18959_v46, 0.0  ;;  %vm18979_vm2 = vmmov %vm18949_vm1  ;;  %v19004_v28 = vld [vmem:[#allocation60_spill] sm:$0xff]  ;;  %v19007_v16 = vld [vmem:[#allocation81_spill] sm:$0xff] }
 0x5ef   : > { %v7712_v13 = vpack.c.bf16 %v7692_v18, %v16705_v61  ;;  %v18966_v61 = vld [vmem:[#allocation51_spill] sm:$0xff]  ;;  %v19026_v46 = vld [vmem:[#allocation17_spill] sm:$0xff] }
 0x5f0   : > { %v19028_v18 = vld [vmem:[#allocation121_spill] sm:$0xff] }
 0x5f2   : > { %12594 = vmatmul.mubr.msk.bf16.vlgmr.msra.gmra.mrb[32].mxu0 %vm18941_vm10, %v7702_v48  ;;  %vm18951_vm10 = vmmov %vm18949_vm1  ;;  %v18991_v48 = vld [vmem:[#allocation100_spill] sm:$0xff] }
 0x5f3   : > { %12597 = vmatprep.mubr.msk.bf16.mxu0 %vm18942_vm15, %v7703_v6  ;;  %12626 = vmatpush3.bf16.msra.mxu0 %v18943_v9  ;;  %vm18952_vm15 = vmmov %vm18949_vm1  ;;  %v18995_v6 = vld [vmem:[#allocation124_spill] sm:$0xff]  ;;  %v18997_v9 = vld [vmem:[#allocation137_spill] sm:$0xff] }
 0x5f4   : > { %12659 = vmatprep.subr.bf16.mxu0 %v13654_v54 }
 0x5fa   : > { %12598 = vmatmul.mubr.msk.bf16.gmra.mrb[36].mxu0 %vm18944_vm5, %v7704_v5  ;;  %vm18954_vm5 = vnez %v18477_v31  ;;  %v7694_v31 = vsel %vm18837_vm6, %v16707_v50, 0.0  ;;  %v7715_v50 = vpack.c.bf16 %v7698_v52, %v16774_v2  ;;  %vm18964_vm6 = vmmov %vm18949_vm1  ;;  %v18974_v2 = vld [vmem:[#allocation65_spill] sm:$0xff]  ;;  %v8029_v5 = vsel %vm18932_vm14, %v19001_v11, 0.0  ;;  %v19066_v11 = vld [vmem:[#allocation103_spill] sm:$0xff] }
 0x5fb   : > { %12601 = vmatprep.mubr.msk.bf16.mxu0 %vm18945_vm11, %v7705_v62  ;;  %v7688_v45 = vsel %vm18954_vm5, %v18953_v37, 0.0  ;;  %vm18955_vm11 = vnez %v18907_v3  ;;  %vm18968_vm5 = vmmov %vm18949_vm1  ;;  %v19002_v62 = vld [vmem:[#allocation128_spill] sm:$0xff]  ;;  %v19015_v37 = vld [vmem:[#allocation106_spill] sm:$0xff]  ;;  %v8630_v52 = vsel %vm18939_vm0, %v17040_v39, 0.0 }
 0x5fc   : > { %v7690_v56 = vsel %vm18955_vm11, %v16693_v23, 0.0  ;;  %v7710_v33 = vpack.c.bf16 %v7688_v45, %v18956_v21  ;;  %v7713_v23 = vpack.c.bf16 %v7694_v31, %v16758_v55  ;;  %vm18973_vm11 = vnez %v18972_v41  ;;  %v19017_v45 = vld [vmem:[#allocation108_spill] sm:$0xff]  ;;  %v19021_v21 = vld [vmem:[#allocation34_spill] sm:$0xff] }
 0x5fd   : > { %v7711_v17 = vpack.c.bf16 %v7690_v56, %v16742_v35  ;;  %v18962_v35 = vld [vmem:[#allocation83_spill] sm:$0xff]  ;;  %v8046_v43 = vpack.c.bf16 %v19002_v62, %v8029_v5  ;;  %v19019_v56 = vld [vmem:[#allocation133_spill] sm:$0xff]  ;;  %v19030_v31 = vld [vmem:[#allocation140_spill] sm:$0xff] }
 0x5fe   : > { %v7696_v63 = vsel %vm18841_vm7, %v18962_v35, 0.0  ;;  %vm18970_vm7 = vmmov %vm18949_vm1  ;;  %v19039_v41 = vld [vmem:[#allocation94_spill] sm:$0xff]  ;;  %v19077_v62 = vld [vmem:[#allocation56_spill] sm:$0xff] }
 0x5ff   : > { %v7714_v3 = vpack.c.bf16 %v7696_v63, %v16724_v19  ;;  %v8001_v19 = vsel %vm18973_vm11, %v18971_v22, 0.0  ;;  %vm18994_vm11 = vmmov %vm18949_vm1  ;;  %v19033_v63 = vld [vmem:[#allocation49_spill] sm:$0xff]  ;;  %v19075_v5 = vld [vmem:[#allocation50_spill] sm:$0xff] }
 0x600   : > { %v8032_v57 = vpack.c.bf16 %v18974_v2, %v8001_v19  ;;  %v19041_v19 = vld [vmem:[#allocation104_spill] sm:$0xff] }
 0x602   : > { %12602 = vmatmul.mubr.msk.bf16.gmra.mrb[40].mxu0 %vm18948_vm3, %v7706_v49  ;;  %vm18961_vm3 = vmmov %vm18949_vm1  ;;  %v13656_v49 = vld [vmem:[#allocation7 + $0x30] sm:$0xff]  }
 0x603   : > { %12605 = vmatprep.mubr.msk.bf16.mxu0 %vm18949_vm1, %v7707_v38  ;;  %v19005_v38 = vld [vmem:[#allocation68_spill] sm:$0xff] }
 0x60a   : > { %12606 = vmatmul.mubr.msk.bf16.gmra.mrb[44].mxu0 %vm18951_vm10, %v7708_v58  ;;  %vm18965_vm10 = vmmov %vm18949_vm1  ;;  %v19011_v58 = vld [vmem:[#allocation97_spill] sm:$0xff] }
 0x60b   : > { %12609 = vmatprep.mubr.msk.bf16.mxu0 %vm18952_vm15, %v7709_v30  ;;  %vm18967_vm15 = vnez %v18966_v61  ;;  %v19013_v30 = vld [vmem:[#allocation105_spill] sm:$0xff] }
 0x60c   : > { %v7700_v55 = vsel %vm18967_vm15, %v16728_v8, 0.0  ;;  %v18978_v8 = vld [vmem:[#allocation72_spill] sm:$0xff] }
 0x60d   : > { %v7716_v25 = vpack.c.bf16 %v7700_v55, %v16744_v42  ;;  %v18980_v42 = vld [vmem:[#allocation84_spill] sm:$0xff]  ;;  %v13657_v55 = vld [vmem:[#allocation7 + $0x38] sm:$0xff]  }
 0x612   : > { %12610 = vmatmul.mubr.msk.bf16.gmra.mrb[48].mxu0 %vm18957_vm9, %v7710_v33  ;;  %vm18975_vm9 = vmmov %vm18949_vm1  ;;  %v19023_v33 = vld [vmem:[#allocation38_spill] sm:$0xff] }
 0x613   : > { %12613 = vmatprep.mubr.msk.bf16.mxu0 %vm18958_vm13, %v7711_v17  ;;  %vm18977_vm13 = vmmov %vm18949_vm1  ;;  %v19025_v17 = vld [vmem:[#allocation70_spill] sm:$0xff] }
 0x61a   : > { %12614 = vmatmul.mubr.msk.bf16.gmra.mrb[52].mxu0 %vm18961_vm3, %v7712_v13  ;;  %vm18981_vm3 = vmmov %vm18949_vm1  ;;  %v8327_v13 = vld [vmem:[#allocation4 + $0x101] sm:$0xff] }
 0x61b   : > { %12617 = vmatprep.mubr.msk.bf16.mxu0 %vm18949_vm1, %v7713_v23  ;;  %v8328_v23 = vld [vmem:[#allocation4 + $0x109] sm:$0xff] }
 0x61c   : > { %v17192_v35 = vpack.c.bf16 %v8328_v23, %v8327_v13 }
 0x622   : > { %12618 = vmatmul.mubr.msk.bf16.gmra.mrb[56].mxu0 %vm18964_vm6, %v7714_v3  ;;  %vm18986_vm6 = vmmov %vm18949_vm1  ;;  %v8632_v3 = vsel %vm18885_vm12, %v17053_v4, 0.0 }
 0x623   : > { %12621 = vmatprep.mubr.msk.bf16.mxu0 %vm18965_vm10, %v7715_v50  ;;  %vm18988_vm10 = vmmov %vm18949_vm1  ;;  %v8660_v50 = vpack.c.bf16 %v8630_v52, %v17049_v14  ;;  %v9263_v52 = vld [vmem:[#allocation4 + $0x61] sm:$0xff] }
 0x624   : > { %vm19044_vm12 = vmmov %vm18949_vm1 }
 0x62a   : > { %12622 = vmatmul.mubr.msk.bf16.gmra.mrb[60].mxu0 %vm18968_vm5, %v7716_v25  ;;  %vm18990_vm5 = vmmov %vm18949_vm1  ;;  %v8661_v25 = vpack.c.bf16 %v8632_v3, %v17057_v47  ;;  %v9264_v3 = vld [vmem:[#allocation4 + $0x69] sm:$0xff] }
 0x62b   : > { %12627 = vmatprep.mubr.msk.bf16.mxu0 %vm18970_vm7, %v18969_v15  ;;  %vm18992_vm7 = vmmov %vm18949_vm1  ;;  %v19037_v15 = vld [vmem:[#allocation92_spill] sm:$0xff] }
 0x632   : > { %12628 = vmatmul.mubr.msk.bf16.vlgmr.msra.gmra.mrb[32].mxu0 %vm18975_vm9, %v8032_v57  ;;  %vm18996_vm9 = vmmov %vm18949_vm1  ;;  %v19045_v57 = vld [vmem:[#allocation120_spill] sm:$0xff] }
 0x633   : > { %12631 = vmatprep.mubr.msk.bf16.mxu0 %vm18977_vm13, %v18976_v36  ;;  %12660 = vmatpush3.bf16.msra.mxu0 %v13654_v54  ;;  %v18993_v54 = vld [vmem:[#allocation116_spill] sm:$0xff]  ;;  %vm18998_vm13 = vmmov %vm18949_vm1  ;;  %v19048_v36 = vld [vmem:[#allocation135_spill] sm:$0xff] }
 0x634   : > { %12693 = vmatprep.subr.bf16.mxu0 %v13655_v20 }
 0x63a   : > { %12632 = vmatmul.mubr.msk.bf16.gmra.mrb[36].mxu0 %vm18979_vm2, %v18978_v8  ;;  %vm19000_vm2 = vmmov %vm18949_vm1  ;;  %v19050_v8 = vld [vmem:[#allocation55_spill] sm:$0xff] }
 0x63b   : > { %12635 = vmatprep.mubr.msk.bf16.mxu0 %vm18981_vm3, %v18980_v42  ;;  %vm19003_vm3 = vmmov %vm18949_vm1  ;;  %v19052_v42 = vld [vmem:[#allocation66_spill] sm:$0xff] }
 0x642   : > { %12636 = vmatmul.mubr.msk.bf16.gmra.mrb[40].mxu0 %vm18949_vm1, %v18982_v60  ;;  %v19054_v60 = vld [vmem:[#allocation78_spill] sm:$0xff] }
 0x643   : > { %12639 = vmatprep.mubr.msk.bf16.mxu0 %vm18984_vm8, %v18983_v32  ;;  %vm19006_vm8 = vmmov %vm18949_vm1  ;;  %v19056_v32 = vld [vmem:[#allocation79_spill] sm:$0xff] }
 0x64a   : > { %12640 = vmatmul.mubr.msk.bf16.gmra.mrb[44].mxu0 %vm18986_vm6, %v18985_v7  ;;  %vm19008_vm6 = vmmov %vm18949_vm1  ;;  %v19058_v7 = vld [vmem:[#allocation90_spill] sm:$0xff] }
 0x64b   : > { %12643 = vmatprep.mubr.msk.bf16.mxu0 %vm18988_vm10, %v18987_v34  ;;  %vm19010_vm10 = vmmov %vm18949_vm1  ;;  %v8658_v34 = vsel %vm18967_vm15, %v16938_v51, 0.0  ;;  %v19067_v51 = vld [vmem:[#allocation117_spill] sm:$0xff] }
 0x652   : > { %12644 = vmatmul.mubr.msk.bf16.gmra.mrb[48].mxu0 %vm18990_vm5, %v18989_v12  ;;  %vm19012_vm5 = vmmov %vm18949_vm1  ;;  %v19060_v12 = vld [vmem:[#allocation11_spill] sm:$0xff] }
 0x653   : > { %12647 = vmatprep.mubr.msk.bf16.mxu0 %vm18992_vm7, %v18991_v48  ;;  %vm19014_vm7 = vmmov %vm18949_vm1 }
 0x65a   : > { %12648 = vmatmul.mubr.msk.bf16.gmra.mrb[52].mxu0 %vm18994_vm11, %v18993_v54  ;;  %vm19016_vm11 = vmmov %vm18949_vm1  ;;  %v8674_v54 = vpack.c.bf16 %v8658_v34, %v16952_v24  ;;  %v19071_v24 = vld [vmem:[#allocation127_spill] sm:$0xff] }
 0x65b   : > { %12651 = vmatprep.mubr.msk.bf16.mxu0 %vm18996_vm9, %v18995_v6  ;;  %vm19018_vm9 = vmmov %vm18949_vm1  ;;  %v9274_v34 = vld [vmem:[#allocation4 + $0xb9] sm:$0xff] }
 0x662   : > { %12652 = vmatmul.mubr.msk.bf16.gmra.mrb[56].mxu0 %vm18998_vm13, %v18997_v9  ;;  %vm19020_vm13 = vmmov %vm18949_vm1  ;;  %v13658_v9 = vld [vmem:[#allocation7 + $0x40] sm:$0xff]  }
 0x663   : > { %12655 = vmatprep.mubr.msk.bf16.mxu0 %vm19000_vm2, %v18999_v27  ;;  %vm19022_vm2 = vmmov %vm18949_vm1  ;;  %v19064_v27 = vld [vmem:[#allocation102_spill] sm:$0xff] }
 0x66a   : > { %12656 = vmatmul.mubr.msk.bf16.gmra.mrb[60].mxu0 %vm19003_vm3, %v8046_v43  ;;  %vm19024_vm3 = vmmov %vm18949_vm1  ;;  %v19079_v43 = vld [vmem:[#allocation119_spill] sm:$0xff] }
 0x66b   : > { %12661 = vmatprep.mubr.msk.bf16.mxu0 %vm18949_vm1, %v19004_v28  ;;  %v19081_v28 = vld [vmem:[#allocation122_spill] sm:$0xff] }
 0x672   : > { %12662 = vmatmul.mubr.msk.bf16.vlgmr.msra.gmra.mrb[32].mxu0 %vm19006_vm8, %v19005_v38  ;;  %vm19027_vm8 = vmmov %vm18949_vm1  ;;  %v19085_v38 = vld [vmem:[#allocation130_spill] sm:$0xff] }
 0x673   : > { %12665 = vmatprep.mubr.msk.bf16.mxu0 %vm19008_vm6, %v19007_v16  ;;  %12694 = vmatpush3.bf16.msra.mxu0 %v13655_v20  ;;  %vm19029_vm6 = vmmov %vm18949_vm1  ;;  %v19046_v20 = vld [vmem:[#allocation123_spill] sm:$0xff] }
 0x674   : > { %12727 = vmatprep.subr.bf16.mxu0 %v13656_v49  ;;  %v19087_v16 = vld [vmem:[#allocation131_spill] sm:$0xff] }
 0x67a   : > { %12666 = vmatmul.mubr.msk.bf16.gmra.mrb[36].mxu0 %vm19010_vm10, %v19009_v0  ;;  %vm19031_vm10 = vmmov %vm18949_vm1  ;;  %v8955_v0 = vld [vmem:[#allocation4 + $0x110] sm:$0xff] }
 0x67b   : > { %12669 = vmatprep.mubr.msk.bf16.mxu0 %vm19012_vm5, %v19011_v58  ;;  %vm19032_vm5 = vmmov %vm18949_vm1  ;;  %v19089_v58 = vld [vmem:[#allocation132_spill] sm:$0xff] }
 0x682   : > { %12670 = vmatmul.mubr.msk.bf16.gmra.mrb[40].mxu0 %vm19014_vm7, %v19013_v30  ;;  %vm19034_vm7 = vmmov %vm18949_vm1  ;;  %v8956_v30 = vld [vmem:[#allocation4 + $0x118] sm:$0xff] }
 0x683   : > { %12673 = vmatprep.mubr.msk.bf16.mxu0 %vm19016_vm11, %v19015_v37  ;;  %vm19035_vm11 = vmmov %vm18949_vm1  ;;  %v8987_v37 = vsel %vm18932_vm14, %v8955_v0, 0.0  ;;  %v9588_v0 = vsel %vm18939_vm0, %v17053_v4, 0.0  ;;  %v19120_v4 = vld [vmem:[#allocation144_spill] sm:$0xff] }
 0x684   : > { %vm19094_vm14 = vmmov %vm18949_vm1 }
 0x685   : > { %vm19119_vm0 = vmmov %vm18949_vm1 }
 0x68a   : > { %12674 = vmatmul.mubr.msk.bf16.gmra.mrb[44].mxu0 %vm19018_vm9, %v19017_v45  ;;  %vm19036_vm9 = vmmov %vm18949_vm1  ;;  %v9255_v45 = vld [vmem:[#allocation4 + $0x21] sm:$0xff] }
 0x68b   : > { %12677 = vmatprep.mubr.msk.bf16.mxu0 %vm19020_vm13, %v19019_v56  ;;  %vm19038_vm13 = vmmov %vm18949_vm1  ;;  %v9256_v56 = vld [vmem:[#allocation4 + $0x29] sm:$0xff] }
 0x692   : > { %12678 = vmatmul.mubr.msk.bf16.gmra.mrb[48].mxu0 %vm19022_vm2, %v19021_v21  ;;  %vm19040_vm2 = vmmov %vm18949_vm1  ;;  %v9004_v21 = vpack.c.bf16 %v8956_v30, %v8987_v37  ;;  %v19110_v30 = vld [vmem:[#allocation136_spill] sm:$0xff]  ;;  %v19125_v37 = vld [vmem:[#allocation62_spill] sm:$0xff] }
 0x693   : > { %12681 = vmatprep.mubr.msk.bf16.mxu0 %vm19024_vm3, %v19023_v33  ;;  %vm19042_vm3 = vmmov %vm18949_vm1  ;;  %v9287_v33 = vpack.c.bf16 %v9256_v56, %v9255_v45  ;;  %v9584_v45 = vld [vmem:[#allocation4 + $0x11a] sm:$0xff]  ;;  %v9583_v56 = vld [vmem:[#allocation4 + $0x112] sm:$0xff] }
 0x69a   : > { %12682 = vmatmul.mubr.msk.bf16.gmra.mrb[52].mxu0 %vm18949_vm1, %v19025_v17  ;;  %v9257_v17 = vld [vmem:[#allocation4 + $0x31] sm:$0xff] }
 0x69b   : > { %12685 = vmatprep.mubr.msk.bf16.mxu0 %vm19027_vm8, %v19026_v46  ;;  %vm19047_vm8 = vmmov %vm18949_vm1  ;;  %v9258_v46 = vld [vmem:[#allocation4 + $0x39] sm:$0xff] }
 0x69c   : > { %v9288_v13 = vpack.c.bf16 %v9258_v46, %v9257_v17 }
 0x6a2   : > { %12686 = vmatmul.mubr.msk.bf16.gmra.mrb[56].mxu0 %vm19029_vm6, %v19028_v18  ;;  %vm19049_vm6 = vmmov %vm18949_vm1  ;;  %v9259_v18 = vld [vmem:[#allocation4 + $0x41] sm:$0xff] }
 0x6a3   : > { %12689 = vmatprep.mubr.msk.bf16.mxu0 %vm19031_vm10, %v19030_v31  ;;  %vm19051_vm10 = vmmov %vm18949_vm1  ;;  %v9260_v31 = vld [vmem:[#allocation4 + $0x49] sm:$0xff] }
 0x6a4   : > { %v9289_v23 = vpack.c.bf16 %v9260_v31, %v9259_v18  ;;  %v19131_v18 = vld [vmem:[#allocation28_spill] sm:$0xff] }
 0x6a5   : > { %v19132_v31 = vunpack.c.l.bf16 %v19131_v18 }
 0x6aa   : > { %12690 = vmatmul.mubr.msk.bf16.gmra.mrb[60].mxu0 %vm19032_vm5, %v17192_v35  ;;  %vm19053_vm5 = vmmov %vm18949_vm1 }
 0x6ab   : > { %12695 = vmatprep.mubr.msk.bf16.mxu0 %vm19034_vm7, %v19033_v63  ;;  %vm19055_vm7 = vmmov %vm18949_vm1  ;;  %v9262_v63 = vld [vmem:[#allocation4 + $0x59] sm:$0xff] }
 0x6b2   : > { %12696 = vmatmul.mubr.msk.bf16.vlgmr.msra.gmra.mrb[32].mxu0 %vm19035_vm11, %v8660_v50  ;;  %vm19057_vm11 = vmmov %vm18949_vm1  ;;  %v9290_v50 = vpack.c.bf16 %v9262_v63, %v9261_v26  ;;  %v19133_v63 = vld [vmem:[#allocation25_spill] sm:$0xff] }
 0x6b3   : > { %12699 = vmatprep.mubr.msk.bf16.mxu0 %vm19036_vm9, %v8661_v25  ;;  %12728 = vmatpush3.bf16.msra.mxu0 %v13656_v49  ;;  %vm19059_vm9 = vmmov %vm18949_vm1  ;;  %v19083_v49 = vld [vmem:[#allocation129_spill] sm:$0xff]  ;;  %v9265_v25 = vld [vmem:[#allocation4 + $0x71] sm:$0xff] }
 0x6b4   : > { %12761 = vmatprep.subr.bf16.mxu0 %v13657_v55 }
 0x6ba   : > { %12700 = vmatmul.mubr.msk.bf16.gmra.mrb[36].mxu0 %vm19038_vm13, %v19037_v15  ;;  %vm19061_vm13 = vnez %v19060_v12  ;;  %v9266_v15 = vld [vmem:[#allocation4 + $0x79] sm:$0xff]  ;;  %v9275_v12 = vld [vmem:[#allocation4 + $0xc1] sm:$0xff] }
 0x6bb   : > { %12703 = vmatprep.mubr.msk.bf16.mxu0 %vm19040_vm2, %v19039_v41  ;;  %v8957_v48 = vsel %vm19061_vm13, %v18971_v22, 0.0  ;;  %vm19062_vm2 = vmmov %vm18949_vm1  ;;  %v19069_v22 = vld [vmem:[#allocation118_spill] sm:$0xff]  ;;  %v9267_v41 = vld [vmem:[#allocation4 + $0x81] sm:$0xff] }
 0x6bc   : > { %v8989_v6 = vpack.c.bf16 %v18974_v2, %v8957_v48  ;;  %v19073_v2 = vld [vmem:[#allocation138_spill] sm:$0xff]  ;;  %vm19082_vm13 = vmmov %vm18949_vm1 }
 0x6bd   : > { %v9276_v48 = vld [vmem:[#allocation4 + $0xc9] sm:$0xff] }
 0x6c2   : > { %12704 = vmatmul.mubr.msk.bf16.gmra.mrb[40].mxu0 %vm19042_vm3, %v19041_v19  ;;  %vm19063_vm3 = vmmov %vm18949_vm1  ;;  %v9268_v19 = vld [vmem:[#allocation4 + $0x89] sm:$0xff] }
 0x6c3   : > { %12707 = vmatprep.mubr.msk.bf16.mxu0 %vm19044_vm12, %v19043_v44  ;;  %vm19065_vm12 = vmmov %vm18949_vm1  ;;  %v9292_v44 = vpack.c.bf16 %v9266_v15, %v9265_v25  ;;  %v19135_v25 = vunpack.c.h.bf16 %v19131_v18 }
 0x6ca   : > { %12708 = vmatmul.mubr.msk.bf16.gmra.mrb[44].mxu0 %vm18949_vm1, %v19045_v57  ;;  %v9293_v57 = vpack.c.bf16 %v9268_v19, %v9267_v41  ;;  %v19136_v19 = vunpack.c.h.bf16 %v19133_v63 }
 0x6cb   : > { %12711 = vmatprep.mubr.msk.bf16.mxu0 %vm19047_vm8, %v19046_v20  ;;  %vm19068_vm8 = vmmov %vm18949_vm1  ;;  %v9269_v20 = vld [vmem:[#allocation4 + $0x91] sm:$0xff] }
 0x6d2   : > { %12712 = vmatmul.mubr.msk.bf16.gmra.mrb[48].mxu0 %vm19049_vm6, %v19048_v36  ;;  %vm19070_vm6 = vmmov %vm18949_vm1  ;;  %v9270_v36 = vld [vmem:[#allocation4 + $0x99] sm:$0xff] }
 0x6d3   : > { %12715 = vmatprep.mubr.msk.bf16.mxu0 %vm19051_vm10, %v19050_v8  ;;  %vm19072_vm10 = vmmov %vm18949_vm1  ;;  %v9271_v8 = vld [vmem:[#allocation4 + $0xa1] sm:$0xff] }
 0x6da   : > { %12716 = vmatmul.mubr.msk.bf16.gmra.mrb[52].mxu0 %vm19053_vm5, %v19052_v42  ;;  %vm19074_vm5 = vmmov %vm18949_vm1  ;;  %v9272_v42 = vld [vmem:[#allocation4 + $0xa9] sm:$0xff] }
 0x6db   : > { %12719 = vmatprep.mubr.msk.bf16.mxu0 %vm19055_vm7, %v19054_v60  ;;  %vm19076_vm7 = vmmov %vm18949_vm1  ;;  %v9294_v60 = vpack.c.bf16 %v9270_v36, %v9269_v20 }
 0x6e2   : > { %12720 = vmatmul.mubr.msk.bf16.gmra.mrb[56].mxu0 %vm19057_vm11, %v19056_v32  ;;  %vm19078_vm11 = vmmov %vm18949_vm1  ;;  %v9295_v32 = vpack.c.bf16 %v9272_v42, %v9271_v8 }
 0x6e3   : > { %12723 = vmatprep.mubr.msk.bf16.mxu0 %vm19059_vm9, %v19058_v7  ;;  %vm19080_vm9 = vmmov %vm18949_vm1  ;;  %v9273_v7 = vld [vmem:[#allocation4 + $0xb1] sm:$0xff] }
 0x6ea   : > { %12724 = vmatmul.mubr.msk.bf16.gmra.mrb[60].mxu0 %vm19062_vm2, %v8674_v54  ;;  %vm19084_vm2 = vmmov %vm18949_vm1  ;;  %v9296_v54 = vpack.c.bf16 %v9274_v34, %v9273_v7 }
 0x6eb   : > { %12729 = vmatprep.mubr.msk.bf16.mxu0 %vm19063_vm3, %v8989_v6  ;;  %vm19086_vm3 = vmmov %vm18949_vm1  ;;  %v9297_v6 = vpack.c.bf16 %v9276_v48, %v9275_v12 }
 0x6f2   : > { %12730 = vmatmul.mubr.msk.bf16.vlgmr.msra.gmra.mrb[32].mxu0 %vm19065_vm12, %v19064_v27  ;;  %vm19088_vm12 = vmmov %vm18949_vm1  ;;  %v9278_v27 = vld [vmem:[#allocation4 + $0xd9] sm:$0xff] }
 0x6f3   : > { %12733 = vmatprep.mubr.msk.bf16.mxu0 %vm18949_vm1, %v19066_v11  ;;  %12762 = vmatpush3.bf16.msra.mxu0 %v13657_v55  ;;  %v9291_v55 = vpack.c.bf16 %v9264_v3, %v9263_v52  ;;  %v9279_v11 = vld [vmem:[#allocation4 + $0xe1] sm:$0xff]  ;;  %v19134_v52 = vunpack.c.l.bf16 %v19133_v63 }
 0x6f4   : > { %12795 = vmatprep.subr.bf16.mxu0 %v13658_v9 }
 0x6fa   : > { %12734 = vmatmul.mubr.msk.bf16.gmra.mrb[36].mxu0 %vm19068_vm8, %v19067_v51  ;;  %vm19090_vm8 = vmmov %vm18949_vm1  ;;  %v9280_v51 = vld [vmem:[#allocation4 + $0xe9] sm:$0xff] }
 0x6fb   : > { %12737 = vmatprep.mubr.msk.bf16.mxu0 %vm19070_vm6, %v19069_v22  ;;  %vm19091_vm6 = vmmov %vm18949_vm1 }
 0x702   : > { %12738 = vmatmul.mubr.msk.bf16.gmra.mrb[40].mxu0 %vm19072_vm10, %v19071_v24  ;;  %vm19092_vm10 = vmmov %vm18949_vm1  ;;  %v9299_v24 = vpack.c.bf16 %v9280_v51, %v9279_v11 }
 0x703   : > { %12741 = vmatprep.mubr.msk.bf16.mxu0 %vm19074_vm5, %v19073_v2  ;;  %vm19093_vm5 = vmmov %vm18949_vm1  ;;  %v9281_v2 = vld [vmem:[#allocation4 + $0xf1] sm:$0xff] }
 0x70a   : > { %12742 = vmatmul.mubr.msk.bf16.gmra.mrb[44].mxu0 %vm19076_vm7, %v19075_v5  ;;  %vm19095_vm7 = vmmov %vm18949_vm1  ;;  %v9282_v5 = vld [vmem:[#allocation4 + $0xf9] sm:$0xff] }
 0x70b   : > { %12745 = vmatprep.mubr.msk.bf16.mxu0 %vm19078_vm11, %v19077_v62  ;;  %vm19096_vm11 = vmmov %vm18949_vm1  ;;  %v9300_v62 = vpack.c.bf16 %v9282_v5, %v9281_v2 }
 0x712   : > { %12746 = vmatmul.mubr.msk.bf16.gmra.mrb[48].mxu0 %vm19080_vm9, %v19079_v43  ;;  %vm19097_vm9 = vmmov %vm18949_vm1  ;;  %v9285_v43 = vld [vmem:[#allocation4 + $0x111] sm:$0xff] }
 0x713   : > { %12749 = vmatprep.mubr.msk.bf16.mxu0 %vm19082_vm13, %v19081_v28  ;;  %vm19098_vm13 = vmmov %vm18949_vm1  ;;  %v9286_v28 = vld [vmem:[#allocation4 + $0x119] sm:$0xff] }
 0x71a   : > { %12750 = vmatmul.mubr.msk.bf16.gmra.mrb[52].mxu0 %vm19084_vm2, %v19083_v49  ;;  %vm19099_vm2 = vmmov %vm18949_vm1  ;;  %v9302_v49 = vpack.c.bf16 %v9286_v28, %v9285_v43 }
 0x71b   : > { %12753 = vmatprep.mubr.msk.bf16.mxu0 %vm19086_vm3, %v19085_v38  ;;  %vm19100_vm3 = vmmov %vm18949_vm1  ;;  %v9586_v38 = vsel %vm18934_vm4, %v17040_v39, 0.0  ;;  %v19114_v39 = vld [vmem:[#allocation141_spill] sm:$0xff] }
 0x71c   : > { %vm19113_vm4 = vmmov %vm18949_vm1 }
 0x722   : > { %12754 = vmatmul.mubr.msk.bf16.gmra.mrb[56].mxu0 %vm19088_vm12, %v19087_v16  ;;  %vm19101_vm12 = vmmov %vm18949_vm1  ;;  %v9617_v16 = vpack.c.bf16 %v9586_v38, %v17049_v14  ;;  %v19116_v14 = vld [vmem:[#allocation142_spill] sm:$0xff] }
 0x723   : > { %12757 = vmatprep.mubr.msk.bf16.mxu0 %vm18949_vm1, %v19089_v58  ;;  %v9618_v58 = vpack.c.bf16 %v9588_v0, %v17057_v47  ;;  %v19122_v47 = vld [vmem:[#allocation145_spill] sm:$0xff] }
 0x72a   : > { %12758 = vmatmul.mubr.msk.bf16.gmra.mrb[60].mxu0 %vm19090_vm8, %v9004_v21  ;;  %vm19102_vm8 = vmmov %vm18949_vm1  ;;  %v9616_v21 = vsel %vm18967_vm15, %v9584_v45, 0.0 }
 0x72b   : > { %12763 = vmatprep.mubr.msk.bf16.mxu0 %vm19091_vm6, %v9287_v33  ;;  %vm19103_vm6 = vmmov %vm18949_vm1  ;;  %v9632_v33 = vpack.c.bf16 %v9616_v21, %v9583_v56  ;;  %v19143_v21 = vld [vmem:[#allocation43_spill] sm:$0xff] }
 0x732   : > { %12764 = vmatmul.mubr.msk.bf16.vlgmr.msra.gmra.mrb[32].mxu0 %vm19092_vm10, %v9288_v13  ;;  %vm19104_vm10 = vmmov %vm18949_vm1 }
 0x733   : > { %12767 = vmatprep.mubr.msk.bf16.mxu0 %vm19093_vm5, %v9289_v23  ;;  %12796 = vmatpush3.bf16.msra.mxu0 %v13658_v9  ;;  %v9277_v9 = vld [vmem:[#allocation4 + $0xd1] sm:$0xff]  ;;  %vm19105_vm5 = vmmov %vm18949_vm1 }
 0x734   : > { %v9298_v22 = vpack.c.bf16 %v9278_v27, %v9277_v9 }
 0x73a   : > { %12768 = vmatmul.mubr.msk.bf16.gmra.mrb[36].mxu0 %vm19094_vm14, %v9290_v50  ;;  %vm19106_vm14 = vmmov %vm18949_vm1 }
 0x73b   : > { %12771 = vmatprep.mubr.msk.bf16.mxu0 %vm19095_vm7, %v9291_v55  ;;  %vm19107_vm7 = vmmov %vm18949_vm1 }
 0x742   : > { %12772 = vmatmul.mubr.msk.bf16.gmra.mrb[40].mxu0 %vm19096_vm11, %v9292_v44  ;;  %vm19109_vm11 = vmmov %vm18949_vm1 }
 0x743   : > { %12775 = vmatprep.mubr.msk.bf16.mxu0 %vm19097_vm9, %v9293_v57  ;;  %vm19111_vm9 = vmmov %vm18949_vm1 }
 0x74a   : > { %12776 = vmatmul.mubr.msk.bf16.gmra.mrb[44].mxu0 %vm19098_vm13, %v9294_v60  ;;  %vm19115_vm13 = vmmov %vm18949_vm1 }
 0x74b   : > { %12779 = vmatprep.mubr.msk.bf16.mxu0 %vm19099_vm2, %v9295_v32  ;;  %vm19117_vm2 = vmmov %vm18949_vm1 }
 0x752   : > { %12780 = vmatmul.mubr.msk.bf16.gmra.mrb[48].mxu0 %vm19100_vm3, %v9296_v54  ;;  %vm19121_vm3 = vmmov %vm19119_vm0 }
 0x753   : > { %12783 = vmatprep.mubr.msk.bf16.mxu0 %vm19101_vm12, %v9297_v6  ;;  %vm19123_vm12 = vmmov %vm19119_vm0  ;;  %v19137_v6 = vld [vmem:[#allocation29_spill] sm:$0xff] }
 0x754   : > { %v19138_v9 = vunpack.c.l.bf16 %v19137_v6  ;;  %v19141_v28 = vunpack.c.h.bf16 %v19137_v6  ;;  %v19151_v6 = vld [vmem:[#allocation61_spill] sm:$0xff] }
 0x75a   : > { %12784 = vmatmul.mubr.msk.bf16.gmra.mrb[52].mxu0 %vm18949_vm1, %v9298_v22  ;;  %vm19124_vm1 = vmmov %vm19119_vm0 }
 0x75b   : > { %12787 = vmatprep.mubr.msk.bf16.mxu0 %vm19102_vm8, %v9299_v24  ;;  %vm19126_vm8 = vmmov %vm19119_vm0  ;;  %v19139_v24 = vld [vmem:[#allocation31_spill] sm:$0xff] }
 0x75c   : > { %v19140_v2 = vunpack.c.l.bf16 %v19139_v24 }
 0x762   : > { %12788 = vmatmul.mubr.msk.bf16.gmra.mrb[56].mxu0 %vm19103_vm6, %v9300_v62  ;;  %vm19127_vm6 = vmmov %vm19119_vm0 }
 0x763   : > { %12791 = vmatprep.mubr.msk.bf16.mxu0 %vm19104_vm10, %v17192_v35  ;;  %v19108_v35 = vld [vmem:[#allocation134_spill] sm:$0xff]  ;;  %vm19128_vm10 = vmmov %vm19119_vm0 }
 0x76a   : > { %12792 = vmatmul.mubr.msk.bf16.gmra.mrb[60].mxu0 %vm19105_vm5, %v9302_v49  ;;  %vm19129_vm5 = vmmov %vm19119_vm0 }
 0x76b   : > { %12797 = vmatprep.mubr.msk.bf16.mxu0 %vm19106_vm14, %v9617_v16  ;;  %vm19130_vm14 = vmmov %vm19119_vm0  ;;  %v19142_v16 = vunpack.c.h.bf16 %v19139_v24 }
 0x772   : > { %12798 = vmatmul.mubr.msk.bf16.vlgmr.msra.gmra.mrb[32].mxu0 %vm19107_vm7, %v9618_v58 }
 0x773   : > { %12801 = vmatprep.mubr.msk.bf16.mxu0 %vm19109_vm11, %v19108_v35 }
 0x77a   : > { %12802 = vmatmul.mubr.msk.bf16.gmra.mrb[36].mxu0 %vm19111_vm9, %v19110_v30 }
 0x77b   : > { %12805 = vmatprep.mubr.msk.bf16.mxu0 %vm19113_vm4, %v19112_v53 }
 0x782   : > { %12806 = vmatmul.mubr.msk.bf16.gmra.mrb[40].mxu0 %vm19115_vm13, %v19114_v39 }
 0x783   : > { %12809 = vmatprep.mubr.msk.bf16.mxu0 %vm19117_vm2, %v19116_v14 }
 0x78a   : > { %12810 = vmatmul.mubr.msk.bf16.gmra.mrb[44].mxu0 %vm19119_vm0, %v19118_v1 }
 0x78b   : > { %12813 = vmatprep.mubr.msk.bf16.mxu0 %vm19121_vm3, %v19120_v4 }
 0x792   : > { %12814 = vmatmul.mubr.msk.bf16.gmra.mrb[48].mxu0 %vm19123_vm12, %v19122_v47 }
 0x793   : > { %12817 = vmatprep.mubr.msk.bf16.mxu0 %vm19124_vm1, %v16967_v59  ;;  %v13661_v59 = vld [vmem:[%s17666_s7 + $0x4] ss:$8 sps:$4 sm:$0xff]  }
 0x794   : > { %10146 = vmatprep.mubr.bf16.mxu1 %v13661_v59 }
 0x79a   : > { %12818 = vmatmul.mubr.msk.bf16.gmra.mrb[52].mxu0 %vm19126_vm8, %v19125_v37 }
 0x79b   : > { %12821 = vmatprep.mubr.msk.bf16.mxu0 %vm19127_vm6, %v16980_v10  ;;  %v17335_v10 = vld [vmem:[%s17665_s6] ss:$0 sm:$0xff] }
 0x7a2   : > { %12822 = vmatmul.mubr.msk.bf16.gmra.mrb[56].mxu0 %vm19128_vm10, %v16983_v29 }
 0x7a3   : > { %12825 = vmatprep.mubr.msk.bf16.mxu0 %vm19129_vm5, %v16990_v40 }
 0x7aa   : > { %12826 = vmatmul.mubr.msk.bf16.gmra.mrb[60].mxu0 %vm19130_vm14, %v9632_v33  ;;  %v19144_v33 = vunpack.c.l.bf16 %v19143_v21 }
 0x845   : > { %v12799_v29 = vpop.f32.mrb[32].mxu0 }
 0x846   : > { %v9892_v40 = vadd.f32 %v12799_v29, %v17335_v10  ;;  %v9724_v17 = vpop.f32.mrb[33].mxu0 }
 0x847   : > { %v9890_v61 = vadd.f32 %v17335_v10, %v9724_v17  ;;  %v12800_v46 = vpop.f32.mrb[34].mxu0 }
 0x848   : > { %v9924_v13 = vadd.f32 %v9892_v40, %v19132_v31  ;;  %v9893_v23 = vadd.f32 %v12800_v46, %v17335_v10  ;;  %v9727_v26 = vpop.f32.mrb[35].mxu0 }
 0x849   : > { %v9922_v3 = vadd.f32 %v9890_v61, %v19134_v52  ;;  %v9891_v50 = vadd.f32 %v17335_v10, %v9727_v26  ;;  %v19145_v61 = vld [vmem:[#allocation52_spill] sm:$0xff] }
 0x84a   : > { %v9988_v55 = vmul.f32 0.01, %v9924_v13  ;;  %v9925_v15 = vadd.f32 %v9893_v23, %v19135_v25  ;;  %vm9956_vm15 = vcmp.gt.f32.partialorder %v9924_v13, 0.0  ;;  %v19146_v46 = vunpack.c.l.bf16 %v19145_v61 }
 0x84b   : > { %v9986_v41 = vmul.f32 0.01, %v9922_v3  ;;  %v9923_v44 = vadd.f32 %v9891_v50, %v19136_v19  ;;  %vm9954_vm7 = vcmp.gt.f32.partialorder %v9922_v3, 0.0  ;;  %v19147_v23 = vunpack.c.h.bf16 %v19143_v21 }
 0x84c   : > { %vm9957_vm11 = vcmp.gt.f32.partialorder %v9925_v15, 0.0  ;;  %v9989_v57 = vmul.f32 0.01, %v9925_v15  ;;  %v10020_v8 = vsel %vm9956_vm15, %v9924_v13, %v9988_v55  ;;  %v19148_v52 = vunpack.c.h.bf16 %v19145_v61 }
 0x84d   : > { %vm9955_vm9 = vcmp.gt.f32.partialorder %v9923_v44, 0.0  ;;  %v9987_v20 = vmul.f32 0.01, %v9923_v44  ;;  %v12803_v36 = vpop.f32.mrb[36].mxu0  ;;  %v10018_v7 = vsel %vm9954_vm7, %v9922_v3, %v9986_v41 }
 0x84e   : > { %v10021_v42 = vsel %vm9957_vm11, %v9925_v15, %v9989_v57  ;;  %v9896_v60 = vadd.f32 %v12803_v36, %v17335_v10  ;;  %v9740_v32 = vpop.f32.mrb[37].mxu0 }
 0x84f   : > { %v10019_v34 = vsel %vm9955_vm9, %v9923_v44, %v9987_v20  ;;  %v9894_v12 = vadd.f32 %v17335_v10, %v9740_v32  ;;  %v12804_v48 = vpop.f32.mrb[38].mxu0  ;;  %v17351_v54 = vpack.c.bf16 %v10021_v42, %v10020_v8 }
 0x850   : > { %v9928_v27 = vadd.f32 %v9896_v60, %v19138_v9  ;;  %v9897_v11 = vadd.f32 %v12804_v48, %v17335_v10  ;;  %v9743_v51 = vpop.f32.mrb[39].mxu0  ;;  %v17356_v22 = vpack.c.bf16 %v10019_v34, %v10018_v7  ;;  %v19149_v60 = vld [vmem:[#allocation59_spill] sm:$0xff]  ;;  %v19152_v9 = vunpack.c.l.bf16 %v19151_v6 }
 0x851   : > { %v9926_v5 = vadd.f32 %v9894_v12, %v19140_v2  ;;  %v9895_v62 = vadd.f32 %v17335_v10, %v9743_v51  ;;  %v19150_v32 = vunpack.c.l.bf16 %v19149_v60  ;;  %v19153_v24 = vunpack.c.h.bf16 %v19149_v60 }
 0x852   : > { %v9992_v43 = vmul.f32 0.01, %v9928_v27  ;;  %v9929_v49 = vadd.f32 %v9897_v11, %v19141_v28  ;;  %vm9960_vm4 = vcmp.gt.f32.partialorder %v9928_v27, 0.0 }
 0x853   : > { %v9990_v38 = vmul.f32 0.01, %v9926_v5  ;;  %v9927_v0 = vadd.f32 %v9895_v62, %v19142_v16  ;;  %vm9958_vm13 = vcmp.gt.f32.partialorder %v9926_v5, 0.0  ;;  %v19154_v62 = vunpack.c.h.bf16 %v19151_v6 }
 0x854   : > { %vm9961_vm2 = vcmp.gt.f32.partialorder %v9929_v49, 0.0  ;;  %v9993_v58 = vmul.f32 0.01, %v9929_v49  ;;  %v10024_v53 = vsel %vm9960_vm4, %v9928_v27, %v9992_v43 }
 0x855   : > { %vm9959_vm0 = vcmp.gt.f32.partialorder %v9927_v0, 0.0  ;;  %v9991_v35 = vmul.f32 0.01, %v9927_v0  ;;  %v12807_v30 = vpop.f32.mrb[40].mxu0  ;;  %v10022_v4 = vsel %vm9958_vm13, %v9926_v5, %v9990_v38 }
 0x856   : > { %v10025_v39 = vsel %vm9961_vm2, %v9929_v49, %v9993_v58  ;;  %v9900_v14 = vadd.f32 %v12807_v30, %v17335_v10  ;;  %v9756_v1 = vpop.f32.mrb[41].mxu0 }
 0x857   : > { %v10023_v47 = vsel %vm9959_vm0, %v9927_v0, %v9991_v35  ;;  %v9898_v37 = vadd.f32 %v17335_v10, %v9756_v1  ;;  %v12808_v45 = vpop.f32.mrb[42].mxu0  ;;  %v17367_v56 = vpack.c.bf16 %v10025_v39, %v10024_v53 }
 0x858   : > { %v9932_v59 = vadd.f32 %v9900_v14, %v19144_v33  ;;  %v9901_v29 = vadd.f32 %v12808_v45, %v17335_v10  ;;  %v9759_v40 = vpop.f32.mrb[43].mxu0  ;;  %v17372_v17 = vpack.c.bf16 %v10023_v47, %v10022_v4  ;;  %v19155_v4 = vld [vmem:[#allocation71_spill] sm:$0xff] }
 0x859   : > { %v9930_v18 = vadd.f32 %v9898_v37, %v19146_v46  ;;  %v9899_v31 = vadd.f32 %v17335_v10, %v9759_v40  ;;  %v19156_v47 = vunpack.c.l.bf16 %v19155_v4 }
 0x85a   : > { %v9996_v13 = vmul.f32 0.01, %v9932_v59  ;;  %v9933_v26 = vadd.f32 %v9901_v29, %v19147_v23  ;;  %vm9964_vm3 = vcmp.gt.f32.partialorder %v9932_v59, 0.0 }
 0x85b   : > { %v9994_v63 = vmul.f32 0.01, %v9930_v18  ;;  %v9931_v3 = vadd.f32 %v9899_v31, %v19148_v52  ;;  %vm9962_vm12 = vcmp.gt.f32.partialorder %v9930_v18, 0.0 }
 0x85c   : > { %vm9965_vm1 = vcmp.gt.f32.partialorder %v9933_v26, 0.0  ;;  %v9997_v50 = vmul.f32 0.01, %v9933_v26  ;;  %v10028_v15 = vsel %vm9964_vm3, %v9932_v59, %v9996_v13  ;;  %v19157_v59 = vld [vmem:[#allocation73_spill] sm:$0xff] }
 0x85d   : > { %vm9963_vm8 = vcmp.gt.f32.partialorder %v9931_v3, 0.0  ;;  %v9995_v55 = vmul.f32 0.01, %v9931_v3  ;;  %v12811_v25 = vpop.f32.mrb[44].mxu0  ;;  %v10026_v57 = vsel %vm9962_vm12, %v9930_v18, %v9994_v63  ;;  %v19158_v29 = vunpack.c.l.bf16 %v19157_v59 }
 0x85e   : > { %v10029_v41 = vsel %vm9965_vm1, %v9933_v26, %v9997_v50  ;;  %v9904_v19 = vadd.f32 %v12811_v25, %v17335_v10  ;;  %v9772_v44 = vpop.f32.mrb[45].mxu0  ;;  %v19159_v18 = vunpack.c.h.bf16 %v19155_v4  ;;  %v19160_v23 = vunpack.c.h.bf16 %v19157_v59  ;;  %v19167_v4 = vld [vmem:[#allocation96_spill] sm:$0xff] }
 0x85f   : > { %v10027_v20 = vsel %vm9963_vm8, %v9931_v3, %v9995_v55  ;;  %v9902_v36 = vadd.f32 %v17335_v10, %v9772_v44  ;;  %v12812_v8 = vpop.f32.mrb[46].mxu0  ;;  %v17383_v42 = vpack.c.bf16 %v10029_v41, %v10028_v15 }
 0x860   : > { %v9936_v7 = vadd.f32 %v9904_v19, %v19150_v32  ;;  %v9905_v34 = vadd.f32 %v12812_v8, %v17335_v10  ;;  %v9775_v12 = vpop.f32.mrb[47].mxu0  ;;  %v17388_v48 = vpack.c.bf16 %v10027_v20, %v10026_v57 }
 0x861   : > { %v9934_v27 = vadd.f32 %v9902_v36, %v19152_v9  ;;  %v9903_v11 = vadd.f32 %v17335_v10, %v9775_v12  ;;  %v19161_v36 = vld [vmem:[#allocation85_spill] sm:$0xff]  ;;  %v19163_v12 = vld [vmem:[#allocation18_spill] sm:$0xff] }
 0x862   : > { %v10000_v51 = vmul.f32 0.01, %v9936_v7  ;;  %v9937_v2 = vadd.f32 %v9905_v34, %v19153_v24  ;;  %vm9968_vm6 = vcmp.gt.f32.partialorder %v9936_v7, 0.0  ;;  %v19162_v8 = vunpack.c.l.bf16 %v19161_v36 }
 0x863   : > { %v9998_v5 = vmul.f32 0.01, %v9934_v27  ;;  %v9935_v43 = vadd.f32 %v9903_v11, %v19154_v62  ;;  %vm9966_vm10 = vcmp.gt.f32.partialorder %v9934_v27, 0.0  ;;  %v19164_v6 = vunpack.c.l.bf16 %v19163_v12 }
 0x864   : > { %vm9969_vm5 = vcmp.gt.f32.partialorder %v9937_v2, 0.0  ;;  %v10001_v28 = vmul.f32 0.01, %v9937_v2  ;;  %v10032_v16 = vsel %vm9968_vm6, %v9936_v7, %v10000_v51  ;;  %v19165_v51 = vunpack.c.h.bf16 %v19161_v36 }
 0x865   : > { %vm9967_vm14 = vcmp.gt.f32.partialorder %v9935_v43, 0.0  ;;  %v9999_v49 = vmul.f32 0.01, %v9935_v43  ;;  %v12815_v38 = vpop.f32.mrb[48].mxu0  ;;  %v10030_v30 = vsel %vm9966_vm10, %v9934_v27, %v9998_v5  ;;  %v19166_v5 = vunpack.c.h.bf16 %v19163_v12 }
 0x866   : > { %v10033_v0 = vsel %vm9969_vm5, %v9937_v2, %v10001_v28  ;;  %v9908_v58 = vadd.f32 %v12815_v38, %v17335_v10  ;;  %v9788_v35 = vpop.f32.mrb[49].mxu0 }
 0x867   : > { %v10031_v53 = vsel %vm9967_vm14, %v9935_v43, %v9999_v49  ;;  %v9906_v39 = vadd.f32 %v17335_v10, %v9788_v35  ;;  %v12816_v14 = vpop.f32.mrb[50].mxu0  ;;  %v17399_v1 = vpack.c.bf16 %v10033_v0, %v10032_v16 }
 0x868   : > { %v9940_v37 = vadd.f32 %v9908_v58, %v19156_v47  ;;  %v9909_v45 = vadd.f32 %v12816_v14, %v17335_v10  ;;  %v9791_v21 = vpop.f32.mrb[51].mxu0  ;;  %v17404_v33 = vpack.c.bf16 %v10031_v53, %v10030_v30  ;;  %v19168_v47 = vunpack.c.l.bf16 %v19167_v4 }
 0x869   : > { %v9938_v40 = vadd.f32 %v9906_v39, %v19158_v29  ;;  %v9907_v61 = vadd.f32 %v17335_v10, %v9791_v21  ;;  %v19169_v29 = vld [vmem:[#allocation19_spill] sm:$0xff] }
 0x86a   : > { %v10004_v46 = vmul.f32 0.01, %v9940_v37  ;;  %v9941_v31 = vadd.f32 %v9909_v45, %v19159_v18  ;;  %vm9972_vm15 = vcmp.gt.f32.partialorder %v9940_v37, 0.0 }
 0x86b   : > { %v10002_v13 = vmul.f32 0.01, %v9938_v40  ;;  %v9939_v26 = vadd.f32 %v9907_v61, %v19160_v23  ;;  %vm9970_vm7 = vcmp.gt.f32.partialorder %v9938_v40, 0.0 }
 0x86c   : > { %vm9973_vm11 = vcmp.gt.f32.partialorder %v9941_v31, 0.0  ;;  %v10005_v63 = vmul.f32 0.01, %v9941_v31  ;;  %v10036_v50 = vsel %vm9972_vm15, %v9940_v37, %v10004_v46  ;;  %vm10577_vm15 = vcmask 125952  }
 0x86d   : > { %vm9971_vm9 = vcmp.gt.f32.partialorder %v9939_v26, 0.0  ;;  %v10003_v52 = vmul.f32 0.01, %v9939_v26  ;;  %v12819_v3 = vpop.f32.mrb[52].mxu0  ;;  %v10034_v41 = vsel %vm9970_vm7, %v9938_v40, %v10002_v13  ;;  %v19170_v40 = vunpack.c.l.bf16 %v19169_v29 }
 0x86e   : > { %v10037_v55 = vsel %vm9973_vm11, %v9941_v31, %v10005_v63  ;;  %v9912_v25 = vadd.f32 %v12819_v3, %v17335_v10  ;;  %v9804_v15 = vpop.f32.mrb[53].mxu0  ;;  %v19171_v31 = vunpack.c.h.bf16 %v19167_v4  ;;  %v13662_v4 = vld [vmem:[%s17666_s7 + $0x14] ss:$8 sps:$4 sm:$0xff]  }
 0x86f   : > { %v10035_v19 = vsel %vm9971_vm9, %v9939_v26, %v10003_v52  ;;  %v9910_v44 = vadd.f32 %v17335_v10, %v9804_v15  ;;  %v12820_v57 = vpop.f32.mrb[54].mxu0  ;;  %v17415_v20 = vpack.c.bf16 %v10037_v55, %v10036_v50  ;;  %v19172_v26 = vunpack.c.h.bf16 %v19169_v29  ;;  %v13670_v29 = vld [vmem:[%s17666_s7 + $0x30] ss:$8 sps:$4 sm:$0xff]  }
 0x870   : > { %v9944_v60 = vadd.f32 %v9912_v25, %v19162_v8  ;;  %v9913_v32 = vadd.f32 %v12820_v57, %v17335_v10  ;;  %v9807_v7 = vpop.f32.mrb[55].mxu0  ;;  %v17420_v34 = vpack.c.bf16 %v10035_v19, %v10034_v41 }
 0x871   : > { %v9942_v9 = vadd.f32 %v9910_v44, %v19164_v6  ;;  %v9911_v27 = vadd.f32 %v17335_v10, %v9807_v7 }
 0x872   : > { %v10008_v11 = vmul.f32 0.01, %v9944_v60  ;;  %v9945_v24 = vadd.f32 %v9913_v32, %v19165_v51  ;;  %11751 = vmatprep.subr.bf16.mxu1 %v17420_v34  ;;  %vm9976_vm4 = vcmp.gt.f32.partialorder %v9944_v60, 0.0 }
 0x873   : > { %v10006_v2 = vmul.f32 0.01, %v9942_v9  ;;  %v9943_v62 = vadd.f32 %v9911_v27, %v19166_v5  ;;  %11752 = vmatpush3.bf16.msra.mxu1 %v17356_v22  ;;  %vm9974_vm13 = vcmp.gt.f32.partialorder %v9942_v9, 0.0  ;;  %v19175_v27 = vld [vmem:[#allocation113_spill] sm:$0xff] }
 0x874   : > { %vm9977_vm2 = vcmp.gt.f32.partialorder %v9945_v24, 0.0  ;;  %v10009_v43 = vmul.f32 0.01, %v9945_v24  ;;  %11753 = vmatprep.subr.bf16.mxu1 %v17415_v20  ;;  %v10040_v38 = vsel %vm9976_vm4, %v9944_v60, %v10008_v11  ;;  %v19173_v60 = vld [vmem:[#allocation111_spill] sm:$0xff]  ;;  %v19176_v11 = vunpack.c.l.bf16 %v19175_v27 }
 0x875   : > { %vm9975_vm0 = vcmp.gt.f32.partialorder %v9943_v62, 0.0  ;;  %v10007_v28 = vmul.f32 0.01, %v9943_v62  ;;  %v12823_v49 = vpop.f32.mrb[56].mxu0  ;;  %v10038_v35 = vsel %vm9974_vm13, %v9942_v9, %v10006_v2  ;;  %v19174_v32 = vunpack.c.l.bf16 %v19173_v60 }
 0x876   : > { %v10041_v16 = vsel %vm9977_vm2, %v9945_v24, %v10009_v43  ;;  %v9916_v0 = vadd.f32 %v12823_v49, %v17335_v10  ;;  %v9820_v58 = vpop.f32.mrb[57].mxu0  ;;  %v19177_v5 = vunpack.c.h.bf16 %v19173_v60 }
 0x877   : > { %v10039_v30 = vsel %vm9975_vm0, %v9943_v62, %v10007_v28  ;;  %v9914_v53 = vadd.f32 %v17335_v10, %v9820_v58  ;;  %v12824_v39 = vpop.f32.mrb[58].mxu0  ;;  %11754 = vmatpush3.bf16.msra.mxu1 %v17351_v54  ;;  %v17435_v14 = vpack.c.bf16 %v10041_v16, %v10040_v38  ;;  %v19178_v28 = vunpack.c.h.bf16 %v19175_v27 }
 0x878   : > { %v9948_v37 = vadd.f32 %v9916_v0, %v19168_v47  ;;  %v9917_v45 = vadd.f32 %v12824_v39, %v17335_v10  ;;  %v9823_v21 = vpop.f32.mrb[59].mxu0  ;;  %v17440_v59 = vpack.c.bf16 %v10039_v30, %v10038_v35  ;;  %v13659_v39 = vld [vmem:[%s17666_s7] ss:$8 sps:$4 sm:$0xff]   ;;  %v13664_v47 = vld [vmem:[%s17666_s7 + $0x10] ss:$8 sps:$4 sm:$0xff]  }
 0x879   : > { %v9946_v61 = vadd.f32 %v9914_v53, %v19170_v40  ;;  %v9915_v46 = vadd.f32 %v17335_v10, %v9823_v21  ;;  %v13668_v21 = vld [vmem:[%s17666_s7 + $0x34] ss:$8 sps:$4 sm:$0xff]   ;;  %v13673_v40 = vld [vmem:[%s17666_s7 + $0x44] ss:$8 sps:$4 sm:$0xff]  }
 0x87a   : > { %v10012_v18 = vmul.f32 0.01, %v9948_v37  ;;  %v9949_v13 = vadd.f32 %v9917_v45, %v19171_v31  ;;  %11755 = vmatprep.subr.bf16.mxu1 %v17440_v59  ;;  %vm9980_vm3 = vcmp.gt.f32.partialorder %v9948_v37, 0.0  ;;  %v13667_v45 = vld [vmem:[%s17666_s7 + $0x20] ss:$8 sps:$4 sm:$0xff]  }
 0x87b   : > { %v10010_v23 = vmul.f32 0.01, %v9946_v61  ;;  %v9947_v63 = vadd.f32 %v9915_v46, %v19172_v26  ;;  %11756 = vmatpush3.bf16.msra.mxu1 %v17372_v17  ;;  %vm9978_vm12 = vcmp.gt.f32.partialorder %v9946_v61, 0.0  ;;  %v13674_v46 = vld [vmem:[%s17666_s7 + $0x54] ss:$8 sps:$4 sm:$0xff]  }
 0x87c   : > { %vm9981_vm1 = vcmp.gt.f32.partialorder %v9949_v13, 0.0  ;;  %v10013_v52 = vmul.f32 0.01, %v9949_v13  ;;  %11757 = vmatprep.subr.bf16.mxu1 %v17435_v14  ;;  %v10044_v55 = vsel %vm9980_vm3, %v9948_v37, %v10012_v18  ;;  %v13665_v37 = vld [vmem:[%s17666_s7 + $0x24] ss:$8 sps:$4 sm:$0xff]  }
 0x87d   : > { %vm9979_vm8 = vcmp.gt.f32.partialorder %v9947_v63, 0.0  ;;  %v10011_v3 = vmul.f32 0.01, %v9947_v63  ;;  %v12827_v50 = vpop.f32.mrb[60].mxu0  ;;  %v10042_v19 = vsel %vm9978_vm12, %v9946_v61, %v10010_v23  ;;  %v13671_v61 = vld [vmem:[%s17666_s7 + $0x40] ss:$8 sps:$4 sm:$0xff]  }
 0x87e   : > { %v10045_v25 = vsel %vm9981_vm1, %v9949_v13, %v10013_v52  ;;  %v9920_v15 = vadd.f32 %v12827_v50, %v17335_v10  ;;  %v9836_v41 = vpop.f32.mrb[61].mxu0  ;;  %v13676_v18 = vld [vmem:[%s17666_s7 + $0x50] ss:$8 sps:$4 sm:$0xff]   ;;  %v13677_v31 = vld [vmem:[%s17666_s7 + $0x64] ss:$8 sps:$4 sm:$0xff]  }
 0x87f   : > { %v10043_v44 = vsel %vm9979_vm8, %v9947_v63, %v10011_v3  ;;  %v9918_v57 = vadd.f32 %v17335_v10, %v9836_v41  ;;  %v12828_v36 = vpop.f32.mrb[62].mxu0  ;;  %11758 = vmatpush3.bf16.msra.mxu1 %v17367_v56  ;;  %v17455_v8 = vpack.c.bf16 %v10045_v25, %v10044_v55  ;;  %v13679_v13 = vld [vmem:[%s17666_s7 + $0x60] ss:$8 sps:$4 sm:$0xff]   ;;  %v13680_v23 = vld [vmem:[%s17666_s7 + $0x74] ss:$8 sps:$4 sm:$0xff]  }
 0x880   : > { %v9952_v7 = vadd.f32 %v9920_v15, %v19174_v32  ;;  %v9921_v12 = vadd.f32 %v12828_v36, %v17335_v10  ;;  %v9839_v6 = vpop.f32.mrb[63].mxu0  ;;  %v17460_v9 = vpack.c.bf16 %v10043_v44, %v10042_v19  ;;  %v13682_v26 = vld [vmem:[%s17666_s7 + $0x70] ss:$8 sps:$4 sm:$0xff]   ;;  %v13685_v63 = vld [vmem:[%s17666_s7 + $0x84] ss:$8 sps:$4 sm:$0xff]  }
 0x881   : > { %v9950_v51 = vadd.f32 %v9918_v57, %v19176_v11  ;;  %v9919_v24 = vadd.f32 %v17335_v10, %v9839_v6  ;;  %v13683_v52 = vld [vmem:[%s17666_s7 + $0x80] ss:$8 sps:$4 sm:$0xff]   ;;  %v13686_v3 = vld [vmem:[%s17666_s7 + $0x94] ss:$8 sps:$4 sm:$0xff]   ;;  %v13688_v50 = vld [vmem:[%s17666_s7 + $0x90] ss:$8 sps:$4 sm:$0xff]  }
 0x882   : > { %v10016_v2 = vmul.f32 0.01, %v9952_v7  ;;  %v9953_v62 = vadd.f32 %v9921_v12, %v19177_v5  ;;  %11759 = vmatprep.subr.bf16.mxu1 %v17460_v9  ;;  %vm9984_vm6 = vcmp.gt.f32.partialorder %v9952_v7, 0.0  ;;  %v13689_v55 = vld [vmem:[%s17666_s7 + $0xa4] ss:$8 sps:$4 sm:$0xff]  }
 0x883   : > { %v10014_v43 = vmul.f32 0.01, %v9950_v51  ;;  %v9951_v49 = vadd.f32 %v9919_v24, %v19178_v28  ;;  %11760 = vmatpush3.bf16.msra.mxu1 %v17388_v48  ;;  %vm9982_vm10 = vcmp.gt.f32.partialorder %v9950_v51, 0.0 }
 0x884   : > { %vm9985_vm5 = vcmp.gt.f32.partialorder %v9953_v62, 0.0  ;;  %v10017_v38 = vmul.f32 0.01, %v9953_v62  ;;  %11761 = vmatprep.subr.bf16.mxu1 %v17455_v8  ;;  %v10048_v16 = vsel %vm9984_vm6, %v9952_v7, %v10016_v2 }
 0x885   : > { %vm9983_vm14 = vcmp.gt.f32.partialorder %v9951_v49, 0.0  ;;  %v10015_v10 = vmul.f32 0.01, %v9951_v49  ;;  %v10046_v58 = vsel %vm9982_vm10, %v9950_v51, %v10014_v43 }
 0x886   : > { %v10049_v0 = vsel %vm9985_vm5, %v9953_v62, %v10017_v38 }
 0x887   : > { %v10047_v35 = vsel %vm9983_vm14, %v9951_v49, %v10015_v10  ;;  %11762 = vmatpush3.bf16.msra.mxu1 %v17383_v42  ;;  %v17473_v30 = vpack.c.bf16 %v10049_v0, %v10048_v16 }
 0x888   : > { %v17475_v53 = vpack.c.bf16 %v10047_v35, %v10046_v58 }
 0x88a   : > { %11763 = vmatprep.subr.bf16.mxu1 %v17475_v53 }
 0x88b   : > { %11764 = vmatpush3.bf16.msra.mxu1 %v17404_v33 }
 0x88c   : > { %11765 = vmatprep.subr.bf16.mxu1 %v17473_v30 }
 0x88f   : > { %11766 = vmatpush3.bf16.msra.mxu1 %v17399_v1 }
 0x890   : > { %11791 = vmatprep.subr.bf16.mxu1 %v17420_v34 }
 0x892   : > { %10147 = vmatmul.mubr.bf16.vlgmr.msra.gmra.mrb[64].mxu1 %v13659_v39 }
 0x893   : > { %11792 = vmatpush3.bf16.msra.mxu1 %v17356_v22  ;;  %10154 = vmatprep.mubr.bf16.mxu1 %v13662_v4 }
 0x894   : > { %11793 = vmatprep.subr.bf16.mxu1 %v17415_v20 }
 0x897   : > { %11794 = vmatpush3.bf16.msra.mxu1 %v17351_v54 }
 0x898   : > { %11795 = vmatprep.subr.bf16.mxu1 %v17440_v59 }
 0x89a   : > { %10155 = vmatmul.mubr.bf16.gmra.mrb[68].mxu1 %v13664_v47 }
 0x89b   : > { %11796 = vmatpush3.bf16.msra.mxu1 %v17372_v17  ;;  %10162 = vmatprep.mubr.bf16.mxu1 %v13665_v37 }
 0x89c   : > { %11797 = vmatprep.subr.bf16.mxu1 %v17435_v14 }
 0x89f   : > { %11798 = vmatpush3.bf16.msra.mxu1 %v17367_v56 }
 0x8a0   : > { %11799 = vmatprep.subr.bf16.mxu1 %v17460_v9 }
 0x8a2   : > { %10163 = vmatmul.mubr.bf16.gmra.mrb[72].mxu1 %v13667_v45 }
 0x8a3   : > { %11800 = vmatpush3.bf16.msra.mxu1 %v17388_v48  ;;  %10170 = vmatprep.mubr.bf16.mxu1 %v13668_v21 }
 0x8a4   : > { %11801 = vmatprep.subr.bf16.mxu1 %v17455_v8 }
 0x8a7   : > { %11802 = vmatpush3.bf16.msra.mxu1 %v17383_v42 }
 0x8a8   : > { %11803 = vmatprep.subr.bf16.mxu1 %v17475_v53 }
 0x8aa   : > { %10171 = vmatmul.mubr.bf16.gmra.mrb[76].mxu1 %v13670_v29 }
 0x8ab   : > { %11804 = vmatpush3.bf16.msra.mxu1 %v17404_v33  ;;  %10260 = vmatprep.mubr.bf16.mxu1 %v13673_v40 }
 0x8ac   : > { %11805 = vmatprep.subr.bf16.mxu1 %v17473_v30 }
 0x8af   : > { %11806 = vmatpush3.bf16.msra.mxu1 %v17399_v1 }
 0x8b0   : > { %11831 = vmatprep.subr.bf16.mxu1 %v17420_v34 }
 0x8b2   : > { %10261 = vmatmul.mubr.bf16.vlgmr.msra.gmra.mrb[80].mxu1 %v13671_v61 }
 0x8b3   : > { %11832 = vmatpush3.bf16.msra.mxu1 %v17356_v22  ;;  %10268 = vmatprep.mubr.bf16.mxu1 %v13674_v46 }
 0x8b4   : > { %11833 = vmatprep.subr.bf16.mxu1 %v17415_v20 }
 0x8b7   : > { %11834 = vmatpush3.bf16.msra.mxu1 %v17351_v54 }
 0x8b8   : > { %11835 = vmatprep.subr.bf16.mxu1 %v17440_v59 }
 0x8ba   : > { %10269 = vmatmul.mubr.bf16.gmra.mrb[84].mxu1 %v13676_v18 }
 0x8bb   : > { %11836 = vmatpush3.bf16.msra.mxu1 %v17372_v17  ;;  %10276 = vmatprep.mubr.bf16.mxu1 %v13677_v31 }
 0x8bc   : > { %11837 = vmatprep.subr.bf16.mxu1 %v17435_v14 }
 0x8bf   : > { %11838 = vmatpush3.bf16.msra.mxu1 %v17367_v56 }
 0x8c0   : > { %11839 = vmatprep.subr.bf16.mxu1 %v17460_v9 }
 0x8c2   : > { %10277 = vmatmul.mubr.bf16.gmra.mrb[88].mxu1 %v13679_v13 }
 0x8c3   : > { %11840 = vmatpush3.bf16.msra.mxu1 %v17388_v48  ;;  %10284 = vmatprep.mubr.bf16.mxu1 %v13680_v23 }
 0x8c4   : > { %11841 = vmatprep.subr.bf16.mxu1 %v17455_v8 }
 0x8c7   : > { %11842 = vmatpush3.bf16.msra.mxu1 %v17383_v42 }
 0x8c8   : > { %11843 = vmatprep.subr.bf16.mxu1 %v17475_v53 }
 0x8ca   : > { %10285 = vmatmul.mubr.bf16.gmra.mrb[92].mxu1 %v13682_v26 }
 0x8cb   : > { %11844 = vmatpush3.bf16.msra.mxu1 %v17404_v33  ;;  %10382 = vmatprep.mubr.bf16.mxu1 %v13685_v63 }
 0x8cc   : > { %11845 = vmatprep.subr.bf16.mxu1 %v17473_v30 }
 0x8cf   : > { %11846 = vmatpush3.bf16.msra.mxu1 %v17399_v1 }
 0x8d0   : > { %11871 = vmatprep.subr.bf16.mxu1 %v17420_v34  ;;  %v13704_v34 = vld [vmem:[%s17666_s7 + $0xf4] ss:$8 sps:$4 sm:$0xff]  }
 0x8d2   : > { %10383 = vmatmul.mubr.bf16.vlgmr.msra.gmra.mrb[96].mxu1 %v13683_v52 }
 0x8d3   : > { %11872 = vmatpush3.bf16.msra.mxu1 %v17356_v22  ;;  %10390 = vmatprep.mubr.bf16.mxu1 %v13686_v3  ;;  %v13691_v22 = vld [vmem:[%s17666_s7 + $0xa0] ss:$8 sps:$4 sm:$0xff]  }
 0x8d4   : > { %11873 = vmatprep.subr.bf16.mxu1 %v17415_v20  ;;  %v13700_v20 = vld [vmem:[%s17666_s7 + $0xd0] ss:$8 sps:$4 sm:$0xff]  }
 0x8d7   : > { %11874 = vmatpush3.bf16.msra.mxu1 %v17351_v54  ;;  %v13692_v54 = vld [vmem:[%s17666_s7 + $0xb4] ss:$8 sps:$4 sm:$0xff]  }
 0x8d8   : > { %11875 = vmatprep.subr.bf16.mxu1 %v17440_v59 }
 0x8da   : > { %10391 = vmatmul.mubr.bf16.gmra.mrb[100].mxu1 %v13688_v50 }
 0x8db   : > { %11876 = vmatpush3.bf16.msra.mxu1 %v17372_v17  ;;  %10398 = vmatprep.mubr.bf16.mxu1 %v13689_v55  ;;  %v13694_v17 = vld [vmem:[%s17666_s7 + $0xb0] ss:$8 sps:$4 sm:$0xff]  }
 0x8dc   : > { %11877 = vmatprep.subr.bf16.mxu1 %v17435_v14  ;;  %v13706_v14 = vld [vmem:[%s17666_s7 + $0xf0] ss:$8 sps:$4 sm:$0xff]  }
 0x8df   : > { %11878 = vmatpush3.bf16.msra.mxu1 %v17367_v56  ;;  %v13697_v56 = vld [vmem:[%s17666_s7 + $0xc4] ss:$8 sps:$4 sm:$0xff]  }
 0x8e0   : > { %11879 = vmatprep.subr.bf16.mxu1 %v17460_v9 }
 0x8e2   : > { %10399 = vmatmul.mubr.bf16.gmra.mrb[104].mxu1 %v13691_v22 }
 0x8e3   : > { %11880 = vmatpush3.bf16.msra.mxu1 %v17388_v48  ;;  %10406 = vmatprep.mubr.bf16.mxu1 %v13692_v54  ;;  %v13695_v48 = vld [vmem:[%s17666_s7 + $0xc0] ss:$8 sps:$4 sm:$0xff]  }
 0x8e4   : > { %11881 = vmatprep.subr.bf16.mxu1 %v17455_v8 }
 0x8e7   : > { %11882 = vmatpush3.bf16.msra.mxu1 %v17383_v42  ;;  %v13698_v42 = vld [vmem:[%s17666_s7 + $0xd4] ss:$8 sps:$4 sm:$0xff]  }
 0x8e8   : > { %11883 = vmatprep.subr.bf16.mxu1 %v17475_v53 }
 0x8ea   : > { %10407 = vmatmul.mubr.bf16.gmra.mrb[108].mxu1 %v13694_v17 }
 0x8eb   : > { %11884 = vmatpush3.bf16.msra.mxu1 %v17404_v33  ;;  %10504 = vmatprep.mubr.bf16.mxu1 %v13697_v56  ;;  %v13701_v33 = vld [vmem:[%s17666_s7 + $0xe4] ss:$8 sps:$4 sm:$0xff]  }
 0x8ec   : > { %11885 = vmatprep.subr.bf16.mxu1 %v17473_v30 }
 0x8ef   : > { %11886 = vmatpush3.bf16.msra.mxu1 %v17399_v1  ;;  %v13703_v1 = vld [vmem:[%s17666_s7 + $0xe0] ss:$8 sps:$4 sm:$0xff]  }
 0x8f2   : > { %10505 = vmatmul.mubr.bf16.vlgmr.msra.gmra.mrb[112].mxu1 %v13695_v48 }
 0x8f3   : > { %10512 = vmatprep.mubr.bf16.mxu1 %v13698_v42 }
 0x8fa   : > { %10513 = vmatmul.mubr.bf16.gmra.mrb[116].mxu1 %v13700_v20 }
 0x8fb   : > { %10520 = vmatprep.mubr.bf16.mxu1 %v13701_v33 }
 0x902   : > { %10521 = vmatmul.mubr.bf16.gmra.mrb[120].mxu1 %v13703_v1 }
 0x903   : > { %10528 = vmatprep.mubr.bf16.mxu1 %v13704_v34 }
 0x90a   : > { %10529 = vmatmul.mubr.bf16.gmra.mrb[124].mxu1 %v13706_v14 }
 0x965   : > { %v11767_v59 = vpop.f32.mrb[64].mxu1 }
 0x966   : > { %v11768_v25 = vpop.f32.mrb[65].mxu1 }
 0x967   : > { %v11769_v15 = vadd.f32 %v11768_v25, %v11767_v59  ;;  %v11770_v41 = vpop.f32.mrb[66].mxu1 }
 0x968   : > { %v11771_v19 = vpop.f32.mrb[67].mxu1 }
 0x969   : > { %v11772_v44 = vadd.f32 %v11771_v19, %v11770_v41 }
 0x96d   : > { %v11773_v57 = vpop.f32.mrb[68].mxu1 }
 0x96e   : > { %v11774_v36 = vpop.f32.mrb[69].mxu1 }
 0x96f   : > { %v11775_v8 = vadd.f32 %v11774_v36, %v11773_v57  ;;  %v11776_v60 = vpop.f32.mrb[70].mxu1 }
 0x970   : > { %v11777_v32 = vpop.f32.mrb[71].mxu1 }
 0x971   : > { %v11778_v7 = vadd.f32 %v11777_v32, %v11776_v60 }
 0x975   : > { %v11779_v12 = vpop.f32.mrb[72].mxu1 }
 0x976   : > { %v11780_v6 = vpop.f32.mrb[73].mxu1 }
 0x977   : > { %v17622_v9 = vadd.f32 %v11780_v6, %v11779_v12  ;;  %v11782_v27 = vpop.f32.mrb[74].mxu1 }
 0x978   : > { %v11783_v11 = vpop.f32.mrb[75].mxu1 }
 0x979   : > { %v17624_v51 = vadd.f32 %v11783_v11, %v11782_v27 }
 0x97d   : > { %v11785_v24 = vpop.f32.mrb[76].mxu1 }
 0x97e   : > { %v11786_v2 = vpop.f32.mrb[77].mxu1 }
 0x97f   : > { %v17626_v5 = vadd.f32 %v11786_v2, %v11785_v24  ;;  %v11788_v62 = vpop.f32.mrb[78].mxu1 }
 0x980   : > { %v11789_v43 = vpop.f32.mrb[79].mxu1 }
 0x981   : > { %v17628_v28 = vadd.f32 %v11789_v43, %v11788_v62 }
 0x985   : > { %v11807_v49 = vpop.f32.mrb[80].mxu1 }
 0x986   : > { %v11808_v38 = vpop.f32.mrb[81].mxu1 }
 0x987   : > { %v11809_v10 = vadd.f32 %v11808_v38, %v11807_v49  ;;  %v11810_v16 = vpop.f32.mrb[82].mxu1 }
 0x988   : > { %v11811_v0 = vpop.f32.mrb[83].mxu1 }
 0x989   : > { %v10293_v58 = vmax.f32 %v11769_v15, %v11809_v10  ;;  %v11812_v35 = vadd.f32 %v11811_v0, %v11810_v16 }
 0x98b   : > { %v10294_v30 = vmax.f32 %v11772_v44, %v11812_v35 }
 0x98d   : > { %v11813_v53 = vpop.f32.mrb[84].mxu1 }
 0x98e   : > { %v11814_v39 = vpop.f32.mrb[85].mxu1 }
 0x98f   : > { %v11815_v4 = vadd.f32 %v11814_v39, %v11813_v53  ;;  %v11816_v47 = vpop.f32.mrb[86].mxu1 }
 0x990   : > { %v11817_v37 = vpop.f32.mrb[87].mxu1 }
 0x991   : > { %v10295_v45 = vmax.f32 %v11775_v8, %v11815_v4  ;;  %v11818_v21 = vadd.f32 %v11817_v37, %v11816_v47 }
 0x993   : > { %v10296_v29 = vmax.f32 %v11778_v7, %v11818_v21 }
 0x995   : > { %v11819_v40 = vpop.f32.mrb[88].mxu1 }
 0x996   : > { %v11820_v61 = vpop.f32.mrb[89].mxu1 }
 0x997   : > { %v11821_v46 = vadd.f32 %v11820_v61, %v11819_v40  ;;  %v11822_v18 = vpop.f32.mrb[90].mxu1 }
 0x998   : > { %v11823_v31 = vpop.f32.mrb[91].mxu1 }
 0x999   : > { %v10297_v13 = vmax.f32 %v17622_v9, %v11821_v46  ;;  %v11824_v23 = vadd.f32 %v11823_v31, %v11822_v18 }
 0x99b   : > { %v10298_v26 = vmax.f32 %v17624_v51, %v11824_v23 }
 0x99d   : > { %v11825_v63 = vpop.f32.mrb[92].mxu1 }
 0x99e   : > { %v11826_v52 = vpop.f32.mrb[93].mxu1 }
 0x99f   : > { %v11827_v3 = vadd.f32 %v11826_v52, %v11825_v63  ;;  %v11828_v50 = vpop.f32.mrb[94].mxu1 }
 0x9a0   : > { %v11829_v55 = vpop.f32.mrb[95].mxu1 }
 0x9a1   : > { %v10299_v22 = vmax.f32 %v17626_v5, %v11827_v3  ;;  %v11830_v54 = vadd.f32 %v11829_v55, %v11828_v50 }
 0x9a3   : > { %v10300_v17 = vmax.f32 %v17628_v28, %v11830_v54 }
 0x9a5   : > { %v11847_v56 = vpop.f32.mrb[96].mxu1 }
 0x9a6   : > { %v11848_v48 = vpop.f32.mrb[97].mxu1 }
 0x9a7   : > { %v11849_v42 = vadd.f32 %v11848_v48, %v11847_v56  ;;  %v11850_v20 = vpop.f32.mrb[98].mxu1 }
 0x9a8   : > { %v11851_v33 = vpop.f32.mrb[99].mxu1 }
 0x9a9   : > { %v10415_v1 = vmax.f32 %v10293_v58, %v11849_v42  ;;  %v11852_v34 = vadd.f32 %v11851_v33, %v11850_v20 }
 0x9ab   : > { %v10416_v14 = vmax.f32 %v10294_v30, %v11852_v34 }
 0x9ad   : > { %v11853_v59 = vpop.f32.mrb[100].mxu1 }
 0x9ae   : > { %v11854_v25 = vpop.f32.mrb[101].mxu1 }
 0x9af   : > { %v11855_v15 = vadd.f32 %v11854_v25, %v11853_v59  ;;  %v11856_v41 = vpop.f32.mrb[102].mxu1 }
 0x9b0   : > { %v11857_v19 = vpop.f32.mrb[103].mxu1 }
 0x9b1   : > { %v10417_v44 = vmax.f32 %v10295_v45, %v11855_v15  ;;  %v11858_v57 = vadd.f32 %v11857_v19, %v11856_v41 }
 0x9b3   : > { %v10418_v36 = vmax.f32 %v10296_v29, %v11858_v57 }
 0x9b5   : > { %v11859_v8 = vpop.f32.mrb[104].mxu1 }
 0x9b6   : > { %v11860_v60 = vpop.f32.mrb[105].mxu1 }
 0x9b7   : > { %v11861_v32 = vadd.f32 %v11860_v60, %v11859_v8  ;;  %v11862_v7 = vpop.f32.mrb[106].mxu1 }
 0x9b8   : > { %v11863_v12 = vpop.f32.mrb[107].mxu1 }
 0x9b9   : > { %v10419_v6 = vmax.f32 %v10297_v13, %v11861_v32  ;;  %v11864_v9 = vadd.f32 %v11863_v12, %v11862_v7 }
 0x9bb   : > { %v10420_v27 = vmax.f32 %v10298_v26, %v11864_v9 }
 0x9bd   : > { %v11865_v11 = vpop.f32.mrb[108].mxu1 }
 0x9be   : > { %v11866_v51 = vpop.f32.mrb[109].mxu1 }
 0x9bf   : > { %v11867_v24 = vadd.f32 %v11866_v51, %v11865_v11  ;;  %v11868_v2 = vpop.f32.mrb[110].mxu1 }
 0x9c0   : > { %v11869_v5 = vpop.f32.mrb[111].mxu1 }
 0x9c1   : > { %v10421_v62 = vmax.f32 %v10299_v22, %v11867_v24  ;;  %v11870_v43 = vadd.f32 %v11869_v5, %v11868_v2 }
 0x9c3   : > { %v10422_v28 = vmax.f32 %v10300_v17, %v11870_v43 }
 0x9c5   : > { %v11887_v49 = vpop.f32.mrb[112].mxu1 }
 0x9c6   : > { %v11888_v38 = vpop.f32.mrb[113].mxu1 }
 0x9c7   : > { %v11889_v10 = vadd.f32 %v11888_v38, %v11887_v49  ;;  %v11890_v16 = vpop.f32.mrb[114].mxu1 }
 0x9c8   : > { %v11891_v0 = vpop.f32.mrb[115].mxu1 }
 0x9c9   : > { %v10537_v58 = vmax.f32 %v10415_v1, %v11889_v10  ;;  %v11892_v35 = vadd.f32 %v11891_v0, %v11890_v16 }
 0x9cb   : > { %v11205_v30 = vpack.c.bf16 %v10537_v58, %v10537_v58  ;;  %v10538_v53 = vmax.f32 %v10416_v14, %v11892_v35 }
 0x9cd   : > { %10578 = vst.msk [vmem:[%s17638_s14] sm:$0xf] %vm10577_vm15, %v11205_v30  ;;  %v11206_v39 = vpack.c.bf16 %v10538_v53, %v10538_v53  ;;  %v11893_v4 = vpop.f32.mrb[116].mxu1 }
 0x9ce   : > { %v11894_v47 = vpop.f32.mrb[117].mxu1 }
 0x9cf   : > { %10579 = vst.msk [vmem:[%s17638_s14 + $0x4] sm:$0xf] %vm10577_vm15, %v11206_v39  ;;  %v11895_v37 = vadd.f32 %v11894_v47, %v11893_v4  ;;  %v11896_v45 = vpop.f32.mrb[118].mxu1 }
 0x9d0   : > { %v11897_v21 = vpop.f32.mrb[119].mxu1 }
 0x9d1   : > { %v10539_v29 = vmax.f32 %v10417_v44, %v11895_v37  ;;  %v11898_v40 = vadd.f32 %v11897_v21, %v11896_v45 }
 0x9d3   : > { %v11207_v61 = vpack.c.bf16 %v10539_v29, %v10539_v29  ;;  %v10540_v46 = vmax.f32 %v10418_v36, %v11898_v40 }
 0x9d5   : > { %10580 = vst.msk [vmem:[%s17638_s14 + $0x8] sm:$0xf] %vm10577_vm15, %v11207_v61  ;;  %v11208_v18 = vpack.c.bf16 %v10540_v46, %v10540_v46  ;;  %v11899_v31 = vpop.f32.mrb[120].mxu1 }
 0x9d6   : > { %v11900_v13 = vpop.f32.mrb[121].mxu1 }
 0x9d7   : > { %10581 = vst.msk [vmem:[%s17638_s14 + $0xc] sm:$0xf] %vm10577_vm15, %v11208_v18  ;;  %v11901_v23 = vadd.f32 %v11900_v13, %v11899_v31  ;;  %v11902_v26 = vpop.f32.mrb[122].mxu1 }
 0x9d8   : > { %v11903_v63 = vpop.f32.mrb[123].mxu1 }
 0x9d9   : > { %v10541_v52 = vmax.f32 %v10419_v6, %v11901_v23  ;;  %v11904_v3 = vadd.f32 %v11903_v63, %v11902_v26 }
 0x9db   : > { %v11209_v50 = vpack.c.bf16 %v10541_v52, %v10541_v52  ;;  %v10542_v55 = vmax.f32 %v10420_v27, %v11904_v3 }
 0x9dd   : > { %10582 = vst.msk [vmem:[%s17638_s14 + $0x10] sm:$0xf] %vm10577_vm15, %v11209_v50  ;;  %v11210_v22 = vpack.c.bf16 %v10542_v55, %v10542_v55  ;;  %v11905_v54 = vpop.f32.mrb[124].mxu1 }
 0x9de   : > { %v11906_v17 = vpop.f32.mrb[125].mxu1 }
 0x9df   : > { %10583 = vst.msk [vmem:[%s17638_s14 + $0x14] sm:$0xf] %vm10577_vm15, %v11210_v22  ;;  %v11907_v56 = vadd.f32 %v11906_v17, %v11905_v54  ;;  %v11908_v48 = vpop.f32.mrb[126].mxu1 }
 0x9e0   : > { %v11909_v42 = vpop.f32.mrb[127].mxu1 }
 0x9e1   : > { %v10543_v20 = vmax.f32 %v10421_v62, %v11907_v56  ;;  %v11910_v33 = vadd.f32 %v11909_v42, %v11908_v48 }
 0x9e3   : > { %v11211_v1 = vpack.c.bf16 %v10543_v20, %v10543_v20  ;;  %v10544_v34 = vmax.f32 %v10422_v28, %v11910_v33 }
 0x9e5   : > { %10584 = vst.msk [vmem:[%s17638_s14 + $0x18] sm:$0xf] %vm10577_vm15, %v11211_v1  ;;  %v11212_v14 = vpack.c.bf16 %v10544_v34, %v10544_v34 }
 0x9e7   : > { %10585 = vst.msk [vmem:[%s17638_s14 + $0x1c] sm:$0xf] %vm10577_vm15, %v11212_v14 }
 0x9e8 PF: > { %s20_s27 = sadd.s32 1, %s13777_s27  }
 0x9e9   : > { %p17_p5 = scmp.ge.s32.totalorder %s20_s27, 4  }
 0x9eb   :  { %19 = sbr.rel (!%p17_p5) target bundleno = 2 (0x2), region = 118 }
 0x9f2   :  { %10607 = vsyncpa [#allocation6], 1 }
 0x9f3   :  { %10609 = vsyncpa [#allocation6 + $0x1], 1 }
 0x9f4   :  { %10610 = vsyncpa [#allocation8], 1 }

</bundles_post_ra>
